<compile_context>
chip_gen: v7x
topology: tpu7x:2x2x1
jax: 0.10.0
libtpu: 0.0.40
codegen_flags: <defaults>
</compile_context>

<pallas_src>
import functools

import numpy as np
import jax
import jax.numpy as jnp
from jax.experimental import pallas as pl
from jax.experimental.pallas import tpu as pltpu


def _make_tap_masks(H, W):
    """(9, H*W) float32 validity masks (one per 3x3 tap), built at trace time."""
    HW = H * W
    hh = np.arange(HW) // W
    ww = np.arange(HW) % W
    masks = np.zeros((9, HW), np.float32)
    for kh in range(3):
        for kw in range(3):
            dh, dw = kh - 1, kw - 1
            valid = ((hh + dh >= 0) & (hh + dh < H) &
                     (ww + dw >= 0) & (ww + dw < W))
            masks[kh * 3 + kw] = valid.astype(np.float32)
    return masks


def _resblock_kernel(x_ref, mask_ref, w1_ref, b1_ref, w2_ref, b2_ref, o_ref,
                     *, H, W):
    """Fused residual block for one image, laid out as (C, H*W)."""
    C = x_ref.shape[1]
    HW = H * W

    def conv3x3(inp, w_ref, b_ref):
        # inp: (C, HW) float32.  Returns conv3x3(inp) + bias, shape (C, HW).
        taps = []
        for kh in range(3):
            for kw in range(3):
                d = (kh - 1) * W + (kw - 1)
                if d == 0:
                    t = inp
                else:
                    # rolled[:, s] == inp[:, (s + d) mod HW]; boundary garbage is
                    # zeroed by the precomputed tap mask.
                    t = pltpu.roll(inp, shift=(-d) % HW, axis=1)
                    t = t * mask_ref[kh * 3 + kw: kh * 3 + kw + 1, :]
                taps.append(t)
        # Per-(tap, input-channel) rows, reused for every output channel.
        tap_rows = [[t[ci:ci + 1, :] for ci in range(C)] for t in taps]
        rows = []
        for co in range(C):
            acc = jnp.full((1, HW), b_ref[co], dtype=jnp.float32)
            for ci in range(C):
                for k in range(9):
                    w_scalar = w_ref[(co * C + ci) * 9 + k]   # SMEM scalar splat
                    acc = acc + w_scalar * tap_rows[k][ci]
            rows.append(acc)
        return jnp.concatenate(rows, axis=0)

    x = x_ref[0].astype(jnp.float32)                      # (C, HW)
    y = jnp.maximum(conv3x3(x, w1_ref, b1_ref), 0.0)      # relu(conv1(x))
    z = conv3x3(y, w2_ref, b2_ref) + x                    # conv2(y) + residual
    o_ref[0] = jnp.maximum(z, 0.0).astype(o_ref.dtype)    # final relu


def residual_block_pallas(x_nchw, w1_oihw, b1, w2_oihw, b2):
    """Forward pass of ResidualBlock.  x is NCHW (PyTorch convention)."""
    N, C, H, W = x_nchw.shape
    HW = H * W

    x_flat = x_nchw.reshape(N, C, HW)                     # lane-dense, no transpose
    masks = jnp.asarray(_make_tap_masks(H, W))            # (9, HW) constant
    w1_flat = w1_oihw.reshape(-1).astype(jnp.float32)     # (C*C*9,) row-major (co,ci,kh,kw)
    w2_flat = w2_oihw.reshape(-1).astype(jnp.float32)
    b1_f = b1.astype(jnp.float32)
    b2_f = b2.astype(jnp.float32)

    kernel = functools.partial(_resblock_kernel, H=H, W=W)
    out = pl.pallas_call(
        kernel,
        out_shape=jax.ShapeDtypeStruct((N, C, HW), x_nchw.dtype),
        grid=(N,),
        in_specs=[
            pl.BlockSpec((1, C, HW), lambda n: (n, 0, 0)),      # image tile (VMEM)
            pl.BlockSpec((9, HW), lambda n: (0, 0)),            # tap masks (VMEM)
            pl.BlockSpec(memory_space=pltpu.MemorySpace.SMEM),  # conv1 weights
            pl.BlockSpec(memory_space=pltpu.MemorySpace.SMEM),  # conv1 bias
            pl.BlockSpec(memory_space=pltpu.MemorySpace.SMEM),  # conv2 weights
            pl.BlockSpec(memory_space=pltpu.MemorySpace.SMEM),  # conv2 bias
        ],
        out_specs=pl.BlockSpec((1, C, HW), lambda n: (n, 0, 0)),
        compiler_params=pltpu.CompilerParams(
            dimension_semantics=("parallel",)),                 # v7x: split batch over 2 TCs
    )(x_flat, masks, w1_flat, b1_f, w2_flat, b2_f)
    return out.reshape(N, C, H, W)


def residual_block_ref(x, w1, b1, w2, b2):
    """Pure-JAX reference (NCHW), mirrors the PyTorch module exactly."""
    dn = ("NCHW", "OIHW", "NCHW")
    y = jax.lax.conv_general_dilated(x, w1, (1, 1), ((1, 1), (1, 1)),
                                     dimension_numbers=dn)
    y = jax.nn.relu(y + b1[None, :, None, None])
    y = jax.lax.conv_general_dilated(y, w2, (1, 1), ((1, 1), (1, 1)),
                                     dimension_numbers=dn)
    y = y + b2[None, :, None, None]
    return jax.nn.relu(y + x)


if __name__ == "__main__":
    N, C, H, W = 2, 4, 16, 16

    key = jax.random.PRNGKey(0)
    kx, kw1, kb1, kw2, kb2 = jax.random.split(key, 5)

    x = jax.random.normal(kx, (N, C, H, W), dtype=jnp.float32)
    # Shapes match torch.nn.Conv2d(C, C, kernel_size=3, padding=1).
    w1 = 0.1 * jax.random.normal(kw1, (C, C, 3, 3), dtype=jnp.float32)
    b1 = 0.1 * jax.random.normal(kb1, (C,), dtype=jnp.float32)
    w2 = 0.1 * jax.random.normal(kw2, (C, C, 3, 3), dtype=jnp.float32)
    b2 = 0.1 * jax.random.normal(kb2, (C,), dtype=jnp.float32)

    out = jax.block_until_ready(residual_block_pallas(x, w1, b1, w2, b2))
    ref = jax.block_until_ready(residual_block_ref(x, w1, b1, w2, b2))

    assert out.shape == (N, C, H, W), out.shape
    assert jnp.allclose(out, ref, atol=1e-4, rtol=1e-4), "mismatch vs reference"

    print("KERNEL_OK")
</pallas_src>

<mosaic_0001>
module attributes {stable_mosaic.version = 11 : i64} {
  func.func @_resblock_kernel(%arg0: i32, %arg1: memref<1x4x256xf32, #tpu.memory_space<vmem>>, %arg2: memref<9x256xf32, #tpu.memory_space<vmem>>, %arg3: memref<144xf32, #tpu.memory_space<smem>>, %arg4: memref<4xf32, #tpu.memory_space<smem>>, %arg5: memref<144xf32, #tpu.memory_space<smem>>, %arg6: memref<4xf32, #tpu.memory_space<smem>>, %arg7: memref<1x4x256xf32, #tpu.memory_space<vmem>>) attributes {dimension_semantics = [#tpu.dimension_semantics<parallel>], iteration_bounds = array<i64: 2>, scalar_prefetch = 0 : i64, scratch_operands = 0 : i64, tpu.core_type = #tpu.core_type<tc>, window_params = [{transform_indices = @transform_0, window_bounds = array<i64: 1, 4, 256>}, {pipeline_mode = #tpu.pipeline_mode<synchronous>, transform_indices = @transform_1, window_bounds = array<i64: 9, 256>}, {transform_indices = @transform_2, window_bounds = array<i64: 144>}, {transform_indices = @transform_3, window_bounds = array<i64: 4>}, {transform_indices = @transform_4, window_bounds = array<i64: 144>}, {transform_indices = @transform_5, window_bounds = array<i64: 4>}, {transform_indices = @transform_6, window_bounds = array<i64: 1, 4, 256>}]} {
    %c0 = arith.constant 0 : index
    %c0_0 = arith.constant 0 : index
    %c0_1 = arith.constant 0 : index
    %0 = vector.load %arg1[%c0, %c0_0, %c0_1] : memref<1x4x256xf32, #tpu.memory_space<vmem>>, vector<1x4x256xf32>
    %1 = vector.shape_cast %0 : vector<1x4x256xf32> to vector<4x256xf32>
    %c17_i32 = arith.constant 17 : i32
    %2 = tpu.dynamic_rotate %1 by %c17_i32 dim 1 : vector<4x256xf32>, i32 -> vector<4x256xf32>
    %c0_2 = arith.constant 0 : index
    %c0_3 = arith.constant 0 : index
    %3 = vector.load %arg2[%c0_2, %c0_3] : memref<9x256xf32, #tpu.memory_space<vmem>>, vector<1x256xf32>
    %4 = vector.broadcast %3 : vector<1x256xf32> to vector<4x256xf32>
    %5 = arith.mulf %2, %4 : vector<4x256xf32>
    %c16_i32 = arith.constant 16 : i32
    %6 = tpu.dynamic_rotate %1 by %c16_i32 dim 1 : vector<4x256xf32>, i32 -> vector<4x256xf32>
    %c1 = arith.constant 1 : index
    %c0_4 = arith.constant 0 : index
    %7 = vector.load %arg2[%c1, %c0_4] : memref<9x256xf32, #tpu.memory_space<vmem>>, vector<1x256xf32>
    %8 = vector.broadcast %7 : vector<1x256xf32> to vector<4x256xf32>
    %9 = arith.mulf %6, %8 : vector<4x256xf32>
    %c15_i32 = arith.constant 15 : i32
    %10 = tpu.dynamic_rotate %1 by %c15_i32 dim 1 : vector<4x256xf32>, i32 -> vector<4x256xf32>
    %c2 = arith.constant 2 : index
    %c0_5 = arith.constant 0 : index
    %11 = vector.load %arg2[%c2, %c0_5] : memref<9x256xf32, #tpu.memory_space<vmem>>, vector<1x256xf32>
    %12 = vector.broadcast %11 : vector<1x256xf32> to vector<4x256xf32>
    %13 = arith.mulf %10, %12 : vector<4x256xf32>
    %c1_i32 = arith.constant 1 : i32
    %14 = tpu.dynamic_rotate %1 by %c1_i32 dim 1 : vector<4x256xf32>, i32 -> vector<4x256xf32>
    %c3 = arith.constant 3 : index
    %c0_6 = arith.constant 0 : index
    %15 = vector.load %arg2[%c3, %c0_6] : memref<9x256xf32, #tpu.memory_space<vmem>>, vector<1x256xf32>
    %16 = vector.broadcast %15 : vector<1x256xf32> to vector<4x256xf32>
    %17 = arith.mulf %14, %16 : vector<4x256xf32>
    %c255_i32 = arith.constant 255 : i32
    %18 = tpu.dynamic_rotate %1 by %c255_i32 dim 1 : vector<4x256xf32>, i32 -> vector<4x256xf32>
    %c5 = arith.constant 5 : index
    %c0_7 = arith.constant 0 : index
    %19 = vector.load %arg2[%c5, %c0_7] : memref<9x256xf32, #tpu.memory_space<vmem>>, vector<1x256xf32>
    %20 = vector.broadcast %19 : vector<1x256xf32> to vector<4x256xf32>
    %21 = arith.mulf %18, %20 : vector<4x256xf32>
    %c241_i32 = arith.constant 241 : i32
    %22 = tpu.dynamic_rotate %1 by %c241_i32 dim 1 : vector<4x256xf32>, i32 -> vector<4x256xf32>
    %c6 = arith.constant 6 : index
    %c0_8 = arith.constant 0 : index
    %23 = vector.load %arg2[%c6, %c0_8] : memref<9x256xf32, #tpu.memory_space<vmem>>, vector<1x256xf32>
    %24 = vector.broadcast %23 : vector<1x256xf32> to vector<4x256xf32>
    %25 = arith.mulf %22, %24 : vector<4x256xf32>
    %c240_i32 = arith.constant 240 : i32
    %26 = tpu.dynamic_rotate %1 by %c240_i32 dim 1 : vector<4x256xf32>, i32 -> vector<4x256xf32>
    %c7 = arith.constant 7 : index
    %c0_9 = arith.constant 0 : index
    %27 = vector.load %arg2[%c7, %c0_9] : memref<9x256xf32, #tpu.memory_space<vmem>>, vector<1x256xf32>
    %28 = vector.broadcast %27 : vector<1x256xf32> to vector<4x256xf32>
    %29 = arith.mulf %26, %28 : vector<4x256xf32>
    %c239_i32 = arith.constant 239 : i32
    %30 = tpu.dynamic_rotate %1 by %c239_i32 dim 1 : vector<4x256xf32>, i32 -> vector<4x256xf32>
    %c8 = arith.constant 8 : index
    %c0_10 = arith.constant 0 : index
    %31 = vector.load %arg2[%c8, %c0_10] : memref<9x256xf32, #tpu.memory_space<vmem>>, vector<1x256xf32>
    %32 = vector.broadcast %31 : vector<1x256xf32> to vector<4x256xf32>
    %33 = arith.mulf %30, %32 : vector<4x256xf32>
    %34 = vector.extract_strided_slice %5 {offsets = [0, 0], sizes = [1, 256], strides = [1, 1]} : vector<4x256xf32> to vector<1x256xf32>
    %35 = vector.extract_strided_slice %5 {offsets = [1, 0], sizes = [1, 256], strides = [1, 1]} : vector<4x256xf32> to vector<1x256xf32>
    %36 = vector.extract_strided_slice %5 {offsets = [2, 0], sizes = [1, 256], strides = [1, 1]} : vector<4x256xf32> to vector<1x256xf32>
    %37 = vector.extract_strided_slice %5 {offsets = [3, 0], sizes = [1, 256], strides = [1, 1]} : vector<4x256xf32> to vector<1x256xf32>
    %38 = vector.extract_strided_slice %9 {offsets = [0, 0], sizes = [1, 256], strides = [1, 1]} : vector<4x256xf32> to vector<1x256xf32>
    %39 = vector.extract_strided_slice %9 {offsets = [1, 0], sizes = [1, 256], strides = [1, 1]} : vector<4x256xf32> to vector<1x256xf32>
    %40 = vector.extract_strided_slice %9 {offsets = [2, 0], sizes = [1, 256], strides = [1, 1]} : vector<4x256xf32> to vector<1x256xf32>
    %41 = vector.extract_strided_slice %9 {offsets = [3, 0], sizes = [1, 256], strides = [1, 1]} : vector<4x256xf32> to vector<1x256xf32>
    %42 = vector.extract_strided_slice %13 {offsets = [0, 0], sizes = [1, 256], strides = [1, 1]} : vector<4x256xf32> to vector<1x256xf32>
    %43 = vector.extract_strided_slice %13 {offsets = [1, 0], sizes = [1, 256], strides = [1, 1]} : vector<4x256xf32> to vector<1x256xf32>
    %44 = vector.extract_strided_slice %13 {offsets = [2, 0], sizes = [1, 256], strides = [1, 1]} : vector<4x256xf32> to vector<1x256xf32>
    %45 = vector.extract_strided_slice %13 {offsets = [3, 0], sizes = [1, 256], strides = [1, 1]} : vector<4x256xf32> to vector<1x256xf32>
    %46 = vector.extract_strided_slice %17 {offsets = [0, 0], sizes = [1, 256], strides = [1, 1]} : vector<4x256xf32> to vector<1x256xf32>
    %47 = vector.extract_strided_slice %17 {offsets = [1, 0], sizes = [1, 256], strides = [1, 1]} : vector<4x256xf32> to vector<1x256xf32>
    %48 = vector.extract_strided_slice %17 {offsets = [2, 0], sizes = [1, 256], strides = [1, 1]} : vector<4x256xf32> to vector<1x256xf32>
    %49 = vector.extract_strided_slice %17 {offsets = [3, 0], sizes = [1, 256], strides = [1, 1]} : vector<4x256xf32> to vector<1x256xf32>
    %50 = vector.extract_strided_slice %1 {offsets = [0, 0], sizes = [1, 256], strides = [1, 1]} : vector<4x256xf32> to vector<1x256xf32>
    %51 = vector.extract_strided_slice %1 {offsets = [1, 0], sizes = [1, 256], strides = [1, 1]} : vector<4x256xf32> to vector<1x256xf32>
    %52 = vector.extract_strided_slice %1 {offsets = [2, 0], sizes = [1, 256], strides = [1, 1]} : vector<4x256xf32> to vector<1x256xf32>
    %53 = vector.extract_strided_slice %1 {offsets = [3, 0], sizes = [1, 256], strides = [1, 1]} : vector<4x256xf32> to vector<1x256xf32>
    %54 = vector.extract_strided_slice %21 {offsets = [0, 0], sizes = [1, 256], strides = [1, 1]} : vector<4x256xf32> to vector<1x256xf32>
    %55 = vector.extract_strided_slice %21 {offsets = [1, 0], sizes = [1, 256], strides = [1, 1]} : vector<4x256xf32> to vector<1x256xf32>
    %56 = vector.extract_strided_slice %21 {offsets = [2, 0], sizes = [1, 256], strides = [1, 1]} : vector<4x256xf32> to vector<1x256xf32>
    %57 = vector.extract_strided_slice %21 {offsets = [3, 0], sizes = [1, 256], strides = [1, 1]} : vector<4x256xf32> to vector<1x256xf32>
    %58 = vector.extract_strided_slice %25 {offsets = [0, 0], sizes = [1, 256], strides = [1, 1]} : vector<4x256xf32> to vector<1x256xf32>
    %59 = vector.extract_strided_slice %25 {offsets = [1, 0], sizes = [1, 256], strides = [1, 1]} : vector<4x256xf32> to vector<1x256xf32>
    %60 = vector.extract_strided_slice %25 {offsets = [2, 0], sizes = [1, 256], strides = [1, 1]} : vector<4x256xf32> to vector<1x256xf32>
    %61 = vector.extract_strided_slice %25 {offsets = [3, 0], sizes = [1, 256], strides = [1, 1]} : vector<4x256xf32> to vector<1x256xf32>
    %62 = vector.extract_strided_slice %29 {offsets = [0, 0], sizes = [1, 256], strides = [1, 1]} : vector<4x256xf32> to vector<1x256xf32>
    %63 = vector.extract_strided_slice %29 {offsets = [1, 0], sizes = [1, 256], strides = [1, 1]} : vector<4x256xf32> to vector<1x256xf32>
    %64 = vector.extract_strided_slice %29 {offsets = [2, 0], sizes = [1, 256], strides = [1, 1]} : vector<4x256xf32> to vector<1x256xf32>
    %65 = vector.extract_strided_slice %29 {offsets = [3, 0], sizes = [1, 256], strides = [1, 1]} : vector<4x256xf32> to vector<1x256xf32>
    %66 = vector.extract_strided_slice %33 {offsets = [0, 0], sizes = [1, 256], strides = [1, 1]} : vector<4x256xf32> to vector<1x256xf32>
    %67 = vector.extract_strided_slice %33 {offsets = [1, 0], sizes = [1, 256], strides = [1, 1]} : vector<4x256xf32> to vector<1x256xf32>
    %68 = vector.extract_strided_slice %33 {offsets = [2, 0], sizes = [1, 256], strides = [1, 1]} : vector<4x256xf32> to vector<1x256xf32>
    %69 = vector.extract_strided_slice %33 {offsets = [3, 0], sizes = [1, 256], strides = [1, 1]} : vector<4x256xf32> to vector<1x256xf32>
    %c0_11 = arith.constant 0 : index
    %70 = memref.load %arg4[%c0_11] : memref<4xf32, #tpu.memory_space<smem>>
    %71 = vector.broadcast %70 : f32 to vector<1x256xf32>
    %c0_12 = arith.constant 0 : index
    %72 = memref.load %arg3[%c0_12] : memref<144xf32, #tpu.memory_space<smem>>
    %73 = vector.broadcast %72 : f32 to vector<1x256xf32>
    %74 = arith.mulf %73, %34 : vector<1x256xf32>
    %75 = arith.addf %71, %74 : vector<1x256xf32>
    %c1_13 = arith.constant 1 : index
    %76 = memref.load %arg3[%c1_13] : memref<144xf32, #tpu.memory_space<smem>>
    %77 = vector.broadcast %76 : f32 to vector<1x256xf32>
    %78 = arith.mulf %77, %38 : vector<1x256xf32>
    %79 = arith.addf %75, %78 : vector<1x256xf32>
    %c2_14 = arith.constant 2 : index
    %80 = memref.load %arg3[%c2_14] : memref<144xf32, #tpu.memory_space<smem>>
    %81 = vector.broadcast %80 : f32 to vector<1x256xf32>
    %82 = arith.mulf %81, %42 : vector<1x256xf32>
    %83 = arith.addf %79, %82 : vector<1x256xf32>
    %c3_15 = arith.constant 3 : index
    %84 = memref.load %arg3[%c3_15] : memref<144xf32, #tpu.memory_space<smem>>
    %85 = vector.broadcast %84 : f32 to vector<1x256xf32>
    %86 = arith.mulf %85, %46 : vector<1x256xf32>
    %87 = arith.addf %83, %86 : vector<1x256xf32>
    %c4 = arith.constant 4 : index
    %88 = memref.load %arg3[%c4] : memref<144xf32, #tpu.memory_space<smem>>
    %89 = vector.broadcast %88 : f32 to vector<1x256xf32>
    %90 = arith.mulf %89, %50 : vector<1x256xf32>
    %91 = arith.addf %87, %90 : vector<1x256xf32>
    %c5_16 = arith.constant 5 : index
    %92 = memref.load %arg3[%c5_16] : memref<144xf32, #tpu.memory_space<smem>>
    %93 = vector.broadcast %92 : f32 to vector<1x256xf32>
    %94 = arith.mulf %93, %54 : vector<1x256xf32>
    %95 = arith.addf %91, %94 : vector<1x256xf32>
    %c6_17 = arith.constant 6 : index
    %96 = memref.load %arg3[%c6_17] : memref<144xf32, #tpu.memory_space<smem>>
    %97 = vector.broadcast %96 : f32 to vector<1x256xf32>
    %98 = arith.mulf %97, %58 : vector<1x256xf32>
    %99 = arith.addf %95, %98 : vector<1x256xf32>
    %c7_18 = arith.constant 7 : index
    %100 = memref.load %arg3[%c7_18] : memref<144xf32, #tpu.memory_space<smem>>
    %101 = vector.broadcast %100 : f32 to vector<1x256xf32>
    %102 = arith.mulf %101, %62 : vector<1x256xf32>
    %103 = arith.addf %99, %102 : vector<1x256xf32>
    %c8_19 = arith.constant 8 : index
    %104 = memref.load %arg3[%c8_19] : memref<144xf32, #tpu.memory_space<smem>>
    %105 = vector.broadcast %104 : f32 to vector<1x256xf32>
    %106 = arith.mulf %105, %66 : vector<1x256xf32>
    %107 = arith.addf %103, %106 : vector<1x256xf32>
    %c9 = arith.constant 9 : index
    %108 = memref.load %arg3[%c9] : memref<144xf32, #tpu.memory_space<smem>>
    %109 = vector.broadcast %108 : f32 to vector<1x256xf32>
    %110 = arith.mulf %109, %35 : vector<1x256xf32>
    %111 = arith.addf %107, %110 : vector<1x256xf32>
    %c10 = arith.constant 10 : index
    %112 = memref.load %arg3[%c10] : memref<144xf32, #tpu.memory_space<smem>>
    %113 = vector.broadcast %112 : f32 to vector<1x256xf32>
    %114 = arith.mulf %113, %39 : vector<1x256xf32>
    %115 = arith.addf %111, %114 : vector<1x256xf32>
    %c11 = arith.constant 11 : index
    %116 = memref.load %arg3[%c11] : memref<144xf32, #tpu.memory_space<smem>>
    %117 = vector.broadcast %116 : f32 to vector<1x256xf32>
    %118 = arith.mulf %117, %43 : vector<1x256xf32>
    %119 = arith.addf %115, %118 : vector<1x256xf32>
    %c12 = arith.constant 12 : index
    %120 = memref.load %arg3[%c12] : memref<144xf32, #tpu.memory_space<smem>>
    %121 = vector.broadcast %120 : f32 to vector<1x256xf32>
    %122 = arith.mulf %121, %47 : vector<1x256xf32>
    %123 = arith.addf %119, %122 : vector<1x256xf32>
    %c13 = arith.constant 13 : index
    %124 = memref.load %arg3[%c13] : memref<144xf32, #tpu.memory_space<smem>>
    %125 = vector.broadcast %124 : f32 to vector<1x256xf32>
    %126 = arith.mulf %125, %51 : vector<1x256xf32>
    %127 = arith.addf %123, %126 : vector<1x256xf32>
    %c14 = arith.constant 14 : index
    %128 = memref.load %arg3[%c14] : memref<144xf32, #tpu.memory_space<smem>>
    %129 = vector.broadcast %128 : f32 to vector<1x256xf32>
    %130 = arith.mulf %129, %55 : vector<1x256xf32>
    %131 = arith.addf %127, %130 : vector<1x256xf32>
    %c15 = arith.constant 15 : index
    %132 = memref.load %arg3[%c15] : memref<144xf32, #tpu.memory_space<smem>>
    %133 = vector.broadcast %132 : f32 to vector<1x256xf32>
    %134 = arith.mulf %133, %59 : vector<1x256xf32>
    %135 = arith.addf %131, %134 : vector<1x256xf32>
    %c16 = arith.constant 16 : index
    %136 = memref.load %arg3[%c16] : memref<144xf32, #tpu.memory_space<smem>>
    %137 = vector.broadcast %136 : f32 to vector<1x256xf32>
    %138 = arith.mulf %137, %63 : vector<1x256xf32>
    %139 = arith.addf %135, %138 : vector<1x256xf32>
    %c17 = arith.constant 17 : index
    %140 = memref.load %arg3[%c17] : memref<144xf32, #tpu.memory_space<smem>>
    %141 = vector.broadcast %140 : f32 to vector<1x256xf32>
    %142 = arith.mulf %141, %67 : vector<1x256xf32>
    %143 = arith.addf %139, %142 : vector<1x256xf32>
    %c18 = arith.constant 18 : index
    %144 = memref.load %arg3[%c18] : memref<144xf32, #tpu.memory_space<smem>>
    %145 = vector.broadcast %144 : f32 to vector<1x256xf32>
    %146 = arith.mulf %145, %36 : vector<1x256xf32>
    %147 = arith.addf %143, %146 : vector<1x256xf32>
    %c19 = arith.constant 19 : index
    %148 = memref.load %arg3[%c19] : memref<144xf32, #tpu.memory_space<smem>>
    %149 = vector.broadcast %148 : f32 to vector<1x256xf32>
    %150 = arith.mulf %149, %40 : vector<1x256xf32>
    %151 = arith.addf %147, %150 : vector<1x256xf32>
    %c20 = arith.constant 20 : index
    %152 = memref.load %arg3[%c20] : memref<144xf32, #tpu.memory_space<smem>>
    %153 = vector.broadcast %152 : f32 to vector<1x256xf32>
    %154 = arith.mulf %153, %44 : vector<1x256xf32>
    %155 = arith.addf %151, %154 : vector<1x256xf32>
    %c21 = arith.constant 21 : index
    %156 = memref.load %arg3[%c21] : memref<144xf32, #tpu.memory_space<smem>>
    %157 = vector.broadcast %156 : f32 to vector<1x256xf32>
    %158 = arith.mulf %157, %48 : vector<1x256xf32>
    %159 = arith.addf %155, %158 : vector<1x256xf32>
    %c22 = arith.constant 22 : index
    %160 = memref.load %arg3[%c22] : memref<144xf32, #tpu.memory_space<smem>>
    %161 = vector.broadcast %160 : f32 to vector<1x256xf32>
    %162 = arith.mulf %161, %52 : vector<1x256xf32>
    %163 = arith.addf %159, %162 : vector<1x256xf32>
    %c23 = arith.constant 23 : index
    %164 = memref.load %arg3[%c23] : memref<144xf32, #tpu.memory_space<smem>>
    %165 = vector.broadcast %164 : f32 to vector<1x256xf32>
    %166 = arith.mulf %165, %56 : vector<1x256xf32>
    %167 = arith.addf %163, %166 : vector<1x256xf32>
    %c24 = arith.constant 24 : index
    %168 = memref.load %arg3[%c24] : memref<144xf32, #tpu.memory_space<smem>>
    %169 = vector.broadcast %168 : f32 to vector<1x256xf32>
    %170 = arith.mulf %169, %60 : vector<1x256xf32>
    %171 = arith.addf %167, %170 : vector<1x256xf32>
    %c25 = arith.constant 25 : index
    %172 = memref.load %arg3[%c25] : memref<144xf32, #tpu.memory_space<smem>>
    %173 = vector.broadcast %172 : f32 to vector<1x256xf32>
    %174 = arith.mulf %173, %64 : vector<1x256xf32>
    %175 = arith.addf %171, %174 : vector<1x256xf32>
    %c26 = arith.constant 26 : index
    %176 = memref.load %arg3[%c26] : memref<144xf32, #tpu.memory_space<smem>>
    %177 = vector.broadcast %176 : f32 to vector<1x256xf32>
    %178 = arith.mulf %177, %68 : vector<1x256xf32>
    %179 = arith.addf %175, %178 : vector<1x256xf32>
    %c27 = arith.constant 27 : index
    %180 = memref.load %arg3[%c27] : memref<144xf32, #tpu.memory_space<smem>>
    %181 = vector.broadcast %180 : f32 to vector<1x256xf32>
    %182 = arith.mulf %181, %37 : vector<1x256xf32>
    %183 = arith.addf %179, %182 : vector<1x256xf32>
    %c28 = arith.constant 28 : index
    %184 = memref.load %arg3[%c28] : memref<144xf32, #tpu.memory_space<smem>>
    %185 = vector.broadcast %184 : f32 to vector<1x256xf32>
    %186 = arith.mulf %185, %41 : vector<1x256xf32>
    %187 = arith.addf %183, %186 : vector<1x256xf32>
    %c29 = arith.constant 29 : index
    %188 = memref.load %arg3[%c29] : memref<144xf32, #tpu.memory_space<smem>>
    %189 = vector.broadcast %188 : f32 to vector<1x256xf32>
    %190 = arith.mulf %189, %45 : vector<1x256xf32>
    %191 = arith.addf %187, %190 : vector<1x256xf32>
    %c30 = arith.constant 30 : index
    %192 = memref.load %arg3[%c30] : memref<144xf32, #tpu.memory_space<smem>>
    %193 = vector.broadcast %192 : f32 to vector<1x256xf32>
    %194 = arith.mulf %193, %49 : vector<1x256xf32>
    %195 = arith.addf %191, %194 : vector<1x256xf32>
    %c31 = arith.constant 31 : index
    %196 = memref.load %arg3[%c31] : memref<144xf32, #tpu.memory_space<smem>>
    %197 = vector.broadcast %196 : f32 to vector<1x256xf32>
    %198 = arith.mulf %197, %53 : vector<1x256xf32>
    %199 = arith.addf %195, %198 : vector<1x256xf32>
    %c32 = arith.constant 32 : index
    %200 = memref.load %arg3[%c32] : memref<144xf32, #tpu.memory_space<smem>>
    %201 = vector.broadcast %200 : f32 to vector<1x256xf32>
    %202 = arith.mulf %201, %57 : vector<1x256xf32>
    %203 = arith.addf %199, %202 : vector<1x256xf32>
    %c33 = arith.constant 33 : index
    %204 = memref.load %arg3[%c33] : memref<144xf32, #tpu.memory_space<smem>>
    %205 = vector.broadcast %204 : f32 to vector<1x256xf32>
    %206 = arith.mulf %205, %61 : vector<1x256xf32>
    %207 = arith.addf %203, %206 : vector<1x256xf32>
    %c34 = arith.constant 34 : index
    %208 = memref.load %arg3[%c34] : memref<144xf32, #tpu.memory_space<smem>>
    %209 = vector.broadcast %208 : f32 to vector<1x256xf32>
    %210 = arith.mulf %209, %65 : vector<1x256xf32>
    %211 = arith.addf %207, %210 : vector<1x256xf32>
    %c35 = arith.constant 35 : index
    %212 = memref.load %arg3[%c35] : memref<144xf32, #tpu.memory_space<smem>>
    %213 = vector.broadcast %212 : f32 to vector<1x256xf32>
    %214 = arith.mulf %213, %69 : vector<1x256xf32>
    %215 = arith.addf %211, %214 : vector<1x256xf32>
    %c1_20 = arith.constant 1 : index
    %216 = memref.load %arg4[%c1_20] : memref<4xf32, #tpu.memory_space<smem>>
    %217 = vector.broadcast %216 : f32 to vector<1x256xf32>
    %c36 = arith.constant 36 : index
    %218 = memref.load %arg3[%c36] : memref<144xf32, #tpu.memory_space<smem>>
    %219 = vector.broadcast %218 : f32 to vector<1x256xf32>
    %220 = arith.mulf %219, %34 : vector<1x256xf32>
    %221 = arith.addf %217, %220 : vector<1x256xf32>
    %c37 = arith.constant 37 : index
    %222 = memref.load %arg3[%c37] : memref<144xf32, #tpu.memory_space<smem>>
    %223 = vector.broadcast %222 : f32 to vector<1x256xf32>
    %224 = arith.mulf %223, %38 : vector<1x256xf32>
    %225 = arith.addf %221, %224 : vector<1x256xf32>
    %c38 = arith.constant 38 : index
    %226 = memref.load %arg3[%c38] : memref<144xf32, #tpu.memory_space<smem>>
    %227 = vector.broadcast %226 : f32 to vector<1x256xf32>
    %228 = arith.mulf %227, %42 : vector<1x256xf32>
    %229 = arith.addf %225, %228 : vector<1x256xf32>
    %c39 = arith.constant 39 : index
    %230 = memref.load %arg3[%c39] : memref<144xf32, #tpu.memory_space<smem>>
    %231 = vector.broadcast %230 : f32 to vector<1x256xf32>
    %232 = arith.mulf %231, %46 : vector<1x256xf32>
    %233 = arith.addf %229, %232 : vector<1x256xf32>
    %c40 = arith.constant 40 : index
    %234 = memref.load %arg3[%c40] : memref<144xf32, #tpu.memory_space<smem>>
    %235 = vector.broadcast %234 : f32 to vector<1x256xf32>
    %236 = arith.mulf %235, %50 : vector<1x256xf32>
    %237 = arith.addf %233, %236 : vector<1x256xf32>
    %c41 = arith.constant 41 : index
    %238 = memref.load %arg3[%c41] : memref<144xf32, #tpu.memory_space<smem>>
    %239 = vector.broadcast %238 : f32 to vector<1x256xf32>
    %240 = arith.mulf %239, %54 : vector<1x256xf32>
    %241 = arith.addf %237, %240 : vector<1x256xf32>
    %c42 = arith.constant 42 : index
    %242 = memref.load %arg3[%c42] : memref<144xf32, #tpu.memory_space<smem>>
    %243 = vector.broadcast %242 : f32 to vector<1x256xf32>
    %244 = arith.mulf %243, %58 : vector<1x256xf32>
    %245 = arith.addf %241, %244 : vector<1x256xf32>
    %c43 = arith.constant 43 : index
    %246 = memref.load %arg3[%c43] : memref<144xf32, #tpu.memory_space<smem>>
    %247 = vector.broadcast %246 : f32 to vector<1x256xf32>
    %248 = arith.mulf %247, %62 : vector<1x256xf32>
    %249 = arith.addf %245, %248 : vector<1x256xf32>
    %c44 = arith.constant 44 : index
    %250 = memref.load %arg3[%c44] : memref<144xf32, #tpu.memory_space<smem>>
    %251 = vector.broadcast %250 : f32 to vector<1x256xf32>
    %252 = arith.mulf %251, %66 : vector<1x256xf32>
    %253 = arith.addf %249, %252 : vector<1x256xf32>
    %c45 = arith.constant 45 : index
    %254 = memref.load %arg3[%c45] : memref<144xf32, #tpu.memory_space<smem>>
    %255 = vector.broadcast %254 : f32 to vector<1x256xf32>
    %256 = arith.mulf %255, %35 : vector<1x256xf32>
    %257 = arith.addf %253, %256 : vector<1x256xf32>
    %c46 = arith.constant 46 : index
    %258 = memref.load %arg3[%c46] : memref<144xf32, #tpu.memory_space<smem>>
    %259 = vector.broadcast %258 : f32 to vector<1x256xf32>
    %260 = arith.mulf %259, %39 : vector<1x256xf32>
    %261 = arith.addf %257, %260 : vector<1x256xf32>
    %c47 = arith.constant 47 : index
    %262 = memref.load %arg3[%c47] : memref<144xf32, #tpu.memory_space<smem>>
    %263 = vector.broadcast %262 : f32 to vector<1x256xf32>
    %264 = arith.mulf %263, %43 : vector<1x256xf32>
    %265 = arith.addf %261, %264 : vector<1x256xf32>
    %c48 = arith.constant 48 : index
    %266 = memref.load %arg3[%c48] : memref<144xf32, #tpu.memory_space<smem>>
    %267 = vector.broadcast %266 : f32 to vector<1x256xf32>
    %268 = arith.mulf %267, %47 : vector<1x256xf32>
    %269 = arith.addf %265, %268 : vector<1x256xf32>
    %c49 = arith.constant 49 : index
    %270 = memref.load %arg3[%c49] : memref<144xf32, #tpu.memory_space<smem>>
    %271 = vector.broadcast %270 : f32 to vector<1x256xf32>
    %272 = arith.mulf %271, %51 : vector<1x256xf32>
    %273 = arith.addf %269, %272 : vector<1x256xf32>
    %c50 = arith.constant 50 : index
    %274 = memref.load %arg3[%c50] : memref<144xf32, #tpu.memory_space<smem>>
    %275 = vector.broadcast %274 : f32 to vector<1x256xf32>
    %276 = arith.mulf %275, %55 : vector<1x256xf32>
    %277 = arith.addf %273, %276 : vector<1x256xf32>
    %c51 = arith.constant 51 : index
    %278 = memref.load %arg3[%c51] : memref<144xf32, #tpu.memory_space<smem>>
    %279 = vector.broadcast %278 : f32 to vector<1x256xf32>
    %280 = arith.mulf %279, %59 : vector<1x256xf32>
    %281 = arith.addf %277, %280 : vector<1x256xf32>
    %c52 = arith.constant 52 : index
    %282 = memref.load %arg3[%c52] : memref<144xf32, #tpu.memory_space<smem>>
    %283 = vector.broadcast %282 : f32 to vector<1x256xf32>
    %284 = arith.mulf %283, %63 : vector<1x256xf32>
    %285 = arith.addf %281, %284 : vector<1x256xf32>
    %c53 = arith.constant 53 : index
    %286 = memref.load %arg3[%c53] : memref<144xf32, #tpu.memory_space<smem>>
    %287 = vector.broadcast %286 : f32 to vector<1x256xf32>
    %288 = arith.mulf %287, %67 : vector<1x256xf32>
    %289 = arith.addf %285, %288 : vector<1x256xf32>
    %c54 = arith.constant 54 : index
    %290 = memref.load %arg3[%c54] : memref<144xf32, #tpu.memory_space<smem>>
    %291 = vector.broadcast %290 : f32 to vector<1x256xf32>
    %292 = arith.mulf %291, %36 : vector<1x256xf32>
    %293 = arith.addf %289, %292 : vector<1x256xf32>
    %c55 = arith.constant 55 : index
    %294 = memref.load %arg3[%c55] : memref<144xf32, #tpu.memory_space<smem>>
    %295 = vector.broadcast %294 : f32 to vector<1x256xf32>
    %296 = arith.mulf %295, %40 : vector<1x256xf32>
    %297 = arith.addf %293, %296 : vector<1x256xf32>
    %c56 = arith.constant 56 : index
    %298 = memref.load %arg3[%c56] : memref<144xf32, #tpu.memory_space<smem>>
    %299 = vector.broadcast %298 : f32 to vector<1x256xf32>
    %300 = arith.mulf %299, %44 : vector<1x256xf32>
    %301 = arith.addf %297, %300 : vector<1x256xf32>
    %c57 = arith.constant 57 : index
    %302 = memref.load %arg3[%c57] : memref<144xf32, #tpu.memory_space<smem>>
    %303 = vector.broadcast %302 : f32 to vector<1x256xf32>
    %304 = arith.mulf %303, %48 : vector<1x256xf32>
    %305 = arith.addf %301, %304 : vector<1x256xf32>
    %c58 = arith.constant 58 : index
    %306 = memref.load %arg3[%c58] : memref<144xf32, #tpu.memory_space<smem>>
    %307 = vector.broadcast %306 : f32 to vector<1x256xf32>
    %308 = arith.mulf %307, %52 : vector<1x256xf32>
    %309 = arith.addf %305, %308 : vector<1x256xf32>
    %c59 = arith.constant 59 : index
    %310 = memref.load %arg3[%c59] : memref<144xf32, #tpu.memory_space<smem>>
    %311 = vector.broadcast %310 : f32 to vector<1x256xf32>
    %312 = arith.mulf %311, %56 : vector<1x256xf32>
    %313 = arith.addf %309, %312 : vector<1x256xf32>
    %c60 = arith.constant 60 : index
    %314 = memref.load %arg3[%c60] : memref<144xf32, #tpu.memory_space<smem>>
    %315 = vector.broadcast %314 : f32 to vector<1x256xf32>
    %316 = arith.mulf %315, %60 : vector<1x256xf32>
    %317 = arith.addf %313, %316 : vector<1x256xf32>
    %c61 = arith.constant 61 : index
    %318 = memref.load %arg3[%c61] : memref<144xf32, #tpu.memory_space<smem>>
    %319 = vector.broadcast %318 : f32 to vector<1x256xf32>
    %320 = arith.mulf %319, %64 : vector<1x256xf32>
    %321 = arith.addf %317, %320 : vector<1x256xf32>
    %c62 = arith.constant 62 : index
    %322 = memref.load %arg3[%c62] : memref<144xf32, #tpu.memory_space<smem>>
    %323 = vector.broadcast %322 : f32 to vector<1x256xf32>
    %324 = arith.mulf %323, %68 : vector<1x256xf32>
    %325 = arith.addf %321, %324 : vector<1x256xf32>
    %c63 = arith.constant 63 : index
    %326 = memref.load %arg3[%c63] : memref<144xf32, #tpu.memory_space<smem>>
    %327 = vector.broadcast %326 : f32 to vector<1x256xf32>
    %328 = arith.mulf %327, %37 : vector<1x256xf32>
    %329 = arith.addf %325, %328 : vector<1x256xf32>
    %c64 = arith.constant 64 : index
    %330 = memref.load %arg3[%c64] : memref<144xf32, #tpu.memory_space<smem>>
    %331 = vector.broadcast %330 : f32 to vector<1x256xf32>
    %332 = arith.mulf %331, %41 : vector<1x256xf32>
    %333 = arith.addf %329, %332 : vector<1x256xf32>
    %c65 = arith.constant 65 : index
    %334 = memref.load %arg3[%c65] : memref<144xf32, #tpu.memory_space<smem>>
    %335 = vector.broadcast %334 : f32 to vector<1x256xf32>
    %336 = arith.mulf %335, %45 : vector<1x256xf32>
    %337 = arith.addf %333, %336 : vector<1x256xf32>
    %c66 = arith.constant 66 : index
    %338 = memref.load %arg3[%c66] : memref<144xf32, #tpu.memory_space<smem>>
    %339 = vector.broadcast %338 : f32 to vector<1x256xf32>
    %340 = arith.mulf %339, %49 : vector<1x256xf32>
    %341 = arith.addf %337, %340 : vector<1x256xf32>
    %c67 = arith.constant 67 : index
    %342 = memref.load %arg3[%c67] : memref<144xf32, #tpu.memory_space<smem>>
    %343 = vector.broadcast %342 : f32 to vector<1x256xf32>
    %344 = arith.mulf %343, %53 : vector<1x256xf32>
    %345 = arith.addf %341, %344 : vector<1x256xf32>
    %c68 = arith.constant 68 : index
    %346 = memref.load %arg3[%c68] : memref<144xf32, #tpu.memory_space<smem>>
    %347 = vector.broadcast %346 : f32 to vector<1x256xf32>
    %348 = arith.mulf %347, %57 : vector<1x256xf32>
    %349 = arith.addf %345, %348 : vector<1x256xf32>
    %c69 = arith.constant 69 : index
    %350 = memref.load %arg3[%c69] : memref<144xf32, #tpu.memory_space<smem>>
    %351 = vector.broadcast %350 : f32 to vector<1x256xf32>
    %352 = arith.mulf %351, %61 : vector<1x256xf32>
    %353 = arith.addf %349, %352 : vector<1x256xf32>
    %c70 = arith.constant 70 : index
    %354 = memref.load %arg3[%c70] : memref<144xf32, #tpu.memory_space<smem>>
    %355 = vector.broadcast %354 : f32 to vector<1x256xf32>
    %356 = arith.mulf %355, %65 : vector<1x256xf32>
    %357 = arith.addf %353, %356 : vector<1x256xf32>
    %c71 = arith.constant 71 : index
    %358 = memref.load %arg3[%c71] : memref<144xf32, #tpu.memory_space<smem>>
    %359 = vector.broadcast %358 : f32 to vector<1x256xf32>
    %360 = arith.mulf %359, %69 : vector<1x256xf32>
    %361 = arith.addf %357, %360 : vector<1x256xf32>
    %c2_21 = arith.constant 2 : index
    %362 = memref.load %arg4[%c2_21] : memref<4xf32, #tpu.memory_space<smem>>
    %363 = vector.broadcast %362 : f32 to vector<1x256xf32>
    %c72 = arith.constant 72 : index
    %364 = memref.load %arg3[%c72] : memref<144xf32, #tpu.memory_space<smem>>
    %365 = vector.broadcast %364 : f32 to vector<1x256xf32>
    %366 = arith.mulf %365, %34 : vector<1x256xf32>
    %367 = arith.addf %363, %366 : vector<1x256xf32>
    %c73 = arith.constant 73 : index
    %368 = memref.load %arg3[%c73] : memref<144xf32, #tpu.memory_space<smem>>
    %369 = vector.broadcast %368 : f32 to vector<1x256xf32>
    %370 = arith.mulf %369, %38 : vector<1x256xf32>
    %371 = arith.addf %367, %370 : vector<1x256xf32>
    %c74 = arith.constant 74 : index
    %372 = memref.load %arg3[%c74] : memref<144xf32, #tpu.memory_space<smem>>
    %373 = vector.broadcast %372 : f32 to vector<1x256xf32>
    %374 = arith.mulf %373, %42 : vector<1x256xf32>
    %375 = arith.addf %371, %374 : vector<1x256xf32>
    %c75 = arith.constant 75 : index
    %376 = memref.load %arg3[%c75] : memref<144xf32, #tpu.memory_space<smem>>
    %377 = vector.broadcast %376 : f32 to vector<1x256xf32>
    %378 = arith.mulf %377, %46 : vector<1x256xf32>
    %379 = arith.addf %375, %378 : vector<1x256xf32>
    %c76 = arith.constant 76 : index
    %380 = memref.load %arg3[%c76] : memref<144xf32, #tpu.memory_space<smem>>
    %381 = vector.broadcast %380 : f32 to vector<1x256xf32>
    %382 = arith.mulf %381, %50 : vector<1x256xf32>
    %383 = arith.addf %379, %382 : vector<1x256xf32>
    %c77 = arith.constant 77 : index
    %384 = memref.load %arg3[%c77] : memref<144xf32, #tpu.memory_space<smem>>
    %385 = vector.broadcast %384 : f32 to vector<1x256xf32>
    %386 = arith.mulf %385, %54 : vector<1x256xf32>
    %387 = arith.addf %383, %386 : vector<1x256xf32>
    %c78 = arith.constant 78 : index
    %388 = memref.load %arg3[%c78] : memref<144xf32, #tpu.memory_space<smem>>
    %389 = vector.broadcast %388 : f32 to vector<1x256xf32>
    %390 = arith.mulf %389, %58 : vector<1x256xf32>
    %391 = arith.addf %387, %390 : vector<1x256xf32>
    %c79 = arith.constant 79 : index
    %392 = memref.load %arg3[%c79] : memref<144xf32, #tpu.memory_space<smem>>
    %393 = vector.broadcast %392 : f32 to vector<1x256xf32>
    %394 = arith.mulf %393, %62 : vector<1x256xf32>
    %395 = arith.addf %391, %394 : vector<1x256xf32>
    %c80 = arith.constant 80 : index
    %396 = memref.load %arg3[%c80] : memref<144xf32, #tpu.memory_space<smem>>
    %397 = vector.broadcast %396 : f32 to vector<1x256xf32>
    %398 = arith.mulf %397, %66 : vector<1x256xf32>
    %399 = arith.addf %395, %398 : vector<1x256xf32>
    %c81 = arith.constant 81 : index
    %400 = memref.load %arg3[%c81] : memref<144xf32, #tpu.memory_space<smem>>
    %401 = vector.broadcast %400 : f32 to vector<1x256xf32>
    %402 = arith.mulf %401, %35 : vector<1x256xf32>
    %403 = arith.addf %399, %402 : vector<1x256xf32>
    %c82 = arith.constant 82 : index
    %404 = memref.load %arg3[%c82] : memref<144xf32, #tpu.memory_space<smem>>
    %405 = vector.broadcast %404 : f32 to vector<1x256xf32>
    %406 = arith.mulf %405, %39 : vector<1x256xf32>
    %407 = arith.addf %403, %406 : vector<1x256xf32>
    %c83 = arith.constant 83 : index
    %408 = memref.load %arg3[%c83] : memref<144xf32, #tpu.memory_space<smem>>
    %409 = vector.broadcast %408 : f32 to vector<1x256xf32>
    %410 = arith.mulf %409, %43 : vector<1x256xf32>
    %411 = arith.addf %407, %410 : vector<1x256xf32>
    %c84 = arith.constant 84 : index
    %412 = memref.load %arg3[%c84] : memref<144xf32, #tpu.memory_space<smem>>
    %413 = vector.broadcast %412 : f32 to vector<1x256xf32>
    %414 = arith.mulf %413, %47 : vector<1x256xf32>
    %415 = arith.addf %411, %414 : vector<1x256xf32>
    %c85 = arith.constant 85 : index
    %416 = memref.load %arg3[%c85] : memref<144xf32, #tpu.memory_space<smem>>
    %417 = vector.broadcast %416 : f32 to vector<1x256xf32>
    %418 = arith.mulf %417, %51 : vector<1x256xf32>
    %419 = arith.addf %415, %418 : vector<1x256xf32>
    %c86 = arith.constant 86 : index
    %420 = memref.load %arg3[%c86] : memref<144xf32, #tpu.memory_space<smem>>
    %421 = vector.broadcast %420 : f32 to vector<1x256xf32>
    %422 = arith.mulf %421, %55 : vector<1x256xf32>
    %423 = arith.addf %419, %422 : vector<1x256xf32>
    %c87 = arith.constant 87 : index
    %424 = memref.load %arg3[%c87] : memref<144xf32, #tpu.memory_space<smem>>
    %425 = vector.broadcast %424 : f32 to vector<1x256xf32>
    %426 = arith.mulf %425, %59 : vector<1x256xf32>
    %427 = arith.addf %423, %426 : vector<1x256xf32>
    %c88 = arith.constant 88 : index
    %428 = memref.load %arg3[%c88] : memref<144xf32, #tpu.memory_space<smem>>
    %429 = vector.broadcast %428 : f32 to vector<1x256xf32>
    %430 = arith.mulf %429, %63 : vector<1x256xf32>
    %431 = arith.addf %427, %430 : vector<1x256xf32>
    %c89 = arith.constant 89 : index
    %432 = memref.load %arg3[%c89] : memref<144xf32, #tpu.memory_space<smem>>
    %433 = vector.broadcast %432 : f32 to vector<1x256xf32>
    %434 = arith.mulf %433, %67 : vector<1x256xf32>
    %435 = arith.addf %431, %434 : vector<1x256xf32>
    %c90 = arith.constant 90 : index
    %436 = memref.load %arg3[%c90] : memref<144xf32, #tpu.memory_space<smem>>
    %437 = vector.broadcast %436 : f32 to vector<1x256xf32>
    %438 = arith.mulf %437, %36 : vector<1x256xf32>
    %439 = arith.addf %435, %438 : vector<1x256xf32>
    %c91 = arith.constant 91 : index
    %440 = memref.load %arg3[%c91] : memref<144xf32, #tpu.memory_space<smem>>
    %441 = vector.broadcast %440 : f32 to vector<1x256xf32>
    %442 = arith.mulf %441, %40 : vector<1x256xf32>
    %443 = arith.addf %439, %442 : vector<1x256xf32>
    %c92 = arith.constant 92 : index
    %444 = memref.load %arg3[%c92] : memref<144xf32, #tpu.memory_space<smem>>
    %445 = vector.broadcast %444 : f32 to vector<1x256xf32>
    %446 = arith.mulf %445, %44 : vector<1x256xf32>
    %447 = arith.addf %443, %446 : vector<1x256xf32>
    %c93 = arith.constant 93 : index
    %448 = memref.load %arg3[%c93] : memref<144xf32, #tpu.memory_space<smem>>
    %449 = vector.broadcast %448 : f32 to vector<1x256xf32>
    %450 = arith.mulf %449, %48 : vector<1x256xf32>
    %451 = arith.addf %447, %450 : vector<1x256xf32>
    %c94 = arith.constant 94 : index
    %452 = memref.load %arg3[%c94] : memref<144xf32, #tpu.memory_space<smem>>
    %453 = vector.broadcast %452 : f32 to vector<1x256xf32>
    %454 = arith.mulf %453, %52 : vector<1x256xf32>
    %455 = arith.addf %451, %454 : vector<1x256xf32>
    %c95 = arith.constant 95 : index
    %456 = memref.load %arg3[%c95] : memref<144xf32, #tpu.memory_space<smem>>
    %457 = vector.broadcast %456 : f32 to vector<1x256xf32>
    %458 = arith.mulf %457, %56 : vector<1x256xf32>
    %459 = arith.addf %455, %458 : vector<1x256xf32>
    %c96 = arith.constant 96 : index
    %460 = memref.load %arg3[%c96] : memref<144xf32, #tpu.memory_space<smem>>
    %461 = vector.broadcast %460 : f32 to vector<1x256xf32>
    %462 = arith.mulf %461, %60 : vector<1x256xf32>
    %463 = arith.addf %459, %462 : vector<1x256xf32>
    %c97 = arith.constant 97 : index
    %464 = memref.load %arg3[%c97] : memref<144xf32, #tpu.memory_space<smem>>
    %465 = vector.broadcast %464 : f32 to vector<1x256xf32>
    %466 = arith.mulf %465, %64 : vector<1x256xf32>
    %467 = arith.addf %463, %466 : vector<1x256xf32>
    %c98 = arith.constant 98 : index
    %468 = memref.load %arg3[%c98] : memref<144xf32, #tpu.memory_space<smem>>
    %469 = vector.broadcast %468 : f32 to vector<1x256xf32>
    %470 = arith.mulf %469, %68 : vector<1x256xf32>
    %471 = arith.addf %467, %470 : vector<1x256xf32>
    %c99 = arith.constant 99 : index
    %472 = memref.load %arg3[%c99] : memref<144xf32, #tpu.memory_space<smem>>
    %473 = vector.broadcast %472 : f32 to vector<1x256xf32>
    %474 = arith.mulf %473, %37 : vector<1x256xf32>
    %475 = arith.addf %471, %474 : vector<1x256xf32>
    %c100 = arith.constant 100 : index
    %476 = memref.load %arg3[%c100] : memref<144xf32, #tpu.memory_space<smem>>
    %477 = vector.broadcast %476 : f32 to vector<1x256xf32>
    %478 = arith.mulf %477, %41 : vector<1x256xf32>
    %479 = arith.addf %475, %478 : vector<1x256xf32>
    %c101 = arith.constant 101 : index
    %480 = memref.load %arg3[%c101] : memref<144xf32, #tpu.memory_space<smem>>
    %481 = vector.broadcast %480 : f32 to vector<1x256xf32>
    %482 = arith.mulf %481, %45 : vector<1x256xf32>
    %483 = arith.addf %479, %482 : vector<1x256xf32>
    %c102 = arith.constant 102 : index
    %484 = memref.load %arg3[%c102] : memref<144xf32, #tpu.memory_space<smem>>
    %485 = vector.broadcast %484 : f32 to vector<1x256xf32>
    %486 = arith.mulf %485, %49 : vector<1x256xf32>
    %487 = arith.addf %483, %486 : vector<1x256xf32>
    %c103 = arith.constant 103 : index
    %488 = memref.load %arg3[%c103] : memref<144xf32, #tpu.memory_space<smem>>
    %489 = vector.broadcast %488 : f32 to vector<1x256xf32>
    %490 = arith.mulf %489, %53 : vector<1x256xf32>
    %491 = arith.addf %487, %490 : vector<1x256xf32>
    %c104 = arith.constant 104 : index
    %492 = memref.load %arg3[%c104] : memref<144xf32, #tpu.memory_space<smem>>
    %493 = vector.broadcast %492 : f32 to vector<1x256xf32>
    %494 = arith.mulf %493, %57 : vector<1x256xf32>
    %495 = arith.addf %491, %494 : vector<1x256xf32>
    %c105 = arith.constant 105 : index
    %496 = memref.load %arg3[%c105] : memref<144xf32, #tpu.memory_space<smem>>
    %497 = vector.broadcast %496 : f32 to vector<1x256xf32>
    %498 = arith.mulf %497, %61 : vector<1x256xf32>
    %499 = arith.addf %495, %498 : vector<1x256xf32>
    %c106 = arith.constant 106 : index
    %500 = memref.load %arg3[%c106] : memref<144xf32, #tpu.memory_space<smem>>
    %501 = vector.broadcast %500 : f32 to vector<1x256xf32>
    %502 = arith.mulf %501, %65 : vector<1x256xf32>
    %503 = arith.addf %499, %502 : vector<1x256xf32>
    %c107 = arith.constant 107 : index
    %504 = memref.load %arg3[%c107] : memref<144xf32, #tpu.memory_space<smem>>
    %505 = vector.broadcast %504 : f32 to vector<1x256xf32>
    %506 = arith.mulf %505, %69 : vector<1x256xf32>
    %507 = arith.addf %503, %506 : vector<1x256xf32>
    %c3_22 = arith.constant 3 : index
    %508 = memref.load %arg4[%c3_22] : memref<4xf32, #tpu.memory_space<smem>>
    %509 = vector.broadcast %508 : f32 to vector<1x256xf32>
    %c108 = arith.constant 108 : index
    %510 = memref.load %arg3[%c108] : memref<144xf32, #tpu.memory_space<smem>>
    %511 = vector.broadcast %510 : f32 to vector<1x256xf32>
    %512 = arith.mulf %511, %34 : vector<1x256xf32>
    %513 = arith.addf %509, %512 : vector<1x256xf32>
    %c109 = arith.constant 109 : index
    %514 = memref.load %arg3[%c109] : memref<144xf32, #tpu.memory_space<smem>>
    %515 = vector.broadcast %514 : f32 to vector<1x256xf32>
    %516 = arith.mulf %515, %38 : vector<1x256xf32>
    %517 = arith.addf %513, %516 : vector<1x256xf32>
    %c110 = arith.constant 110 : index
    %518 = memref.load %arg3[%c110] : memref<144xf32, #tpu.memory_space<smem>>
    %519 = vector.broadcast %518 : f32 to vector<1x256xf32>
    %520 = arith.mulf %519, %42 : vector<1x256xf32>
    %521 = arith.addf %517, %520 : vector<1x256xf32>
    %c111 = arith.constant 111 : index
    %522 = memref.load %arg3[%c111] : memref<144xf32, #tpu.memory_space<smem>>
    %523 = vector.broadcast %522 : f32 to vector<1x256xf32>
    %524 = arith.mulf %523, %46 : vector<1x256xf32>
    %525 = arith.addf %521, %524 : vector<1x256xf32>
    %c112 = arith.constant 112 : index
    %526 = memref.load %arg3[%c112] : memref<144xf32, #tpu.memory_space<smem>>
    %527 = vector.broadcast %526 : f32 to vector<1x256xf32>
    %528 = arith.mulf %527, %50 : vector<1x256xf32>
    %529 = arith.addf %525, %528 : vector<1x256xf32>
    %c113 = arith.constant 113 : index
    %530 = memref.load %arg3[%c113] : memref<144xf32, #tpu.memory_space<smem>>
    %531 = vector.broadcast %530 : f32 to vector<1x256xf32>
    %532 = arith.mulf %531, %54 : vector<1x256xf32>
    %533 = arith.addf %529, %532 : vector<1x256xf32>
    %c114 = arith.constant 114 : index
    %534 = memref.load %arg3[%c114] : memref<144xf32, #tpu.memory_space<smem>>
    %535 = vector.broadcast %534 : f32 to vector<1x256xf32>
    %536 = arith.mulf %535, %58 : vector<1x256xf32>
    %537 = arith.addf %533, %536 : vector<1x256xf32>
    %c115 = arith.constant 115 : index
    %538 = memref.load %arg3[%c115] : memref<144xf32, #tpu.memory_space<smem>>
    %539 = vector.broadcast %538 : f32 to vector<1x256xf32>
    %540 = arith.mulf %539, %62 : vector<1x256xf32>
    %541 = arith.addf %537, %540 : vector<1x256xf32>
    %c116 = arith.constant 116 : index
    %542 = memref.load %arg3[%c116] : memref<144xf32, #tpu.memory_space<smem>>
    %543 = vector.broadcast %542 : f32 to vector<1x256xf32>
    %544 = arith.mulf %543, %66 : vector<1x256xf32>
    %545 = arith.addf %541, %544 : vector<1x256xf32>
    %c117 = arith.constant 117 : index
    %546 = memref.load %arg3[%c117] : memref<144xf32, #tpu.memory_space<smem>>
    %547 = vector.broadcast %546 : f32 to vector<1x256xf32>
    %548 = arith.mulf %547, %35 : vector<1x256xf32>
    %549 = arith.addf %545, %548 : vector<1x256xf32>
    %c118 = arith.constant 118 : index
    %550 = memref.load %arg3[%c118] : memref<144xf32, #tpu.memory_space<smem>>
    %551 = vector.broadcast %550 : f32 to vector<1x256xf32>
    %552 = arith.mulf %551, %39 : vector<1x256xf32>
    %553 = arith.addf %549, %552 : vector<1x256xf32>
    %c119 = arith.constant 119 : index
    %554 = memref.load %arg3[%c119] : memref<144xf32, #tpu.memory_space<smem>>
    %555 = vector.broadcast %554 : f32 to vector<1x256xf32>
    %556 = arith.mulf %555, %43 : vector<1x256xf32>
    %557 = arith.addf %553, %556 : vector<1x256xf32>
    %c120 = arith.constant 120 : index
    %558 = memref.load %arg3[%c120] : memref<144xf32, #tpu.memory_space<smem>>
    %559 = vector.broadcast %558 : f32 to vector<1x256xf32>
    %560 = arith.mulf %559, %47 : vector<1x256xf32>
    %561 = arith.addf %557, %560 : vector<1x256xf32>
    %c121 = arith.constant 121 : index
    %562 = memref.load %arg3[%c121] : memref<144xf32, #tpu.memory_space<smem>>
    %563 = vector.broadcast %562 : f32 to vector<1x256xf32>
    %564 = arith.mulf %563, %51 : vector<1x256xf32>
    %565 = arith.addf %561, %564 : vector<1x256xf32>
    %c122 = arith.constant 122 : index
    %566 = memref.load %arg3[%c122] : memref<144xf32, #tpu.memory_space<smem>>
    %567 = vector.broadcast %566 : f32 to vector<1x256xf32>
    %568 = arith.mulf %567, %55 : vector<1x256xf32>
    %569 = arith.addf %565, %568 : vector<1x256xf32>
    %c123 = arith.constant 123 : index
    %570 = memref.load %arg3[%c123] : memref<144xf32, #tpu.memory_space<smem>>
    %571 = vector.broadcast %570 : f32 to vector<1x256xf32>
    %572 = arith.mulf %571, %59 : vector<1x256xf32>
    %573 = arith.addf %569, %572 : vector<1x256xf32>
    %c124 = arith.constant 124 : index
    %574 = memref.load %arg3[%c124] : memref<144xf32, #tpu.memory_space<smem>>
    %575 = vector.broadcast %574 : f32 to vector<1x256xf32>
    %576 = arith.mulf %575, %63 : vector<1x256xf32>
    %577 = arith.addf %573, %576 : vector<1x256xf32>
    %c125 = arith.constant 125 : index
    %578 = memref.load %arg3[%c125] : memref<144xf32, #tpu.memory_space<smem>>
    %579 = vector.broadcast %578 : f32 to vector<1x256xf32>
    %580 = arith.mulf %579, %67 : vector<1x256xf32>
    %581 = arith.addf %577, %580 : vector<1x256xf32>
    %c126 = arith.constant 126 : index
    %582 = memref.load %arg3[%c126] : memref<144xf32, #tpu.memory_space<smem>>
    %583 = vector.broadcast %582 : f32 to vector<1x256xf32>
    %584 = arith.mulf %583, %36 : vector<1x256xf32>
    %585 = arith.addf %581, %584 : vector<1x256xf32>
    %c127 = arith.constant 127 : index
    %586 = memref.load %arg3[%c127] : memref<144xf32, #tpu.memory_space<smem>>
    %587 = vector.broadcast %586 : f32 to vector<1x256xf32>
    %588 = arith.mulf %587, %40 : vector<1x256xf32>
    %589 = arith.addf %585, %588 : vector<1x256xf32>
    %c128 = arith.constant 128 : index
    %590 = memref.load %arg3[%c128] : memref<144xf32, #tpu.memory_space<smem>>
    %591 = vector.broadcast %590 : f32 to vector<1x256xf32>
    %592 = arith.mulf %591, %44 : vector<1x256xf32>
    %593 = arith.addf %589, %592 : vector<1x256xf32>
    %c129 = arith.constant 129 : index
    %594 = memref.load %arg3[%c129] : memref<144xf32, #tpu.memory_space<smem>>
    %595 = vector.broadcast %594 : f32 to vector<1x256xf32>
    %596 = arith.mulf %595, %48 : vector<1x256xf32>
    %597 = arith.addf %593, %596 : vector<1x256xf32>
    %c130 = arith.constant 130 : index
    %598 = memref.load %arg3[%c130] : memref<144xf32, #tpu.memory_space<smem>>
    %599 = vector.broadcast %598 : f32 to vector<1x256xf32>
    %600 = arith.mulf %599, %52 : vector<1x256xf32>
    %601 = arith.addf %597, %600 : vector<1x256xf32>
    %c131 = arith.constant 131 : index
    %602 = memref.load %arg3[%c131] : memref<144xf32, #tpu.memory_space<smem>>
    %603 = vector.broadcast %602 : f32 to vector<1x256xf32>
    %604 = arith.mulf %603, %56 : vector<1x256xf32>
    %605 = arith.addf %601, %604 : vector<1x256xf32>
    %c132 = arith.constant 132 : index
    %606 = memref.load %arg3[%c132] : memref<144xf32, #tpu.memory_space<smem>>
    %607 = vector.broadcast %606 : f32 to vector<1x256xf32>
    %608 = arith.mulf %607, %60 : vector<1x256xf32>
    %609 = arith.addf %605, %608 : vector<1x256xf32>
    %c133 = arith.constant 133 : index
    %610 = memref.load %arg3[%c133] : memref<144xf32, #tpu.memory_space<smem>>
    %611 = vector.broadcast %610 : f32 to vector<1x256xf32>
    %612 = arith.mulf %611, %64 : vector<1x256xf32>
    %613 = arith.addf %609, %612 : vector<1x256xf32>
    %c134 = arith.constant 134 : index
    %614 = memref.load %arg3[%c134] : memref<144xf32, #tpu.memory_space<smem>>
    %615 = vector.broadcast %614 : f32 to vector<1x256xf32>
    %616 = arith.mulf %615, %68 : vector<1x256xf32>
    %617 = arith.addf %613, %616 : vector<1x256xf32>
    %c135 = arith.constant 135 : index
    %618 = memref.load %arg3[%c135] : memref<144xf32, #tpu.memory_space<smem>>
    %619 = vector.broadcast %618 : f32 to vector<1x256xf32>
    %620 = arith.mulf %619, %37 : vector<1x256xf32>
    %621 = arith.addf %617, %620 : vector<1x256xf32>
    %c136 = arith.constant 136 : index
    %622 = memref.load %arg3[%c136] : memref<144xf32, #tpu.memory_space<smem>>
    %623 = vector.broadcast %622 : f32 to vector<1x256xf32>
    %624 = arith.mulf %623, %41 : vector<1x256xf32>
    %625 = arith.addf %621, %624 : vector<1x256xf32>
    %c137 = arith.constant 137 : index
    %626 = memref.load %arg3[%c137] : memref<144xf32, #tpu.memory_space<smem>>
    %627 = vector.broadcast %626 : f32 to vector<1x256xf32>
    %628 = arith.mulf %627, %45 : vector<1x256xf32>
    %629 = arith.addf %625, %628 : vector<1x256xf32>
    %c138 = arith.constant 138 : index
    %630 = memref.load %arg3[%c138] : memref<144xf32, #tpu.memory_space<smem>>
    %631 = vector.broadcast %630 : f32 to vector<1x256xf32>
    %632 = arith.mulf %631, %49 : vector<1x256xf32>
    %633 = arith.addf %629, %632 : vector<1x256xf32>
    %c139 = arith.constant 139 : index
    %634 = memref.load %arg3[%c139] : memref<144xf32, #tpu.memory_space<smem>>
    %635 = vector.broadcast %634 : f32 to vector<1x256xf32>
    %636 = arith.mulf %635, %53 : vector<1x256xf32>
    %637 = arith.addf %633, %636 : vector<1x256xf32>
    %c140 = arith.constant 140 : index
    %638 = memref.load %arg3[%c140] : memref<144xf32, #tpu.memory_space<smem>>
    %639 = vector.broadcast %638 : f32 to vector<1x256xf32>
    %640 = arith.mulf %639, %57 : vector<1x256xf32>
    %641 = arith.addf %637, %640 : vector<1x256xf32>
    %c141 = arith.constant 141 : index
    %642 = memref.load %arg3[%c141] : memref<144xf32, #tpu.memory_space<smem>>
    %643 = vector.broadcast %642 : f32 to vector<1x256xf32>
    %644 = arith.mulf %643, %61 : vector<1x256xf32>
    %645 = arith.addf %641, %644 : vector<1x256xf32>
    %c142 = arith.constant 142 : index
    %646 = memref.load %arg3[%c142] : memref<144xf32, #tpu.memory_space<smem>>
    %647 = vector.broadcast %646 : f32 to vector<1x256xf32>
    %648 = arith.mulf %647, %65 : vector<1x256xf32>
    %649 = arith.addf %645, %648 : vector<1x256xf32>
    %c143 = arith.constant 143 : index
    %650 = memref.load %arg3[%c143] : memref<144xf32, #tpu.memory_space<smem>>
    %651 = vector.broadcast %650 : f32 to vector<1x256xf32>
    %652 = arith.mulf %651, %69 : vector<1x256xf32>
    %653 = arith.addf %649, %652 : vector<1x256xf32>
    %654 = tpu.concatenate %215, %361, %507, %653 in 0 : vector<1x256xf32>, vector<1x256xf32>, vector<1x256xf32>, vector<1x256xf32> -> vector<4x256xf32>
    %cst = arith.constant 0.000000e+00 : f32
    %655 = vector.broadcast %cst : f32 to vector<4x256xf32>
    %656 = arith.maximumf %654, %655 : vector<4x256xf32>
    %c17_i32_23 = arith.constant 17 : i32
    %657 = tpu.dynamic_rotate %656 by %c17_i32_23 dim 1 : vector<4x256xf32>, i32 -> vector<4x256xf32>
    %c0_24 = arith.constant 0 : index
    %c0_25 = arith.constant 0 : index
    %658 = vector.load %arg2[%c0_24, %c0_25] : memref<9x256xf32, #tpu.memory_space<vmem>>, vector<1x256xf32>
    %659 = vector.broadcast %658 : vector<1x256xf32> to vector<4x256xf32>
    %660 = arith.mulf %657, %659 : vector<4x256xf32>
    %c16_i32_26 = arith.constant 16 : i32
    %661 = tpu.dynamic_rotate %656 by %c16_i32_26 dim 1 : vector<4x256xf32>, i32 -> vector<4x256xf32>
    %c1_27 = arith.constant 1 : index
    %c0_28 = arith.constant 0 : index
    %662 = vector.load %arg2[%c1_27, %c0_28] : memref<9x256xf32, #tpu.memory_space<vmem>>, vector<1x256xf32>
    %663 = vector.broadcast %662 : vector<1x256xf32> to vector<4x256xf32>
    %664 = arith.mulf %661, %663 : vector<4x256xf32>
    %c15_i32_29 = arith.constant 15 : i32
    %665 = tpu.dynamic_rotate %656 by %c15_i32_29 dim 1 : vector<4x256xf32>, i32 -> vector<4x256xf32>
    %c2_30 = arith.constant 2 : index
    %c0_31 = arith.constant 0 : index
    %666 = vector.load %arg2[%c2_30, %c0_31] : memref<9x256xf32, #tpu.memory_space<vmem>>, vector<1x256xf32>
    %667 = vector.broadcast %666 : vector<1x256xf32> to vector<4x256xf32>
    %668 = arith.mulf %665, %667 : vector<4x256xf32>
    %c1_i32_32 = arith.constant 1 : i32
    %669 = tpu.dynamic_rotate %656 by %c1_i32_32 dim 1 : vector<4x256xf32>, i32 -> vector<4x256xf32>
    %c3_33 = arith.constant 3 : index
    %c0_34 = arith.constant 0 : index
    %670 = vector.load %arg2[%c3_33, %c0_34] : memref<9x256xf32, #tpu.memory_space<vmem>>, vector<1x256xf32>
    %671 = vector.broadcast %670 : vector<1x256xf32> to vector<4x256xf32>
    %672 = arith.mulf %669, %671 : vector<4x256xf32>
    %c255_i32_35 = arith.constant 255 : i32
    %673 = tpu.dynamic_rotate %656 by %c255_i32_35 dim 1 : vector<4x256xf32>, i32 -> vector<4x256xf32>
    %c5_36 = arith.constant 5 : index
    %c0_37 = arith.constant 0 : index
    %674 = vector.load %arg2[%c5_36, %c0_37] : memref<9x256xf32, #tpu.memory_space<vmem>>, vector<1x256xf32>
    %675 = vector.broadcast %674 : vector<1x256xf32> to vector<4x256xf32>
    %676 = arith.mulf %673, %675 : vector<4x256xf32>
    %c241_i32_38 = arith.constant 241 : i32
    %677 = tpu.dynamic_rotate %656 by %c241_i32_38 dim 1 : vector<4x256xf32>, i32 -> vector<4x256xf32>
    %c6_39 = arith.constant 6 : index
    %c0_40 = arith.constant 0 : index
    %678 = vector.load %arg2[%c6_39, %c0_40] : memref<9x256xf32, #tpu.memory_space<vmem>>, vector<1x256xf32>
    %679 = vector.broadcast %678 : vector<1x256xf32> to vector<4x256xf32>
    %680 = arith.mulf %677, %679 : vector<4x256xf32>
    %c240_i32_41 = arith.constant 240 : i32
    %681 = tpu.dynamic_rotate %656 by %c240_i32_41 dim 1 : vector<4x256xf32>, i32 -> vector<4x256xf32>
    %c7_42 = arith.constant 7 : index
    %c0_43 = arith.constant 0 : index
    %682 = vector.load %arg2[%c7_42, %c0_43] : memref<9x256xf32, #tpu.memory_space<vmem>>, vector<1x256xf32>
    %683 = vector.broadcast %682 : vector<1x256xf32> to vector<4x256xf32>
    %684 = arith.mulf %681, %683 : vector<4x256xf32>
    %c239_i32_44 = arith.constant 239 : i32
    %685 = tpu.dynamic_rotate %656 by %c239_i32_44 dim 1 : vector<4x256xf32>, i32 -> vector<4x256xf32>
    %c8_45 = arith.constant 8 : index
    %c0_46 = arith.constant 0 : index
    %686 = vector.load %arg2[%c8_45, %c0_46] : memref<9x256xf32, #tpu.memory_space<vmem>>, vector<1x256xf32>
    %687 = vector.broadcast %686 : vector<1x256xf32> to vector<4x256xf32>
    %688 = arith.mulf %685, %687 : vector<4x256xf32>
    %689 = vector.extract_strided_slice %660 {offsets = [0, 0], sizes = [1, 256], strides = [1, 1]} : vector<4x256xf32> to vector<1x256xf32>
    %690 = vector.extract_strided_slice %660 {offsets = [1, 0], sizes = [1, 256], strides = [1, 1]} : vector<4x256xf32> to vector<1x256xf32>
    %691 = vector.extract_strided_slice %660 {offsets = [2, 0], sizes = [1, 256], strides = [1, 1]} : vector<4x256xf32> to vector<1x256xf32>
    %692 = vector.extract_strided_slice %660 {offsets = [3, 0], sizes = [1, 256], strides = [1, 1]} : vector<4x256xf32> to vector<1x256xf32>
    %693 = vector.extract_strided_slice %664 {offsets = [0, 0], sizes = [1, 256], strides = [1, 1]} : vector<4x256xf32> to vector<1x256xf32>
    %694 = vector.extract_strided_slice %664 {offsets = [1, 0], sizes = [1, 256], strides = [1, 1]} : vector<4x256xf32> to vector<1x256xf32>
    %695 = vector.extract_strided_slice %664 {offsets = [2, 0], sizes = [1, 256], strides = [1, 1]} : vector<4x256xf32> to vector<1x256xf32>
    %696 = vector.extract_strided_slice %664 {offsets = [3, 0], sizes = [1, 256], strides = [1, 1]} : vector<4x256xf32> to vector<1x256xf32>
    %697 = vector.extract_strided_slice %668 {offsets = [0, 0], sizes = [1, 256], strides = [1, 1]} : vector<4x256xf32> to vector<1x256xf32>
    %698 = vector.extract_strided_slice %668 {offsets = [1, 0], sizes = [1, 256], strides = [1, 1]} : vector<4x256xf32> to vector<1x256xf32>
    %699 = vector.extract_strided_slice %668 {offsets = [2, 0], sizes = [1, 256], strides = [1, 1]} : vector<4x256xf32> to vector<1x256xf32>
    %700 = vector.extract_strided_slice %668 {offsets = [3, 0], sizes = [1, 256], strides = [1, 1]} : vector<4x256xf32> to vector<1x256xf32>
    %701 = vector.extract_strided_slice %672 {offsets = [0, 0], sizes = [1, 256], strides = [1, 1]} : vector<4x256xf32> to vector<1x256xf32>
    %702 = vector.extract_strided_slice %672 {offsets = [1, 0], sizes = [1, 256], strides = [1, 1]} : vector<4x256xf32> to vector<1x256xf32>
    %703 = vector.extract_strided_slice %672 {offsets = [2, 0], sizes = [1, 256], strides = [1, 1]} : vector<4x256xf32> to vector<1x256xf32>
    %704 = vector.extract_strided_slice %672 {offsets = [3, 0], sizes = [1, 256], strides = [1, 1]} : vector<4x256xf32> to vector<1x256xf32>
    %705 = vector.extract_strided_slice %656 {offsets = [0, 0], sizes = [1, 256], strides = [1, 1]} : vector<4x256xf32> to vector<1x256xf32>
    %706 = vector.extract_strided_slice %656 {offsets = [1, 0], sizes = [1, 256], strides = [1, 1]} : vector<4x256xf32> to vector<1x256xf32>
    %707 = vector.extract_strided_slice %656 {offsets = [2, 0], sizes = [1, 256], strides = [1, 1]} : vector<4x256xf32> to vector<1x256xf32>
    %708 = vector.extract_strided_slice %656 {offsets = [3, 0], sizes = [1, 256], strides = [1, 1]} : vector<4x256xf32> to vector<1x256xf32>
    %709 = vector.extract_strided_slice %676 {offsets = [0, 0], sizes = [1, 256], strides = [1, 1]} : vector<4x256xf32> to vector<1x256xf32>
    %710 = vector.extract_strided_slice %676 {offsets = [1, 0], sizes = [1, 256], strides = [1, 1]} : vector<4x256xf32> to vector<1x256xf32>
    %711 = vector.extract_strided_slice %676 {offsets = [2, 0], sizes = [1, 256], strides = [1, 1]} : vector<4x256xf32> to vector<1x256xf32>
    %712 = vector.extract_strided_slice %676 {offsets = [3, 0], sizes = [1, 256], strides = [1, 1]} : vector<4x256xf32> to vector<1x256xf32>
    %713 = vector.extract_strided_slice %680 {offsets = [0, 0], sizes = [1, 256], strides = [1, 1]} : vector<4x256xf32> to vector<1x256xf32>
    %714 = vector.extract_strided_slice %680 {offsets = [1, 0], sizes = [1, 256], strides = [1, 1]} : vector<4x256xf32> to vector<1x256xf32>
    %715 = vector.extract_strided_slice %680 {offsets = [2, 0], sizes = [1, 256], strides = [1, 1]} : vector<4x256xf32> to vector<1x256xf32>
    %716 = vector.extract_strided_slice %680 {offsets = [3, 0], sizes = [1, 256], strides = [1, 1]} : vector<4x256xf32> to vector<1x256xf32>
    %717 = vector.extract_strided_slice %684 {offsets = [0, 0], sizes = [1, 256], strides = [1, 1]} : vector<4x256xf32> to vector<1x256xf32>
    %718 = vector.extract_strided_slice %684 {offsets = [1, 0], sizes = [1, 256], strides = [1, 1]} : vector<4x256xf32> to vector<1x256xf32>
    %719 = vector.extract_strided_slice %684 {offsets = [2, 0], sizes = [1, 256], strides = [1, 1]} : vector<4x256xf32> to vector<1x256xf32>
    %720 = vector.extract_strided_slice %684 {offsets = [3, 0], sizes = [1, 256], strides = [1, 1]} : vector<4x256xf32> to vector<1x256xf32>
    %721 = vector.extract_strided_slice %688 {offsets = [0, 0], sizes = [1, 256], strides = [1, 1]} : vector<4x256xf32> to vector<1x256xf32>
    %722 = vector.extract_strided_slice %688 {offsets = [1, 0], sizes = [1, 256], strides = [1, 1]} : vector<4x256xf32> to vector<1x256xf32>
    %723 = vector.extract_strided_slice %688 {offsets = [2, 0], sizes = [1, 256], strides = [1, 1]} : vector<4x256xf32> to vector<1x256xf32>
    %724 = vector.extract_strided_slice %688 {offsets = [3, 0], sizes = [1, 256], strides = [1, 1]} : vector<4x256xf32> to vector<1x256xf32>
    %c0_47 = arith.constant 0 : index
    %725 = memref.load %arg6[%c0_47] : memref<4xf32, #tpu.memory_space<smem>>
    %726 = vector.broadcast %725 : f32 to vector<1x256xf32>
    %c0_48 = arith.constant 0 : index
    %727 = memref.load %arg5[%c0_48] : memref<144xf32, #tpu.memory_space<smem>>
    %728 = vector.broadcast %727 : f32 to vector<1x256xf32>
    %729 = arith.mulf %728, %689 : vector<1x256xf32>
    %730 = arith.addf %726, %729 : vector<1x256xf32>
    %c1_49 = arith.constant 1 : index
    %731 = memref.load %arg5[%c1_49] : memref<144xf32, #tpu.memory_space<smem>>
    %732 = vector.broadcast %731 : f32 to vector<1x256xf32>
    %733 = arith.mulf %732, %693 : vector<1x256xf32>
    %734 = arith.addf %730, %733 : vector<1x256xf32>
    %c2_50 = arith.constant 2 : index
    %735 = memref.load %arg5[%c2_50] : memref<144xf32, #tpu.memory_space<smem>>
    %736 = vector.broadcast %735 : f32 to vector<1x256xf32>
    %737 = arith.mulf %736, %697 : vector<1x256xf32>
    %738 = arith.addf %734, %737 : vector<1x256xf32>
    %c3_51 = arith.constant 3 : index
    %739 = memref.load %arg5[%c3_51] : memref<144xf32, #tpu.memory_space<smem>>
    %740 = vector.broadcast %739 : f32 to vector<1x256xf32>
    %741 = arith.mulf %740, %701 : vector<1x256xf32>
    %742 = arith.addf %738, %741 : vector<1x256xf32>
    %c4_52 = arith.constant 4 : index
    %743 = memref.load %arg5[%c4_52] : memref<144xf32, #tpu.memory_space<smem>>
    %744 = vector.broadcast %743 : f32 to vector<1x256xf32>
    %745 = arith.mulf %744, %705 : vector<1x256xf32>
    %746 = arith.addf %742, %745 : vector<1x256xf32>
    %c5_53 = arith.constant 5 : index
    %747 = memref.load %arg5[%c5_53] : memref<144xf32, #tpu.memory_space<smem>>
    %748 = vector.broadcast %747 : f32 to vector<1x256xf32>
    %749 = arith.mulf %748, %709 : vector<1x256xf32>
    %750 = arith.addf %746, %749 : vector<1x256xf32>
    %c6_54 = arith.constant 6 : index
    %751 = memref.load %arg5[%c6_54] : memref<144xf32, #tpu.memory_space<smem>>
    %752 = vector.broadcast %751 : f32 to vector<1x256xf32>
    %753 = arith.mulf %752, %713 : vector<1x256xf32>
    %754 = arith.addf %750, %753 : vector<1x256xf32>
    %c7_55 = arith.constant 7 : index
    %755 = memref.load %arg5[%c7_55] : memref<144xf32, #tpu.memory_space<smem>>
    %756 = vector.broadcast %755 : f32 to vector<1x256xf32>
    %757 = arith.mulf %756, %717 : vector<1x256xf32>
    %758 = arith.addf %754, %757 : vector<1x256xf32>
    %c8_56 = arith.constant 8 : index
    %759 = memref.load %arg5[%c8_56] : memref<144xf32, #tpu.memory_space<smem>>
    %760 = vector.broadcast %759 : f32 to vector<1x256xf32>
    %761 = arith.mulf %760, %721 : vector<1x256xf32>
    %762 = arith.addf %758, %761 : vector<1x256xf32>
    %c9_57 = arith.constant 9 : index
    %763 = memref.load %arg5[%c9_57] : memref<144xf32, #tpu.memory_space<smem>>
    %764 = vector.broadcast %763 : f32 to vector<1x256xf32>
    %765 = arith.mulf %764, %690 : vector<1x256xf32>
    %766 = arith.addf %762, %765 : vector<1x256xf32>
    %c10_58 = arith.constant 10 : index
    %767 = memref.load %arg5[%c10_58] : memref<144xf32, #tpu.memory_space<smem>>
    %768 = vector.broadcast %767 : f32 to vector<1x256xf32>
    %769 = arith.mulf %768, %694 : vector<1x256xf32>
    %770 = arith.addf %766, %769 : vector<1x256xf32>
    %c11_59 = arith.constant 11 : index
    %771 = memref.load %arg5[%c11_59] : memref<144xf32, #tpu.memory_space<smem>>
    %772 = vector.broadcast %771 : f32 to vector<1x256xf32>
    %773 = arith.mulf %772, %698 : vector<1x256xf32>
    %774 = arith.addf %770, %773 : vector<1x256xf32>
    %c12_60 = arith.constant 12 : index
    %775 = memref.load %arg5[%c12_60] : memref<144xf32, #tpu.memory_space<smem>>
    %776 = vector.broadcast %775 : f32 to vector<1x256xf32>
    %777 = arith.mulf %776, %702 : vector<1x256xf32>
    %778 = arith.addf %774, %777 : vector<1x256xf32>
    %c13_61 = arith.constant 13 : index
    %779 = memref.load %arg5[%c13_61] : memref<144xf32, #tpu.memory_space<smem>>
    %780 = vector.broadcast %779 : f32 to vector<1x256xf32>
    %781 = arith.mulf %780, %706 : vector<1x256xf32>
    %782 = arith.addf %778, %781 : vector<1x256xf32>
    %c14_62 = arith.constant 14 : index
    %783 = memref.load %arg5[%c14_62] : memref<144xf32, #tpu.memory_space<smem>>
    %784 = vector.broadcast %783 : f32 to vector<1x256xf32>
    %785 = arith.mulf %784, %710 : vector<1x256xf32>
    %786 = arith.addf %782, %785 : vector<1x256xf32>
    %c15_63 = arith.constant 15 : index
    %787 = memref.load %arg5[%c15_63] : memref<144xf32, #tpu.memory_space<smem>>
    %788 = vector.broadcast %787 : f32 to vector<1x256xf32>
    %789 = arith.mulf %788, %714 : vector<1x256xf32>
    %790 = arith.addf %786, %789 : vector<1x256xf32>
    %c16_64 = arith.constant 16 : index
    %791 = memref.load %arg5[%c16_64] : memref<144xf32, #tpu.memory_space<smem>>
    %792 = vector.broadcast %791 : f32 to vector<1x256xf32>
    %793 = arith.mulf %792, %718 : vector<1x256xf32>
    %794 = arith.addf %790, %793 : vector<1x256xf32>
    %c17_65 = arith.constant 17 : index
    %795 = memref.load %arg5[%c17_65] : memref<144xf32, #tpu.memory_space<smem>>
    %796 = vector.broadcast %795 : f32 to vector<1x256xf32>
    %797 = arith.mulf %796, %722 : vector<1x256xf32>
    %798 = arith.addf %794, %797 : vector<1x256xf32>
    %c18_66 = arith.constant 18 : index
    %799 = memref.load %arg5[%c18_66] : memref<144xf32, #tpu.memory_space<smem>>
    %800 = vector.broadcast %799 : f32 to vector<1x256xf32>
    %801 = arith.mulf %800, %691 : vector<1x256xf32>
    %802 = arith.addf %798, %801 : vector<1x256xf32>
    %c19_67 = arith.constant 19 : index
    %803 = memref.load %arg5[%c19_67] : memref<144xf32, #tpu.memory_space<smem>>
    %804 = vector.broadcast %803 : f32 to vector<1x256xf32>
    %805 = arith.mulf %804, %695 : vector<1x256xf32>
    %806 = arith.addf %802, %805 : vector<1x256xf32>
    %c20_68 = arith.constant 20 : index
    %807 = memref.load %arg5[%c20_68] : memref<144xf32, #tpu.memory_space<smem>>
    %808 = vector.broadcast %807 : f32 to vector<1x256xf32>
    %809 = arith.mulf %808, %699 : vector<1x256xf32>
    %810 = arith.addf %806, %809 : vector<1x256xf32>
    %c21_69 = arith.constant 21 : index
    %811 = memref.load %arg5[%c21_69] : memref<144xf32, #tpu.memory_space<smem>>
    %812 = vector.broadcast %811 : f32 to vector<1x256xf32>
    %813 = arith.mulf %812, %703 : vector<1x256xf32>
    %814 = arith.addf %810, %813 : vector<1x256xf32>
    %c22_70 = arith.constant 22 : index
    %815 = memref.load %arg5[%c22_70] : memref<144xf32, #tpu.memory_space<smem>>
    %816 = vector.broadcast %815 : f32 to vector<1x256xf32>
    %817 = arith.mulf %816, %707 : vector<1x256xf32>
    %818 = arith.addf %814, %817 : vector<1x256xf32>
    %c23_71 = arith.constant 23 : index
    %819 = memref.load %arg5[%c23_71] : memref<144xf32, #tpu.memory_space<smem>>
    %820 = vector.broadcast %819 : f32 to vector<1x256xf32>
    %821 = arith.mulf %820, %711 : vector<1x256xf32>
    %822 = arith.addf %818, %821 : vector<1x256xf32>
    %c24_72 = arith.constant 24 : index
    %823 = memref.load %arg5[%c24_72] : memref<144xf32, #tpu.memory_space<smem>>
    %824 = vector.broadcast %823 : f32 to vector<1x256xf32>
    %825 = arith.mulf %824, %715 : vector<1x256xf32>
    %826 = arith.addf %822, %825 : vector<1x256xf32>
    %c25_73 = arith.constant 25 : index
    %827 = memref.load %arg5[%c25_73] : memref<144xf32, #tpu.memory_space<smem>>
    %828 = vector.broadcast %827 : f32 to vector<1x256xf32>
    %829 = arith.mulf %828, %719 : vector<1x256xf32>
    %830 = arith.addf %826, %829 : vector<1x256xf32>
    %c26_74 = arith.constant 26 : index
    %831 = memref.load %arg5[%c26_74] : memref<144xf32, #tpu.memory_space<smem>>
    %832 = vector.broadcast %831 : f32 to vector<1x256xf32>
    %833 = arith.mulf %832, %723 : vector<1x256xf32>
    %834 = arith.addf %830, %833 : vector<1x256xf32>
    %c27_75 = arith.constant 27 : index
    %835 = memref.load %arg5[%c27_75] : memref<144xf32, #tpu.memory_space<smem>>
    %836 = vector.broadcast %835 : f32 to vector<1x256xf32>
    %837 = arith.mulf %836, %692 : vector<1x256xf32>
    %838 = arith.addf %834, %837 : vector<1x256xf32>
    %c28_76 = arith.constant 28 : index
    %839 = memref.load %arg5[%c28_76] : memref<144xf32, #tpu.memory_space<smem>>
    %840 = vector.broadcast %839 : f32 to vector<1x256xf32>
    %841 = arith.mulf %840, %696 : vector<1x256xf32>
    %842 = arith.addf %838, %841 : vector<1x256xf32>
    %c29_77 = arith.constant 29 : index
    %843 = memref.load %arg5[%c29_77] : memref<144xf32, #tpu.memory_space<smem>>
    %844 = vector.broadcast %843 : f32 to vector<1x256xf32>
    %845 = arith.mulf %844, %700 : vector<1x256xf32>
    %846 = arith.addf %842, %845 : vector<1x256xf32>
    %c30_78 = arith.constant 30 : index
    %847 = memref.load %arg5[%c30_78] : memref<144xf32, #tpu.memory_space<smem>>
    %848 = vector.broadcast %847 : f32 to vector<1x256xf32>
    %849 = arith.mulf %848, %704 : vector<1x256xf32>
    %850 = arith.addf %846, %849 : vector<1x256xf32>
    %c31_79 = arith.constant 31 : index
    %851 = memref.load %arg5[%c31_79] : memref<144xf32, #tpu.memory_space<smem>>
    %852 = vector.broadcast %851 : f32 to vector<1x256xf32>
    %853 = arith.mulf %852, %708 : vector<1x256xf32>
    %854 = arith.addf %850, %853 : vector<1x256xf32>
    %c32_80 = arith.constant 32 : index
    %855 = memref.load %arg5[%c32_80] : memref<144xf32, #tpu.memory_space<smem>>
    %856 = vector.broadcast %855 : f32 to vector<1x256xf32>
    %857 = arith.mulf %856, %712 : vector<1x256xf32>
    %858 = arith.addf %854, %857 : vector<1x256xf32>
    %c33_81 = arith.constant 33 : index
    %859 = memref.load %arg5[%c33_81] : memref<144xf32, #tpu.memory_space<smem>>
    %860 = vector.broadcast %859 : f32 to vector<1x256xf32>
    %861 = arith.mulf %860, %716 : vector<1x256xf32>
    %862 = arith.addf %858, %861 : vector<1x256xf32>
    %c34_82 = arith.constant 34 : index
    %863 = memref.load %arg5[%c34_82] : memref<144xf32, #tpu.memory_space<smem>>
    %864 = vector.broadcast %863 : f32 to vector<1x256xf32>
    %865 = arith.mulf %864, %720 : vector<1x256xf32>
    %866 = arith.addf %862, %865 : vector<1x256xf32>
    %c35_83 = arith.constant 35 : index
    %867 = memref.load %arg5[%c35_83] : memref<144xf32, #tpu.memory_space<smem>>
    %868 = vector.broadcast %867 : f32 to vector<1x256xf32>
    %869 = arith.mulf %868, %724 : vector<1x256xf32>
    %870 = arith.addf %866, %869 : vector<1x256xf32>
    %c1_84 = arith.constant 1 : index
    %871 = memref.load %arg6[%c1_84] : memref<4xf32, #tpu.memory_space<smem>>
    %872 = vector.broadcast %871 : f32 to vector<1x256xf32>
    %c36_85 = arith.constant 36 : index
    %873 = memref.load %arg5[%c36_85] : memref<144xf32, #tpu.memory_space<smem>>
    %874 = vector.broadcast %873 : f32 to vector<1x256xf32>
    %875 = arith.mulf %874, %689 : vector<1x256xf32>
    %876 = arith.addf %872, %875 : vector<1x256xf32>
    %c37_86 = arith.constant 37 : index
    %877 = memref.load %arg5[%c37_86] : memref<144xf32, #tpu.memory_space<smem>>
    %878 = vector.broadcast %877 : f32 to vector<1x256xf32>
    %879 = arith.mulf %878, %693 : vector<1x256xf32>
    %880 = arith.addf %876, %879 : vector<1x256xf32>
    %c38_87 = arith.constant 38 : index
    %881 = memref.load %arg5[%c38_87] : memref<144xf32, #tpu.memory_space<smem>>
    %882 = vector.broadcast %881 : f32 to vector<1x256xf32>
    %883 = arith.mulf %882, %697 : vector<1x256xf32>
    %884 = arith.addf %880, %883 : vector<1x256xf32>
    %c39_88 = arith.constant 39 : index
    %885 = memref.load %arg5[%c39_88] : memref<144xf32, #tpu.memory_space<smem>>
    %886 = vector.broadcast %885 : f32 to vector<1x256xf32>
    %887 = arith.mulf %886, %701 : vector<1x256xf32>
    %888 = arith.addf %884, %887 : vector<1x256xf32>
    %c40_89 = arith.constant 40 : index
    %889 = memref.load %arg5[%c40_89] : memref<144xf32, #tpu.memory_space<smem>>
    %890 = vector.broadcast %889 : f32 to vector<1x256xf32>
    %891 = arith.mulf %890, %705 : vector<1x256xf32>
    %892 = arith.addf %888, %891 : vector<1x256xf32>
    %c41_90 = arith.constant 41 : index
    %893 = memref.load %arg5[%c41_90] : memref<144xf32, #tpu.memory_space<smem>>
    %894 = vector.broadcast %893 : f32 to vector<1x256xf32>
    %895 = arith.mulf %894, %709 : vector<1x256xf32>
    %896 = arith.addf %892, %895 : vector<1x256xf32>
    %c42_91 = arith.constant 42 : index
    %897 = memref.load %arg5[%c42_91] : memref<144xf32, #tpu.memory_space<smem>>
    %898 = vector.broadcast %897 : f32 to vector<1x256xf32>
    %899 = arith.mulf %898, %713 : vector<1x256xf32>
    %900 = arith.addf %896, %899 : vector<1x256xf32>
    %c43_92 = arith.constant 43 : index
    %901 = memref.load %arg5[%c43_92] : memref<144xf32, #tpu.memory_space<smem>>
    %902 = vector.broadcast %901 : f32 to vector<1x256xf32>
    %903 = arith.mulf %902, %717 : vector<1x256xf32>
    %904 = arith.addf %900, %903 : vector<1x256xf32>
    %c44_93 = arith.constant 44 : index
    %905 = memref.load %arg5[%c44_93] : memref<144xf32, #tpu.memory_space<smem>>
    %906 = vector.broadcast %905 : f32 to vector<1x256xf32>
    %907 = arith.mulf %906, %721 : vector<1x256xf32>
    %908 = arith.addf %904, %907 : vector<1x256xf32>
    %c45_94 = arith.constant 45 : index
    %909 = memref.load %arg5[%c45_94] : memref<144xf32, #tpu.memory_space<smem>>
    %910 = vector.broadcast %909 : f32 to vector<1x256xf32>
    %911 = arith.mulf %910, %690 : vector<1x256xf32>
    %912 = arith.addf %908, %911 : vector<1x256xf32>
    %c46_95 = arith.constant 46 : index
    %913 = memref.load %arg5[%c46_95] : memref<144xf32, #tpu.memory_space<smem>>
    %914 = vector.broadcast %913 : f32 to vector<1x256xf32>
    %915 = arith.mulf %914, %694 : vector<1x256xf32>
    %916 = arith.addf %912, %915 : vector<1x256xf32>
    %c47_96 = arith.constant 47 : index
    %917 = memref.load %arg5[%c47_96] : memref<144xf32, #tpu.memory_space<smem>>
    %918 = vector.broadcast %917 : f32 to vector<1x256xf32>
    %919 = arith.mulf %918, %698 : vector<1x256xf32>
    %920 = arith.addf %916, %919 : vector<1x256xf32>
    %c48_97 = arith.constant 48 : index
    %921 = memref.load %arg5[%c48_97] : memref<144xf32, #tpu.memory_space<smem>>
    %922 = vector.broadcast %921 : f32 to vector<1x256xf32>
    %923 = arith.mulf %922, %702 : vector<1x256xf32>
    %924 = arith.addf %920, %923 : vector<1x256xf32>
    %c49_98 = arith.constant 49 : index
    %925 = memref.load %arg5[%c49_98] : memref<144xf32, #tpu.memory_space<smem>>
    %926 = vector.broadcast %925 : f32 to vector<1x256xf32>
    %927 = arith.mulf %926, %706 : vector<1x256xf32>
    %928 = arith.addf %924, %927 : vector<1x256xf32>
    %c50_99 = arith.constant 50 : index
    %929 = memref.load %arg5[%c50_99] : memref<144xf32, #tpu.memory_space<smem>>
    %930 = vector.broadcast %929 : f32 to vector<1x256xf32>
    %931 = arith.mulf %930, %710 : vector<1x256xf32>
    %932 = arith.addf %928, %931 : vector<1x256xf32>
    %c51_100 = arith.constant 51 : index
    %933 = memref.load %arg5[%c51_100] : memref<144xf32, #tpu.memory_space<smem>>
    %934 = vector.broadcast %933 : f32 to vector<1x256xf32>
    %935 = arith.mulf %934, %714 : vector<1x256xf32>
    %936 = arith.addf %932, %935 : vector<1x256xf32>
    %c52_101 = arith.constant 52 : index
    %937 = memref.load %arg5[%c52_101] : memref<144xf32, #tpu.memory_space<smem>>
    %938 = vector.broadcast %937 : f32 to vector<1x256xf32>
    %939 = arith.mulf %938, %718 : vector<1x256xf32>
    %940 = arith.addf %936, %939 : vector<1x256xf32>
    %c53_102 = arith.constant 53 : index
    %941 = memref.load %arg5[%c53_102] : memref<144xf32, #tpu.memory_space<smem>>
    %942 = vector.broadcast %941 : f32 to vector<1x256xf32>
    %943 = arith.mulf %942, %722 : vector<1x256xf32>
    %944 = arith.addf %940, %943 : vector<1x256xf32>
    %c54_103 = arith.constant 54 : index
    %945 = memref.load %arg5[%c54_103] : memref<144xf32, #tpu.memory_space<smem>>
    %946 = vector.broadcast %945 : f32 to vector<1x256xf32>
    %947 = arith.mulf %946, %691 : vector<1x256xf32>
    %948 = arith.addf %944, %947 : vector<1x256xf32>
    %c55_104 = arith.constant 55 : index
    %949 = memref.load %arg5[%c55_104] : memref<144xf32, #tpu.memory_space<smem>>
    %950 = vector.broadcast %949 : f32 to vector<1x256xf32>
    %951 = arith.mulf %950, %695 : vector<1x256xf32>
    %952 = arith.addf %948, %951 : vector<1x256xf32>
    %c56_105 = arith.constant 56 : index
    %953 = memref.load %arg5[%c56_105] : memref<144xf32, #tpu.memory_space<smem>>
    %954 = vector.broadcast %953 : f32 to vector<1x256xf32>
    %955 = arith.mulf %954, %699 : vector<1x256xf32>
    %956 = arith.addf %952, %955 : vector<1x256xf32>
    %c57_106 = arith.constant 57 : index
    %957 = memref.load %arg5[%c57_106] : memref<144xf32, #tpu.memory_space<smem>>
    %958 = vector.broadcast %957 : f32 to vector<1x256xf32>
    %959 = arith.mulf %958, %703 : vector<1x256xf32>
    %960 = arith.addf %956, %959 : vector<1x256xf32>
    %c58_107 = arith.constant 58 : index
    %961 = memref.load %arg5[%c58_107] : memref<144xf32, #tpu.memory_space<smem>>
    %962 = vector.broadcast %961 : f32 to vector<1x256xf32>
    %963 = arith.mulf %962, %707 : vector<1x256xf32>
    %964 = arith.addf %960, %963 : vector<1x256xf32>
    %c59_108 = arith.constant 59 : index
    %965 = memref.load %arg5[%c59_108] : memref<144xf32, #tpu.memory_space<smem>>
    %966 = vector.broadcast %965 : f32 to vector<1x256xf32>
    %967 = arith.mulf %966, %711 : vector<1x256xf32>
    %968 = arith.addf %964, %967 : vector<1x256xf32>
    %c60_109 = arith.constant 60 : index
    %969 = memref.load %arg5[%c60_109] : memref<144xf32, #tpu.memory_space<smem>>
    %970 = vector.broadcast %969 : f32 to vector<1x256xf32>
    %971 = arith.mulf %970, %715 : vector<1x256xf32>
    %972 = arith.addf %968, %971 : vector<1x256xf32>
    %c61_110 = arith.constant 61 : index
    %973 = memref.load %arg5[%c61_110] : memref<144xf32, #tpu.memory_space<smem>>
    %974 = vector.broadcast %973 : f32 to vector<1x256xf32>
    %975 = arith.mulf %974, %719 : vector<1x256xf32>
    %976 = arith.addf %972, %975 : vector<1x256xf32>
    %c62_111 = arith.constant 62 : index
    %977 = memref.load %arg5[%c62_111] : memref<144xf32, #tpu.memory_space<smem>>
    %978 = vector.broadcast %977 : f32 to vector<1x256xf32>
    %979 = arith.mulf %978, %723 : vector<1x256xf32>
    %980 = arith.addf %976, %979 : vector<1x256xf32>
    %c63_112 = arith.constant 63 : index
    %981 = memref.load %arg5[%c63_112] : memref<144xf32, #tpu.memory_space<smem>>
    %982 = vector.broadcast %981 : f32 to vector<1x256xf32>
    %983 = arith.mulf %982, %692 : vector<1x256xf32>
    %984 = arith.addf %980, %983 : vector<1x256xf32>
    %c64_113 = arith.constant 64 : index
    %985 = memref.load %arg5[%c64_113] : memref<144xf32, #tpu.memory_space<smem>>
    %986 = vector.broadcast %985 : f32 to vector<1x256xf32>
    %987 = arith.mulf %986, %696 : vector<1x256xf32>
    %988 = arith.addf %984, %987 : vector<1x256xf32>
    %c65_114 = arith.constant 65 : index
    %989 = memref.load %arg5[%c65_114] : memref<144xf32, #tpu.memory_space<smem>>
    %990 = vector.broadcast %989 : f32 to vector<1x256xf32>
    %991 = arith.mulf %990, %700 : vector<1x256xf32>
    %992 = arith.addf %988, %991 : vector<1x256xf32>
    %c66_115 = arith.constant 66 : index
    %993 = memref.load %arg5[%c66_115] : memref<144xf32, #tpu.memory_space<smem>>
    %994 = vector.broadcast %993 : f32 to vector<1x256xf32>
    %995 = arith.mulf %994, %704 : vector<1x256xf32>
    %996 = arith.addf %992, %995 : vector<1x256xf32>
    %c67_116 = arith.constant 67 : index
    %997 = memref.load %arg5[%c67_116] : memref<144xf32, #tpu.memory_space<smem>>
    %998 = vector.broadcast %997 : f32 to vector<1x256xf32>
    %999 = arith.mulf %998, %708 : vector<1x256xf32>
    %1000 = arith.addf %996, %999 : vector<1x256xf32>
    %c68_117 = arith.constant 68 : index
    %1001 = memref.load %arg5[%c68_117] : memref<144xf32, #tpu.memory_space<smem>>
    %1002 = vector.broadcast %1001 : f32 to vector<1x256xf32>
    %1003 = arith.mulf %1002, %712 : vector<1x256xf32>
    %1004 = arith.addf %1000, %1003 : vector<1x256xf32>
    %c69_118 = arith.constant 69 : index
    %1005 = memref.load %arg5[%c69_118] : memref<144xf32, #tpu.memory_space<smem>>
    %1006 = vector.broadcast %1005 : f32 to vector<1x256xf32>
    %1007 = arith.mulf %1006, %716 : vector<1x256xf32>
    %1008 = arith.addf %1004, %1007 : vector<1x256xf32>
    %c70_119 = arith.constant 70 : index
    %1009 = memref.load %arg5[%c70_119] : memref<144xf32, #tpu.memory_space<smem>>
    %1010 = vector.broadcast %1009 : f32 to vector<1x256xf32>
    %1011 = arith.mulf %1010, %720 : vector<1x256xf32>
    %1012 = arith.addf %1008, %1011 : vector<1x256xf32>
    %c71_120 = arith.constant 71 : index
    %1013 = memref.load %arg5[%c71_120] : memref<144xf32, #tpu.memory_space<smem>>
    %1014 = vector.broadcast %1013 : f32 to vector<1x256xf32>
    %1015 = arith.mulf %1014, %724 : vector<1x256xf32>
    %1016 = arith.addf %1012, %1015 : vector<1x256xf32>
    %c2_121 = arith.constant 2 : index
    %1017 = memref.load %arg6[%c2_121] : memref<4xf32, #tpu.memory_space<smem>>
    %1018 = vector.broadcast %1017 : f32 to vector<1x256xf32>
    %c72_122 = arith.constant 72 : index
    %1019 = memref.load %arg5[%c72_122] : memref<144xf32, #tpu.memory_space<smem>>
    %1020 = vector.broadcast %1019 : f32 to vector<1x256xf32>
    %1021 = arith.mulf %1020, %689 : vector<1x256xf32>
    %1022 = arith.addf %1018, %1021 : vector<1x256xf32>
    %c73_123 = arith.constant 73 : index
    %1023 = memref.load %arg5[%c73_123] : memref<144xf32, #tpu.memory_space<smem>>
    %1024 = vector.broadcast %1023 : f32 to vector<1x256xf32>
    %1025 = arith.mulf %1024, %693 : vector<1x256xf32>
    %1026 = arith.addf %1022, %1025 : vector<1x256xf32>
    %c74_124 = arith.constant 74 : index
    %1027 = memref.load %arg5[%c74_124] : memref<144xf32, #tpu.memory_space<smem>>
    %1028 = vector.broadcast %1027 : f32 to vector<1x256xf32>
    %1029 = arith.mulf %1028, %697 : vector<1x256xf32>
    %1030 = arith.addf %1026, %1029 : vector<1x256xf32>
    %c75_125 = arith.constant 75 : index
    %1031 = memref.load %arg5[%c75_125] : memref<144xf32, #tpu.memory_space<smem>>
    %1032 = vector.broadcast %1031 : f32 to vector<1x256xf32>
    %1033 = arith.mulf %1032, %701 : vector<1x256xf32>
    %1034 = arith.addf %1030, %1033 : vector<1x256xf32>
    %c76_126 = arith.constant 76 : index
    %1035 = memref.load %arg5[%c76_126] : memref<144xf32, #tpu.memory_space<smem>>
    %1036 = vector.broadcast %1035 : f32 to vector<1x256xf32>
    %1037 = arith.mulf %1036, %705 : vector<1x256xf32>
    %1038 = arith.addf %1034, %1037 : vector<1x256xf32>
    %c77_127 = arith.constant 77 : index
    %1039 = memref.load %arg5[%c77_127] : memref<144xf32, #tpu.memory_space<smem>>
    %1040 = vector.broadcast %1039 : f32 to vector<1x256xf32>
    %1041 = arith.mulf %1040, %709 : vector<1x256xf32>
    %1042 = arith.addf %1038, %1041 : vector<1x256xf32>
    %c78_128 = arith.constant 78 : index
    %1043 = memref.load %arg5[%c78_128] : memref<144xf32, #tpu.memory_space<smem>>
    %1044 = vector.broadcast %1043 : f32 to vector<1x256xf32>
    %1045 = arith.mulf %1044, %713 : vector<1x256xf32>
    %1046 = arith.addf %1042, %1045 : vector<1x256xf32>
    %c79_129 = arith.constant 79 : index
    %1047 = memref.load %arg5[%c79_129] : memref<144xf32, #tpu.memory_space<smem>>
    %1048 = vector.broadcast %1047 : f32 to vector<1x256xf32>
    %1049 = arith.mulf %1048, %717 : vector<1x256xf32>
    %1050 = arith.addf %1046, %1049 : vector<1x256xf32>
    %c80_130 = arith.constant 80 : index
    %1051 = memref.load %arg5[%c80_130] : memref<144xf32, #tpu.memory_space<smem>>
    %1052 = vector.broadcast %1051 : f32 to vector<1x256xf32>
    %1053 = arith.mulf %1052, %721 : vector<1x256xf32>
    %1054 = arith.addf %1050, %1053 : vector<1x256xf32>
    %c81_131 = arith.constant 81 : index
    %1055 = memref.load %arg5[%c81_131] : memref<144xf32, #tpu.memory_space<smem>>
    %1056 = vector.broadcast %1055 : f32 to vector<1x256xf32>
    %1057 = arith.mulf %1056, %690 : vector<1x256xf32>
    %1058 = arith.addf %1054, %1057 : vector<1x256xf32>
    %c82_132 = arith.constant 82 : index
    %1059 = memref.load %arg5[%c82_132] : memref<144xf32, #tpu.memory_space<smem>>
    %1060 = vector.broadcast %1059 : f32 to vector<1x256xf32>
    %1061 = arith.mulf %1060, %694 : vector<1x256xf32>
    %1062 = arith.addf %1058, %1061 : vector<1x256xf32>
    %c83_133 = arith.constant 83 : index
    %1063 = memref.load %arg5[%c83_133] : memref<144xf32, #tpu.memory_space<smem>>
    %1064 = vector.broadcast %1063 : f32 to vector<1x256xf32>
    %1065 = arith.mulf %1064, %698 : vector<1x256xf32>
    %1066 = arith.addf %1062, %1065 : vector<1x256xf32>
    %c84_134 = arith.constant 84 : index
    %1067 = memref.load %arg5[%c84_134] : memref<144xf32, #tpu.memory_space<smem>>
    %1068 = vector.broadcast %1067 : f32 to vector<1x256xf32>
    %1069 = arith.mulf %1068, %702 : vector<1x256xf32>
    %1070 = arith.addf %1066, %1069 : vector<1x256xf32>
    %c85_135 = arith.constant 85 : index
    %1071 = memref.load %arg5[%c85_135] : memref<144xf32, #tpu.memory_space<smem>>
    %1072 = vector.broadcast %1071 : f32 to vector<1x256xf32>
    %1073 = arith.mulf %1072, %706 : vector<1x256xf32>
    %1074 = arith.addf %1070, %1073 : vector<1x256xf32>
    %c86_136 = arith.constant 86 : index
    %1075 = memref.load %arg5[%c86_136] : memref<144xf32, #tpu.memory_space<smem>>
    %1076 = vector.broadcast %1075 : f32 to vector<1x256xf32>
    %1077 = arith.mulf %1076, %710 : vector<1x256xf32>
    %1078 = arith.addf %1074, %1077 : vector<1x256xf32>
    %c87_137 = arith.constant 87 : index
    %1079 = memref.load %arg5[%c87_137] : memref<144xf32, #tpu.memory_space<smem>>
    %1080 = vector.broadcast %1079 : f32 to vector<1x256xf32>
    %1081 = arith.mulf %1080, %714 : vector<1x256xf32>
    %1082 = arith.addf %1078, %1081 : vector<1x256xf32>
    %c88_138 = arith.constant 88 : index
    %1083 = memref.load %arg5[%c88_138] : memref<144xf32, #tpu.memory_space<smem>>
    %1084 = vector.broadcast %1083 : f32 to vector<1x256xf32>
    %1085 = arith.mulf %1084, %718 : vector<1x256xf32>
    %1086 = arith.addf %1082, %1085 : vector<1x256xf32>
    %c89_139 = arith.constant 89 : index
    %1087 = memref.load %arg5[%c89_139] : memref<144xf32, #tpu.memory_space<smem>>
    %1088 = vector.broadcast %1087 : f32 to vector<1x256xf32>
    %1089 = arith.mulf %1088, %722 : vector<1x256xf32>
    %1090 = arith.addf %1086, %1089 : vector<1x256xf32>
    %c90_140 = arith.constant 90 : index
    %1091 = memref.load %arg5[%c90_140] : memref<144xf32, #tpu.memory_space<smem>>
    %1092 = vector.broadcast %1091 : f32 to vector<1x256xf32>
    %1093 = arith.mulf %1092, %691 : vector<1x256xf32>
    %1094 = arith.addf %1090, %1093 : vector<1x256xf32>
    %c91_141 = arith.constant 91 : index
    %1095 = memref.load %arg5[%c91_141] : memref<144xf32, #tpu.memory_space<smem>>
    %1096 = vector.broadcast %1095 : f32 to vector<1x256xf32>
    %1097 = arith.mulf %1096, %695 : vector<1x256xf32>
    %1098 = arith.addf %1094, %1097 : vector<1x256xf32>
    %c92_142 = arith.constant 92 : index
    %1099 = memref.load %arg5[%c92_142] : memref<144xf32, #tpu.memory_space<smem>>
    %1100 = vector.broadcast %1099 : f32 to vector<1x256xf32>
    %1101 = arith.mulf %1100, %699 : vector<1x256xf32>
    %1102 = arith.addf %1098, %1101 : vector<1x256xf32>
    %c93_143 = arith.constant 93 : index
    %1103 = memref.load %arg5[%c93_143] : memref<144xf32, #tpu.memory_space<smem>>
    %1104 = vector.broadcast %1103 : f32 to vector<1x256xf32>
    %1105 = arith.mulf %1104, %703 : vector<1x256xf32>
    %1106 = arith.addf %1102, %1105 : vector<1x256xf32>
    %c94_144 = arith.constant 94 : index
    %1107 = memref.load %arg5[%c94_144] : memref<144xf32, #tpu.memory_space<smem>>
    %1108 = vector.broadcast %1107 : f32 to vector<1x256xf32>
    %1109 = arith.mulf %1108, %707 : vector<1x256xf32>
    %1110 = arith.addf %1106, %1109 : vector<1x256xf32>
    %c95_145 = arith.constant 95 : index
    %1111 = memref.load %arg5[%c95_145] : memref<144xf32, #tpu.memory_space<smem>>
    %1112 = vector.broadcast %1111 : f32 to vector<1x256xf32>
    %1113 = arith.mulf %1112, %711 : vector<1x256xf32>
    %1114 = arith.addf %1110, %1113 : vector<1x256xf32>
    %c96_146 = arith.constant 96 : index
    %1115 = memref.load %arg5[%c96_146] : memref<144xf32, #tpu.memory_space<smem>>
    %1116 = vector.broadcast %1115 : f32 to vector<1x256xf32>
    %1117 = arith.mulf %1116, %715 : vector<1x256xf32>
    %1118 = arith.addf %1114, %1117 : vector<1x256xf32>
    %c97_147 = arith.constant 97 : index
    %1119 = memref.load %arg5[%c97_147] : memref<144xf32, #tpu.memory_space<smem>>
    %1120 = vector.broadcast %1119 : f32 to vector<1x256xf32>
    %1121 = arith.mulf %1120, %719 : vector<1x256xf32>
    %1122 = arith.addf %1118, %1121 : vector<1x256xf32>
    %c98_148 = arith.constant 98 : index
    %1123 = memref.load %arg5[%c98_148] : memref<144xf32, #tpu.memory_space<smem>>
    %1124 = vector.broadcast %1123 : f32 to vector<1x256xf32>
    %1125 = arith.mulf %1124, %723 : vector<1x256xf32>
    %1126 = arith.addf %1122, %1125 : vector<1x256xf32>
    %c99_149 = arith.constant 99 : index
    %1127 = memref.load %arg5[%c99_149] : memref<144xf32, #tpu.memory_space<smem>>
    %1128 = vector.broadcast %1127 : f32 to vector<1x256xf32>
    %1129 = arith.mulf %1128, %692 : vector<1x256xf32>
    %1130 = arith.addf %1126, %1129 : vector<1x256xf32>
    %c100_150 = arith.constant 100 : index
    %1131 = memref.load %arg5[%c100_150] : memref<144xf32, #tpu.memory_space<smem>>
    %1132 = vector.broadcast %1131 : f32 to vector<1x256xf32>
    %1133 = arith.mulf %1132, %696 : vector<1x256xf32>
    %1134 = arith.addf %1130, %1133 : vector<1x256xf32>
    %c101_151 = arith.constant 101 : index
    %1135 = memref.load %arg5[%c101_151] : memref<144xf32, #tpu.memory_space<smem>>
    %1136 = vector.broadcast %1135 : f32 to vector<1x256xf32>
    %1137 = arith.mulf %1136, %700 : vector<1x256xf32>
    %1138 = arith.addf %1134, %1137 : vector<1x256xf32>
    %c102_152 = arith.constant 102 : index
    %1139 = memref.load %arg5[%c102_152] : memref<144xf32, #tpu.memory_space<smem>>
    %1140 = vector.broadcast %1139 : f32 to vector<1x256xf32>
    %1141 = arith.mulf %1140, %704 : vector<1x256xf32>
    %1142 = arith.addf %1138, %1141 : vector<1x256xf32>
    %c103_153 = arith.constant 103 : index
    %1143 = memref.load %arg5[%c103_153] : memref<144xf32, #tpu.memory_space<smem>>
    %1144 = vector.broadcast %1143 : f32 to vector<1x256xf32>
    %1145 = arith.mulf %1144, %708 : vector<1x256xf32>
    %1146 = arith.addf %1142, %1145 : vector<1x256xf32>
    %c104_154 = arith.constant 104 : index
    %1147 = memref.load %arg5[%c104_154] : memref<144xf32, #tpu.memory_space<smem>>
    %1148 = vector.broadcast %1147 : f32 to vector<1x256xf32>
    %1149 = arith.mulf %1148, %712 : vector<1x256xf32>
    %1150 = arith.addf %1146, %1149 : vector<1x256xf32>
    %c105_155 = arith.constant 105 : index
    %1151 = memref.load %arg5[%c105_155] : memref<144xf32, #tpu.memory_space<smem>>
    %1152 = vector.broadcast %1151 : f32 to vector<1x256xf32>
    %1153 = arith.mulf %1152, %716 : vector<1x256xf32>
    %1154 = arith.addf %1150, %1153 : vector<1x256xf32>
    %c106_156 = arith.constant 106 : index
    %1155 = memref.load %arg5[%c106_156] : memref<144xf32, #tpu.memory_space<smem>>
    %1156 = vector.broadcast %1155 : f32 to vector<1x256xf32>
    %1157 = arith.mulf %1156, %720 : vector<1x256xf32>
    %1158 = arith.addf %1154, %1157 : vector<1x256xf32>
    %c107_157 = arith.constant 107 : index
    %1159 = memref.load %arg5[%c107_157] : memref<144xf32, #tpu.memory_space<smem>>
    %1160 = vector.broadcast %1159 : f32 to vector<1x256xf32>
    %1161 = arith.mulf %1160, %724 : vector<1x256xf32>
    %1162 = arith.addf %1158, %1161 : vector<1x256xf32>
    %c3_158 = arith.constant 3 : index
    %1163 = memref.load %arg6[%c3_158] : memref<4xf32, #tpu.memory_space<smem>>
    %1164 = vector.broadcast %1163 : f32 to vector<1x256xf32>
    %c108_159 = arith.constant 108 : index
    %1165 = memref.load %arg5[%c108_159] : memref<144xf32, #tpu.memory_space<smem>>
    %1166 = vector.broadcast %1165 : f32 to vector<1x256xf32>
    %1167 = arith.mulf %1166, %689 : vector<1x256xf32>
    %1168 = arith.addf %1164, %1167 : vector<1x256xf32>
    %c109_160 = arith.constant 109 : index
    %1169 = memref.load %arg5[%c109_160] : memref<144xf32, #tpu.memory_space<smem>>
    %1170 = vector.broadcast %1169 : f32 to vector<1x256xf32>
    %1171 = arith.mulf %1170, %693 : vector<1x256xf32>
    %1172 = arith.addf %1168, %1171 : vector<1x256xf32>
    %c110_161 = arith.constant 110 : index
    %1173 = memref.load %arg5[%c110_161] : memref<144xf32, #tpu.memory_space<smem>>
    %1174 = vector.broadcast %1173 : f32 to vector<1x256xf32>
    %1175 = arith.mulf %1174, %697 : vector<1x256xf32>
    %1176 = arith.addf %1172, %1175 : vector<1x256xf32>
    %c111_162 = arith.constant 111 : index
    %1177 = memref.load %arg5[%c111_162] : memref<144xf32, #tpu.memory_space<smem>>
    %1178 = vector.broadcast %1177 : f32 to vector<1x256xf32>
    %1179 = arith.mulf %1178, %701 : vector<1x256xf32>
    %1180 = arith.addf %1176, %1179 : vector<1x256xf32>
    %c112_163 = arith.constant 112 : index
    %1181 = memref.load %arg5[%c112_163] : memref<144xf32, #tpu.memory_space<smem>>
    %1182 = vector.broadcast %1181 : f32 to vector<1x256xf32>
    %1183 = arith.mulf %1182, %705 : vector<1x256xf32>
    %1184 = arith.addf %1180, %1183 : vector<1x256xf32>
    %c113_164 = arith.constant 113 : index
    %1185 = memref.load %arg5[%c113_164] : memref<144xf32, #tpu.memory_space<smem>>
    %1186 = vector.broadcast %1185 : f32 to vector<1x256xf32>
    %1187 = arith.mulf %1186, %709 : vector<1x256xf32>
    %1188 = arith.addf %1184, %1187 : vector<1x256xf32>
    %c114_165 = arith.constant 114 : index
    %1189 = memref.load %arg5[%c114_165] : memref<144xf32, #tpu.memory_space<smem>>
    %1190 = vector.broadcast %1189 : f32 to vector<1x256xf32>
    %1191 = arith.mulf %1190, %713 : vector<1x256xf32>
    %1192 = arith.addf %1188, %1191 : vector<1x256xf32>
    %c115_166 = arith.constant 115 : index
    %1193 = memref.load %arg5[%c115_166] : memref<144xf32, #tpu.memory_space<smem>>
    %1194 = vector.broadcast %1193 : f32 to vector<1x256xf32>
    %1195 = arith.mulf %1194, %717 : vector<1x256xf32>
    %1196 = arith.addf %1192, %1195 : vector<1x256xf32>
    %c116_167 = arith.constant 116 : index
    %1197 = memref.load %arg5[%c116_167] : memref<144xf32, #tpu.memory_space<smem>>
    %1198 = vector.broadcast %1197 : f32 to vector<1x256xf32>
    %1199 = arith.mulf %1198, %721 : vector<1x256xf32>
    %1200 = arith.addf %1196, %1199 : vector<1x256xf32>
    %c117_168 = arith.constant 117 : index
    %1201 = memref.load %arg5[%c117_168] : memref<144xf32, #tpu.memory_space<smem>>
    %1202 = vector.broadcast %1201 : f32 to vector<1x256xf32>
    %1203 = arith.mulf %1202, %690 : vector<1x256xf32>
    %1204 = arith.addf %1200, %1203 : vector<1x256xf32>
    %c118_169 = arith.constant 118 : index
    %1205 = memref.load %arg5[%c118_169] : memref<144xf32, #tpu.memory_space<smem>>
    %1206 = vector.broadcast %1205 : f32 to vector<1x256xf32>
    %1207 = arith.mulf %1206, %694 : vector<1x256xf32>
    %1208 = arith.addf %1204, %1207 : vector<1x256xf32>
    %c119_170 = arith.constant 119 : index
    %1209 = memref.load %arg5[%c119_170] : memref<144xf32, #tpu.memory_space<smem>>
    %1210 = vector.broadcast %1209 : f32 to vector<1x256xf32>
    %1211 = arith.mulf %1210, %698 : vector<1x256xf32>
    %1212 = arith.addf %1208, %1211 : vector<1x256xf32>
    %c120_171 = arith.constant 120 : index
    %1213 = memref.load %arg5[%c120_171] : memref<144xf32, #tpu.memory_space<smem>>
    %1214 = vector.broadcast %1213 : f32 to vector<1x256xf32>
    %1215 = arith.mulf %1214, %702 : vector<1x256xf32>
    %1216 = arith.addf %1212, %1215 : vector<1x256xf32>
    %c121_172 = arith.constant 121 : index
    %1217 = memref.load %arg5[%c121_172] : memref<144xf32, #tpu.memory_space<smem>>
    %1218 = vector.broadcast %1217 : f32 to vector<1x256xf32>
    %1219 = arith.mulf %1218, %706 : vector<1x256xf32>
    %1220 = arith.addf %1216, %1219 : vector<1x256xf32>
    %c122_173 = arith.constant 122 : index
    %1221 = memref.load %arg5[%c122_173] : memref<144xf32, #tpu.memory_space<smem>>
    %1222 = vector.broadcast %1221 : f32 to vector<1x256xf32>
    %1223 = arith.mulf %1222, %710 : vector<1x256xf32>
    %1224 = arith.addf %1220, %1223 : vector<1x256xf32>
    %c123_174 = arith.constant 123 : index
    %1225 = memref.load %arg5[%c123_174] : memref<144xf32, #tpu.memory_space<smem>>
    %1226 = vector.broadcast %1225 : f32 to vector<1x256xf32>
    %1227 = arith.mulf %1226, %714 : vector<1x256xf32>
    %1228 = arith.addf %1224, %1227 : vector<1x256xf32>
    %c124_175 = arith.constant 124 : index
    %1229 = memref.load %arg5[%c124_175] : memref<144xf32, #tpu.memory_space<smem>>
    %1230 = vector.broadcast %1229 : f32 to vector<1x256xf32>
    %1231 = arith.mulf %1230, %718 : vector<1x256xf32>
    %1232 = arith.addf %1228, %1231 : vector<1x256xf32>
    %c125_176 = arith.constant 125 : index
    %1233 = memref.load %arg5[%c125_176] : memref<144xf32, #tpu.memory_space<smem>>
    %1234 = vector.broadcast %1233 : f32 to vector<1x256xf32>
    %1235 = arith.mulf %1234, %722 : vector<1x256xf32>
    %1236 = arith.addf %1232, %1235 : vector<1x256xf32>
    %c126_177 = arith.constant 126 : index
    %1237 = memref.load %arg5[%c126_177] : memref<144xf32, #tpu.memory_space<smem>>
    %1238 = vector.broadcast %1237 : f32 to vector<1x256xf32>
    %1239 = arith.mulf %1238, %691 : vector<1x256xf32>
    %1240 = arith.addf %1236, %1239 : vector<1x256xf32>
    %c127_178 = arith.constant 127 : index
    %1241 = memref.load %arg5[%c127_178] : memref<144xf32, #tpu.memory_space<smem>>
    %1242 = vector.broadcast %1241 : f32 to vector<1x256xf32>
    %1243 = arith.mulf %1242, %695 : vector<1x256xf32>
    %1244 = arith.addf %1240, %1243 : vector<1x256xf32>
    %c128_179 = arith.constant 128 : index
    %1245 = memref.load %arg5[%c128_179] : memref<144xf32, #tpu.memory_space<smem>>
    %1246 = vector.broadcast %1245 : f32 to vector<1x256xf32>
    %1247 = arith.mulf %1246, %699 : vector<1x256xf32>
    %1248 = arith.addf %1244, %1247 : vector<1x256xf32>
    %c129_180 = arith.constant 129 : index
    %1249 = memref.load %arg5[%c129_180] : memref<144xf32, #tpu.memory_space<smem>>
    %1250 = vector.broadcast %1249 : f32 to vector<1x256xf32>
    %1251 = arith.mulf %1250, %703 : vector<1x256xf32>
    %1252 = arith.addf %1248, %1251 : vector<1x256xf32>
    %c130_181 = arith.constant 130 : index
    %1253 = memref.load %arg5[%c130_181] : memref<144xf32, #tpu.memory_space<smem>>
    %1254 = vector.broadcast %1253 : f32 to vector<1x256xf32>
    %1255 = arith.mulf %1254, %707 : vector<1x256xf32>
    %1256 = arith.addf %1252, %1255 : vector<1x256xf32>
    %c131_182 = arith.constant 131 : index
    %1257 = memref.load %arg5[%c131_182] : memref<144xf32, #tpu.memory_space<smem>>
    %1258 = vector.broadcast %1257 : f32 to vector<1x256xf32>
    %1259 = arith.mulf %1258, %711 : vector<1x256xf32>
    %1260 = arith.addf %1256, %1259 : vector<1x256xf32>
    %c132_183 = arith.constant 132 : index
    %1261 = memref.load %arg5[%c132_183] : memref<144xf32, #tpu.memory_space<smem>>
    %1262 = vector.broadcast %1261 : f32 to vector<1x256xf32>
    %1263 = arith.mulf %1262, %715 : vector<1x256xf32>
    %1264 = arith.addf %1260, %1263 : vector<1x256xf32>
    %c133_184 = arith.constant 133 : index
    %1265 = memref.load %arg5[%c133_184] : memref<144xf32, #tpu.memory_space<smem>>
    %1266 = vector.broadcast %1265 : f32 to vector<1x256xf32>
    %1267 = arith.mulf %1266, %719 : vector<1x256xf32>
    %1268 = arith.addf %1264, %1267 : vector<1x256xf32>
    %c134_185 = arith.constant 134 : index
    %1269 = memref.load %arg5[%c134_185] : memref<144xf32, #tpu.memory_space<smem>>
    %1270 = vector.broadcast %1269 : f32 to vector<1x256xf32>
    %1271 = arith.mulf %1270, %723 : vector<1x256xf32>
    %1272 = arith.addf %1268, %1271 : vector<1x256xf32>
    %c135_186 = arith.constant 135 : index
    %1273 = memref.load %arg5[%c135_186] : memref<144xf32, #tpu.memory_space<smem>>
    %1274 = vector.broadcast %1273 : f32 to vector<1x256xf32>
    %1275 = arith.mulf %1274, %692 : vector<1x256xf32>
    %1276 = arith.addf %1272, %1275 : vector<1x256xf32>
    %c136_187 = arith.constant 136 : index
    %1277 = memref.load %arg5[%c136_187] : memref<144xf32, #tpu.memory_space<smem>>
    %1278 = vector.broadcast %1277 : f32 to vector<1x256xf32>
    %1279 = arith.mulf %1278, %696 : vector<1x256xf32>
    %1280 = arith.addf %1276, %1279 : vector<1x256xf32>
    %c137_188 = arith.constant 137 : index
    %1281 = memref.load %arg5[%c137_188] : memref<144xf32, #tpu.memory_space<smem>>
    %1282 = vector.broadcast %1281 : f32 to vector<1x256xf32>
    %1283 = arith.mulf %1282, %700 : vector<1x256xf32>
    %1284 = arith.addf %1280, %1283 : vector<1x256xf32>
    %c138_189 = arith.constant 138 : index
    %1285 = memref.load %arg5[%c138_189] : memref<144xf32, #tpu.memory_space<smem>>
    %1286 = vector.broadcast %1285 : f32 to vector<1x256xf32>
    %1287 = arith.mulf %1286, %704 : vector<1x256xf32>
    %1288 = arith.addf %1284, %1287 : vector<1x256xf32>
    %c139_190 = arith.constant 139 : index
    %1289 = memref.load %arg5[%c139_190] : memref<144xf32, #tpu.memory_space<smem>>
    %1290 = vector.broadcast %1289 : f32 to vector<1x256xf32>
    %1291 = arith.mulf %1290, %708 : vector<1x256xf32>
    %1292 = arith.addf %1288, %1291 : vector<1x256xf32>
    %c140_191 = arith.constant 140 : index
    %1293 = memref.load %arg5[%c140_191] : memref<144xf32, #tpu.memory_space<smem>>
    %1294 = vector.broadcast %1293 : f32 to vector<1x256xf32>
    %1295 = arith.mulf %1294, %712 : vector<1x256xf32>
    %1296 = arith.addf %1292, %1295 : vector<1x256xf32>
    %c141_192 = arith.constant 141 : index
    %1297 = memref.load %arg5[%c141_192] : memref<144xf32, #tpu.memory_space<smem>>
    %1298 = vector.broadcast %1297 : f32 to vector<1x256xf32>
    %1299 = arith.mulf %1298, %716 : vector<1x256xf32>
    %1300 = arith.addf %1296, %1299 : vector<1x256xf32>
    %c142_193 = arith.constant 142 : index
    %1301 = memref.load %arg5[%c142_193] : memref<144xf32, #tpu.memory_space<smem>>
    %1302 = vector.broadcast %1301 : f32 to vector<1x256xf32>
    %1303 = arith.mulf %1302, %720 : vector<1x256xf32>
    %1304 = arith.addf %1300, %1303 : vector<1x256xf32>
    %c143_194 = arith.constant 143 : index
    %1305 = memref.load %arg5[%c143_194] : memref<144xf32, #tpu.memory_space<smem>>
    %1306 = vector.broadcast %1305 : f32 to vector<1x256xf32>
    %1307 = arith.mulf %1306, %724 : vector<1x256xf32>
    %1308 = arith.addf %1304, %1307 : vector<1x256xf32>
    %1309 = tpu.concatenate %870, %1016, %1162, %1308 in 0 : vector<1x256xf32>, vector<1x256xf32>, vector<1x256xf32>, vector<1x256xf32> -> vector<4x256xf32>
    %1310 = arith.addf %1309, %1 : vector<4x256xf32>
    %cst_195 = arith.constant 0.000000e+00 : f32
    %1311 = vector.broadcast %cst_195 : f32 to vector<4x256xf32>
    %1312 = arith.maximumf %1310, %1311 : vector<4x256xf32>
    %c0_196 = arith.constant 0 : index
    %c0_197 = arith.constant 0 : index
    %c0_198 = arith.constant 0 : index
    %1313 = vector.load %arg7[%c0_196, %c0_197, %c0_198] : memref<1x4x256xf32, #tpu.memory_space<vmem>>, vector<1x4x256xf32>
    %1314 = vector.shape_cast %1313 : vector<1x4x256xf32> to vector<4x256xf32>
    %1315 = vector.shape_cast %1312 : vector<4x256xf32> to vector<1x4x256xf32>
    tpu.vector_store %arg7[%c0_196, %c0_197, %c0_198], %1315 {strides = array<i32>} : memref<1x4x256xf32, #tpu.memory_space<vmem>>, vector<1x4x256xf32>,
    return
  }
  func.func @transform_0(%arg0: i32) -> (i32, i32, i32) {
    %c0_i32 = arith.constant 0 : i32
    %c0_i32_0 = arith.constant 0 : i32
    %c0_i32_1 = arith.constant 0 : i32
    return %arg0, %c0_i32, %c0_i32_0 : i32, i32, i32
  }
  func.func @transform_1(%arg0: i32) -> (i32, i32) {
    %c0_i32 = arith.constant 0 : i32
    %c0_i32_0 = arith.constant 0 : i32
    %c0_i32_1 = arith.constant 0 : i32
    return %c0_i32, %c0_i32_0 : i32, i32
  }
  func.func @transform_2(%arg0: i32) -> i32 {
    %c0_i32 = arith.constant 0 : i32
    %c0_i32_0 = arith.constant 0 : i32
    return %c0_i32 : i32
  }
  func.func @transform_3(%arg0: i32) -> i32 {
    %c0_i32 = arith.constant 0 : i32
    %c0_i32_0 = arith.constant 0 : i32
    return %c0_i32 : i32
  }
  func.func @transform_4(%arg0: i32) -> i32 {
    %c0_i32 = arith.constant 0 : i32
    %c0_i32_0 = arith.constant 0 : i32
    return %c0_i32 : i32
  }
  func.func @transform_5(%arg0: i32) -> i32 {
    %c0_i32 = arith.constant 0 : i32
    %c0_i32_0 = arith.constant 0 : i32
    return %c0_i32 : i32
  }
  func.func @transform_6(%arg0: i32) -> (i32, i32, i32) {
    %c0_i32 = arith.constant 0 : i32
    %c0_i32_0 = arith.constant 0 : i32
    %c0_i32_1 = arith.constant 0 : i32
    return %arg0, %c0_i32, %c0_i32_0 : i32, i32, i32
  }
}

</mosaic_0001>

<bundles_post_ra>
// kernel: tpu_custom_call.1
= control target key start
LH: loop header
LB: loop body
LE: loop exit
PB: predicated region body
PF: predicated region fallthrough
CT: control target
= control target key end

     0   :  { %s9057_s0 = inlined_call_operand.hbm [shape: f32[2,4,256], index: 0, kind: input, shape index: {}]   ;;  %s9058_s1 = inlined_call_operand.hbm [shape: f32[9,256], index: 1, kind: input, shape index: {}]   ;;  %s9059_s2 = inlined_call_operand.vmem [shape: f32[144], index: 2, kind: input, shape index: {}]   ;;  %s9060_s3 = inlined_call_operand.vmem [shape: f32[4], index: 3, kind: input, shape index: {}]   ;;  %s9061_s4 = inlined_call_operand.vmem [shape: f32[144], index: 4, kind: input, shape index: {}]   ;;  %s9062_s5 = inlined_call_operand.vmem [shape: f32[4], index: 5, kind: input, shape index: {}]   ;;  %s9063_s6 = inlined_call_operand.hbm [shape: f32[2,4,256], index: 6, kind: output, shape index: {}]  }
   0x1   :  { %9582 = sst [smem:[#allocation295_spill]] %s9057_s0 }
   0x2   :  { %9583 = sst [smem:[#allocation296_spill]] %s9058_s1 }
   0x3   :  { %9584 = sst [smem:[#allocation297_spill]] %s9059_s2 }
   0x4   :  { %9585 = sst [smem:[#allocation298_spill]] %s9060_s3 }
   0x5   :  { %9586 = sst [smem:[#allocation299_spill]] %s9061_s4 }
   0x6   :  { %9587 = sst [smem:[#allocation300_spill]] %s9062_s5 }
   0x7   :  { %9588 = sst [smem:[#allocation301_spill]] %s9063_s6 }
   0x8   :  { %11 = vsyncpa [#allocation3], 0 }
   0x9   :  { %13 = vsyncpa [#allocation3 + $0x1], 0 }
   0xa   :  { %14 = vsyncpa [#allocation7], 0 }
   0xb   :  { %15 = vsyncpa [#allocation5], 0 }
   0xc   :  { %16 = vsyncpa [#allocation10], 0 }
   0xd   :  { %17 = vsyncpa [#allocation13], 0 }
   0xe   :  { %18 = vsyncpa [#allocation4], 0 }
   0xf   :  { %20 = vsyncpa [#allocation4 + $0x1], 0  ;;  %s4587_s21 = smov 0   ;;  %s4589_s22 = smov 0  }
  0x10   :  { %s4591_s23 = smov 0   ;;  %s4593_s24 = smov 0  }
  0x11 LB: > { %9589 = sst [smem:[#allocation21_spill]] %s4521_s21  ;;  %s4611_s28 = sadd.s32 4294967295, %s4533_s24   ;;  %s4533_s24 = sphi %s4593_s24, %s11071_s24   ;;  %s4529_s23 = sphi %s4591_s23, %s11074_s23   ;;  %s4525_s22 = sphi %s4589_s22, %s11073_s22   ;;  %s4521_s21 = sphi %s4587_s21, %s11072_s21  }
  0x12   : > { %9590 = sst [smem:[#allocation22_spill]] %s4525_s22  ;;  %s9593_s3 = sld [smem:[#allocation298_spill]] }
  0x13   : > { %9591 = sst [smem:[#allocation23_spill]] %s4529_s23  ;;  %p3907_p0 = scmp.ge.s32.totalorder %s4533_s24, 1 }
  0x14   : > { %9592 = sst [smem:[#allocation24_spill]] %s4533_s24  ;;  %p9064_p1 = scmp.eq.s32.totalorder %s4611_s28, 0 }
  0x15   : > { %9594 = sst [smem:[#allocation25_spill]] %s4611_s28  ;;  %p188_p2 = scmp.lt.s32.totalorder %s4533_s24, 3 }
  0x16   : > { %s4535_s30 = smov [#allocation6]   ;;  %s9597_s2 = sld [smem:[#allocation297_spill]] }
  0x17   : > { %p4616_p3 = pnand %p3907_p0, %p188_p2  ;;  %s200_s7 = sshll.u32 %s4535_s30, 4  ;;  %s4623_s7 = int_to_ptr.vmem [resolvable:$true] %s200_s7 }
  0x18   : > { %s225_s27 = sshll.u32 %s9593_s3, 4  ;;  %s9598_s4 = sld [smem:[#allocation299_spill]]  ;;  %s226_s27 = int_to_ptr.vmem [resolvable:$true] %s225_s27 }
  0x19   : > { %p4248_p5 = pneg %p4616_p3  ;;  %s4333_s15 = scalar_lea.vmem %s226_s27, 16 }
  0x1a   : > { %p4334_p7 = scmp.ne.s32.totalorder %s226_s27, %s4333_s15  ;;  %p4341_p11 = scmp.lt.s32.totalorder %s226_s27, %s226_s27 }
  0x1b   : > { %p4627_p6 = pnand %p4248_p5, %p9064_p1  ;;  %p4342_p12 = scmp.lt.s32.totalorder %s4333_s15, %s4333_s15 }
  0x1c   : > { %s214_s11 = sshll.u32 %s9597_s2, 4  ;;  %s4634_s11 = int_to_ptr.vmem [resolvable:$true] %s214_s11 }
  0x1d   : > { %p4641_p8 = pneg %p4627_p6  ;;  %p4343_p13 = por %p4342_p12, %p4341_p11 }
  0x1e   : > { %s236_s14 = sshll.u32 %s9598_s4, 4  ;;  %s237_s14 = int_to_ptr.vmem [resolvable:$true] %s236_s14 }
  0x1f   : > { %p4336_p9 = pnand %p4641_p8, %p4334_p7 }
  0x21   : > { %p4337_p10 = pneg %p4336_p9 }
  0x23   : > { %p4344_p0 = pnand %p4343_p13, %p4337_p10 }
  0x25   : > { %4347 = shalt.err (!%p4344_p0)
}
  0x26   : > { %s4536_s17 = smov [#allocation9]   ;;  %s9600_s1 = sld [smem:[#allocation296_spill]] }
  0x27   : > { %4257 = dma.vmem_to_smem (!%p4627_p6), %s226_s27, 16, %s4536_s17, [#allocation10]  }
  0x2c   : > { %s4348_s20 = scalar_lea.hbm %s9600_s1, 512 }
  0x2d   : > { %p4349_p2 = scmp.ne.s32.totalorder %s9600_s1, %s4348_s20  ;;  %p4355_p9 = scmp.lt.u32.totalorder %s4348_s20, %s9600_s1 }
  0x2f   : > { %p4351_p5 = pnand %p4349_p2, %p4641_p8 }
  0x31   : > { %p4352_p7 = pneg %p4351_p5 }
  0x33   : > { %p4357_p10 = pnand %p4355_p9, %p4352_p7 }
  0x35   : > { %4360 = shalt.err (!%p4357_p10)
}
  0x36   : > { %s4361_s27 = scalar_lea.vmem %s4623_s7, 512  ;;  %p4369_p0 = scmp.lt.s32.totalorder %s4623_s7, %s4623_s7 }
  0x37   : > { %p4362_p11 = scmp.ne.s32.totalorder %s4623_s7, %s4361_s27  ;;  %p4370_p4 = scmp.lt.s32.totalorder %s4361_s27, %s4361_s27 }
  0x39   : > { %p4364_p12 = pnand %p4362_p11, %p4641_p8  ;;  %p4371_p2 = por %p4370_p4, %p4369_p0 }
  0x3b   : > { %p4365_p13 = pneg %p4364_p12 }
  0x3d   : > { %p4372_p5 = pnand %p4371_p2, %p4365_p13 }
  0x3f   : > { %4375 = shalt.err (!%p4372_p5)
}
  0x40   : > { %s4537_s10 = smov 256   ;;  %s4538_s12 = smov 16  }
  0x41   : > { %4251 = dma.hbm_to_vmem [thread:$0]  (!%p4627_p6), %s9600_s1, 512, %s4623_s7, [#allocation7], %s4537_s10, %s4537_s10, %s4538_s12  }
  0x42   : > { %s4376_s17 = scalar_lea.vmem %s4634_s11, 32  ;;  %p4384_p10 = scmp.lt.s32.totalorder %s4634_s11, %s4634_s11 }
  0x43   : > { %p4377_p7 = scmp.ne.s32.totalorder %s4634_s11, %s4376_s17  ;;  %p4385_p11 = scmp.lt.s32.totalorder %s4376_s17, %s4376_s17 }
  0x45   : > { %p4379_p9 = pnand %p4377_p7, %p4641_p8  ;;  %p4386_p12 = por %p4385_p11, %p4384_p10 }
  0x47   : > { %p4380_p4 = pneg %p4379_p9 }
  0x49   : > { %p4387_p13 = pnand %p4386_p12, %p4380_p4 }
  0x4b   : > { %4390 = shalt.err (!%p4387_p13)
}
  0x4c   : > { %s4539_s18 = smov [#allocation8]   ;;  %s4391_s7 = scalar_lea.vmem %s237_s14, 32 }
  0x4d   : > { %4254 = dma.vmem_to_smem (!%p4627_p6), %s4634_s11, 32, %s4539_s18, [#allocation5]  }
  0x4e   : > { %p4392_p0 = scmp.ne.s32.totalorder %s237_s14, %s4391_s7  ;;  %p4399_p7 = scmp.lt.s32.totalorder %s237_s14, %s237_s14 }
  0x4f   : > { %p4400_p9 = scmp.lt.s32.totalorder %s4391_s7, %s4391_s7 }
  0x50   : > { %p4394_p2 = pnand %p4392_p0, %p4641_p8 }
  0x51   : > { %p4401_p4 = por %p4400_p9, %p4399_p7 }
  0x52   : > { %p4395_p5 = pneg %p4394_p2 }
  0x54   : > { %p4402_p10 = pnand %p4401_p4, %p4395_p5 }
  0x56   : > { %4405 = shalt.err (!%p4402_p10)
}
  0x57   : > { %s4540_s25 = smov [#allocation11]   ;;  %s9601_s5 = sld [smem:[#allocation300_spill]] }
  0x58   : > { %4260 = dma.vmem_to_smem (!%p4627_p6), %s237_s14, 32, %s4540_s25, [#allocation10]  }
  0x5d   : > { %s247_s30 = sshll.u32 %s9601_s5, 4  ;;  %s248_s30 = int_to_ptr.vmem [resolvable:$true] %s247_s30 }
  0x5e   : > { %s4406_s9 = scalar_lea.vmem %s248_s30, 16  ;;  %p4414_p0 = scmp.lt.s32.totalorder %s248_s30, %s248_s30 }
  0x5f   : > { %p4407_p11 = scmp.ne.s32.totalorder %s248_s30, %s4406_s9  ;;  %p4415_p2 = scmp.lt.s32.totalorder %s4406_s9, %s4406_s9 }
  0x61   : > { %p4409_p12 = pnand %p4407_p11, %p4641_p8  ;;  %p4416_p7 = por %p4415_p2, %p4414_p0 }
  0x63   : > { %p4410_p13 = pneg %p4409_p12 }
  0x65   : > { %p4417_p5 = pnand %p4416_p7, %p4410_p13 }
  0x67   : > { %4420 = shalt.err (!%p4417_p5)
}
  0x68   : > { %s4541_s27 = smov [#allocation12]   ;;  %s3906_s14 = sadd.s32 4294967294, %s4533_s24  }
  0x69   : > { %4263 = dma.vmem_to_smem (!%p4627_p6), %s248_s30, 16, %s4541_s27, [#allocation13]  }
  0x6a   : > { %s4698_s16 = sadd.s32 1, %s4533_s24   ;;  %s33_s8 = sadd.s32 1, %s4529_s23 }
  0x6b   : > { %9602 = sst [smem:[#allocation26_spill]] %s4698_s16  ;;  %s30_s10 = ssub.s32 %s4533_s24, %s4698_s16 }
  0x6c   : > { %p40_p8 = scmp.ne.s32.totalorder %s4529_s23, %s4525_s22  ;;  %p31_p9 = scmp.eq.s32.totalorder %s30_s10, 0 }
  0x6d   : > { %p41_p4 = scmp.eq.s32.totalorder %s4533_s24, 0  ;;  %p46_p10 = scmp.ne.s32.totalorder %s4525_s22, %s4521_s21 }
  0x6e   : > { %p175_p11 = scmp.eq.s32.totalorder %s4611_s28, 1  ;;  %p181_p0 = scmp.eq.s32.totalorder %s3906_s14, 1 }
  0x6f   : > { %s4710_s12 = scalar_select %p31_p9, %s4529_s23, %s33_s8  }
  0x70   : > { %p42_p12 = por %p41_p4, %p40_p8  ;;  %p4714_p13 = por %p9064_p1, %p46_p10 }
  0x71   : > { %9603 = sst [smem:[#allocation27_spill]] %s4710_s12  ;;  %p4718_p6 = por %p175_p11, %p40_p8 }
  0x72   : > { %s9604_s13 = scalar_select %p4714_p13, 1, 0 }
  0x73   : > { %s9605_s15 = scalar_select %p4718_p6, 1, 0 }
  0x74   : > { %p4277_p2 = scmp.lt.s32.totalorder %s4533_s24, 2  ;;  %s258_s17 = sand.u32 1, %s4529_s23  }
  0x75   : > { %9606 = sst [smem:[#allocation28_spill]] %s9605_s15  ;;  %p4724_p7 = por %p181_p0, %p46_p10 }
  0x76   : > { %s3914_s19 = sshll.u32 %s258_s17, 3  ;;  %s4222_s20 = sshll.u32 %s4533_s24, 7 }
  0x77   : > { %s9607_s18 = scalar_select %p4724_p7, 1, 0 }
  0x78   : > { %s9609_s0 = sld [smem:[#allocation295_spill]]  ;;  %s262_s26 = scalar_lea.vmem [#allocation2], %s3914_s19 }
  0x79   : > { %9608 = sst [smem:[#allocation29_spill]] %s9607_s18  ;;  %s270_s30 = sshll.u32 %s262_s26, 4  ;;  %s4738_s30 = int_to_ptr.vmem [resolvable:$true] %s270_s30 }
  0x7a   : > { %p4734_p5 = pnand %p4277_p2, %p42_p12  ;;  %s259_s27 = scalar_lea.sflag [#allocation3], %s258_s17 }
  0x7c   : > { %p4423_p9 = pneg %p4734_p5 }
  0x7e   : > { %s4732_s11 = scalar_lea.hbm %s9609_s0, %s4222_s20  ;;  %s4426_s19 = scalar_lea.hbm %s9609_s0, 256 }
  0x7f   : > { %s4421_s14 = scalar_lea.hbm %s4732_s11, 128  ;;  %p4427_p11 = scmp.lt.u32.totalorder %s4732_s11, %s9609_s0 }
  0x80   : > { %p4422_p8 = scmp.ne.s32.totalorder %s4732_s11, %s4421_s14  ;;  %p4428_p12 = scmp.lt.u32.totalorder %s4426_s19, %s4421_s14 }
  0x81   : > { %p4430_p2 = scmp.lt.u32.totalorder %s4421_s14, %s4732_s11 }
  0x82   : > { %p4424_p4 = pnand %p4423_p9, %p4422_p8  ;;  %p4429_p0 = por %p4428_p12, %p4427_p11 }
  0x84   : > { %p4425_p10 = pneg %p4424_p4  ;;  %p4431_p1 = por %p4430_p2, %p4429_p0 }
  0x86   : > { %p4432_p7 = pnand %p4431_p1, %p4425_p10 }
  0x88   : > { %4435 = shalt.err (!%p4432_p7)
}
  0x89   : > { %s4436_s17 = scalar_lea.vmem %s4738_s30, 128  ;;  %s4542_s25 = smov [#allocation2]  }
  0x8a   : > { %p4437_p8 = scmp.ne.s32.totalorder %s4738_s30, %s4436_s17  ;;  %s4441_s26 = sshll.u32 %s4542_s25, 4  ;;  %s4442_s26 = int_to_ptr.vmem [resolvable:$false] %s4441_s26 }
  0x8b   : > { %s4443_s8 = scalar_lea.vmem %s4442_s26, 256  ;;  %p4444_p13 = scmp.lt.s32.totalorder %s4738_s30, %s4442_s26 }
  0x8c   : > { %p4439_p4 = pnand %p4437_p8, %p4423_p9  ;;  %p4445_p11 = scmp.lt.s32.totalorder %s4443_s8, %s4436_s17 }
  0x8e   : > { %p4440_p6 = pneg %p4439_p4  ;;  %p4446_p12 = por %p4445_p11, %p4444_p13 }
  0x90   : > { %p4447_p0 = pnand %p4446_p12, %p4440_p6 }
  0x92   : > { %4450 = shalt.err (!%p4447_p0)
}
  0x93   : > { %4267 = dma.hbm_to_vmem [thread:$0]  (!%p4734_p5), %s4732_s11, 128, %s4738_s30, %s259_s27  }
  0x94   : > { %279 = sbr.rel (%p4616_p3) target bundleno = 985 (0x3d9), region = 44 }
  0x9b   : > { %s4768_s14 = sand.u32 1, %s4525_s22   ;;  %p9613_p1 = scmp.ne.s32.totalorder %s9604_s13, 0 }
  0x9c   : > { %9611 = sst [smem:[#allocation30_spill]] %s4768_s14  ;;  %s9067_s10 = sshll.u32 %s4768_s14, 3 }
  0x9d   : > { %s282_s19 = scalar_lea.sflag [#allocation3], %s4768_s14  ;;  %s4774_s20 = scalar_lea.vmem [#allocation2], %s9067_s10 }
  0x9e   : > { %9612 = sst [smem:[#allocation31_spill]] %s4774_s20 }
  0x9f   : > { %4496 = dma.done.wait (%p9613_p1), %s282_s19, 128  }
  0xa0   : > { %4498 = vsyncadd (%p9613_p1), %s282_s19, 4294967168  ;;  %p9614_p13 = scmp.eq.s32.totalorder %s4611_s28, 0 }
  0xa2   : > { %4500 = dma.done.wait (%p9614_p13), [#allocation7], 512   ;;  %p9615_p3 = pmov %p9614_p13 }
  0xa4   : > { %4502 = vsyncadd (%p9615_p3), [#allocation7], 4294966784  ;;  %p9616_p6 = pmov %p9615_p3 }
  0xa5   : > { %p9617_p7 = pmov %p9615_p3 }
  0xa6   : > { %4504 = dma.done.wait (%p9616_p6), [#allocation5], 32  }
  0xa7   : > { %4506 = vsyncadd (%p9617_p7), [#allocation5], 4294967264  ;;  %p9618_p5 = pmov %p9615_p3 }
  0xa8   : > { %p9619_p9 = pmov %p9615_p3 }
  0xa9   : > { %4508 = dma.done.wait (%p9618_p5), [#allocation10], 48  }
  0xaa   : > { %4510 = vsyncadd (%p9619_p9), [#allocation10], 4294967248  ;;  %p9620_p10 = pmov %p9615_p3 }
  0xab   : > { %p9621_p2 = pmov %p9615_p3 }
  0xac   : > { %4512 = dma.done.wait (%p9620_p10), [#allocation13], 16  }
  0xad   : > { %4514 = vsyncadd (%p9621_p2), [#allocation13], 4294967280 }
  0xae   : > { %310 = sfence }
  0xaf   : > { %v4797_v0 = vld [vmem:[%s4774_s20] sm:$0xff]  ;;  %s9080_s29 = smov 16   ;;  %s9082_s13 = smov 17   ;;  %v343_v2 = vlaneseq  ;;  %v370_v4 = vld [vmem:[#allocation6 + $0x1] ss:$8 sm:$0x3] }
  0xb0   : > { %362 = vrot.lane.b32.xlu1 %v4797_v0, %s9080_s29  ;;  %339 = vrot.lane.b32.xlu0 %v4797_v0, %s9082_s13  ;;  %v4805_v1 = vcombine.high %v4797_v0, %v4797_v0  ;;  %s9076_s11 = smov 15   ;;  %s9074_s30 = smov 1   ;;  %v348_v7 = vld [vmem:[#allocation6] ss:$8 sm:$0x3]  ;;  %vm2142_vm8 = vcmask 1040384  }
  0xb1   : > { %s9072_s9 = smov 127   ;;  %s9068_s27 = smov 113   ;;  %v351_v3 = vshrl.u32 %v343_v2, 7  ;;  %v4929_v8 = vand.u32 127, %v343_v2  ;;  %vm2145_vm9 = vcmask 1041408   ;;  %vm2148_vm10 = vcmask 1042432  }
  0xb2   : > { %9622 = vst [vmem:[#allocation32_spill] sm:$0xff] %v4805_v1  ;;  %s9070_s7 = smov 112   ;;  %s9078_s17 = smov 111   ;;  %v392_v57 = vld [vmem:[#allocation6 + $0x2] ss:$8 sm:$0x3] }
  0xb3   : > { %s4835_s25 = sld [smem:[#allocation8 + $0x1]]  ;;  %s4837_s26 = sld [smem:[#allocation8 + $0x4]]  ;;  %v4917_v5 = vsub.s32 0, %v351_v3  ;;  %v4919_v6 = vsub.s32 1, %v351_v3  ;;  %9656 = vst [vmem:[#allocation66_spill] sm:$0xff] %v4929_v8  ;;  %v4936_v10 = vsub.s32 4, %v351_v3 }
  0xb4   : > { %364 = vrot.lane.b32.xlu1 %v4805_v1, %s9080_s29  ;;  %341 = vrot.lane.b32.xlu0 %v4805_v1, %s9082_s13  ;;  %s4839_s8 = sld [smem:[#allocation8 + $0xa]]  ;;  %s4841_s19 = sld [smem:[#allocation8 + $0xd]]  ;;  %v4939_v12 = vsub.s32 5, %v351_v3  ;;  %v4952_v16 = vsub.s32 2, %v351_v3  ;;  %v4961_v18 = vsub.s32 6, %v351_v3  ;;  %v4964_v20 = vsub.s32 3, %v351_v3 }
  0xb5   : > { %s4843_s10 = sld [smem:[#allocation8 + $0x13]]  ;;  %s4857_s29 = sld [smem:[#allocation8 + $0x31]]  ;;  %9651 = vst [vmem:[#allocation61_spill] sm:$0xff] %v4919_v6  ;;  %v4946_v13 = vrot.slane %v370_v4, %v4917_v5  ;;  %v4949_v14 = vrot.slane %v370_v4, %v4919_v6  ;;  %v4973_v22 = vsub.s32 7, %v351_v3  ;;  %v4977_v24 = vrot.slane %v348_v7, %v4917_v5 }
  0xb6   : > { %s4859_s13 = sld [smem:[#allocation8 + $0x37]]  ;;  %s4861_s0 = sld [smem:[#allocation8 + $0x3a]]  ;;  %9659 = vst [vmem:[#allocation69_spill] sm:$0xff] %v4939_v12  ;;  %9664 = vst [vmem:[#allocation74_spill] sm:$0xff] %v4952_v16  ;;  %v4989_v28 = vrot.slane %v348_v7, %v4919_v6  ;;  %v5235_v49 = vrot.slane %v392_v57, %v4919_v6  ;;  %vm366_vm0 = vcmp.lt.s32.totalorder %v4929_v8, 16  ;;  %vm345_vm1 = vcmp.lt.s32.totalorder %v4929_v8, 17 }
  0xb7   : > { %s4863_s1 = sld [smem:[#allocation8 + $0x40]]  ;;  %s4865_s2 = sld [smem:[#allocation8 + $0x43]]  ;;  %9662 = vst [vmem:[#allocation72_spill] sm:$0xff] %v4946_v13  ;;  %9663 = vst [vmem:[#allocation73_spill] sm:$0xff] %v4949_v14  ;;  %vm388_vm2 = vcmp.lt.s32.totalorder %v4929_v8, 15  ;;  %vm410_vm3 = vcmp.lt.s32.totalorder %v4929_v8, 1 }
  0xb8   : > { %386 = vrot.lane.b32.xlu1 %v4805_v1, %s9076_s11  ;;  %384 = vrot.lane.b32.xlu0 %v4797_v0, %s9076_s11  ;;  %s4853_s11 = sld [smem:[#allocation8 + $0x28]]  ;;  %s4867_s3 = sld [smem:[#allocation8 + $0x49]]  ;;  %9667 = vst [vmem:[#allocation77_spill] sm:$0xff] %v4961_v18  ;;  %9668 = vst [vmem:[#allocation78_spill] sm:$0xff] %v4964_v20  ;;  %vm432_vm4 = vcmp.lt.s32.totalorder %v4929_v8, 127  ;;  %vm454_vm5 = vcmp.lt.s32.totalorder %v4929_v8, 113 }
  0xb9   : > { %9623 = sst [smem:[#allocation33_spill]] %s4835_s25  ;;  %s4869_s4 = sld [smem:[#allocation8 + $0x4c]]  ;;  %v543_v9 = vstv %s4837_s26  ;;  %9672 = vst [vmem:[#allocation82_spill] sm:$0xff] %v4973_v22  ;;  %9673 = vst [vmem:[#allocation83_spill] sm:$0xff] %v4977_v24  ;;  %v525_v25 = vstv %s4835_s25  ;;  %vm476_vm6 = vcmp.lt.s32.totalorder %v4929_v8, 112  ;;  %vm498_vm7 = vcmp.lt.s32.totalorder %v4929_v8, 111 }
  0xba   : > { %9624 = sst [smem:[#allocation34_spill]] %s4839_s8  ;;  %s4871_s5 = sld [smem:[#allocation8 + $0x52]]  ;;  %v631_v11 = vstv %s4841_s19  ;;  %v4959_v17 = vmul.f32 %v543_v9, %v4797_v0  ;;  %9677 = vst [vmem:[#allocation87_spill] sm:$0xff] %v4989_v28  ;;  %v595_v29 = vstv %s4839_s8  ;;  %9757 = vst [vmem:[#allocation142_spill] sm:$0xff] %v5235_v49 }
  0xbb   : > { %9625 = sst [smem:[#allocation35_spill]] %s4843_s10  ;;  %s4875_s23 = sld [smem:[#allocation8 + $0x5b]]  ;;  %v4971_v21 = vmul.f32 %v631_v11, %v4797_v0  ;;  %v1033_v27 = vstv %s4857_s29  ;;  %v707_v30 = vstv %s4843_s10  ;;  %v436_v38 = vld [vmem:[#allocation6 + $0x5] ss:$8 sm:$0x3] }
  0xbc   : > { %408 = vrot.lane.b32.xlu1 %v4805_v1, %s9074_s30  ;;  %406 = vrot.lane.b32.xlu0 %v4797_v0, %s9074_s30  ;;  %s4851_s30 = sld [smem:[#allocation8 + $0x25]]  ;;  %9629 = sst [smem:[#allocation39_spill]] %s4859_s13  ;;  %v1145_v36 = vstv %s4861_s0  ;;  %v5023_v40 = vmul.f32 %v1033_v27, %v4797_v0  ;;  %v1109_v50 = vstv %s4859_s13  ;;  %v5232_v27 = vrot.slane %v392_v57, %v4917_v5  ;;  %v458_v62 = vld [vmem:[#allocation6 + $0x6] ss:$8 sm:$0x3] }
  0xbd   : > { %9630 = sst [smem:[#allocation40_spill]] %s4863_s1  ;;  %s4873_s12 = sld [smem:[#allocation8 + $0x55]]  ;;  %9671 = vst [vmem:[#allocation81_spill] sm:$0xff] %v4971_v21  ;;  %v1257_v44 = vstv %s4865_s2  ;;  %v5044_v47 = vmul.f32 %v1145_v36, %v4797_v0  ;;  %v1221_v51 = vstv %s4863_s1  ;;  %v5313_v33 = vrot.slane %v436_v38, %v4917_v5  ;;  %v480_v34 = vld [vmem:[#allocation6 + $0x7] ss:$8 sm:$0x3] }
  0xbe   : > { %9631 = sst [smem:[#allocation41_spill]] %s4867_s3  ;;  %s4877_s22 = sld [smem:[#allocation8 + $0x5e]]  ;;  %v945_v23 = vstv %s4853_s11  ;;  %9685 = vst [vmem:[#allocation95_spill] sm:$0xff] %v5023_v40  ;;  %v5065_v55 = vmul.f32 %v1257_v44, %v4797_v0  ;;  %9756 = vst [vmem:[#allocation141_spill] sm:$0xff] %v5232_v27  ;;  %v5316_v37 = vrot.slane %v436_v38, %v4919_v6  ;;  %v5394_v41 = vrot.slane %v480_v34, %v4917_v5 }
  0xbf   : > { %s4879_s16 = sld [smem:[#allocation8 + $0x64]]  ;;  %s4881_s24 = sld [smem:[#allocation8 + $0x67]]  ;;  %v5010_v35 = vmul.f32 %v945_v23, %v4797_v0  ;;  %9690 = vst [vmem:[#allocation100_spill] sm:$0xff] %v5044_v47  ;;  %v1347_v48 = vstv %s4869_s4  ;;  %9803 = vst [vmem:[#allocation160_spill] sm:$0xff] %v5313_v33  ;;  %v5397_v54 = vrot.slane %v480_v34, %v4919_v6 }
  0xc0   : > { %430 = vrot.lane.b32.xlu1 %v4805_v1, %s9072_s9  ;;  %428 = vrot.lane.b32.xlu0 %v4797_v0, %s9072_s9  ;;  %s4849_s9 = sld [smem:[#allocation8 + $0x1f]]  ;;  %9632 = sst [smem:[#allocation42_spill]] %s4871_s5  ;;  %9696 = vst [vmem:[#allocation105_spill] sm:$0xff] %v5065_v55  ;;  %v5076_v59 = vmul.f32 %v1347_v48, %v4797_v0  ;;  %9804 = vst [vmem:[#allocation161_spill] sm:$0xff] %v5316_v37 }
  0xc1   : > { %9633 = sst [smem:[#allocation43_spill]] %s4875_s23  ;;  %s4885_s21 = sld [smem:[#allocation8 + $0x70]]  ;;  %9826 = vst [vmem:[#allocation168_spill] sm:$0xff] %v5394_v41  ;;  %9827 = vst [vmem:[#allocation169_spill] sm:$0xff] %v5397_v54 }
  0xc2   : > { %9627 = sst [smem:[#allocation37_spill]] %s4851_s30  ;;  %s4883_s18 = sld [smem:[#allocation8 + $0x6d]]  ;;  %v927_v39 = vstv %s4851_s30  ;;  %v502_v34 = vld [vmem:[#allocation6 + $0x10] ss:$8 sm:$0x3] }
  0xc3   : > { %s4887_s6 = sld [smem:[#allocation8 + $0x76]]  ;;  %s4889_s15 = sld [smem:[#allocation8 + $0x79]]  ;;  %v1435_v52 = vstv %s4873_s12  ;;  %v5445_v44 = vrot.slane %v502_v34, %v4919_v6 }
  0xc4   : > { %452 = vrot.lane.b32.xlu1 %v4805_v1, %s9068_s27  ;;  %450 = vrot.lane.b32.xlu0 %v4797_v0, %s9068_s27  ;;  %s4845_s27 = sld [smem:[#allocation8 + $0x16]]  ;;  %s4891_s14 = sld [smem:[#allocation8 + $0x7f]]  ;;  %v1547_v56 = vstv %s4877_s22  ;;  %v5088_v63 = vmul.f32 %v1435_v52, %v4797_v0 }
  0xc5   : > { %9634 = sst [smem:[#allocation44_spill]] %s4879_s16  ;;  %s4893_s28 = sld [smem:[#allocation8 + $0x82]]  ;;  %v1659_v60 = vstv %s4881_s24  ;;  %v5097_v4 = vmul.f32 %v1547_v56, %v4797_v0  ;;  %9834 = vst [vmem:[#allocation172_spill] sm:$0xff] %v5445_v44 }
  0xc6   : > { %s4895_s20 = sld [smem:[#allocation8 + $0x88]]  ;;  %s4897_s23 = sld [smem:[#allocation8 + $0x8b]]  ;;  %v855_v19 = vstv %s4849_s9  ;;  %9704 = vst [vmem:[#allocation108_spill] sm:$0xff] %v5088_v63 }
  0xc7   : > { %9636 = sst [smem:[#allocation46_spill]] %s4885_s21  ;;  %s4905_s21 = sld [smem:[#allocation8 + $0x12]]  ;;  %v4999_v32 = vmul.f32 %v855_v19, %v4797_v0  ;;  %9709 = vst [vmem:[#allocation110_spill] sm:$0xff] %v5097_v4  ;;  %v5110_v19 = vmul.f32 %v1659_v60, %v4797_v0 }
  0xc8   : > { %474 = vrot.lane.b32.xlu1 %v4805_v1, %s9070_s7  ;;  %472 = vrot.lane.b32.xlu0 %v4797_v0, %s9070_s7  ;;  %s4847_s7 = sld [smem:[#allocation8 + $0x1c]]  ;;  %9635 = sst [smem:[#allocation45_spill]] %s4883_s18 }
  0xc9   : > { %9637 = sst [smem:[#allocation47_spill]] %s4887_s6  ;;  %s4899_s16 = sld [smem:[#allocation9]]  ;;  %9680 = vst [vmem:[#allocation90_spill] sm:$0xff] %v4999_v32  ;;  %9712 = vst [vmem:[#allocation113_spill] sm:$0xff] %v5110_v19 }
  0xca   : > { %9638 = sst [smem:[#allocation48_spill]] %s4889_s15  ;;  %s4901_s5 = sld [smem:[#allocation8]]  ;;  %v743_v15 = vstv %s4845_s27 }
  0xcb   : > { %9639 = sst [smem:[#allocation49_spill]] %s4891_s14  ;;  %s4903_s18 = sld [smem:[#allocation8 + $0x9]]  ;;  %v4985_v26 = vmul.f32 %v743_v15, %v4797_v0  ;;  %v1949_v9 = vstv %s4893_s28 }
  0xcc   : > { %496 = vrot.lane.b32.xlu1 %v4805_v1, %s9078_s17  ;;  %494 = vrot.lane.b32.xlu0 %v4797_v0, %s9078_s17  ;;  %s4855_s17 = sld [smem:[#allocation8 + $0x2e]]  ;;  %9640 = sst [smem:[#allocation50_spill]] %s4895_s20  ;;  %v5136_v46 = vmul.f32 %v1949_v9, %v4797_v0 }
  0xcd   : > { %9641 = sst [smem:[#allocation51_spill]] %s4897_s23  ;;  %s4907_s6 = sld [smem:[#allocation8 + $0x1b]]  ;;  %9676 = vst [vmem:[#allocation86_spill] sm:$0xff] %v4985_v26 }
  0xce   : > { %9626 = sst [smem:[#allocation36_spill]] %s4847_s7  ;;  %s4909_s15 = sld [smem:[#allocation9 + $0x1]]  ;;  %v819_v31 = vstv %s4847_s7  ;;  %9720 = vst [vmem:[#allocation119_spill] sm:$0xff] %v5136_v46 }
  0xcf   : > { %9642 = sst [smem:[#allocation52_spill]] %s4899_s16  ;;  %s4911_s14 = sld [smem:[#allocation8 + $0x24]] }
  0xd0   : > { %9643 = sst [smem:[#allocation53_spill]] %s4901_s5  ;;  %s4913_s20 = sld [smem:[#allocation8 + $0x2d]] }
  0xd1   : > { %9644 = sst [smem:[#allocation54_spill]] %s4903_s18  ;;  %s4915_s23 = sld [smem:[#allocation8 + $0x36]] }
  0xd2   : > { %9628 = sst [smem:[#allocation38_spill]] %s4855_s17  ;;  %s4921_s18 = sld [smem:[#allocation8 + $0x3f]]  ;;  %v997_v43 = vstv %s4855_s17 }
  0xd3   : > { %9645 = sst [smem:[#allocation55_spill]] %s4905_s21  ;;  %s4923_s21 = sld [smem:[#allocation9 + $0x2]] }
  0xd4   : > { %9646 = sst [smem:[#allocation56_spill]] %s4907_s6  ;;  %s4925_s6 = sld [smem:[#allocation8 + $0x48]] }
  0xd5   : > { %9647 = sst [smem:[#allocation57_spill]] %s4909_s15  ;;  %s4927_s15 = sld [smem:[#allocation8 + $0x51]] }
  0xd6   : > { %9648 = sst [smem:[#allocation58_spill]] %s4911_s14  ;;  %s4954_s26 = sld [smem:[#allocation8 + $0x75]] }
  0xd7   : > { %9649 = sst [smem:[#allocation59_spill]] %s4913_s20  ;;  %s4932_s20 = sld [smem:[#allocation8 + $0x5a]] }
  0xd8   : > { %9650 = sst [smem:[#allocation60_spill]] %s4915_s23  ;;  %s4934_s23 = sld [smem:[#allocation8 + $0x63]] }
  0xd9   : > { %9652 = sst [smem:[#allocation62_spill]] %s4921_s18  ;;  %s4941_s18 = sld [smem:[#allocation9 + $0x3]] }
  0xda   : > { %9653 = sst [smem:[#allocation63_spill]] %s4923_s21  ;;  %s4943_s21 = sld [smem:[#allocation8 + $0x6c]] }
  0xdb   : > { %9654 = sst [smem:[#allocation64_spill]] %s4925_s6  ;;  %s4956_s19 = sld [smem:[#allocation8 + $0x7e]] }
  0xdc   : > { %9655 = sst [smem:[#allocation65_spill]] %s4927_s15  ;;  %s4981_s9 = sld [smem:[#allocation8 + $0x14]] }
  0xdd   : > { %9657 = sst [smem:[#allocation67_spill]] %s4932_s20  ;;  %s4968_s27 = sld [smem:[#allocation8 + $0x2]] }
  0xde   : > { %9658 = sst [smem:[#allocation68_spill]] %s4934_s23  ;;  %s4993_s11 = sld [smem:[#allocation8 + $0x26]] }
  0xdf   : > { %9660 = sst [smem:[#allocation70_spill]] %s4941_s18  ;;  %s5003_s25 = sld [smem:[#allocation8 + $0x38]] }
  0xe0   : > { %9661 = sst [smem:[#allocation71_spill]] %s4943_s21  ;;  %s4966_s21 = sld [smem:[#allocation8 + $0x87]] }
  0xe1   : > { %9665 = sst [smem:[#allocation75_spill]] %s4954_s26  ;;  %s5013_s29 = sld [smem:[#allocation8 + $0x41]] }
  0xe2   : > { %9666 = sst [smem:[#allocation76_spill]] %s4956_s19  ;;  %s4979_s19 = sld [smem:[#allocation8 + $0xb]] }
  0xe3   : > { %9670 = sst [smem:[#allocation80_spill]] %s4968_s27  ;;  %s4991_s27 = sld [smem:[#allocation8 + $0x1d]] }
  0xe4   : > { %9675 = sst [smem:[#allocation85_spill]] %s4981_s9  ;;  %s5001_s9 = sld [smem:[#allocation8 + $0x2f]] }
  0xe5   : > { %9679 = sst [smem:[#allocation89_spill]] %s4993_s11  ;;  %s5015_s7 = sld [smem:[#allocation8 + $0x4a]] }
  0xe6   : > { %9669 = sst [smem:[#allocation79_spill]] %s4966_s21  ;;  %s5025_s10 = sld [smem:[#allocation8 + $0x53]] }
  0xe7   : > { %9682 = sst [smem:[#allocation92_spill]] %s5003_s25  ;;  %s5027_s0 = sld [smem:[#allocation8 + $0x5c]] }
  0xe8   : > { %9674 = sst [smem:[#allocation84_spill]] %s4979_s19  ;;  %s5035_s8 = sld [smem:[#allocation8 + $0x65]] }
  0xe9   : > { %9678 = sst [smem:[#allocation88_spill]] %s4991_s27  ;;  %s5037_s30 = sld [smem:[#allocation8 + $0x6e]] }
  0xea   : > { %9681 = sst [smem:[#allocation91_spill]] %s5001_s9  ;;  %s5049_s17 = sld [smem:[#allocation8 + $0x80]] }
  0xeb   : > { %9683 = sst [smem:[#allocation93_spill]] %s5013_s29  ;;  %s9699_s1 = sld [smem:[#allocation48_spill]] }
  0xec   : > { %9684 = sst [smem:[#allocation94_spill]] %s5015_s7  ;;  %s5056_s2 = sld [smem:[#allocation8 + $0x89]] }
  0xed   : > { %9686 = sst [smem:[#allocation96_spill]] %s5025_s10  ;;  %s5070_s12 = sld [smem:[#allocation8 + $0x15]] }
  0xee   : > { %9687 = sst [smem:[#allocation97_spill]] %s5027_s0  ;;  %s5047_s0 = sld [smem:[#allocation8 + $0x77]] }
  0xef   : > { %9688 = sst [smem:[#allocation98_spill]] %s5035_s8  ;;  %s9695_s8 = sld [smem:[#allocation46_spill]] }
  0xf0   : > { %9689 = sst [smem:[#allocation99_spill]] %s5037_s30  ;;  %s5058_s30 = sld [smem:[#allocation8 + $0x3]] }
  0xf1   : > { %9692 = sst [smem:[#allocation102_spill]] %s5049_s17  ;;  %s5068_s17 = sld [smem:[#allocation8 + $0xc]]  ;;  %v1837_v7 = vstv %s9699_s1 }
  0xf2   : > { %9693 = sst [smem:[#allocation103_spill]] %s5056_s2  ;;  %s5079_s13 = sld [smem:[#allocation8 + $0x1e]]  ;;  %v5133_v60 = vmul.f32 %v1837_v7, %v4797_v0 }
  0xf3   : > { %9700 = sst [smem:[#allocation48_spill]] %s5070_s12  ;;  %s9703_s22 = sld [smem:[#allocation51_spill]] }
  0xf4   : > { %9691 = sst [smem:[#allocation101_spill]] %s5047_s0  ;;  %s5091_s12 = sld [smem:[#allocation8 + $0x30]]  ;;  %9719 = vst [vmem:[#allocation118_spill] sm:$0xff] %v5133_v60 }
  0xf5   : > { %v1749_v2 = vstv %s9695_s8  ;;  %s5093_s24 = sld [smem:[#allocation8 + $0x39]]  ;;  %s5113_s8 = sld [smem:[#allocation8 + $0x54]] }
  0xf6   : > { %9694 = sst [smem:[#allocation104_spill]] %s5058_s30  ;;  %s5081_s30 = sld [smem:[#allocation8 + $0x27]]  ;;  %v5122_v48 = vmul.f32 %v1749_v2, %v4797_v0 }
  0xf7   : > { %9698 = sst [smem:[#allocation46_spill]] %s5068_s17  ;;  %s5124_s1 = sld [smem:[#allocation8 + $0x66]] }
  0xf8   : > { %9701 = sst [smem:[#allocation106_spill]] %s5079_s13  ;;  %s5126_s28 = sld [smem:[#allocation8 + $0x6f]] }
  0xf9   : > { %s5103_s13 = sld [smem:[#allocation8 + $0x4b]]  ;;  %v2061_v23 = vstv %s9703_s22  ;;  %s5138_s17 = sld [smem:[#allocation8 + $0x78]] }
  0xfa   : > { %9706 = sst [smem:[#allocation51_spill]] %s5091_s12  ;;  %v5148_v11 = vmul.f32 %v2061_v23, %v4797_v0  ;;  %s5163_s4 = sld [smem:[#allocation8 + $0x17]]  ;;  %v414_v0 = vld [vmem:[#allocation6 + $0x3] ss:$8 sm:$0x3]  ;;  %v5356_v23 = vrot.slane %v458_v62, %v4917_v5 }
  0xfb   : > { %9708 = sst [smem:[#allocation109_spill]] %s5093_s24  ;;  %s5182_s3 = sld [smem:[#allocation8 + $0x32]]  ;;  %v5269_v57 = vrot.slane %v414_v0, %v4917_v5  ;;  %v5277_v42 = vrot.slane %v414_v0, %v4919_v6  ;;  %v5359_v0 = vrot.slane %v458_v62, %v4919_v6 }
  0xfc   : > { %9702 = sst [smem:[#allocation107_spill]] %s5081_s30  ;;  %s5101_s30 = sld [smem:[#allocation8 + $0x42]]  ;;  %9725 = vst [vmem:[#allocation122_spill] sm:$0xff] %v5148_v11  ;;  %9814 = vst [vmem:[#allocation166_spill] sm:$0xff] %v5356_v23 }
  0xfd   : > { %9713 = sst [smem:[#allocation114_spill]] %s5113_s8  ;;  %s5115_s24 = sld [smem:[#allocation8 + $0x5d]]  ;;  %9775 = vst [vmem:[#allocation150_spill] sm:$0xff] %v5269_v57  ;;  %9782 = vst [vmem:[#allocation153_spill] sm:$0xff] %v5277_v42 }
  0xfe   : > { %9716 = sst [smem:[#allocation116_spill]] %s5124_s1  ;;  %s5152_s8 = sld [smem:[#allocation8 + $0x5]]  ;;  %9816 = vst [vmem:[#allocation167_spill] sm:$0xff] %v5359_v0 }
  0xff   : > { %9711 = sst [smem:[#allocation112_spill]] %s5103_s13  ;;  %s5150_s1 = sld [smem:[#allocation8 + $0x8a]] }
 0x100   : > { %9717 = sst [smem:[#allocation117_spill]] %s5126_s28  ;;  %s5173_s13 = sld [smem:[#allocation8 + $0x29]] }
 0x101   : > { %9721 = sst [smem:[#allocation120_spill]] %s5138_s17  ;;  %s5203_s5 = sld [smem:[#allocation8 + $0x5f]] }
 0x102   : > { %9710 = sst [smem:[#allocation111_spill]] %s5101_s30  ;;  %s5192_s16 = sld [smem:[#allocation8 + $0x44]] }
 0x103   : > { %9715 = sst [smem:[#allocation115_spill]] %s5115_s24  ;;  %s5217_s22 = sld [smem:[#allocation8 + $0x7a]] }
 0x104   : > { %s5140_s24 = sld [smem:[#allocation8 + $0x81]]  ;;  %9727 = sst [smem:[#allocation124_spill]] %s5152_s8 }
 0x105   : > { %9726 = sst [smem:[#allocation123_spill]] %s5150_s1  ;;  %s5171_s8 = sld [smem:[#allocation8 + $0x20]] }
 0x106   : > { %9729 = sst [smem:[#allocation126_spill]] %s5163_s4  ;;  %s5219_s17 = sld [smem:[#allocation8 + $0x83]] }
 0x107   : > { %9733 = sst [smem:[#allocation128_spill]] %s5173_s13  ;;  %s5211_s12 = sld [smem:[#allocation8 + $0x71]] }
 0x108   : > { %9736 = sst [smem:[#allocation129_spill]] %s5182_s3  ;;  %s5194_s3 = sld [smem:[#allocation8 + $0x4d]] }
 0x109   : > { %9742 = sst [smem:[#allocation131_spill]] %s5192_s16  ;;  %s5209_s16 = sld [smem:[#allocation8 + $0x68]] }
 0x10a   : > { %9723 = sst [smem:[#allocation121_spill]] %s5140_s24  ;;  %s5161_s24 = sld [smem:[#allocation8 + $0xe]] }
 0x10b   : > { %9731 = sst [smem:[#allocation127_spill]] %s5171_s8  ;;  %s5184_s8 = sld [smem:[#allocation8 + $0x3b]] }
 0x10c   : > { %9746 = sst [smem:[#allocation134_spill]] %s5203_s5  ;;  %s5227_s30 = sld [smem:[#allocation8 + $0x6]] }
 0x10d   : > { %9749 = sst [smem:[#allocation136_spill]] %s5211_s12  ;;  %s5237_s18 = sld [smem:[#allocation8 + $0xf]] }
 0x10e   : > { %9743 = sst [smem:[#allocation132_spill]] %s5194_s3  ;;  %s5239_s1 = sld [smem:[#allocation8 + $0x18]] }
 0x10f   : > { %9748 = sst [smem:[#allocation135_spill]] %s5209_s16  ;;  %s5245_s21 = sld [smem:[#allocation8 + $0x21]] }
 0x110   : > { %9728 = sst [smem:[#allocation125_spill]] %s5161_s24  ;;  %s5225_s24 = sld [smem:[#allocation8 + $0x8c]] }
 0x111   : > { %9738 = sst [smem:[#allocation130_spill]] %s5184_s8  ;;  %s5201_s8 = sld [smem:[#allocation8 + $0x56]] }
 0x112   : > { %9751 = sst [smem:[#allocation137_spill]] %s5217_s22  ;;  %s5247_s15 = sld [smem:[#allocation8 + $0x2a]] }
 0x113   : > { %9752 = sst [smem:[#allocation138_spill]] %s5219_s17  ;;  %s5253_s6 = sld [smem:[#allocation8 + $0x33]] }
 0x114   : > { %9755 = sst [smem:[#allocation140_spill]] %s5227_s30  ;;  %s5255_s13 = sld [smem:[#allocation8 + $0x3c]] }
 0x115   : > { %9758 = sst [smem:[#allocation143_spill]] %s5237_s18  ;;  %s5261_s19 = sld [smem:[#allocation8 + $0x45]] }
 0x116   : > { %9754 = sst [smem:[#allocation139_spill]] %s5225_s24  ;;  %s5271_s10 = sld [smem:[#allocation8 + $0x57]] }
 0x117   : > { %9744 = sst [smem:[#allocation133_spill]] %s5201_s8  ;;  %s5281_s3 = sld [smem:[#allocation8 + $0x69]] }
 0x118   : > { %9762 = sst [smem:[#allocation144_spill]] %s5245_s21  ;;  %s5273_s26 = sld [smem:[#allocation8 + $0x60]] }
 0x119   : > { %9764 = sst [smem:[#allocation145_spill]] %s5247_s15  ;;  %s5263_s15 = sld [smem:[#allocation8 + $0x4e]] }
 0x11a   : > { %9765 = sst [smem:[#allocation146_spill]] %s5253_s6  ;;  %s5291_s6 = sld [smem:[#allocation8 + $0x84]] }
 0x11b   : > { %9766 = sst [smem:[#allocation147_spill]] %s5255_s13  ;;  %s5297_s14 = sld [smem:[#allocation8 + $0x8d]] }
 0x11c   : > { %9770 = sst [smem:[#allocation148_spill]] %s5261_s19  ;;  %s5299_s4 = sld [smem:[#allocation8 + $0x7]] }
 0x11d   : > { %9778 = sst [smem:[#allocation151_spill]] %s5271_s10  ;;  %s5289_s10 = sld [smem:[#allocation8 + $0x7b]] }
 0x11e   : > { %9780 = sst [smem:[#allocation152_spill]] %s5273_s26  ;;  %s5308_s7 = sld [smem:[#allocation8 + $0x19]] }
 0x11f   : > { %9772 = sst [smem:[#allocation149_spill]] %s5263_s15  ;;  %s5283_s15 = sld [smem:[#allocation8 + $0x72]] }
 0x120   : > { %9784 = sst [smem:[#allocation154_spill]] %s5281_s3  ;;  %s5318_s19 = sld [smem:[#allocation8 + $0x22]] }
 0x121   : > { %9792 = sst [smem:[#allocation157_spill]] %s5291_s6  ;;  %s5320_s13 = sld [smem:[#allocation8 + $0x2b]] }
 0x122   : > { %9793 = sst [smem:[#allocation158_spill]] %s5297_s14  ;;  %v363_v53 = vpop.permute.xlu1 %362  ;;  %s5326_s2 = sld [smem:[#allocation8 + $0x34]]  ;;  %v340_v38 = vpop.permute.xlu0 %339 }
 0x123   : > { %9790 = sst [smem:[#allocation156_spill]] %s5289_s10  ;;  %s5306_s10 = sld [smem:[#allocation8 + $0x10]] }
 0x124   : > { %9794 = sst [smem:[#allocation159_spill]] %s5299_s4  ;;  %s5328_s26 = sld [smem:[#allocation8 + $0x3d]] }
 0x125   : > { %9786 = sst [smem:[#allocation155_spill]] %s5283_s15  ;;  %s5334_s0 = sld [smem:[#allocation8 + $0x46]] }
 0x126   : > { %9806 = sst [smem:[#allocation162_spill]] %s5318_s19  ;;  %s5342_s9 = sld [smem:[#allocation8 + $0x58]]  ;;  %v365_v62 = vpop.permute.xlu1 %364 }
 0x127   : > { %9807 = sst [smem:[#allocation163_spill]] %s5320_s13  ;;  %s5336_s13 = sld [smem:[#allocation8 + $0x4f]]  ;;  %v367_v9 = vsel %vm366_vm0, %v363_v53, %v365_v62  ;;  %v368_v7 = vsel %vm366_vm0, %v365_v62, %v363_v53  ;;  %v342_v53 = vpop.permute.xlu0 %341 }
 0x128   : > { %s5344_s29 = sld [smem:[#allocation8 + $0x61]]  ;;  %s5351_s20 = sld [smem:[#allocation8 + $0x6a]]  ;;  %v5426_v56 = vmul.f32 %v4946_v13, %v368_v7  ;;  %v5429_v15 = vmul.f32 %v4949_v14, %v367_v9  ;;  %v346_v36 = vsel %vm345_vm1, %v340_v38, %v342_v53  ;;  %v347_v7 = vsel %vm345_vm1, %v342_v53, %v340_v38 }
 0x129   : > { %s9812_s8 = sld [smem:[#allocation147_spill]]  ;;  %s5353_s5 = sld [smem:[#allocation8 + $0x73]]  ;;  %v5442_v9 = vrot.slane %v502_v34, %v4917_v5  ;;  %v5464_v45 = vmul.f32 %v4977_v24, %v347_v7  ;;  %v5467_v62 = vmul.f32 %v4989_v28, %v346_v36 }
 0x12a   : > { %s9813_s16 = sld [smem:[#allocation148_spill]]  ;;  %s9815_s11 = sld [smem:[#allocation149_spill]]  ;;  %v5454_v38 = vmul.f32 %v595_v29, %v5426_v56  ;;  %v5459_v53 = vmul.f32 %v595_v29, %v5429_v15  ;;  %v5474_v29 = vmul.f32 %v707_v30, %v5426_v56  ;;  %v5482_v7 = vmul.f32 %v525_v25, %v5426_v56 }
 0x12b   : > { %9808 = sst [smem:[#allocation164_spill]] %s5334_s0  ;;  %s5363_s22 = sld [smem:[#allocation8 + $0x7c]]  ;;  %9833 = vst [vmem:[#allocation171_spill] sm:$0xff] %v5442_v9  ;;  %v5487_v36 = vmul.f32 %v525_v25, %v5429_v15  ;;  %v5492_v61 = vmul.f32 %v707_v30, %v5429_v15  ;;  %v5497_v2 = vmul.f32 %v819_v31, %v5426_v56  ;;  %v5504_v52 = vmul.f32 %v819_v31, %v5429_v15 }
 0x12c   : > { %s5365_s17 = sld [smem:[#allocation8 + $0x85]]  ;;  %s5371_s28 = sld [smem:[#allocation8 + $0x8e]]  ;;  %9837 = vst [vmem:[#allocation173_spill] sm:$0xff] %v5459_v53  ;;  %9841 = vst [vmem:[#allocation174_spill] sm:$0xff] %v5474_v29  ;;  %v5509_v25 = vmul.f32 %v997_v43, %v5426_v56  ;;  %v5514_v30 = vmul.f32 %v997_v43, %v5429_v15  ;;  %v5519_v3 = vmul.f32 %v1109_v50, %v5426_v56 }
 0x12d   : > { %s5373_s27 = sld [smem:[#allocation8 + $0x8]]  ;;  %s5379_s18 = sld [smem:[#allocation8 + $0x11]]  ;;  %9843 = vst [vmem:[#allocation175_spill] sm:$0xff] %v5492_v61  ;;  %9845 = vst [vmem:[#allocation176_spill] sm:$0xff] %v5497_v2  ;;  %v5524_v34 = vmul.f32 %v1109_v50, %v5429_v15  ;;  %v5529_v31 = vmul.f32 %v1221_v51, %v5426_v56  ;;  %v5535_v1 = vmul.f32 %v927_v39, %v5426_v56 }
 0x12e   : > { %9811 = sst [smem:[#allocation165_spill]] %s5351_s20  ;;  %s9822_s30 = sld [smem:[#allocation159_spill]]  ;;  %9846 = vst [vmem:[#allocation177_spill] sm:$0xff] %v5504_v52  ;;  %9848 = vst [vmem:[#allocation178_spill] sm:$0xff] %v5509_v25  ;;  %v5540_v43 = vmul.f32 %v927_v39, %v5429_v15  ;;  %v5545_v50 = vmul.f32 %v1221_v51, %v5429_v15 }
 0x12f   : > { %s5387_s23 = sld [smem:[#allocation8 + $0x23]]  ;;  %s9825_s4 = sld [smem:[#allocation163_spill]]  ;;  %9849 = vst [vmem:[#allocation179_spill] sm:$0xff] %v5514_v30  ;;  %9850 = vst [vmem:[#allocation180_spill] sm:$0xff] %v5519_v3 }
 0x130   : > { %s5389_s21 = sld [smem:[#allocation8 + $0x2c]]  ;;  %s5399_s3 = sld [smem:[#allocation8 + $0x35]]  ;;  %9851 = vst [vmem:[#allocation181_spill] sm:$0xff] %v5524_v34  ;;  %9852 = vst [vmem:[#allocation182_spill] sm:$0xff] %v5529_v31 }
 0x131   : > { %s5401_s25 = sld [smem:[#allocation8 + $0x3e]]  ;;  %s5409_s14 = sld [smem:[#allocation8 + $0x47]]  ;;  %9854 = vst [vmem:[#allocation183_spill] sm:$0xff] %v5545_v50 }
 0x132   : > { %9819 = sst [smem:[#allocation147_spill]] %s5365_s17  ;;  %s5381_s17 = sld [smem:[#allocation8 + $0x1a]] }
 0x133   : > { %9821 = sst [smem:[#allocation148_spill]] %s5371_s28  ;;  %s5411_s6 = sld [smem:[#allocation8 + $0x50]] }
 0x134   : > { %s5417_s24 = sld [smem:[#allocation8 + $0x59]]  ;;  %s5419_s12 = sld [smem:[#allocation8 + $0x62]] }
 0x135   : > { %9824 = sst [smem:[#allocation159_spill]] %s5387_s23  ;;  %s9847_s20 = sld [smem:[#allocation41_spill]] }
 0x136   : > { %s9853_s15 = sld [smem:[#allocation43_spill]]  ;;  %s9855_s23 = sld [smem:[#allocation44_spill]] }
 0x137   : > { %9828 = sst [smem:[#allocation163_spill]] %s5409_s14  ;;  %s9844_s14 = sld [smem:[#allocation42_spill]] }
 0x138   : > { %9823 = sst [smem:[#allocation149_spill]] %s5381_s17  ;;  %s9860_s17 = sld [smem:[#allocation47_spill]] }
 0x139   : > { %s9861_s0 = sld [smem:[#allocation45_spill]]  ;;  %s9865_s28 = sld [smem:[#allocation50_spill]] }
 0x13a   : > { %9830 = sst [smem:[#allocation170_spill]] %s5419_s12  ;;  %s9866_s19 = sld [smem:[#allocation53_spill]] }
 0x13b   : > { %v9862_v32 = vstv %s9847_s20  ;;  %s9876_s20 = sld [smem:[#allocation54_spill]]  ;;  %s10122_s12 = sld [smem:[#allocation130_spill]] }
 0x13c   : > { %v5564_v14 = vmul.f32 %v9862_v32, %v5426_v56  ;;  %v9863_v13 = vmov %v9862_v32  ;;  %v9867_v46 = vstv %s9853_s15  ;;  %s9883_s15 = sld [smem:[#allocation55_spill]] }
 0x13d   : > { %v9856_v58 = vstv %s9844_s14  ;;  %s9864_s14 = sld [smem:[#allocation49_spill]]  ;;  %v5579_v22 = vmul.f32 %v9867_v46, %v5426_v56 }
 0x13e   : > { %v5552_v28 = vmul.f32 %v9856_v58, %v5426_v56  ;;  %v9858_v24 = vmov %v9856_v58  ;;  %v5569_v58 = vmul.f32 %v9863_v13, %v5429_v15  ;;  %v9869_v13 = vmov %v9867_v46 }
 0x13f   : > { %v5557_v11 = vmul.f32 %v9858_v24, %v5429_v15  ;;  %9868 = vst [vmem:[#allocation186_spill] sm:$0xff] %v5579_v22  ;;  %v5584_v20 = vmul.f32 %v9869_v13, %v5429_v15  ;;  %v9871_v24 = vstv %s9855_s23  ;;  %v9875_v46 = vstv %s9860_s17  ;;  %s9892_s23 = sld [smem:[#allocation52_spill]]  ;;  %s9894_s17 = sld [smem:[#allocation56_spill]] }
 0x140   : > { %9857 = vst [vmem:[#allocation184_spill] sm:$0xff] %v5552_v28  ;;  %v5589_v19 = vmul.f32 %v9871_v24, %v5426_v56  ;;  %v9873_v55 = vmov %v9871_v24  ;;  %v5601_v52 = vmul.f32 %v9875_v46, %v5426_v56  ;;  %v9878_v13 = vstv %s9861_s0  ;;  %s9896_s0 = sld [smem:[#allocation58_spill]] }
 0x141   : > { %9859 = vst [vmem:[#allocation185_spill] sm:$0xff] %v5557_v11  ;;  %9870 = vst [vmem:[#allocation187_spill] sm:$0xff] %v5584_v20  ;;  %v5596_v32 = vmul.f32 %v9873_v55, %v5429_v15  ;;  %v5606_v2 = vmul.f32 %v9878_v13, %v5426_v56  ;;  %v9879_v24 = vmov %v9878_v13  ;;  %v9880_v51 = vmov %v9875_v46 }
 0x142   : > { %9872 = vst [vmem:[#allocation188_spill] sm:$0xff] %v5589_v19  ;;  %9877 = vst [vmem:[#allocation190_spill] sm:$0xff] %v5601_v52  ;;  %v5611_v50 = vmul.f32 %v9879_v24, %v5429_v15  ;;  %v5616_v39 = vmul.f32 %v9880_v51, %v5429_v15  ;;  %v9887_v13 = vstv %s9865_s28  ;;  %v9891_v51 = vstv %s9866_s19  ;;  %v385_v19 = vpop.permute.xlu0 %384  ;;  %s9903_s28 = sld [smem:[#allocation60_spill]]  ;;  %s9905_s19 = sld [smem:[#allocation62_spill]] }
 0x143   : > { %9874 = vst [vmem:[#allocation189_spill] sm:$0xff] %v5596_v32  ;;  %v9882_v55 = vstv %s9864_s14  ;;  %v5631_v60 = vmul.f32 %v9887_v13, %v5426_v56  ;;  %v9889_v24 = vmov %v9887_v13  ;;  %v520_v18 = vmul.f32 %v9891_v51, %v5464_v45  ;;  %s9901_s14 = sld [smem:[#allocation59_spill]] }
 0x144   : > { %9881 = vst [vmem:[#allocation191_spill] sm:$0xff] %v5616_v39  ;;  %v5621_v31 = vmul.f32 %v9882_v55, %v5426_v56  ;;  %v9885_v46 = vmov %v9882_v55  ;;  %v5636_v47 = vmul.f32 %v9889_v24, %v5429_v15  ;;  %v9895_v13 = vstv %s9876_s20  ;;  %s9908_s20 = sld [smem:[#allocation64_spill]] }
 0x145   : > { %v5626_v4 = vmul.f32 %v9885_v46, %v5429_v15  ;;  %9888 = vst [vmem:[#allocation194_spill] sm:$0xff] %v5631_v60  ;;  %v9893_v46 = vmov %v9891_v51  ;;  %v5652_v24 = vmul.f32 %v9895_v13, %v5464_v45  ;;  %v9897_v51 = vmov %v9895_v13  ;;  %v387_v13 = vpop.permute.xlu1 %386 }
 0x146   : > { %9884 = vst [vmem:[#allocation192_spill] sm:$0xff] %v5621_v31  ;;  %9890 = vst [vmem:[#allocation195_spill] sm:$0xff] %v5636_v47  ;;  %v521_v34 = vmul.f32 %v9893_v46, %v5467_v62  ;;  %v5657_v55 = vmul.f32 %v9897_v51, %v5467_v62  ;;  %v9898_v46 = vstv %s9883_s15  ;;  %v9904_v31 = vstv %s9892_s23  ;;  %s9913_s15 = sld [smem:[#allocation57_spill]]  ;;  %s9918_s23 = sld [smem:[#allocation65_spill]] }
 0x147   : > { %9886 = vst [vmem:[#allocation193_spill] sm:$0xff] %v5626_v4  ;;  %v5664_v56 = vmul.f32 %v9898_v46, %v5464_v45  ;;  %v9900_v15 = vmov %v9898_v46  ;;  %v5676_v46 = vadd.f32 %v520_v18, %v9904_v31  ;;  %v9906_v20 = vmov %v9904_v31 }
 0x148   : > { %v5669_v32 = vmul.f32 %v9900_v15, %v5467_v62  ;;  %v5680_v22 = vadd.f32 %v521_v34, %v9906_v20  ;;  %v9907_v15 = vstv %s9894_s17  ;;  %v9912_v26 = vstv %s9896_s0  ;;  %s9927_s17 = sld [smem:[#allocation67_spill]]  ;;  %s9931_s0 = sld [smem:[#allocation63_spill]] }
 0x149   : > { %9899 = vst [vmem:[#allocation196_spill] sm:$0xff] %v5664_v56  ;;  %v5685_v39 = vmul.f32 %v9907_v15, %v5464_v45  ;;  %v9910_v51 = vmov %v9907_v15  ;;  %v922_v16 = vmul.f32 %v9912_v26, %v5464_v45  ;;  %v9914_v34 = vmov %v9912_v26  ;;  %v409_v40 = vpop.permute.xlu1 %408 }
 0x14a   : > { %9902 = vst [vmem:[#allocation197_spill] sm:$0xff] %v5669_v32  ;;  %v5690_v4 = vmul.f32 %v9910_v51, %v5467_v62  ;;  %v923_v31 = vmul.f32 %v9914_v34, %v5467_v62  ;;  %v9915_v15 = vstv %s9901_s14  ;;  %v9920_v18 = vstv %s9903_s28  ;;  %s9933_s14 = sld [smem:[#allocation68_spill]]  ;;  %s9935_s28 = sld [smem:[#allocation71_spill]] }
 0x14b   : > { %9909 = vst [vmem:[#allocation198_spill] sm:$0xff] %v5685_v39  ;;  %v5704_v47 = vmul.f32 %v9915_v15, %v5464_v45  ;;  %v9917_v60 = vmov %v9915_v15  ;;  %v5716_v20 = vmul.f32 %v9920_v18, %v5464_v45  ;;  %v9922_v34 = vmov %v9920_v18 }
 0x14c   : > { %9911 = vst [vmem:[#allocation199_spill] sm:$0xff] %v5690_v4  ;;  %v5711_v52 = vmul.f32 %v9917_v60, %v5467_v62  ;;  %v5721_v3 = vmul.f32 %v9922_v34, %v5467_v62  ;;  %v9924_v15 = vstv %s9905_s19  ;;  %v9929_v60 = vstv %s9908_s20  ;;  %s9941_s19 = sld [smem:[#allocation75_spill]]  ;;  %s9945_s20 = sld [smem:[#allocation76_spill]] }
 0x14d   : > { %9916 = vst [vmem:[#allocation200_spill] sm:$0xff] %v5704_v47  ;;  %9921 = vst [vmem:[#allocation202_spill] sm:$0xff] %v5716_v20  ;;  %v5726_v61 = vmul.f32 %v9924_v15, %v5464_v45  ;;  %v9926_v26 = vmov %v9924_v15  ;;  %v1324_v29 = vmul.f32 %v9929_v60, %v5464_v45  ;;  %v9930_v32 = vstv %s9913_s15  ;;  %s9949_s15 = sld [smem:[#allocation79_spill]] }
 0x14e   : > { %9919 = vst [vmem:[#allocation201_spill] sm:$0xff] %v5711_v52  ;;  %9923 = vst [vmem:[#allocation203_spill] sm:$0xff] %v5721_v3  ;;  %v5731_v51 = vmul.f32 %v9926_v26, %v5467_v62  ;;  %v924_v56 = vadd.f32 %v922_v16, %v9930_v32  ;;  %v9932_v15 = vmov %v9929_v60  ;;  %v407_v26 = vpop.permute.xlu0 %406  ;;  %v9934_v11 = vmov %v9930_v32 }
 0x14f   : > { %9925 = vst [vmem:[#allocation204_spill] sm:$0xff] %v5726_v61  ;;  %v1325_v63 = vmul.f32 %v9932_v15, %v5467_v62  ;;  %v925_v28 = vadd.f32 %v923_v31, %v9934_v11  ;;  %v9936_v18 = vstv %s9918_s23  ;;  %v9940_v4 = vstv %s9927_s17  ;;  %s9954_s23 = sld [smem:[#allocation70_spill]]  ;;  %s9970_s17 = sld [smem:[#allocation80_spill]] }
 0x150   : > { %9928 = vst [vmem:[#allocation205_spill] sm:$0xff] %v5731_v51  ;;  %v5750_v39 = vmul.f32 %v9936_v18, %v5464_v45  ;;  %v9938_v34 = vmov %v9936_v18  ;;  %v5762_v11 = vmul.f32 %v9940_v4, %v5464_v45  ;;  %v9943_v31 = vmov %v9940_v4 }
 0x151   : > { %v5755_v16 = vmul.f32 %v9938_v34, %v5467_v62  ;;  %v5767_v60 = vmul.f32 %v9943_v31, %v5467_v62  ;;  %v9946_v12 = vstv %s9931_s0  ;;  %v9948_v20 = vstv %s9933_s14  ;;  %s9971_s0 = sld [smem:[#allocation84_spill]]  ;;  %s9972_s14 = sld [smem:[#allocation85_spill]] }
 0x152   : > { %9937 = vst [vmem:[#allocation206_spill] sm:$0xff] %v5750_v39  ;;  %9942 = vst [vmem:[#allocation208_spill] sm:$0xff] %v5762_v11  ;;  %v1326_v6 = vadd.f32 %v1324_v29, %v9946_v12  ;;  %v9947_v15 = vmov %v9946_v12  ;;  %v5780_v31 = vmul.f32 %v9948_v20, %v5464_v45  ;;  %v9951_v18 = vmov %v9948_v20  ;;  %v429_v39 = vpop.permute.xlu0 %428 }
 0x153   : > { %9939 = vst [vmem:[#allocation207_spill] sm:$0xff] %v5755_v16  ;;  %9944 = vst [vmem:[#allocation209_spill] sm:$0xff] %v5767_v60  ;;  %v1327_v4 = vadd.f32 %v1325_v63, %v9947_v15  ;;  %v5785_v3 = vmul.f32 %v9951_v18, %v5467_v62  ;;  %v9953_v34 = vstv %s9935_s28  ;;  %v9956_v20 = vstv %s9941_s19  ;;  %v431_v16 = vpop.permute.xlu1 %430  ;;  %s9973_s28 = sld [smem:[#allocation88_spill]]  ;;  %s9974_s19 = sld [smem:[#allocation89_spill]] }
 0x154   : > { %9950 = vst [vmem:[#allocation210_spill] sm:$0xff] %v5780_v31  ;;  %v1726_v61 = vmul.f32 %v9953_v34, %v5464_v45  ;;  %v9955_v63 = vmov %v9953_v34  ;;  %v5799_v32 = vmul.f32 %v9956_v20, %v5464_v45  ;;  %v9958_v51 = vmov %v9956_v20 }
 0x155   : > { %9952 = vst [vmem:[#allocation211_spill] sm:$0xff] %v5785_v3  ;;  %v1727_v15 = vmul.f32 %v9955_v63, %v5467_v62  ;;  %v5806_v21 = vmul.f32 %v9958_v51, %v5467_v62  ;;  %v9960_v12 = vstv %s9945_s20  ;;  %v9964_v20 = vstv %s9949_s15  ;;  %s9976_s20 = sld [smem:[#allocation91_spill]]  ;;  %s9979_s15 = sld [smem:[#allocation92_spill]] }
 0x156   : > { %9957 = vst [vmem:[#allocation212_spill] sm:$0xff] %v5799_v32  ;;  %v5811_v29 = vmul.f32 %v9960_v12, %v5464_v45  ;;  %v9962_v63 = vmov %v9960_v12  ;;  %v5821_v25 = vmul.f32 %v9964_v20, %v5464_v45  ;;  %v389_v34 = vsel %vm388_vm2, %v385_v19, %v387_v13 }
 0x157   : > { %9959 = vst [vmem:[#allocation213_spill] sm:$0xff] %v5806_v21  ;;  %v5816_v30 = vmul.f32 %v9962_v63, %v5467_v62  ;;  %v390_v51 = vsel %vm388_vm2, %v387_v13, %v385_v19  ;;  %v9966_v60 = vstv %s9954_s23  ;;  %v9967_v52 = vmov %v9964_v20  ;;  %s9980_s23 = sld [smem:[#allocation93_spill]] }
 0x158   : > { %9961 = vst [vmem:[#allocation214_spill] sm:$0xff] %v5811_v29  ;;  %9965 = vst [vmem:[#allocation216_spill] sm:$0xff] %v5821_v25  ;;  %v1728_v11 = vadd.f32 %v1726_v61, %v9966_v60  ;;  %v5834_v63 = vmul.f32 %v9967_v52, %v5467_v62  ;;  %v9969_v47 = vmov %v9966_v60  ;;  %v528_v20 = vadd.f32 %v5482_v7, %v5676_v46 }
 0x159   : > { %9963 = vst [vmem:[#allocation215_spill] sm:$0xff] %v5816_v30  ;;  %v1729_v53 = vadd.f32 %v1727_v15, %v9969_v47  ;;  %v529_v19 = vadd.f32 %v5487_v36, %v5680_v22  ;;  %v5845_v12 = vmul.f32 %v5232_v27, %v390_v51  ;;  %v5848_v61 = vmul.f32 %v5235_v49, %v389_v34  ;;  %v453_v34 = vpop.permute.xlu1 %452  ;;  %v451_v51 = vpop.permute.xlu0 %450 }
 0x15a   : > { %9968 = vst [vmem:[#allocation217_spill] sm:$0xff] %v5834_v63  ;;  %v412_v47 = vsel %vm410_vm3, %v409_v40, %v407_v26  ;;  %v411_v22 = vsel %vm410_vm3, %v407_v26, %v409_v40  ;;  %v930_v46 = vadd.f32 %v5535_v1, %v924_v56  ;;  %v931_v60 = vadd.f32 %v5540_v43, %v925_v28 }
 0x15b   : > { %v1332_v15 = vadd.f32 %v5564_v14, %v1326_v6  ;;  %v1333_v7 = vadd.f32 %v5569_v58, %v1327_v4  ;;  %v5863_v62 = vadd.f32 %v5606_v2, %v1728_v11  ;;  %v5866_v40 = vadd.f32 %v5611_v50, %v1729_v53 }
 0x15c   : > { %v5869_v1 = vmul.f32 %v5269_v57, %v412_v47  ;;  %v9975_v6 = vstv %s9970_s17  ;;  %v5878_v58 = vmul.f32 %v5277_v42, %v411_v22  ;;  %v5882_v2 = vsel %vm432_vm4, %v429_v39, %v431_v16  ;;  %s9995_s17 = sld [smem:[#allocation94_spill]] }
 0x15d   : > { %v532_v14 = vmul.f32 %v9975_v6, %v5845_v12  ;;  %v9977_v28 = vmov %v9975_v6  ;;  %v9978_v53 = vstv %s9971_s0  ;;  %v5891_v56 = vsel %vm432_vm4, %v431_v16, %v429_v39  ;;  %s10003_s0 = sld [smem:[#allocation96_spill]] }
 0x15e   : > { %v533_v43 = vmul.f32 %v9977_v28, %v5848_v61  ;;  %v5887_v50 = vmul.f32 %v9978_v53, %v5845_v12  ;;  %v5895_v26 = vsel %vm454_vm5, %v451_v51, %v453_v34  ;;  %v5899_v11 = vsel %vm454_vm5, %v453_v34, %v451_v51 }
 0x15f   : > { %v9981_v4 = vmov %v9978_v53  ;;  %v9982_v22 = vstv %s9972_s14  ;;  %v9986_v28 = vstv %s9973_s28  ;;  %v9990_v36 = vstv %s9974_s19  ;;  %s10004_s14 = sld [smem:[#allocation97_spill]]  ;;  %s10005_s28 = sld [smem:[#allocation98_spill]] }
 0x160   : > { %v5904_v47 = vmul.f32 %v9981_v4, %v5848_v61  ;;  %v5909_v6 = vmul.f32 %v9982_v22, %v5845_v12  ;;  %v9984_v39 = vmov %v9982_v22  ;;  %v5919_v53 = vmul.f32 %v9986_v28, %v5845_v12  ;;  %s10006_s19 = sld [smem:[#allocation99_spill]] }
 0x161   : > { %v5914_v16 = vmul.f32 %v9984_v39, %v5848_v61  ;;  %v9988_v34 = vmov %v9986_v28  ;;  %v934_v4 = vmul.f32 %v9990_v36, %v5845_v12  ;;  %v9991_v52 = vmov %v9990_v36 }
 0x162   : > { %9983 = vst [vmem:[#allocation218_spill] sm:$0xff] %v5909_v6  ;;  %9987 = vst [vmem:[#allocation220_spill] sm:$0xff] %v5919_v53  ;;  %v5924_v51 = vmul.f32 %v9988_v34, %v5848_v61  ;;  %v935_v18 = vmul.f32 %v9991_v52, %v5848_v61  ;;  %v9992_v22 = vstv %s9976_s20  ;;  %v5937_v39 = vadd.f32 %v532_v14, %v528_v20  ;;  %s10007_s20 = sld [smem:[#allocation101_spill]] }
 0x163   : > { %9985 = vst [vmem:[#allocation219_spill] sm:$0xff] %v5914_v16  ;;  %v5935_v13 = vmul.f32 %v9992_v22, %v5845_v12  ;;  %v5939_v45 = vadd.f32 %v533_v43, %v529_v19  ;;  %v9993_v28 = vmov %v9992_v22  ;;  %v9994_v34 = vstv %s9979_s15  ;;  %s10010_s15 = sld [smem:[#allocation102_spill]] }
 0x164   : > { %9989 = vst [vmem:[#allocation221_spill] sm:$0xff] %v5924_v51  ;;  %v5944_v42 = vmul.f32 %v9993_v28, %v5848_v61  ;;  %v5949_v57 = vmul.f32 %v9994_v34, %v5845_v12  ;;  %v9997_v36 = vmov %v9994_v34  ;;  %v9999_v20 = vstv %s9980_s23  ;;  %s10012_s23 = sld [smem:[#allocation103_spill]] }
 0x165   : > { %v5955_v22 = vmul.f32 %v9997_v36, %v5848_v61  ;;  %v5960_v19 = vmul.f32 %v9999_v20, %v5845_v12  ;;  %v10001_v14 = vmov %v9999_v20  ;;  %v5972_v49 = vadd.f32 %v934_v4, %v930_v46 }
 0x166   : > { %9996 = vst [vmem:[#allocation222_spill] sm:$0xff] %v5949_v57  ;;  %v5965_v43 = vmul.f32 %v10001_v14, %v5848_v61  ;;  %v5974_v14 = vadd.f32 %v935_v18, %v931_v60  ;;  %v10008_v27 = vstv %s9995_s17  ;;  %v10011_v4 = vstv %s10003_s0  ;;  %s10029_s17 = sld [smem:[#allocation104_spill]]  ;;  %s10037_s0 = sld [smem:[#allocation46_spill]] }
 0x167   : > { %9998 = vst [vmem:[#allocation223_spill] sm:$0xff] %v5955_v22  ;;  %10000 = vst [vmem:[#allocation224_spill] sm:$0xff] %v5960_v19  ;;  %v1336_v36 = vmul.f32 %v10008_v27, %v5845_v12  ;;  %v10009_v63 = vmov %v10008_v27  ;;  %v5991_v34 = vmul.f32 %v10011_v4, %v5845_v12  ;;  %v10013_v52 = vmov %v10011_v4 }
 0x168   : > { %10002 = vst [vmem:[#allocation225_spill] sm:$0xff] %v5965_v43  ;;  %v1337_v20 = vmul.f32 %v10009_v63, %v5848_v61  ;;  %v5996_v27 = vmul.f32 %v10013_v52, %v5848_v61  ;;  %v10014_v63 = vstv %s10004_s14  ;;  %v10018_v60 = vstv %s10005_s28  ;;  %s10038_s14 = sld [smem:[#allocation48_spill]]  ;;  %s10039_s28 = sld [smem:[#allocation106_spill]] }
 0x169   : > { %v6001_v28 = vmul.f32 %v10014_v63, %v5845_v12  ;;  %v10016_v46 = vmov %v10014_v63  ;;  %v6011_v25 = vmul.f32 %v10018_v60, %v5845_v12  ;;  %v10020_v4 = vmov %v10018_v60 }
 0x16a   : > { %v6006_v18 = vmul.f32 %v10016_v46, %v5848_v61  ;;  %v6016_v51 = vmul.f32 %v10020_v4, %v5848_v61  ;;  %v10022_v53 = vstv %s10006_s19  ;;  %v10024_v63 = vstv %s10007_s20  ;;  %s10040_s19 = sld [smem:[#allocation107_spill]]  ;;  %s10041_s20 = sld [smem:[#allocation51_spill]] }
 0x16b   : > { %10015 = vst [vmem:[#allocation226_spill] sm:$0xff] %v6001_v28  ;;  %10019 = vst [vmem:[#allocation228_spill] sm:$0xff] %v6011_v25  ;;  %v1738_v52 = vmul.f32 %v10022_v53, %v5845_v12  ;;  %v10023_v30 = vmov %v10022_v53  ;;  %v6027_v43 = vmul.f32 %v10024_v63, %v5845_v12  ;;  %v6029_v46 = vadd.f32 %v1336_v36, %v1332_v15 }
 0x16c   : > { %10017 = vst [vmem:[#allocation227_spill] sm:$0xff] %v6006_v18  ;;  %10021 = vst [vmem:[#allocation229_spill] sm:$0xff] %v6016_v51  ;;  %v1739_v29 = vmul.f32 %v10023_v30, %v5848_v61  ;;  %v6031_v19 = vadd.f32 %v1337_v20, %v1333_v7  ;;  %v10026_v60 = vmov %v10024_v63  ;;  %v10028_v4 = vstv %s10010_s15  ;;  %s10044_s15 = sld [smem:[#allocation109_spill]] }
 0x16d   : > { %10025 = vst [vmem:[#allocation230_spill] sm:$0xff] %v6027_v43  ;;  %v6036_v3 = vmul.f32 %v10026_v60, %v5848_v61  ;;  %v6041_v31 = vmul.f32 %v10028_v4, %v5845_v12  ;;  %v10031_v53 = vmov %v10028_v4  ;;  %v10033_v15 = vstv %s10012_s23  ;;  %s10046_s23 = sld [smem:[#allocation111_spill]] }
 0x16e   : > { %v6047_v63 = vmul.f32 %v10031_v53, %v5848_v61  ;;  %v6052_v7 = vmul.f32 %v10033_v15, %v5845_v12  ;;  %v10035_v36 = vmov %v10033_v15  ;;  %v6065_v15 = vadd.f32 %v1738_v52, %v5863_v62 }
 0x16f   : > { %10027 = vst [vmem:[#allocation231_spill] sm:$0xff] %v6036_v3  ;;  %10030 = vst [vmem:[#allocation232_spill] sm:$0xff] %v6041_v31  ;;  %v6057_v20 = vmul.f32 %v10035_v36, %v5848_v61  ;;  %v6068_v61 = vadd.f32 %v1739_v29, %v5866_v40  ;;  %v10042_v53 = vstv %s10029_s17  ;;  %v10045_v36 = vstv %s10037_s0  ;;  %s10061_s17 = sld [smem:[#allocation112_spill]]  ;;  %s10069_s0 = sld [smem:[#allocation114_spill]] }
 0x170   : > { %10032 = vst [vmem:[#allocation233_spill] sm:$0xff] %v6047_v63  ;;  %10034 = vst [vmem:[#allocation234_spill] sm:$0xff] %v6052_v7  ;;  %v538_v60 = vmul.f32 %v10042_v53, %v5869_v1  ;;  %v10043_v12 = vmov %v10042_v53  ;;  %v6085_v30 = vmul.f32 %v10045_v36, %v5869_v1  ;;  %v10047_v4 = vmov %v10045_v36 }
 0x171   : > { %10036 = vst [vmem:[#allocation235_spill] sm:$0xff] %v6057_v20  ;;  %v539_v62 = vmul.f32 %v10043_v12, %v5878_v58  ;;  %v6090_v53 = vmul.f32 %v10047_v4, %v5878_v58  ;;  %v10048_v12 = vstv %s10038_s14  ;;  %v10052_v40 = vstv %s10039_s28  ;;  %s10070_s14 = sld [smem:[#allocation115_spill]]  ;;  %s10071_s28 = sld [smem:[#allocation116_spill]] }
 0x172   : > { %v6095_v31 = vmul.f32 %v10048_v12, %v5869_v1  ;;  %v10050_v52 = vmov %v10048_v12  ;;  %v6105_v20 = vmul.f32 %v10052_v40, %v5869_v1  ;;  %v10054_v36 = vmov %v10052_v40 }
 0x173   : > { %v6100_v29 = vmul.f32 %v10050_v52, %v5878_v58  ;;  %v6110_v7 = vmul.f32 %v10054_v36, %v5878_v58  ;;  %v10056_v63 = vstv %s10040_s19  ;;  %v10058_v12 = vstv %s10041_s20  ;;  %s10072_s19 = sld [smem:[#allocation117_spill]]  ;;  %s10073_s20 = sld [smem:[#allocation120_spill]] }
 0x174   : > { %10049 = vst [vmem:[#allocation236_spill] sm:$0xff] %v6095_v31  ;;  %10053 = vst [vmem:[#allocation238_spill] sm:$0xff] %v6105_v20  ;;  %v940_v4 = vmul.f32 %v10056_v63, %v5869_v1  ;;  %v10057_v51 = vmov %v10056_v63  ;;  %v6121_v18 = vmul.f32 %v10058_v12, %v5869_v1  ;;  %v540_v52 = vadd.f32 %v538_v60, %v5937_v39 }
 0x175   : > { %10051 = vst [vmem:[#allocation237_spill] sm:$0xff] %v6100_v29  ;;  %10055 = vst [vmem:[#allocation239_spill] sm:$0xff] %v6110_v7  ;;  %v941_v25 = vmul.f32 %v10057_v51, %v5878_v58  ;;  %v541_v28 = vadd.f32 %v539_v62, %v5939_v45  ;;  %v10059_v40 = vmov %v10058_v12  ;;  %v10060_v36 = vstv %s10044_s15  ;;  %s10076_s15 = sld [smem:[#allocation121_spill]] }
 0x176   : > { %v6128_v3 = vmul.f32 %v10059_v40, %v5878_v58  ;;  %v6133_v43 = vmul.f32 %v10060_v36, %v5869_v1  ;;  %v10063_v63 = vmov %v10060_v36  ;;  %v10065_v39 = vstv %s10046_s23  ;;  %s10078_s23 = sld [smem:[#allocation123_spill]] }
 0x177   : > { %v6139_v12 = vmul.f32 %v10063_v63, %v5878_v58  ;;  %v6144_v60 = vmul.f32 %v10065_v39, %v5869_v1  ;;  %v10067_v45 = vmov %v10065_v39  ;;  %v942_v39 = vadd.f32 %v940_v4, %v5972_v49 }
 0x178   : > { %10062 = vst [vmem:[#allocation240_spill] sm:$0xff] %v6133_v43  ;;  %v6149_v62 = vmul.f32 %v10067_v45, %v5878_v58  ;;  %v943_v45 = vadd.f32 %v941_v25, %v5974_v14  ;;  %v10074_v63 = vstv %s10061_s17  ;;  %v10077_v4 = vstv %s10069_s0  ;;  %s6244_s17 = sld [smem:[#allocation8 + $0x6b]]  ;;  %s6250_s0 = sld [smem:[#allocation8 + $0x74]] }
 0x179   : > { %10064 = vst [vmem:[#allocation241_spill] sm:$0xff] %v6139_v12  ;;  %10066 = vst [vmem:[#allocation242_spill] sm:$0xff] %v6144_v60  ;;  %v1342_v20 = vmul.f32 %v10074_v63, %v5869_v1  ;;  %v10075_v22 = vmov %v10074_v63  ;;  %v6173_v36 = vmul.f32 %v10077_v4, %v5869_v1  ;;  %v10079_v63 = vmov %v10077_v4 }
 0x17a   : > { %10068 = vst [vmem:[#allocation243_spill] sm:$0xff] %v6149_v62  ;;  %v1343_v7 = vmul.f32 %v10075_v22, %v5878_v58  ;;  %v6179_v22 = vmul.f32 %v10079_v63, %v5878_v58  ;;  %v10080_v49 = vstv %s10070_s14  ;;  %v10084_v40 = vstv %s10071_s28  ;;  %s10103_s14 = sld [smem:[#allocation124_spill]]  ;;  %s10105_s28 = sld [smem:[#allocation125_spill]] }
 0x17b   : > { %v6184_v51 = vmul.f32 %v10080_v49, %v5869_v1  ;;  %v10082_v25 = vmov %v10080_v49  ;;  %v6194_v4 = vmul.f32 %v10084_v40, %v5869_v1  ;;  %v10086_v62 = vmov %v10084_v40 }
 0x17c   : > { %v6189_v14 = vmul.f32 %v10082_v25, %v5878_v58  ;;  %v6199_v60 = vmul.f32 %v10086_v62, %v5878_v58  ;;  %v10088_v12 = vstv %s10072_s19  ;;  %v10090_v49 = vstv %s10073_s20  ;;  %s10106_s19 = sld [smem:[#allocation126_spill]]  ;;  %s10110_s20 = sld [smem:[#allocation127_spill]] }
 0x17d   : > { %10081 = vst [vmem:[#allocation244_spill] sm:$0xff] %v6184_v51  ;;  %10085 = vst [vmem:[#allocation246_spill] sm:$0xff] %v6194_v4  ;;  %v1744_v63 = vmul.f32 %v10088_v12, %v5869_v1  ;;  %v10089_v43 = vmov %v10088_v12  ;;  %v6210_v21 = vmul.f32 %v10090_v49, %v5869_v1  ;;  %v1344_v25 = vadd.f32 %v1342_v20, %v6029_v46 }
 0x17e   : > { %10083 = vst [vmem:[#allocation245_spill] sm:$0xff] %v6189_v14  ;;  %10087 = vst [vmem:[#allocation247_spill] sm:$0xff] %v6199_v60  ;;  %v1745_v57 = vmul.f32 %v10089_v43, %v5878_v58  ;;  %v1345_v32 = vadd.f32 %v1343_v7, %v6031_v19  ;;  %v10092_v40 = vmov %v10090_v49  ;;  %v10094_v62 = vstv %s10076_s15  ;;  %10102 = sst [smem:[#allocation34_spill]] %s6244_s17  ;;  %s10114_s15 = sld [smem:[#allocation128_spill]] }
 0x17f   : > { %10091 = vst [vmem:[#allocation248_spill] sm:$0xff] %v6210_v21  ;;  %v6217_v29 = vmul.f32 %v10092_v40, %v5878_v58  ;;  %v6222_v31 = vmul.f32 %v10094_v62, %v5869_v1  ;;  %v10096_v43 = vmov %v10094_v62  ;;  %v10098_v49 = vstv %s10078_s23  ;;  %s10116_s23 = sld [smem:[#allocation129_spill]]  ;;  %s10153_s17 = sld [smem:[#allocation138_spill]] }
 0x180   : > { %v6228_v16 = vmul.f32 %v10096_v43, %v5878_v58  ;;  %v6233_v6 = vmul.f32 %v10098_v49, %v5869_v1  ;;  %v10100_v19 = vmov %v10098_v49  ;;  %v1746_v12 = vadd.f32 %v1744_v63, %v6065_v15 }
 0x181   : > { %10093 = vst [vmem:[#allocation249_spill] sm:$0xff] %v6217_v29  ;;  %10095 = vst [vmem:[#allocation250_spill] sm:$0xff] %v6222_v31  ;;  %v6238_v46 = vmul.f32 %v10100_v19, %v5878_v58  ;;  %v1747_v1 = vadd.f32 %v1745_v57, %v6068_v61  ;;  %v6256_v40 = vmul.f32 %v5313_v33, %v5882_v2  ;;  %v475_v2 = vpop.permute.xlu1 %474  ;;  %v473_v19 = vpop.permute.xlu0 %472  ;;  %v10137_v33 = vstv %s10122_s12  ;;  %s10147_s12 = sld [smem:[#allocation136_spill]] }
 0x182   : > { %10097 = vst [vmem:[#allocation251_spill] sm:$0xff] %v6228_v16  ;;  %10099 = vst [vmem:[#allocation252_spill] sm:$0xff] %v6233_v6  ;;  %v6260_v43 = vmul.f32 %v5316_v37, %v5891_v56  ;;  %v10104_v63 = vrot.slane %v4959_v17, %v4917_v5  ;;  %v10107_v56 = vrot.slane %v4959_v17, %v4936_v10  ;;  %v10244_v21 = vstv %s5326_s2  ;;  %s10631_s2 = smov 16  }
 0x183   : > { %10101 = vst [vmem:[#allocation253_spill] sm:$0xff] %v6238_v46  ;;  %v10108_v57 = vrot.slane %v5010_v35, %v4917_v5  ;;  %v10109_v61 = vrot.slane %v5010_v35, %v4936_v10  ;;  %v10112_v49 = vrot.slane %v5076_v59, %v4936_v10  ;;  %v10115_v35 = vrot.slane %v5122_v48, %v4936_v10 }
 0x184   : > { %v556_v62 = vadd.f32 %v10104_v63, %v540_v52  ;;  %v557_v20 = vadd.f32 %v10107_v56, %v541_v28  ;;  %v10111_v52 = vrot.slane %v5076_v59, %v4917_v5  ;;  %v10113_v28 = vrot.slane %v5122_v48, %v4917_v5 }
 0x185   : > { %v958_v15 = vadd.f32 %v10108_v57, %v942_v39  ;;  %v959_v58 = vadd.f32 %v10109_v61, %v943_v45  ;;  %v1361_v17 = vadd.f32 %v10112_v49, %v1345_v32  ;;  %v6291_v45 = vadd.f32 %v10115_v35, %v1747_v1 }
 0x186   : > { %v1360_v63 = vadd.f32 %v10111_v52, %v1344_v25  ;;  %v6286_v39 = vadd.f32 %v10113_v28, %v1746_v12  ;;  %v6295_v25 = vmul.f32 %v5356_v23, %v5895_v26  ;;  %v10118_v59 = vstv %s10103_s14  ;;  %s10133_s14 = sld [smem:[#allocation131_spill]] }
 0x187   : > { %v560_v32 = vmul.f32 %v10118_v59, %v6256_v40  ;;  %v10119_v5 = vmov %v10118_v59  ;;  %v6305_v12 = vmul.f32 %v5359_v0, %v5899_v11  ;;  %v6309_v10 = vsel %vm476_vm6, %v473_v19, %v475_v2 }
 0x188   : > { %10117 = vst [vmem:[#allocation254_spill] sm:$0xff] %v6295_v25  ;;  %v561_v49 = vmul.f32 %v10119_v5, %v6260_v43  ;;  %v10121_v48 = vstv %s10105_s28  ;;  %v10124_v61 = vstv %s10106_s19  ;;  %v6328_v11 = vsel %vm476_vm6, %v475_v2, %v473_v19  ;;  %s10138_s28 = sld [smem:[#allocation132_spill]]  ;;  %s10140_s19 = sld [smem:[#allocation133_spill]] }
 0x189   : > { %10120 = vst [vmem:[#allocation255_spill] sm:$0xff] %v6305_v12  ;;  %v6314_v26 = vmul.f32 %v10121_v48, %v6256_v40  ;;  %v10123_v1 = vmov %v10121_v48  ;;  %v6324_v56 = vmul.f32 %v10124_v61, %v6256_v40  ;;  %v10126_v52 = vmov %v10124_v61 }
 0x18a   : > { %v6319_v57 = vmul.f32 %v10123_v1, %v6260_v43  ;;  %v6333_v28 = vmul.f32 %v10126_v52, %v6260_v43  ;;  %v10128_v35 = vstv %s10110_s20  ;;  %v10132_v61 = vstv %s10114_s15  ;;  %s10143_s20 = sld [smem:[#allocation134_spill]]  ;;  %s10145_s15 = sld [smem:[#allocation135_spill]] }
 0x18b   : > { %10125 = vst [vmem:[#allocation256_spill] sm:$0xff] %v6324_v56  ;;  %v6338_v59 = vmul.f32 %v10128_v35, %v6256_v40  ;;  %v10130_v5 = vmov %v10128_v35  ;;  %v962_v7 = vmul.f32 %v10132_v61, %v6256_v40  ;;  %v10134_v19 = vmov %v10132_v61 }
 0x18c   : > { %10127 = vst [vmem:[#allocation257_spill] sm:$0xff] %v6333_v28  ;;  %v6343_v48 = vmul.f32 %v10130_v5, %v6260_v43  ;;  %v963_v2 = vmul.f32 %v10134_v19, %v6260_v43  ;;  %v10135_v0 = vstv %s10116_s23  ;;  %v6358_v35 = vadd.f32 %v560_v32, %v556_v62  ;;  %s10150_s23 = sld [smem:[#allocation137_spill]] }
 0x18d   : > { %10129 = vst [vmem:[#allocation258_spill] sm:$0xff] %v6338_v59  ;;  %v6355_v52 = vmul.f32 %v10135_v0, %v6256_v40  ;;  %v6360_v37 = vadd.f32 %v561_v49, %v557_v20  ;;  %v10136_v5 = vmov %v10135_v0  ;;  %v6370_v61 = vmul.f32 %v10137_v33, %v6256_v40 }
 0x18e   : > { %10131 = vst [vmem:[#allocation259_spill] sm:$0xff] %v6343_v48  ;;  %v6365_v1 = vmul.f32 %v10136_v5, %v6260_v43  ;;  %v10141_v20 = vmov %v10137_v33  ;;  %v10144_v23 = vstv %s10133_s14  ;;  %v6388_v62 = vadd.f32 %v962_v7, %v958_v15  ;;  %s10164_s14 = sld [smem:[#allocation139_spill]] }
 0x18f   : > { %10139 = vst [vmem:[#allocation260_spill] sm:$0xff] %v6370_v61  ;;  %v6378_v32 = vmul.f32 %v10141_v20, %v6260_v43  ;;  %v6386_v0 = vmul.f32 %v10144_v23, %v6256_v40  ;;  %v6390_v19 = vadd.f32 %v963_v2, %v959_v58  ;;  %v10148_v49 = vmov %v10144_v23 }
 0x190   : > { %v6396_v5 = vmul.f32 %v10148_v49, %v6260_v43  ;;  %v10151_v23 = vstv %s10138_s28  ;;  %v10154_v2 = vstv %s10140_s19  ;;  %v10156_v46 = vstv %s10143_s20  ;;  %s10172_s28 = sld [smem:[#allocation140_spill]]  ;;  %s10174_s19 = sld [smem:[#allocation143_spill]] }
 0x191   : > { %10142 = vst [vmem:[#allocation261_spill] sm:$0xff] %v6378_v32  ;;  %10146 = vst [vmem:[#allocation262_spill] sm:$0xff] %v6386_v0  ;;  %v1364_v6 = vmul.f32 %v10151_v23, %v6256_v40  ;;  %v10152_v7 = vmov %v10151_v23  ;;  %v6410_v20 = vmul.f32 %v10154_v2, %v6256_v40  ;;  %v10155_v49 = vmov %v10154_v2  ;;  %s10178_s20 = sld [smem:[#allocation144_spill]] }
 0x192   : > { %10149 = vst [vmem:[#allocation263_spill] sm:$0xff] %v6396_v5  ;;  %v1365_v58 = vmul.f32 %v10152_v7, %v6260_v43  ;;  %v6415_v48 = vmul.f32 %v10155_v49, %v6260_v43  ;;  %v6420_v33 = vmul.f32 %v10156_v46, %v6256_v40  ;;  %v10158_v7 = vmov %v10156_v46 }
 0x193   : > { %v6426_v59 = vmul.f32 %v10158_v7, %v6260_v43  ;;  %v10160_v15 = vstv %s10145_s15  ;;  %v10165_v46 = vstv %s10147_s12  ;;  %v10167_v7 = vstv %s10150_s23  ;;  %s10183_s15 = sld [smem:[#allocation146_spill]]  ;;  %s10205_s12 = sld [smem:[#allocation152_spill]] }
 0x194   : > { %10157 = vst [vmem:[#allocation264_spill] sm:$0xff] %v6420_v33  ;;  %v6431_v60 = vmul.f32 %v10160_v15, %v6256_v40  ;;  %v10162_v2 = vmov %v10160_v15  ;;  %v1766_v16 = vmul.f32 %v10165_v46, %v6256_v40  ;;  %v10166_v23 = vmov %v10165_v46  ;;  %s10208_s23 = sld [smem:[#allocation155_spill]] }
 0x195   : > { %10159 = vst [vmem:[#allocation265_spill] sm:$0xff] %v6426_v59  ;;  %v6436_v4 = vmul.f32 %v10162_v2, %v6260_v43  ;;  %v1767_v0 = vmul.f32 %v10166_v23, %v6260_v43  ;;  %v6448_v31 = vmul.f32 %v10167_v7, %v6256_v40  ;;  %v6450_v15 = vadd.f32 %v1364_v6, %v1360_v63 }
 0x196   : > { %10161 = vst [vmem:[#allocation266_spill] sm:$0xff] %v6431_v60  ;;  %v6452_v14 = vadd.f32 %v1365_v58, %v1361_v17  ;;  %v10169_v2 = vmov %v10167_v7  ;;  %v10171_v49 = vstv %s10153_s17  ;;  %v10177_v23 = vstv %s10164_s14  ;;  %s10180_s17 = sld [smem:[#allocation145_spill]]  ;;  %s10214_s14 = sld [smem:[#allocation154_spill]] }
 0x197   : > { %10163 = vst [vmem:[#allocation267_spill] sm:$0xff] %v6436_v4  ;;  %10168 = vst [vmem:[#allocation268_spill] sm:$0xff] %v6448_v31  ;;  %v6457_v51 = vmul.f32 %v10169_v2, %v6260_v43  ;;  %v6462_v46 = vmul.f32 %v10171_v49, %v6256_v40  ;;  %v10175_v63 = vmov %v10171_v49  ;;  %v6478_v7 = vmul.f32 %v10177_v23, %v6256_v40 }
 0x198   : > { %v6470_v17 = vmul.f32 %v10175_v63, %v6260_v43  ;;  %v6481_v6 = vadd.f32 %v1766_v16, %v6286_v39  ;;  %v6484_v63 = vadd.f32 %v1767_v0, %v6291_v45  ;;  %v10181_v2 = vmov %v10177_v23 }
 0x199   : > { %10170 = vst [vmem:[#allocation269_spill] sm:$0xff] %v6457_v51  ;;  %10173 = vst [vmem:[#allocation270_spill] sm:$0xff] %v6462_v46  ;;  %v6490_v60 = vmul.f32 %v10181_v2, %v6260_v43  ;;  %v10184_v23 = vstv %s10172_s28  ;;  %v10186_v58 = vstv %s10174_s19  ;;  %v10188_v40 = vstv %s5239_s1  ;;  %s10203_s1 = sld [smem:[#allocation151_spill]]  ;;  %s10636_s28 = smov 112  }
 0x19a   : > { %10176 = vst [vmem:[#allocation271_spill] sm:$0xff] %v6470_v17  ;;  %10179 = vst [vmem:[#allocation272_spill] sm:$0xff] %v6478_v7  ;;  %v566_v16 = vmul.f32 %v10184_v23, %v6295_v25  ;;  %v10185_v39 = vmov %v10184_v23  ;;  %v6504_v4 = vmul.f32 %v10186_v58, %v6295_v25  ;;  %v10187_v43 = vmov %v10186_v58  ;;  %s10637_s19 = smov 111  }
 0x19b   : > { %10182 = vst [vmem:[#allocation273_spill] sm:$0xff] %v6490_v60  ;;  %v567_v45 = vmul.f32 %v10185_v39, %v6305_v12  ;;  %v6509_v2 = vmul.f32 %v10187_v43, %v6305_v12  ;;  %v6514_v49 = vmul.f32 %v10188_v40, %v6295_v25  ;;  %v10190_v39 = vmov %v10188_v40 }
 0x19c   : > { %v6520_v5 = vmul.f32 %v10190_v39, %v6305_v12  ;;  %v10192_v0 = vstv %s10178_s20  ;;  %v10196_v40 = vstv %s10180_s17  ;;  %v10198_v39 = vstv %s10183_s15  ;;  %s7389_s20 = sld [smem:[#allocation11 + $0x4]]  ;;  %s7391_s17 = sld [smem:[#allocation11 + $0xd]] }
 0x19d   : > { %10189 = vst [vmem:[#allocation274_spill] sm:$0xff] %v6514_v49  ;;  %v6525_v17 = vmul.f32 %v10192_v0, %v6295_v25  ;;  %v10194_v58 = vmov %v10192_v0  ;;  %v968_v59 = vmul.f32 %v10196_v40, %v6295_v25  ;;  %v10197_v23 = vmov %v10196_v40  ;;  %s7393_s15 = sld [smem:[#allocation11 + $0x16]] }
 0x19e   : > { %10191 = vst [vmem:[#allocation275_spill] sm:$0xff] %v6520_v5  ;;  %v6530_v46 = vmul.f32 %v10194_v58, %v6305_v12  ;;  %v969_v7 = vmul.f32 %v10197_v23, %v6305_v12  ;;  %v6542_v33 = vmul.f32 %v10198_v39, %v6295_v25  ;;  %v568_v0 = vadd.f32 %v566_v16, %v6358_v35 }
 0x19f   : > { %10193 = vst [vmem:[#allocation276_spill] sm:$0xff] %v6525_v17  ;;  %v569_v51 = vadd.f32 %v567_v45, %v6360_v37  ;;  %v10199_v58 = vmov %v10198_v39  ;;  %v10200_v43 = vstv %s9812_s8  ;;  %v970_v39 = vadd.f32 %v968_v59, %v6388_v62  ;;  %s10211_s8 = sld [smem:[#allocation156_spill]] }
 0x1a0   : > { %10195 = vst [vmem:[#allocation277_spill] sm:$0xff] %v6530_v46  ;;  %v6549_v31 = vmul.f32 %v10199_v58, %v6305_v12  ;;  %v6554_v60 = vmul.f32 %v10200_v43, %v6295_v25  ;;  %v10202_v35 = vmov %v10200_v43  ;;  %v10206_v58 = vstv %s9813_s16  ;;  %s6605_s16 = sld [smem:[#allocation8 + $0x7d]] }
 0x1a1   : > { %v6562_v37 = vmul.f32 %v10202_v35, %v6305_v12  ;;  %v6570_v23 = vmul.f32 %v10206_v58, %v6295_v25  ;;  %v971_v35 = vadd.f32 %v969_v7, %v6390_v19  ;;  %v10209_v16 = vmov %v10206_v58 }
 0x1a2   : > { %10201 = vst [vmem:[#allocation278_spill] sm:$0xff] %v6554_v60  ;;  %v6579_v32 = vmul.f32 %v10209_v16, %v6305_v12  ;;  %v10212_v45 = vstv %s9815_s11  ;;  %v10215_v62 = vstv %s10203_s1  ;;  %v10218_v58 = vstv %s10205_s12  ;;  %s10602_s11 = sld [smem:[#allocation148_spill]]  ;;  %s7395_s1 = sld [smem:[#allocation11 + $0x1f]] }
 0x1a3   : > { %10204 = vst [vmem:[#allocation279_spill] sm:$0xff] %v6562_v37  ;;  %10207 = vst [vmem:[#allocation280_spill] sm:$0xff] %v6570_v23  ;;  %v1370_v46 = vmul.f32 %v10212_v45, %v6295_v25  ;;  %v10213_v17 = vmov %v10212_v45  ;;  %v6593_v7 = vmul.f32 %v10215_v62, %v6295_v25  ;;  %v10216_v16 = vmov %v10215_v62  ;;  %s7397_s12 = sld [smem:[#allocation11 + $0x28]] }
 0x1a4   : > { %10210 = vst [vmem:[#allocation281_spill] sm:$0xff] %v6579_v32  ;;  %v1371_v59 = vmul.f32 %v10213_v17, %v6305_v12  ;;  %v6598_v43 = vmul.f32 %v10216_v16, %v6305_v12  ;;  %v6603_v40 = vmul.f32 %v10218_v58, %v6295_v25  ;;  %v10220_v17 = vmov %v10218_v58 }
 0x1a5   : > { %v6610_v45 = vmul.f32 %v10220_v17, %v6305_v12  ;;  %v10222_v19 = vstv %s10208_s23  ;;  %v6617_v62 = vmul.f32 %v5394_v41, %v6309_v10  ;;  %v6621_v16 = vmul.f32 %v5397_v54, %v6328_v11  ;;  %s7399_s23 = sld [smem:[#allocation11 + $0x31]] }
 0x1a6   : > { %10217 = vst [vmem:[#allocation282_spill] sm:$0xff] %v6598_v43  ;;  %10219 = vst [vmem:[#allocation283_spill] sm:$0xff] %v6603_v40  ;;  %v1772_v37 = vmul.f32 %v10222_v19, %v6295_v25  ;;  %v10225_v17 = vmov %v10222_v19  ;;  %v10226_v29 = vstv %s10211_s8  ;;  %v1372_v10 = vadd.f32 %v1370_v46, %v6450_v15  ;;  %s7401_s8 = sld [smem:[#allocation11 + $0x3a]] }
 0x1a7   : > { %10221 = vst [vmem:[#allocation284_spill] sm:$0xff] %v6610_v45  ;;  %10223 = vst [vmem:[#allocation285_spill] sm:$0xff] %v6617_v62  ;;  %v1773_v61 = vmul.f32 %v10225_v17, %v6305_v12  ;;  %v6631_v19 = vmul.f32 %v10226_v29, %v6295_v25  ;;  %v1373_v41 = vadd.f32 %v1371_v59, %v6452_v14  ;;  %v10228_v11 = vstv %s10214_s14  ;;  %s7403_s14 = sld [smem:[#allocation11 + $0x43]] }
 0x1a8   : > { %10224 = vst [vmem:[#allocation286_spill] sm:$0xff] %v6621_v16  ;;  %v6638_v54 = vmul.f32 %v10228_v11, %v6295_v25  ;;  %v10230_v58 = vmov %v10228_v11  ;;  %v10232_v14 = vmov %v10226_v29  ;;  %v1774_v11 = vadd.f32 %v1772_v37, %v6481_v6  ;;  %v497_v25 = vpop.permute.xlu1 %496  ;;  %v495_v29 = vpop.permute.xlu0 %494 }
 0x1a9   : > { %10227 = vst [vmem:[#allocation287_spill] sm:$0xff] %v6631_v19  ;;  %v6643_v60 = vmul.f32 %v10230_v58, %v6305_v12  ;;  %v6651_v46 = vmul.f32 %v10232_v14, %v6305_v12  ;;  %v10234_v58 = vstv %s9822_s30  ;;  %v1775_v15 = vadd.f32 %v1773_v61, %v6484_v63  ;;  %s10520_s30 = sld [smem:[#allocation147_spill]] }
 0x1aa   : > { %10229 = vst [vmem:[#allocation288_spill] sm:$0xff] %v6638_v54  ;;  %v572_v32 = vmul.f32 %v10234_v58, %v6617_v62  ;;  %v10235_v17 = vmov %v10234_v58  ;;  %v10236_v12 = vstv %s5306_s10  ;;  %v10238_v58 = vstv %s5308_s7  ;;  %s7125_s10 = sld [smem:[#allocation8 + $0x8f]]  ;;  %s10533_s7 = sld [smem:[#allocation164_spill]] }
 0x1ab   : > { %10231 = vst [vmem:[#allocation289_spill] sm:$0xff] %v6643_v60  ;;  %10233 = vst [vmem:[#allocation290_spill] sm:$0xff] %v6651_v46  ;;  %v573_v23 = vmul.f32 %v10235_v17, %v6621_v16  ;;  %v6666_v60 = vmul.f32 %v10236_v12, %v6617_v62  ;;  %v10237_v6 = vmov %v10236_v12  ;;  %v6676_v17 = vmul.f32 %v10238_v58, %v6617_v62 }
 0x1ac   : > { %v6671_v37 = vmul.f32 %v10237_v6, %v6621_v16  ;;  %v10240_v59 = vmov %v10238_v58  ;;  %v10242_v61 = vstv %s9825_s4  ;;  %v499_v40 = vsel %vm498_vm7, %v495_v29, %v497_v25  ;;  %s10632_s4 = smov 15  }
 0x1ad   : > { %10239 = vst [vmem:[#allocation291_spill] sm:$0xff] %v6676_v17  ;;  %v6681_v54 = vmul.f32 %v10240_v59, %v6621_v16  ;;  %v974_v63 = vmul.f32 %v10242_v61, %v6617_v62  ;;  %v10243_v12 = vmov %v10242_v61  ;;  %v500_v58 = vsel %vm498_vm7, %v497_v25, %v495_v29 }
 0x1ae   : > { %v975_v14 = vmul.f32 %v10243_v12, %v6621_v16  ;;  %v574_v19 = vadd.f32 %v572_v32, %v568_v0  ;;  %v575_v59 = vadd.f32 %v573_v23, %v569_v51  ;;  %v6698_v5 = vmul.f32 %v10244_v21, %v6617_v62 }
 0x1af   : > { %10241 = vst [vmem:[#allocation292_spill] sm:$0xff] %v6681_v54  ;;  %v10245_v61 = vmov %v10244_v21  ;;  %v10246_v46 = vstv %s5328_s26  ;;  %v976_v0 = vadd.f32 %v974_v63, %v970_v39  ;;  %v10250_v29 = vstv %s5336_s13  ;;  %s10493_s13 = sld [smem:[#allocation162_spill]]  ;;  %s10579_s26 = sld [smem:[#allocation163_spill]] }
 0x1b0   : > { %v6703_v12 = vmul.f32 %v10245_v61, %v6621_v16  ;;  %v6710_v8 = vmul.f32 %v10246_v46, %v6617_v62  ;;  %v10248_v51 = vmov %v10246_v46  ;;  %v977_v23 = vadd.f32 %v975_v14, %v971_v35 }
 0x1b1   : > { %v6715_v25 = vmul.f32 %v10248_v51, %v6621_v16  ;;  %v1376_v46 = vmul.f32 %v10250_v29, %v6617_v62  ;;  %v10251_v61 = vmov %v10250_v29  ;;  %v6726_v51 = vmul.f32 %v5442_v9, %v499_v40 }
 0x1b2   : > { %10247 = vst [vmem:[#allocation293_spill] sm:$0xff] %v6710_v8  ;;  %v1377_v45 = vmul.f32 %v10251_v61, %v6621_v16  ;;  %v6729_v6 = vmul.f32 %v5445_v44, %v500_v58  ;;  %v10252_v39 = vstv %s5342_s9  ;;  %v10254_v58 = vstv %s5373_s27  ;;  %s10580_s27 = sld [smem:[#allocation159_spill]]  ;;  %s10591_s9 = sld [smem:[#allocation34_spill]] }
 0x1b3   : > { %10249 = vst [vmem:[#allocation294_spill] sm:$0xff] %v6715_v25  ;;  %v6736_v35 = vmul.f32 %v10252_v39, %v6617_v62  ;;  %v10253_v14 = vmov %v10252_v39  ;;  %v578_v61 = vmul.f32 %v10254_v58, %v6726_v51  ;;  %v10255_v21 = vmov %v10254_v58 }
 0x1b4   : > { %v6741_v63 = vmul.f32 %v10253_v14, %v6621_v16  ;;  %v579_v32 = vmul.f32 %v10255_v21, %v6729_v6  ;;  %v10256_v39 = vstv %s5344_s29  ;;  %v10258_v40 = vstv %s5353_s5  ;;  %s10266_s5 = sld [smem:[#allocation149_spill]]  ;;  %s10630_s29 = smov 17  }
 0x1b5   : > { %v6754_v44 = vmul.f32 %v10256_v39, %v6617_v62  ;;  %v10257_v14 = vmov %v10256_v39  ;;  %v1778_v8 = vmul.f32 %v10258_v40, %v6617_v62  ;;  %v10259_v29 = vmov %v10258_v40 }
 0x1b6   : > { %v6759_v9 = vmul.f32 %v10257_v14, %v6621_v16  ;;  %v1779_v25 = vmul.f32 %v10259_v29, %v6621_v16  ;;  %v1378_v58 = vadd.f32 %v1376_v46, %v1372_v10  ;;  %v1379_v54 = vadd.f32 %v1377_v45, %v1373_v41 }
 0x1b7   : > { %v580_v17 = vadd.f32 %v578_v61, %v574_v19  ;;  %v581_v49 = vadd.f32 %v579_v32, %v575_v59  ;;  %v10260_v39 = vstv %s5363_s22  ;;  %v10262_v40 = vrot.slane %v5652_v24, 1  ;;  %s10634_s22 = smov 127  }
 0x1b8   : > { %v6772_v56 = vmul.f32 %v10260_v39, %v6617_v62  ;;  %v10261_v14 = vmov %v10260_v39  ;;  %v10263_v41 = vrot.slane %v5657_v55, 1  ;;  %v10264_v19 = vstv %s5389_s21  ;;  %s10480_s21 = sld [smem:[#allocation158_spill]] }
 0x1b9   : > { %v6777_v43 = vmul.f32 %v10261_v14, %v6621_v16  ;;  %v592_v10 = vadd.f32 %v10262_v40, %v580_v17  ;;  %v980_v59 = vmul.f32 %v10264_v19, %v6726_v51  ;;  %v10265_v32 = vmov %v10264_v19  ;;  %v10268_v17 = vld [vmem:[#allocation173_spill] sm:$0xff]  ;;  %v10288_v16 = vld [vmem:[#allocation81_spill] sm:$0xff] }
 0x1ba   : > { %v593_v45 = vadd.f32 %v10263_v41, %v581_v49  ;;  %v981_v46 = vmul.f32 %v10265_v32, %v6729_v6  ;;  %v6791_v39 = vadd.f32 %v1778_v8, %v1774_v11  ;;  %v6793_v24 = vadd.f32 %v1779_v25, %v1775_v15 }
 0x1bb   : > { %v10267_v55 = vrot.slane %v5454_v38, 1  ;;  %v10269_v14 = vrot.slane %v10268_v17, 1  ;;  %v982_v41 = vadd.f32 %v980_v59, %v976_v0  ;;  %v10270_v61 = vstv %s5379_s18  ;;  %v10274_v17 = vld [vmem:[#allocation200_spill] sm:$0xff]  ;;  %s7123_s18 = sld [smem:[#allocation8 + $0x86]] }
 0x1bc   : > { %v983_v19 = vadd.f32 %v981_v46, %v977_v23  ;;  %v684_v8 = vmul.f32 %v10270_v61, %v6726_v51  ;;  %v10271_v11 = vmov %v10270_v61  ;;  %v10272_v25 = vrot.slane %v5887_v50, 1  ;;  %v10276_v23 = vld [vmem:[#allocation201_spill] sm:$0xff] }
 0x1bd   : > { %v604_v49 = vadd.f32 %v10267_v55, %v592_v10  ;;  %v605_v40 = vadd.f32 %v10269_v14, %v593_v45  ;;  %v685_v15 = vmul.f32 %v10271_v11, %v6729_v6  ;;  %v10273_v10 = vrot.slane %v5904_v47, 1 }
 0x1be   : > { %v10275_v45 = vrot.slane %v10274_v17, 1  ;;  %v10277_v59 = vrot.slane %v10276_v23, 1  ;;  %v10278_v14 = vstv %s10266_s5  ;;  %v10280_v50 = vstv %s5411_s6  ;;  %v10286_v23 = vld [vmem:[#allocation179_spill] sm:$0xff]  ;;  %s10467_s6 = sld [smem:[#allocation157_spill]]  ;;  %s7407_s5 = sld [smem:[#allocation11 + $0x55]] }
 0x1bf   : > { %v616_v38 = vadd.f32 %v10272_v25, %v604_v49  ;;  %v617_v55 = vadd.f32 %v10273_v10, %v605_v40  ;;  %v6818_v29 = vmul.f32 %v10278_v14, %v6726_v51  ;;  %v10279_v61 = vmov %v10278_v14  ;;  %v10284_v10 = vld [vmem:[#allocation178_spill] sm:$0xff] }
 0x1c0   : > { %v994_v0 = vadd.f32 %v10275_v45, %v982_v41  ;;  %v995_v46 = vadd.f32 %v10277_v59, %v983_v19  ;;  %v6823_v32 = vmul.f32 %v10279_v61, %v6729_v6  ;;  %v1382_v49 = vmul.f32 %v10280_v50, %v6726_v51 }
 0x1c1   : > { %v10281_v47 = vmov %v10280_v50  ;;  %v10282_v11 = vrot.slane %v6085_v30, 1  ;;  %v10283_v25 = vrot.slane %v6090_v53, 1  ;;  %v10285_v17 = vrot.slane %v10284_v10, 1 }
 0x1c2   : > { %v1383_v40 = vmul.f32 %v10281_v47, %v6729_v6  ;;  %v10287_v59 = vrot.slane %v10286_v23, 1  ;;  %v688_v61 = vrot.slane %v684_v8, 1  ;;  %v689_v28 = vrot.slane %v685_v15, 1  ;;  %v10289_v47 = vld [vmem:[#allocation61_spill] sm:$0xff] }
 0x1c3   : > { %v628_v41 = vadd.f32 %v10282_v11, %v616_v38  ;;  %v629_v19 = vadd.f32 %v10283_v25, %v617_v55  ;;  %v1006_v45 = vadd.f32 %v10285_v17, %v994_v0  ;;  %v1384_v50 = vadd.f32 %v1382_v49, %v1378_v58  ;;  %v10291_v38 = vld [vmem:[#allocation69_spill] sm:$0xff] }
 0x1c4   : > { %v1007_v14 = vadd.f32 %v10287_v59, %v995_v46  ;;  %v1385_v21 = vadd.f32 %v1383_v40, %v1379_v54  ;;  %v10290_v62 = vrot.slane %v10288_v16, %v10289_v47  ;;  %v10292_v53 = vrot.slane %v10288_v16, %v10291_v38  ;;  %v10295_v54 = vld [vmem:[#allocation206_spill] sm:$0xff] }
 0x1c5   : > { %v10293_v11 = vrot.slane %v5935_v13, 1  ;;  %v10294_v25 = vrot.slane %v5944_v42, 1  ;;  %v800_v8 = vrot.slane %v6818_v29, 2  ;;  %v801_v58 = vrot.slane %v6823_v32, 2 }
 0x1c6   : > { %v644_v30 = vadd.f32 %v10290_v62, %v628_v41  ;;  %v645_v55 = vadd.f32 %v10292_v53, %v629_v19  ;;  %v10296_v15 = vrot.slane %v10295_v54, 1  ;;  %v10297_v62 = vld [vmem:[#allocation207_spill] sm:$0xff]  ;;  %v10299_v16 = vrot.slane %v6314_v26, 1  ;;  %v10307_v26 = vld [vmem:[#allocation185_spill] sm:$0xff] }
 0x1c7   : > { %v1018_v0 = vadd.f32 %v10293_v11, %v1006_v45  ;;  %v1019_v46 = vadd.f32 %v10294_v25, %v1007_v14  ;;  %v10298_v40 = vrot.slane %v10297_v62, 1  ;;  %v10300_v13 = vrot.slane %v6319_v57, 1  ;;  %v10305_v11 = vld [vmem:[#allocation184_spill] sm:$0xff] }
 0x1c8   : > { %v1396_v49 = vadd.f32 %v10296_v15, %v1384_v50  ;;  %v656_v19 = vadd.f32 %v10299_v16, %v644_v30  ;;  %v10301_v42 = vrot.slane %v6121_v18, 1  ;;  %v10302_v45 = vrot.slane %v6128_v3, 1 }
 0x1c9   : > { %v1397_v41 = vadd.f32 %v10298_v40, %v1385_v21  ;;  %v657_v10 = vadd.f32 %v10300_v13, %v645_v55  ;;  %v10303_v59 = vstv %s5399_s3  ;;  %v10306_v21 = vrot.slane %v10305_v11, 1  ;;  %s10395_s3 = sld [smem:[#allocation170_spill]] }
 0x1ca   : > { %v1030_v17 = vadd.f32 %v10301_v42, %v1018_v0  ;;  %v1031_v23 = vadd.f32 %v10302_v45, %v1019_v46  ;;  %v1086_v14 = vmul.f32 %v10303_v59, %v6726_v51  ;;  %v10304_v50 = vmov %v10303_v59  ;;  %v10311_v46 = vld [vmem:[#allocation95_spill] sm:$0xff] }
 0x1cb   : > { %v1087_v53 = vmul.f32 %v10304_v50, %v6729_v6  ;;  %v1408_v25 = vadd.f32 %v10306_v21, %v1396_v49  ;;  %v10308_v30 = vrot.slane %v10307_v26, 1  ;;  %v10309_v55 = vrot.slane %v6504_v4, 1 }
 0x1cc   : > { %v10310_v3 = vrot.slane %v6509_v2, 1  ;;  %v10312_v54 = vrot.slane %v10311_v46, %v10289_v47  ;;  %v10313_v62 = vrot.slane %v10311_v46, %v10291_v38  ;;  %v10314_v49 = vstv %s5401_s25  ;;  %s10558_s25 = sld [smem:[#allocation165_spill]] }
 0x1cd   : > { %v1409_v57 = vadd.f32 %v10308_v30, %v1397_v41  ;;  %v668_v18 = vadd.f32 %v10309_v55, %v656_v19  ;;  %v6886_v16 = vmul.f32 %v10314_v49, %v6726_v51  ;;  %v10315_v41 = vmov %v10314_v49  ;;  %v10331_v49 = vld [vmem:[#allocation196_spill] sm:$0xff] }
 0x1ce   : > { %v669_v0 = vadd.f32 %v10310_v3, %v657_v10  ;;  %v1046_v15 = vadd.f32 %v10312_v54, %v1030_v17  ;;  %v1047_v40 = vadd.f32 %v10313_v62, %v1031_v23  ;;  %v6891_v4 = vmul.f32 %v10315_v41, %v6729_v6  ;;  %v10328_v54 = vld [vmem:[#allocation108_spill] sm:$0xff] }
 0x1cf   : > { %v10316_v19 = vrot.slane %v5991_v34, 1  ;;  %v10317_v13 = vrot.slane %v5996_v27, 1  ;;  %v10318_v42 = vrot.slane %v6666_v60, 1  ;;  %v10319_v45 = vrot.slane %v6671_v37, 1 }
 0x1d0   : > { %v10320_v59 = vrot.slane %v6355_v52, 1  ;;  %v10321_v11 = vrot.slane %v6365_v1, 1  ;;  %v10322_v26 = vrot.slane %v6173_v36, 1  ;;  %v10323_v34 = vrot.slane %v6179_v22, 1 }
 0x1d1   : > { %v1420_v2 = vadd.f32 %v10316_v19, %v1408_v25  ;;  %v1421_v10 = vadd.f32 %v10317_v13, %v1409_v57  ;;  %v680_v17 = vadd.f32 %v10318_v42, %v668_v18  ;;  %v681_v23 = vadd.f32 %v10319_v45, %v669_v0 }
 0x1d2   : > { %v1058_v50 = vadd.f32 %v10320_v59, %v1046_v15  ;;  %v1059_v21 = vadd.f32 %v10321_v11, %v1047_v40  ;;  %v10324_v27 = vstv %s5417_s24  ;;  %v10326_v52 = vrot.slane %v6542_v33, 1  ;;  %v10333_v33 = vld [vmem:[#allocation197_spill] sm:$0xff]  ;;  %v10339_v59 = vld [vmem:[#allocation174_spill] sm:$0xff]  ;;  %s10633_s24 = smov 1  }
 0x1d3   : > { %v1432_v30 = vadd.f32 %v10322_v26, %v1420_v2  ;;  %v1433_v25 = vadd.f32 %v10323_v34, %v1421_v10  ;;  %v1488_v57 = vmul.f32 %v10324_v27, %v6726_v51  ;;  %v10325_v60 = vmov %v10324_v27  ;;  %v10344_v27 = vld [vmem:[#allocation282_spill] sm:$0xff] }
 0x1d4   : > { %v1489_v55 = vmul.f32 %v10325_v60, %v6729_v6  ;;  %v692_v37 = vadd.f32 %v688_v61, %v680_v17  ;;  %v693_v18 = vadd.f32 %v689_v28, %v681_v23  ;;  %v1070_v3 = vadd.f32 %v10326_v52, %v1058_v50 }
 0x1d5   : > { %v10327_v1 = vrot.slane %v6549_v31, 1  ;;  %v1090_v46 = vrot.slane %v1086_v14, 1  ;;  %v1091_v36 = vrot.slane %v1087_v53, 1  ;;  %v10329_v22 = vrot.slane %v10328_v54, %v10289_v47 }
 0x1d6   : > { %v10330_v62 = vrot.slane %v10328_v54, %v10291_v38  ;;  %v10332_v61 = vrot.slane %v10331_v49, 2  ;;  %v10334_v41 = vrot.slane %v10333_v33, 2  ;;  %v10335_v31 = vrot.slane %v6698_v5, 1 }
 0x1d7   : > { %v1071_v0 = vadd.f32 %v10327_v1, %v1059_v21  ;;  %v1448_v15 = vadd.f32 %v10329_v22, %v1432_v30  ;;  %v10336_v53 = vrot.slane %v6703_v12, 1  ;;  %v10337_v13 = vrot.slane %v6410_v20, 1  ;;  %v10341_v21 = vld [vmem:[#allocation175_spill] sm:$0xff] }
 0x1d8   : > { %v1449_v40 = vadd.f32 %v10330_v62, %v1433_v25  ;;  %v704_v28 = vadd.f32 %v10332_v61, %v692_v37  ;;  %v705_v19 = vadd.f32 %v10334_v41, %v693_v18  ;;  %v1082_v14 = vadd.f32 %v10335_v31, %v1070_v3  ;;  %v10348_v18 = vld [vmem:[#allocation218_spill] sm:$0xff]  ;;  %v10350_v1 = vld [vmem:[#allocation219_spill] sm:$0xff] }
 0x1d9   : > { %v1083_v2 = vadd.f32 %v10336_v53, %v1071_v0  ;;  %v1460_v10 = vadd.f32 %v10337_v13, %v1448_v15  ;;  %v10338_v42 = vrot.slane %v6415_v48, 1  ;;  %v1492_v45 = vrot.slane %v1488_v57, 1  ;;  %v10360_v53 = vld [vmem:[#allocation237_spill] sm:$0xff] }
 0x1da   : > { %v1493_v23 = vrot.slane %v1489_v55, 1  ;;  %v10340_v50 = vrot.slane %v10339_v59, 2  ;;  %v10342_v26 = vrot.slane %v10341_v21, 2  ;;  %v1094_v34 = vadd.f32 %v1090_v46, %v1082_v14  ;;  %v10352_v46 = vld [vmem:[#allocation202_spill] sm:$0xff]  ;;  %v10364_v59 = vld [vmem:[#allocation181_spill] sm:$0xff] }
 0x1db   : > { %v1461_v17 = vadd.f32 %v10338_v42, %v1449_v40  ;;  %v1095_v5 = vadd.f32 %v1091_v36, %v1083_v2  ;;  %v10343_v25 = vrot.slane %v6593_v7, 1  ;;  %v10345_v60 = vrot.slane %v10344_v27, 1  ;;  %v10354_v7 = vld [vmem:[#allocation203_spill] sm:$0xff] }
 0x1dc   : > { %v716_v11 = vadd.f32 %v10340_v50, %v704_v28  ;;  %v717_v30 = vadd.f32 %v10342_v26, %v705_v19  ;;  %v10346_v37 = vstv %s6250_s0  ;;  %v10349_v52 = vrot.slane %v10348_v18, 2  ;;  %v10358_v19 = vld [vmem:[#allocation236_spill] sm:$0xff]  ;;  %v10377_v18 = vld [vmem:[#allocation223_spill] sm:$0xff]  ;;  %s10635_s0 = smov 113  }
 0x1dd   : > { %v1472_v12 = vadd.f32 %v10343_v25, %v1460_v10  ;;  %v1473_v20 = vadd.f32 %v10345_v60, %v1461_v17  ;;  %v1784_v48 = vmul.f32 %v10346_v37, %v6726_v51  ;;  %v10347_v57 = vmov %v10346_v37  ;;  %v10362_v10 = vld [vmem:[#allocation180_spill] sm:$0xff]  ;;  %v10371_v25 = vld [vmem:[#allocation74_spill] sm:$0xff] }
 0x1de   : > { %v1785_v55 = vmul.f32 %v10347_v57, %v6729_v6  ;;  %v728_v3 = vadd.f32 %v10349_v52, %v716_v11  ;;  %v10351_v0 = vrot.slane %v10350_v1, 2  ;;  %v10353_v36 = vrot.slane %v10352_v46, 2  ;;  %v10373_v60 = vld [vmem:[#allocation77_spill] sm:$0xff] }
 0x1df   : > { %v10355_v15 = vrot.slane %v10354_v7, 2  ;;  %v10356_v40 = vrot.slane %v6736_v35, 1  ;;  %v10357_v61 = vrot.slane %v6741_v63, 1  ;;  %v1786_v33 = vadd.f32 %v1784_v48, %v6791_v39  ;;  %v10366_v63 = vld [vmem:[#allocation212_spill] sm:$0xff]  ;;  %v10368_v39 = vld [vmem:[#allocation213_spill] sm:$0xff]  ;;  %v10375_v48 = vld [vmem:[#allocation222_spill] sm:$0xff] }
 0x1e0   : > { %v729_v54 = vadd.f32 %v10351_v0, %v717_v30  ;;  %v1106_v22 = vadd.f32 %v10353_v36, %v1094_v34  ;;  %v1787_v41 = vadd.f32 %v1785_v55, %v6793_v24  ;;  %v10359_v31 = vrot.slane %v10358_v19, 2  ;;  %v10379_v52 = vld [vmem:[#allocation208_spill] sm:$0xff]  ;;  %v10381_v0 = vld [vmem:[#allocation209_spill] sm:$0xff]  ;;  %v10383_v36 = vld [vmem:[#allocation190_spill] sm:$0xff] }
 0x1e1   : > { %v1107_v62 = vadd.f32 %v10355_v15, %v1095_v5  ;;  %v1484_v49 = vadd.f32 %v10356_v40, %v1472_v12  ;;  %v1485_v28 = vadd.f32 %v10357_v61, %v1473_v20  ;;  %v10361_v2 = vrot.slane %v10360_v53, 2  ;;  %v10370_v5 = vld [vmem:[#allocation86_spill] sm:$0xff]  ;;  %v10385_v15 = vld [vmem:[#allocation191_spill] sm:$0xff] }
 0x1e2   : > { %v740_v14 = vadd.f32 %v10359_v31, %v728_v3  ;;  %v10363_v42 = vrot.slane %v10362_v10, 2  ;;  %v10365_v50 = vrot.slane %v10364_v59, 2  ;;  %v10367_v26 = vrot.slane %v10366_v63, 1  ;;  %v10391_v31 = vld [vmem:[#allocation240_spill] sm:$0xff] }
 0x1e3   : > { %v741_v13 = vadd.f32 %v10361_v2, %v729_v54  ;;  %v1496_v11 = vadd.f32 %v1492_v45, %v1484_v49  ;;  %v1497_v21 = vadd.f32 %v1493_v23, %v1485_v28  ;;  %v10369_v34 = vrot.slane %v10368_v39, 1  ;;  %v10387_v49 = vld [vmem:[#allocation256_spill] sm:$0xff]  ;;  %v10393_v2 = vld [vmem:[#allocation241_spill] sm:$0xff] }
 0x1e4   : > { %v1118_v17 = vadd.f32 %v10363_v42, %v1106_v22  ;;  %v1119_v35 = vadd.f32 %v10365_v50, %v1107_v62  ;;  %v1798_v30 = vadd.f32 %v10367_v26, %v1786_v33  ;;  %v10372_v12 = vrot.slane %v10370_v5, %v10371_v25  ;;  %v10389_v33 = vld [vmem:[#allocation257_spill] sm:$0xff]  ;;  %v10396_v42 = vld [vmem:[#allocation186_spill] sm:$0xff]  ;;  %v10398_v50 = vld [vmem:[#allocation187_spill] sm:$0xff] }
 0x1e5   : > { %v1799_v24 = vadd.f32 %v10369_v34, %v1787_v41  ;;  %v10374_v20 = vrot.slane %v10370_v5, %v10373_v60  ;;  %v10376_v57 = vrot.slane %v10375_v48, 2  ;;  %v10378_v45 = vrot.slane %v10377_v18, 2  ;;  %v10408_v48 = vld [vmem:[#allocation100_spill] sm:$0xff] }
 0x1e6   : > { %v756_v27 = vadd.f32 %v10372_v12, %v740_v14  ;;  %v10380_v3 = vrot.slane %v10379_v52, 2  ;;  %v10382_v54 = vrot.slane %v10381_v0, 2  ;;  %v10384_v22 = vrot.slane %v10383_v36, 1 }
 0x1e7   : > { %v757_v37 = vadd.f32 %v10374_v20, %v741_v13  ;;  %v1130_v55 = vadd.f32 %v10376_v57, %v1118_v17  ;;  %v1131_v23 = vadd.f32 %v10378_v45, %v1119_v35  ;;  %v10386_v62 = vrot.slane %v10385_v15, 1 }
 0x1e8   : > { %v1508_v1 = vadd.f32 %v10380_v3, %v1496_v11  ;;  %v1509_v46 = vadd.f32 %v10382_v54, %v1497_v21  ;;  %v1810_v7 = vadd.f32 %v10384_v22, %v1798_v30  ;;  %v10388_v61 = vrot.slane %v10387_v49, 2  ;;  %v10400_v21 = vld [vmem:[#allocation230_spill] sm:$0xff]  ;;  %v10402_v30 = vld [vmem:[#allocation231_spill] sm:$0xff] }
 0x1e9   : > { %v1811_v40 = vadd.f32 %v10386_v62, %v1799_v24  ;;  %v10390_v41 = vrot.slane %v10389_v33, 2  ;;  %v10392_v14 = vrot.slane %v10391_v31, 2  ;;  %v10394_v13 = vrot.slane %v10393_v2, 2  ;;  %v10404_v24 = vld [vmem:[#allocation274_spill] sm:$0xff]  ;;  %v10425_v2 = vld [vmem:[#allocation244_spill] sm:$0xff] }
 0x1ea   : > { %v768_v28 = vadd.f32 %v10388_v61, %v756_v27  ;;  %v10397_v17 = vrot.slane %v10396_v42, 2  ;;  %v10399_v35 = vrot.slane %v10398_v50, 2  ;;  %v10401_v63 = vrot.slane %v10400_v21, 1  ;;  %v10406_v27 = vld [vmem:[#allocation275_spill] sm:$0xff]  ;;  %v10427_v42 = vld [vmem:[#allocation245_spill] sm:$0xff]  ;;  %v10429_v50 = vld [vmem:[#allocation118_spill] sm:$0xff] }
 0x1eb   : > { %v769_v19 = vadd.f32 %v10390_v41, %v757_v37  ;;  %v1142_v53 = vadd.f32 %v10392_v14, %v1130_v55  ;;  %v1143_v10 = vadd.f32 %v10394_v13, %v1131_v23  ;;  %v10403_v39 = vrot.slane %v10402_v30, 1  ;;  %v10411_v23 = vld [vmem:[#allocation226_spill] sm:$0xff] }
 0x1ec   : > { %v1520_v59 = vadd.f32 %v10397_v17, %v1508_v1  ;;  %v1521_v11 = vadd.f32 %v10399_v35, %v1509_v46  ;;  %v1822_v26 = vadd.f32 %v10401_v63, %v1810_v7  ;;  %v10405_v5 = vrot.slane %v10404_v24, 2  ;;  %v10413_v1 = vld [vmem:[#allocation227_spill] sm:$0xff]  ;;  %v10415_v46 = vld [vmem:[#allocation248_spill] sm:$0xff]  ;;  %v10417_v7 = vld [vmem:[#allocation249_spill] sm:$0xff] }
 0x1ed   : > { %v1823_v34 = vadd.f32 %v10403_v39, %v1811_v40  ;;  %v10407_v20 = vrot.slane %v10406_v27, 2  ;;  %v10409_v57 = vrot.slane %v10408_v48, %v10371_v25  ;;  %v10410_v18 = vrot.slane %v10408_v48, %v10373_v60  ;;  %v10419_v40 = vld [vmem:[#allocation260_spill] sm:$0xff]  ;;  %v10436_v27 = vld [vmem:[#allocation278_spill] sm:$0xff] }
 0x1ee   : > { %v780_v12 = vadd.f32 %v10405_v5, %v768_v28  ;;  %v10412_v52 = vrot.slane %v10411_v23, 2  ;;  %v10414_v0 = vrot.slane %v10413_v1, 2  ;;  %v10416_v36 = vrot.slane %v10415_v46, 1  ;;  %v10421_v28 = vld [vmem:[#allocation261_spill] sm:$0xff] }
 0x1ef   : > { %v781_v37 = vadd.f32 %v10407_v20, %v769_v19  ;;  %v1158_v55 = vadd.f32 %v10409_v57, %v1142_v53  ;;  %v1159_v45 = vadd.f32 %v10410_v18, %v1143_v10  ;;  %v10418_v15 = vrot.slane %v10417_v7, 1  ;;  %v10438_v57 = vld [vmem:[#allocation279_spill] sm:$0xff]  ;;  %v10447_v46 = vld [vmem:[#allocation293_spill] sm:$0xff]  ;;  %v10449_v7 = vld [vmem:[#allocation294_spill] sm:$0xff] }
 0x1f0   : > { %v1532_v3 = vadd.f32 %v10412_v52, %v1520_v59  ;;  %v1533_v54 = vadd.f32 %v10414_v0, %v1521_v11  ;;  %v1834_v22 = vadd.f32 %v10416_v36, %v1822_v26  ;;  %v10420_v49 = vrot.slane %v10419_v40, 2  ;;  %v10432_v26 = vld [vmem:[#allocation291_spill] sm:$0xff]  ;;  %v10445_v0 = vld [vmem:[#allocation269_spill] sm:$0xff] }
 0x1f1   : > { %v1835_v62 = vadd.f32 %v10418_v15, %v1823_v34  ;;  %v10422_v33 = vrot.slane %v10421_v28, 2  ;;  %v10423_v19 = vstv %s10395_s3  ;;  %v10426_v13 = vrot.slane %v10425_v2, 2  ;;  %v10434_v34 = vld [vmem:[#allocation292_spill] sm:$0xff]  ;;  %v10455_v2 = vld [vmem:[#allocation287_spill] sm:$0xff]  ;;  %s7409_s3 = sld [smem:[#allocation11 + $0x5e]] }
 0x1f2   : > { %v1170_v61 = vadd.f32 %v10420_v49, %v1158_v55  ;;  %v1600_v31 = vmul.f32 %v10423_v19, %v6726_v51  ;;  %v10424_v14 = vmov %v10423_v19  ;;  %v10428_v17 = vrot.slane %v10427_v42, 2  ;;  %v10457_v42 = vld [vmem:[#allocation290_spill] sm:$0xff] }
 0x1f3   : > { %v1171_v41 = vadd.f32 %v10422_v33, %v1159_v45  ;;  %v1601_v53 = vmul.f32 %v10424_v14, %v6729_v6  ;;  %v1544_v10 = vadd.f32 %v10426_v13, %v1532_v3  ;;  %v10430_v35 = vrot.slane %v10429_v50, %v10289_v47  ;;  %v10440_v45 = vld [vmem:[#allocation110_spill] sm:$0xff] }
 0x1f4   : > { %v1545_v59 = vadd.f32 %v10428_v17, %v1533_v54  ;;  %v10431_v21 = vrot.slane %v10429_v50, %v10291_v38  ;;  %v10433_v30 = vrot.slane %v10432_v26, 2  ;;  %v10435_v24 = vrot.slane %v10434_v34, 2  ;;  %v10443_v3 = vld [vmem:[#allocation268_spill] sm:$0xff] }
 0x1f5   : > { %v1850_v11 = vadd.f32 %v10430_v35, %v1834_v22  ;;  %v10437_v20 = vrot.slane %v10436_v27, 2  ;;  %v10439_v55 = vrot.slane %v10438_v57, 2  ;;  %v10441_v47 = vrot.slane %v10440_v45, %v10371_v25  ;;  %v10461_v34 = vld [vmem:[#allocation284_spill] sm:$0xff] }
 0x1f6   : > { %v1851_v63 = vadd.f32 %v10431_v21, %v1835_v62  ;;  %v792_v39 = vadd.f32 %v10433_v30, %v780_v12  ;;  %v793_v5 = vadd.f32 %v10435_v24, %v781_v37  ;;  %v10442_v38 = vrot.slane %v10440_v45, %v10373_v60 }
 0x1f7   : > { %v1182_v48 = vadd.f32 %v10437_v20, %v1170_v61  ;;  %v1183_v18 = vadd.f32 %v10439_v55, %v1171_v41  ;;  %v1560_v23 = vadd.f32 %v10441_v47, %v1544_v10  ;;  %v10444_v1 = vrot.slane %v10443_v3, 1  ;;  %v10451_v61 = vld [vmem:[#allocation264_spill] sm:$0xff]  ;;  %v10453_v41 = vld [vmem:[#allocation265_spill] sm:$0xff] }
 0x1f8   : > { %v1561_v52 = vadd.f32 %v10442_v38, %v1545_v59  ;;  %v10446_v54 = vrot.slane %v10445_v0, 1  ;;  %v10448_v36 = vrot.slane %v10447_v46, 2  ;;  %v10450_v15 = vrot.slane %v10449_v7, 2  ;;  %v10463_v20 = vld [vmem:[#allocation204_spill] sm:$0xff]  ;;  %v10465_v55 = vld [vmem:[#allocation205_spill] sm:$0xff]  ;;  %v10476_v0 = vld [vmem:[#allocation182_spill] sm:$0xff] }
 0x1f9   : > { %v1862_v12 = vadd.f32 %v10444_v1, %v1850_v11  ;;  %v1202_v40 = vrot.slane %v6886_v16, 2  ;;  %v1203_v49 = vrot.slane %v6891_v4, 2  ;;  %v10452_v28 = vrot.slane %v10451_v61, 2  ;;  %v10474_v3 = vld [vmem:[#allocation288_spill] sm:$0xff] }
 0x1fa   : > { %v1863_v37 = vadd.f32 %v10446_v54, %v1851_v63  ;;  %v1194_v22 = vadd.f32 %v10448_v36, %v1182_v48  ;;  %v1195_v62 = vadd.f32 %v10450_v15, %v1183_v18  ;;  %v10454_v19 = vrot.slane %v10453_v41, 2  ;;  %v10459_v63 = vld [vmem:[#allocation283_spill] sm:$0xff]  ;;  %v10481_v15 = vld [vmem:[#allocation254_spill] sm:$0xff] }
 0x1fb   : > { %v1572_v33 = vadd.f32 %v10452_v28, %v1560_v23  ;;  %v10456_v13 = vrot.slane %v10455_v2, 1  ;;  %v10458_v17 = vrot.slane %v10457_v42, 1  ;;  %v1604_v11 = vrot.slane %v1600_v31, 2 }
 0x1fc   : > { %v1573_v14 = vadd.f32 %v10454_v19, %v1561_v52  ;;  %v1206_v50 = vadd.f32 %v1202_v40, %v1194_v22  ;;  %v1207_v35 = vadd.f32 %v1203_v49, %v1195_v62  ;;  %v1605_v16 = vrot.slane %v1601_v53, 2  ;;  %v10483_v49 = vld [vmem:[#allocation255_spill] sm:$0xff] }
 0x1fd   : > { %v1874_v10 = vadd.f32 %v10456_v13, %v1862_v12  ;;  %v1875_v59 = vadd.f32 %v10458_v17, %v1863_v37  ;;  %v804_v4 = vadd.f32 %v800_v8, %v792_v39  ;;  %v805_v21 = vadd.f32 %v801_v58, %v793_v5  ;;  %v10478_v37 = vld [vmem:[#allocation183_spill] sm:$0xff] }
 0x1fe   : > { %v10460_v26 = vrot.slane %v10459_v63, 2  ;;  %v10462_v24 = vrot.slane %v10461_v34, 2  ;;  %v10464_v48 = vrot.slane %v10463_v20, 3  ;;  %v10466_v18 = vrot.slane %v10465_v55, 3  ;;  %v10496_v34 = vld [vmem:[#allocation224_spill] sm:$0xff] }
 0x1ff   : > { %v10468_v53 = vrot.slane %v6772_v56, 1  ;;  %v10469_v32 = vrot.slane %v6777_v43, 1  ;;  %v10470_v58 = vrot.slane %v6754_v44, 2  ;;  %v10471_v5 = vrot.slane %v6759_v9, 2  ;;  %v10475_v56 = vld [vmem:[#allocation289_spill] sm:$0xff] }
 0x200   : > { %v1584_v30 = vadd.f32 %v10460_v26, %v1572_v33  ;;  %v1585_v27 = vadd.f32 %v10462_v24, %v1573_v14  ;;  %v1218_v57 = vadd.f32 %v10464_v48, %v1206_v50  ;;  %v1219_v31 = vadd.f32 %v10466_v18, %v1207_v35  ;;  %v10485_v33 = vld [vmem:[#allocation198_spill] sm:$0xff]  ;;  %v10487_v14 = vld [vmem:[#allocation199_spill] sm:$0xff] }
 0x201   : > { %v1886_v29 = vadd.f32 %v10468_v53, %v1874_v10  ;;  %v1887_v8 = vadd.f32 %v10469_v32, %v1875_v59  ;;  %v10472_v47 = vstv %s6605_s16  ;;  %v1692_v1 = vrot.slane %v10474_v3, 3  ;;  %v10489_v10 = vld [vmem:[#allocation210_spill] sm:$0xff]  ;;  %v10491_v59 = vld [vmem:[#allocation211_spill] sm:$0xff]  ;;  %s7405_s16 = sld [smem:[#allocation11 + $0x4c]] }
 0x202   : > { %v1596_v39 = vadd.f32 %v10470_v58, %v1584_v30  ;;  %v1597_v45 = vadd.f32 %v10471_v5, %v1585_v27  ;;  %v1890_v23 = vmul.f32 %v10472_v47, %v6726_v51  ;;  %v10473_v38 = vmov %v10472_v47  ;;  %v10498_v27 = vld [vmem:[#allocation225_spill] sm:$0xff]  ;;  %v10504_v32 = vld [vmem:[#allocation214_spill] sm:$0xff] }
 0x203   : > { %v1891_v52 = vmul.f32 %v10473_v38, %v6729_v6  ;;  %v1693_v12 = vrot.slane %v10475_v56, 3  ;;  %v10477_v54 = vrot.slane %v10476_v0, 3  ;;  %v10479_v46 = vrot.slane %v10478_v37, 3  ;;  %v10508_v38 = vld [vmem:[#allocation176_spill] sm:$0xff] }
 0x204   : > { %v1608_v9 = vadd.f32 %v1604_v11, %v1596_v39  ;;  %v1609_v36 = vadd.f32 %v1605_v16, %v1597_v45  ;;  %v1894_v22 = vrot.slane %v1890_v23, 1  ;;  %v10482_v62 = vstv %s10467_s6  ;;  %v10506_v39 = vld [vmem:[#allocation215_spill] sm:$0xff]  ;;  %s7411_s6 = sld [smem:[#allocation11 + $0x67]] }
 0x205   : > { %v1230_v43 = vadd.f32 %v10477_v54, %v1218_v57  ;;  %v1231_v44 = vadd.f32 %v10479_v46, %v1219_v31  ;;  %v1895_v7 = vrot.slane %v1891_v52, 1  ;;  %v7116_v40 = vmul.f32 %v10482_v62, %v10481_v15  ;;  %v10500_v57 = vld [vmem:[#allocation188_spill] sm:$0xff]  ;;  %v10502_v31 = vld [vmem:[#allocation189_spill] sm:$0xff] }
 0x206   : > { %v10484_v61 = vmov %v10482_v62  ;;  %v10486_v41 = vrot.slane %v10485_v33, 3  ;;  %v10488_v2 = vrot.slane %v10487_v14, 3  ;;  %v10490_v42 = vrot.slane %v10489_v10, 3  ;;  %v10510_v54 = vld [vmem:[#allocation177_spill] sm:$0xff] }
 0x207   : > { %v7121_v28 = vmul.f32 %v10484_v61, %v10483_v49  ;;  %v10492_v50 = vrot.slane %v10491_v59, 3  ;;  %v1898_v11 = vadd.f32 %v1894_v22, %v1886_v29  ;;  %v1899_v16 = vadd.f32 %v1895_v7, %v1887_v8  ;;  %v10512_v46 = vld [vmem:[#allocation285_spill] sm:$0xff] }
 0x208   : > { %v816_v19 = vadd.f32 %v10486_v41, %v804_v4  ;;  %v817_v13 = vadd.f32 %v10488_v2, %v805_v21  ;;  %v1620_v17 = vadd.f32 %v10490_v42, %v1608_v9  ;;  %v10494_v63 = vstv %s10480_s21  ;;  %s7413_s21 = sld [smem:[#allocation12]] }
 0x209   : > { %v1621_v35 = vadd.f32 %v10492_v50, %v1609_v36  ;;  %v7138_v26 = vmul.f32 %v10494_v63, %v10481_v15  ;;  %v10495_v30 = vmov %v10494_v63  ;;  %v10497_v21 = vrot.slane %v10496_v34, 3  ;;  %v10514_v36 = vld [vmem:[#allocation286_spill] sm:$0xff]  ;;  %v10516_v15 = vld [vmem:[#allocation192_spill] sm:$0xff] }
 0x20a   : > { %v7143_v4 = vmul.f32 %v10495_v30, %v10483_v49  ;;  %v10499_v20 = vrot.slane %v10498_v27, 3  ;;  %v10501_v55 = vrot.slane %v10500_v57, 3  ;;  %v10503_v53 = vrot.slane %v10502_v31, 3  ;;  %v10518_v49 = vld [vmem:[#allocation193_spill] sm:$0xff]  ;;  %v10529_v63 = vld [vmem:[#allocation232_spill] sm:$0xff] }
 0x20b   : > { %v1242_v24 = vadd.f32 %v10497_v21, %v1230_v43  ;;  %v10505_v8 = vrot.slane %v10504_v32, 2  ;;  %v10507_v5 = vrot.slane %v10506_v39, 2  ;;  %v1982_v47 = vrot.slane %v7116_v40, 2  ;;  %v10531_v21 = vld [vmem:[#allocation233_spill] sm:$0xff]  ;;  %v10534_v31 = vld [vmem:[#allocation220_spill] sm:$0xff] }
 0x20c   : > { %v1243_v48 = vadd.f32 %v10499_v20, %v1231_v44  ;;  %v1632_v18 = vadd.f32 %v10501_v55, %v1620_v17  ;;  %v1633_v29 = vadd.f32 %v10503_v53, %v1621_v35  ;;  %v1983_v23 = vrot.slane %v7121_v28, 2  ;;  %v10525_v17 = vld [vmem:[#allocation242_spill] sm:$0xff]  ;;  %v10527_v35 = vld [vmem:[#allocation243_spill] sm:$0xff] }
 0x20d   : > { %v1910_v58 = vadd.f32 %v10505_v8, %v1898_v11  ;;  %v1911_v45 = vadd.f32 %v10507_v5, %v1899_v16  ;;  %v10509_v52 = vrot.slane %v10508_v38, 3  ;;  %v10511_v43 = vrot.slane %v10510_v54, 3 }
 0x20e   : > { %v10513_v44 = vstv %s10493_s13  ;;  %v10517_v62 = vrot.slane %v10516_v15, 2  ;;  %v10519_v61 = vrot.slane %v10518_v49, 2  ;;  %v2094_v33 = vrot.slane %v7138_v26, 3  ;;  %10638 = sst [smem:[#allocation35_spill]] %s7413_s21  ;;  %s7419_s13 = sld [smem:[#allocation11 + $0x1]] }
 0x20f   : > { %v828_v0 = vadd.f32 %v10509_v52, %v816_v19  ;;  %v829_v37 = vadd.f32 %v10511_v43, %v817_v13  ;;  %v7166_v9 = vmul.f32 %v10513_v44, %v10512_v46  ;;  %v10515_v22 = vmov %v10513_v44  ;;  %v10521_v19 = vld [vmem:[#allocation228_spill] sm:$0xff]  ;;  %v10523_v13 = vld [vmem:[#allocation229_spill] sm:$0xff] }
 0x210   : > { %v7171_v7 = vmul.f32 %v10515_v22, %v10514_v36  ;;  %v1922_v40 = vadd.f32 %v10517_v62, %v1910_v58  ;;  %v1923_v28 = vadd.f32 %v10519_v61, %v1911_v45  ;;  %v2095_v41 = vrot.slane %v7143_v4, 3  ;;  %v10538_v58 = vld [vmem:[#allocation250_spill] sm:$0xff]  ;;  %v10540_v45 = vld [vmem:[#allocation251_spill] sm:$0xff] }
 0x211   : > { %v10522_v14 = vrot.slane %v10521_v19, 3  ;;  %v10524_v10 = vrot.slane %v10523_v13, 3  ;;  %v10526_v59 = vrot.slane %v10525_v17, 3  ;;  %v10528_v11 = vrot.slane %v10527_v35, 3  ;;  %v10548_v61 = vld [vmem:[#allocation105_spill] sm:$0xff]  ;;  %v10551_v13 = vld [vmem:[#allocation82_spill] sm:$0xff] }
 0x212   : > { %v10530_v30 = vrot.slane %v10529_v63, 2  ;;  %v10532_v27 = vrot.slane %v10531_v21, 2  ;;  %v2001_v57 = vstv %s7123_s18  ;;  %v2113_v55 = vstv %s7125_s10  ;;  %s7415_s18 = sld [smem:[#allocation11 + $0x70]] }
 0x213   : > { %v1644_v2 = vadd.f32 %v10522_v14, %v1632_v18  ;;  %v1645_v42 = vadd.f32 %v10524_v10, %v1633_v29  ;;  %v1254_v50 = vadd.f32 %v10526_v59, %v1242_v24  ;;  %v1255_v16 = vadd.f32 %v10528_v11, %v1243_v48  ;;  %v10536_v29 = vld [vmem:[#allocation221_spill] sm:$0xff]  ;;  %v10553_v59 = vld [vmem:[#allocation119_spill] sm:$0xff]  ;;  %s7417_s10 = sld [smem:[#allocation11]] }
 0x214   : > { %v1934_v34 = vadd.f32 %v10530_v30, %v1922_v40  ;;  %v1935_v20 = vadd.f32 %v10532_v27, %v1923_v28  ;;  %v10535_v18 = vrot.slane %v10534_v31, 3  ;;  %v10537_v32 = vrot.slane %v10536_v29, 3  ;;  %v10549_v28 = vld [vmem:[#allocation78_spill] sm:$0xff]  ;;  %10640 = sst [smem:[#allocation36_spill]] %s7419_s13 }
 0x215   : > { %v900_v24 = vrot.slane %v7166_v9, 3  ;;  %v901_v48 = vrot.slane %v7171_v7, 3  ;;  %v10539_v39 = vrot.slane %v10538_v58, 2  ;;  %v10541_v38 = vrot.slane %v10540_v45, 2  ;;  %v10565_v58 = vld [vmem:[#allocation271_spill] sm:$0xff] }
 0x216   : > { %v840_v53 = vadd.f32 %v10535_v18, %v828_v0  ;;  %v841_v8 = vadd.f32 %v10537_v32, %v829_v37  ;;  %v10542_v54 = vstv %s10520_s30  ;;  %v10544_v0 = vld [vmem:[#allocation246_spill] sm:$0xff]  ;;  %v10546_v37 = vld [vmem:[#allocation247_spill] sm:$0xff]  ;;  %v10550_v19 = vrot.slane %v10548_v61, %v10549_v28  ;;  %s7421_s30 = sld [smem:[#allocation11 + $0x2]] }
 0x217   : > { %v1946_v5 = vadd.f32 %v10539_v39, %v1934_v34  ;;  %v1947_v52 = vadd.f32 %v10541_v38, %v1935_v20  ;;  %v1990_v43 = vmul.f32 %v10542_v54, %v10512_v46  ;;  %v10543_v44 = vmov %v10542_v54  ;;  %v10567_v54 = vld [vmem:[#allocation113_spill] sm:$0xff] }
 0x218   : > { %v1991_v22 = vmul.f32 %v10543_v44, %v10514_v36  ;;  %v10545_v15 = vrot.slane %v10544_v0, 3  ;;  %v10547_v40 = vrot.slane %v10546_v37, 3  ;;  %v1270_v14 = vadd.f32 %v10550_v19, %v1254_v50  ;;  %v10559_v50 = vld [vmem:[#allocation238_spill] sm:$0xff] }
 0x219   : > { %v10552_v10 = vrot.slane %v10548_v61, %v10551_v13  ;;  %v10554_v35 = vrot.slane %v10553_v59, %v10371_v25  ;;  %v10555_v63 = vrot.slane %v10553_v59, %v10373_v60  ;;  %v10560_v27 = vrot.slane %v10559_v50, 3  ;;  %v10563_v25 = vld [vmem:[#allocation270_spill] sm:$0xff]  ;;  %v10572_v61 = vld [vmem:[#allocation263_spill] sm:$0xff]  ;;  %10639 = sst [smem:[#allocation33_spill]] %s7417_s10 }
 0x21a   : > { %v1656_v62 = vadd.f32 %v10545_v15, %v1644_v2  ;;  %v1657_v49 = vadd.f32 %v10547_v40, %v1645_v42  ;;  %v10556_v2 = vstv %s10533_s7  ;;  %v10564_v29 = vrot.slane %v10563_v25, 2  ;;  %v10570_v15 = vld [vmem:[#allocation262_spill] sm:$0xff]  ;;  %v10583_v25 = vld [vmem:[#allocation267_spill] sm:$0xff]  ;;  %s7423_s7 = sld [smem:[#allocation11 + $0x3]] }
 0x21b   : > { %v1271_v17 = vadd.f32 %v10552_v10, %v1255_v16  ;;  %v1962_v11 = vadd.f32 %v10554_v35, %v1946_v5  ;;  %v1963_v30 = vadd.f32 %v10555_v63, %v1947_v52  ;;  %v1298_v34 = vmul.f32 %v10556_v2, %v10512_v46  ;;  %v10561_v16 = vld [vmem:[#allocation239_spill] sm:$0xff] }
 0x21c   : > { %v10557_v42 = vmov %v10556_v2  ;;  %v852_v20 = vadd.f32 %v10560_v27, %v840_v53  ;;  %v10562_v31 = vrot.slane %v10561_v16, 3  ;;  %v10566_v60 = vrot.slane %v10565_v58, 2  ;;  %v10576_v63 = vld [vmem:[#allocation90_spill] sm:$0xff]  ;;  %v10581_v27 = vld [vmem:[#allocation266_spill] sm:$0xff]  ;;  %10641 = sst [smem:[#allocation38_spill]] %s7421_s30 }
 0x21d   : > { %v1299_v21 = vmul.f32 %v10557_v42, %v10514_v36  ;;  %v1974_v32 = vadd.f32 %v10564_v29, %v1962_v11  ;;  %v2002_v5 = vmul.f32 %v2001_v57, %v6726_v51  ;;  %v2003_v45 = vmul.f32 %v2001_v57, %v6729_v6 }
 0x21e   : > { %v853_v18 = vadd.f32 %v10562_v31, %v841_v8  ;;  %v1975_v39 = vadd.f32 %v10566_v60, %v1963_v30  ;;  %v1994_v38 = vrot.slane %v1990_v43, 2  ;;  %v1995_v52 = vrot.slane %v1991_v22, 2 }
 0x21f   : > { %v10568_v44 = vrot.slane %v10567_v54, %v10549_v28  ;;  %v10569_v53 = vrot.slane %v10567_v54, %v10551_v13  ;;  %v10571_v37 = vrot.slane %v10570_v15, 3  ;;  %v10573_v19 = vrot.slane %v10572_v61, 3 }
 0x220   : > { %v1986_v59 = vadd.f32 %v1982_v47, %v1974_v32  ;;  %v1987_v35 = vadd.f32 %v1983_v23, %v1975_v39  ;;  %v10574_v57 = vstv %s10558_s25  ;;  %v2006_v47 = vrot.slane %v2002_v5, 2  ;;  %v10585_v32 = vld [vmem:[#allocation280_spill] sm:$0xff]  ;;  %v10587_v39 = vld [vmem:[#allocation281_spill] sm:$0xff]  ;;  %10642 = sst [smem:[#allocation39_spill]] %s7423_s7  ;;  %s7425_s25 = sld [smem:[#allocation11 + $0x5]] }
 0x221   : > { %v1672_v0 = vadd.f32 %v10568_v44, %v1656_v62  ;;  %v1673_v8 = vadd.f32 %v10569_v53, %v1657_v49  ;;  %v1282_v40 = vadd.f32 %v10571_v37, %v1270_v14  ;;  %v1283_v10 = vadd.f32 %v10573_v19, %v1271_v17  ;;  %v10592_v53 = vld [vmem:[#allocation258_spill] sm:$0xff]  ;;  %v10594_v37 = vld [vmem:[#allocation259_spill] sm:$0xff]  ;;  %v10596_v19 = vld [vmem:[#allocation216_spill] sm:$0xff] }
 0x222   : > { %v1700_v43 = vmul.f32 %v10574_v57, %v10512_v46  ;;  %v10575_v22 = vmov %v10574_v57  ;;  %v10577_v62 = vrot.slane %v10576_v63, %v10549_v28  ;;  %v10578_v49 = vrot.slane %v10576_v63, %v10551_v13 }
 0x223   : > { %v1701_v11 = vmul.f32 %v10575_v22, %v10514_v36  ;;  %v1998_v2 = vadd.f32 %v1994_v38, %v1986_v59  ;;  %v1999_v17 = vadd.f32 %v1995_v52, %v1987_v35  ;;  %v2007_v23 = vrot.slane %v2003_v45, 2  ;;  %v10598_v35 = vld [vmem:[#allocation217_spill] sm:$0xff] }
 0x224   : > { %v868_v30 = vadd.f32 %v10577_v62, %v852_v20  ;;  %v869_v14 = vadd.f32 %v10578_v49, %v853_v18  ;;  %v1302_v42 = vrot.slane %v1298_v34, 3  ;;  %v1303_v50 = vrot.slane %v1299_v21, 3 }
 0x225   : > { %v10582_v16 = vrot.slane %v10581_v27, 3  ;;  %v10584_v29 = vrot.slane %v10583_v25, 3  ;;  %v10586_v58 = vrot.slane %v10585_v32, 3  ;;  %v10588_v18 = vrot.slane %v10587_v39, 3  ;;  %v10605_v27 = vld [vmem:[#allocation195_spill] sm:$0xff] }
 0x226   : > { %v2010_v38 = vadd.f32 %v2006_v47, %v1998_v2  ;;  %v2011_v52 = vadd.f32 %v2007_v23, %v1999_v17  ;;  %v1704_v5 = vrot.slane %v1700_v43, 3  ;;  %v1705_v45 = vrot.slane %v1701_v11, 3  ;;  %v10603_v17 = vld [vmem:[#allocation194_spill] sm:$0xff]  ;;  %10643 = sst [smem:[#allocation40_spill]] %s7425_s25 }
 0x227   : > { %v1684_v31 = vadd.f32 %v10582_v16, %v1672_v0  ;;  %v1685_v20 = vadd.f32 %v10584_v29, %v1673_v8  ;;  %v1294_v60 = vadd.f32 %v10586_v58, %v1282_v40  ;;  %v1295_v54 = vadd.f32 %v10588_v18, %v1283_v10  ;;  %s7651_s25 = sld [smem:[#allocation11 + $0x32]] }
 0x228   : > { %v10589_v34 = vstv %s10579_s26  ;;  %v10593_v15 = vrot.slane %v10592_v53, 3  ;;  %v10595_v40 = vrot.slane %v10594_v37, 3  ;;  %v10597_v10 = vrot.slane %v10596_v19, 3  ;;  %v10619_v19 = vld [vmem:[#allocation252_spill] sm:$0xff]  ;;  %s7427_s26 = sld [smem:[#allocation11 + $0x6]] }
 0x229   : > { %v1310_v21 = vmul.f32 %v10589_v34, %v6726_v51  ;;  %v10590_v44 = vmov %v10589_v34  ;;  %v10599_v57 = vrot.slane %v10598_v35, 3  ;;  %v10600_v22 = vstv %s10580_s27  ;;  %s7430_s27 = sld [smem:[#allocation11 + $0x7]] }
 0x22a   : > { %v1311_v0 = vmul.f32 %v10590_v44, %v6729_v6  ;;  %v880_v8 = vadd.f32 %v10593_v15, %v868_v30  ;;  %v881_v61 = vadd.f32 %v10595_v40, %v869_v14  ;;  %v2022_v59 = vadd.f32 %v10597_v10, %v2010_v38  ;;  %v10615_v38 = vld [vmem:[#allocation235_spill] sm:$0xff] }
 0x22b   : > { %v2023_v43 = vadd.f32 %v10599_v57, %v2011_v52  ;;  %v908_v11 = vmul.f32 %v10600_v22, %v6726_v51  ;;  %v10601_v63 = vmov %v10600_v22  ;;  %v1696_v30 = vadd.f32 %v1692_v1, %v1684_v31  ;;  %v10609_v1 = vld [vmem:[#allocation276_spill] sm:$0xff] }
 0x22c   : > { %v909_v62 = vmul.f32 %v10601_v63, %v6729_v6  ;;  %v1697_v49 = vadd.f32 %v1693_v12, %v1685_v20  ;;  %v1306_v14 = vadd.f32 %v1302_v42, %v1294_v60  ;;  %v1307_v2 = vadd.f32 %v1303_v50, %v1295_v54  ;;  %v10611_v12 = vld [vmem:[#allocation277_spill] sm:$0xff]  ;;  %v10613_v20 = vld [vmem:[#allocation234_spill] sm:$0xff] }
 0x22d   : > { %v10604_v47 = vrot.slane %v10603_v17, 3  ;;  %v10606_v16 = vrot.slane %v10605_v27, 3  ;;  %v1314_v29 = vrot.slane %v1310_v21, 3  ;;  %v1315_v32 = vrot.slane %v1311_v0, 3  ;;  %10700 = sst [smem:[#allocation94_spill]] %s7651_s25 }
 0x22e   : > { %v10607_v58 = vstv %s10591_s9  ;;  %v10610_v31 = vrot.slane %v10609_v1, 3  ;;  %v10612_v42 = vrot.slane %v10611_v12, 3  ;;  %v10614_v60 = vrot.slane %v10613_v20, 3  ;;  %10644 = sst [smem:[#allocation37_spill]] %s7427_s26  ;;  %s7432_s9 = sld [smem:[#allocation11 + $0x8]] }
 0x22f   : > { %v2034_v23 = vadd.f32 %v10604_v47, %v2022_v59  ;;  %v2035_v25 = vadd.f32 %v10606_v16, %v2023_v43  ;;  %v1712_v39 = vmul.f32 %v10607_v58, %v6726_v51  ;;  %v10608_v3 = vmov %v10607_v58  ;;  %v10621_v59 = vld [vmem:[#allocation253_spill] sm:$0xff]  ;;  %10645 = sst [smem:[#allocation42_spill]] %s7430_s27  ;;  %s7628_s27 = sld [smem:[#allocation11 + $0x1a]] }
 0x230   : > { %v1713_v18 = vmul.f32 %v10608_v3, %v6729_v6  ;;  %v892_v56 = vadd.f32 %v10610_v31, %v880_v8  ;;  %v893_v50 = vadd.f32 %v10612_v42, %v881_v61  ;;  %v10616_v52 = vrot.slane %v10615_v38, 3  ;;  %s7631_s26 = sld [smem:[#allocation11 + $0x30]]  ;;  %s7749_s25 = sld [smem:[#allocation11 + $0x4a]] }
 0x231   : > { %v2046_v54 = vadd.f32 %v10614_v60, %v2034_v23  ;;  %v10617_v21 = vstv %s10602_s11  ;;  %v1708_v15 = vadd.f32 %v1704_v5, %v1696_v30  ;;  %v1709_v37 = vadd.f32 %v1705_v45, %v1697_v49  ;;  %v10623_v5 = vld [vmem:[#allocation122_spill] sm:$0xff]  ;;  %s7435_s11 = sld [smem:[#allocation11 + $0x9]] }
 0x232   : > { %v2047_v34 = vadd.f32 %v10616_v52, %v2035_v25  ;;  %v2102_v44 = vmul.f32 %v10617_v21, %v10512_v46  ;;  %v10618_v0 = vmov %v10617_v21  ;;  %v1318_v8 = vadd.f32 %v1314_v29, %v1306_v14 }
 0x233   : > { %v2103_v53 = vmul.f32 %v10618_v0, %v10514_v36  ;;  %v1319_v40 = vadd.f32 %v1315_v32, %v1307_v2  ;;  %v10620_v61 = vrot.slane %v10619_v19, 3  ;;  %v10622_v35 = vrot.slane %v10621_v59, 3 }
 0x234   : > { %v912_v43 = vrot.slane %v908_v11, 3  ;;  %v913_v22 = vrot.slane %v909_v62, 3  ;;  %v1716_v63 = vrot.slane %v1712_v39, 3  ;;  %v1717_v17 = vrot.slane %v1713_v18, 3  ;;  %10646 = sst [smem:[#allocation41_spill]] %s7432_s9 }
 0x235   : > { %v2058_v10 = vadd.f32 %v10620_v61, %v2046_v54  ;;  %v2059_v57 = vadd.f32 %v10622_v35, %v2047_v34  ;;  %v904_v46 = vadd.f32 %v900_v24, %v892_v56  ;;  %v905_v36 = vadd.f32 %v901_v48, %v893_v50  ;;  %v10626_v24 = vld [vmem:[#allocation272_spill] sm:$0xff]  ;;  %v10628_v48 = vld [vmem:[#allocation273_spill] sm:$0xff]  ;;  %10693 = sst [smem:[#allocation91_spill]] %s7628_s27  ;;  %s7641_s9 = sld [smem:[#allocation11 + $0x23]] }
 0x236   : > { %v10624_v45 = vrot.slane %v10623_v5, %v10549_v28  ;;  %v10625_v49 = vrot.slane %v10623_v5, %v10551_v13  ;;  %v1720_v2 = vadd.f32 %v1716_v63, %v1708_v15  ;;  %v1721_v47 = vadd.f32 %v1717_v17, %v1709_v37  ;;  %10694 = sst [smem:[#allocation92_spill]] %s7631_s26  ;;  %s7735_s27 = sld [smem:[#allocation11 + $0x51]] }
 0x237   : > { %v2114_v11 = vmul.f32 %v2113_v55, %v6726_v51  ;;  %v2115_v9 = vmul.f32 %v2113_v55, %v6729_v6  ;;  %v10627_v62 = vrot.slane %v10626_v24, 3  ;;  %v10629_v23 = vrot.slane %v10628_v48, 3  ;;  %10647 = sst [smem:[#allocation43_spill]] %s7435_s11  ;;  %s7743_s26 = sld [smem:[#allocation11 + $0x5a]] }
 0x238   : > { %v2074_v30 = vadd.f32 %v10624_v45, %v2058_v10  ;;  %v2075_v14 = vadd.f32 %v10625_v49, %v2059_v57  ;;  %v2126_v28 = vrot.slane %v1318_v8, 7  ;;  %v2127_v16 = vrot.slane %v1319_v40, 7 }
 0x239   : > { %v2106_v25 = vrot.slane %v2102_v44, 3  ;;  %v2107_v29 = vrot.slane %v2103_v53, 3  ;;  %v916_v13 = vadd.f32 %v912_v43, %v904_v46  ;;  %v917_v32 = vadd.f32 %v913_v22, %v905_v36 }
 0x23a   : > { %v2086_v7 = vadd.f32 %v10627_v62, %v2074_v30  ;;  %v2087_v27 = vadd.f32 %v10629_v23, %v2075_v14  ;;  %v2118_v55 = vrot.slane %v2114_v11, 3  ;;  %v2119_v58 = vrot.slane %v2115_v9, 3  ;;  %v10739_v11 = vld [vmem:[#allocation73_spill] sm:$0xff] }
 0x23b   : > { %v2132_v39 = vrot.slane %v1720_v2, 6  ;;  %v2133_v3 = vrot.slane %v1721_v47, 6  ;;  %v2143_v31 = vsel %vm2142_vm8, %v916_v13, %v2126_v28  ;;  %v2144_v56 = vsel %vm2142_vm8, %v917_v32, %v2127_v16  ;;  %10697 = sst [smem:[#allocation93_spill]] %s7641_s9  ;;  %s7747_s9 = sld [smem:[#allocation11 + $0x45]]  ;;  %v10735_v32 = vld [vmem:[#allocation83_spill] sm:$0xff] }
 0x23c   : > { %v2098_v51 = vadd.f32 %v2094_v33, %v2086_v7  ;;  %v2099_v6 = vadd.f32 %v2095_v41, %v2087_v27  ;;  %v2322_v38 = vstv %s7391_s17  ;;  %v2430_v52 = vstv %s7393_s15  ;;  %s7485_s17 = sld [smem:[#allocation11 + $0xc]]  ;;  %10732 = sst [smem:[#allocation114_spill]] %s7735_s27 }
 0x23d   : > { %v2146_v50 = vsel %vm2145_vm9, %v2143_v31, %v2132_v39  ;;  %v2147_v26 = vsel %vm2145_vm9, %v2144_v56, %v2133_v3  ;;  %v2538_v34 = vstv %s7395_s1  ;;  %v2244_v21 = vstv %s7389_s20  ;;  %s7478_s20 = sld [smem:[#allocation11 + $0x2d]]  ;;  %s7488_s15 = sld [smem:[#allocation11 + $0x14]]  ;;  %v10749_v39 = vld [vmem:[#allocation150_spill] sm:$0xff] }
 0x23e   : > { %v2110_v18 = vadd.f32 %v2106_v25, %v2098_v51  ;;  %v2111_v1 = vadd.f32 %v2107_v29, %v2099_v6  ;;  %v2702_v0 = vstv %s7399_s23  ;;  %v2624_v37 = vstv %s7397_s12  ;;  %s7499_s1 = sld [smem:[#allocation11 + $0x1d]]  ;;  %s7507_s12 = sld [smem:[#allocation11 + $0x79]] }
 0x23f   : > { %v2810_v8 = vstv %s7401_s8  ;;  %v2918_v61 = vstv %s7403_s14  ;;  %v3004_v10 = vstv %s7405_s16  ;;  %v3082_v57 = vstv %s7407_s5  ;;  %s7509_s23 = sld [smem:[#allocation11 + $0xe]]  ;;  %s7513_s8 = sld [smem:[#allocation11 + $0x25]] }
 0x240   : > { %v2122_v12 = vadd.f32 %v2118_v55, %v2110_v18  ;;  %v2123_v42 = vadd.f32 %v2119_v58, %v2111_v1  ;;  %v3190_v43 = vstv %s7409_s3  ;;  %v3298_v46 = vstv %s7411_s6  ;;  %s7521_s14 = sld [smem:[#allocation11 + $0x15]]  ;;  %s7523_s16 = sld [smem:[#allocation11 + $0x1e]] }
 0x241   : > { %s7533_s5 = sld [smem:[#allocation11 + $0xf]]  ;;  %s7535_s3 = sld [smem:[#allocation11 + $0x26]]  ;;  %v3384_v6 = vstv %s7415_s18 }
 0x242   : > { %v2138_v33 = vrot.slane %v2122_v12, 5  ;;  %v2139_v4 = vrot.slane %v2123_v42, 5  ;;  %10659 = sst [smem:[#allocation56_spill]] %s7485_s17  ;;  %s7548_s6 = sld [smem:[#allocation11 + $0x10]]  ;;  %v2218_v12 = vstv %s7413_s21 }
 0x243   : > { %10658 = sst [smem:[#allocation52_spill]] %s7478_s20  ;;  %s7579_s18 = sld [smem:[#allocation11 + $0x27]] }
 0x244   : > { %v2149_v41 = vsel %vm2148_vm10, %v2146_v50, %v2138_v33  ;;  %v2150_v20 = vsel %vm2148_vm10, %v2147_v26, %v2139_v4  ;;  %10660 = sst [smem:[#allocation58_spill]] %s7488_s15  ;;  %v2220_v33 = vstv %s7417_s10  ;;  %v2226_v4 = vstv %s7419_s13  ;;  %s7606_s21 = sld [smem:[#allocation11 + $0x29]] }
 0x245   : > { %v7353_v60 = vmax.f32 %v2149_v41, 0.0  ;;  %v7355_v54 = vmax.f32 %v2150_v20, 0.0  ;;  %10661 = sst [smem:[#allocation59_spill]] %s7499_s1  ;;  %v2232_v41 = vstv %s7421_s30  ;;  %v3462_v20 = vstv %s7507_s12  ;;  %s7623_s30 = sld [smem:[#allocation11 + $0x22]] }
 0x246   : > { %10664 = sst [smem:[#allocation60_spill]] %s7509_s23  ;;  %s7625_s12 = sld [smem:[#allocation11 + $0x2a]] }
 0x247   : > { %2155 = vrot.lane.b32.xlu1 %v7355_v54, %s10630_s29  ;;  %2153 = vrot.lane.b32.xlu0 %v7353_v60, %s10630_s29  ;;  %s7437_s29 = sld [smem:[#allocation11 + $0x12]]  ;;  %v7444_v44 = vmul.f32 %v2322_v38, %v7353_v60  ;;  %v7450_v53 = vmul.f32 %v2322_v38, %v7355_v54  ;;  %v7453_v15 = vmul.f32 %v2430_v52, %v7353_v60  ;;  %10665 = sst [smem:[#allocation62_spill]] %s7513_s8  ;;  %v2238_v38 = vstv %s7423_s7 }
 0x248   : > { %v7464_v40 = vmul.f32 %v2430_v52, %v7355_v54  ;;  %v7467_v19 = vmul.f32 %v2538_v34, %v7353_v60  ;;  %v7474_v59 = vmul.f32 %v2538_v34, %v7355_v54  ;;  %v7481_v35 = vmul.f32 %v2702_v0, %v7353_v60  ;;  %10668 = sst [smem:[#allocation64_spill]] %s7521_s14  ;;  %s7659_s7 = sld [smem:[#allocation11 + $0x2c]]  ;;  %v10753_v52 = vld [vmem:[#allocation160_spill] sm:$0xff]  ;;  %v10758_v34 = vld [vmem:[#allocation167_spill] sm:$0xff] }
 0x249   : > { %v7491_v63 = vmul.f32 %v2702_v0, %v7355_v54  ;;  %v7494_v17 = vmul.f32 %v2810_v8, %v7353_v60  ;;  %v7502_v45 = vmul.f32 %v2810_v8, %v7355_v54  ;;  %v7505_v30 = vmul.f32 %v2918_v61, %v7353_v60  ;;  %10669 = sst [smem:[#allocation57_spill]] %s7523_s16  ;;  %s7550_s16 = sld [smem:[#allocation11 + $0x36]] }
 0x24a   : > { %10654 = vst [vmem:[#allocation173_spill] sm:$0xff] %v7467_v19  ;;  %10656 = vst [vmem:[#allocation200_spill] sm:$0xff] %v7474_v59  ;;  %v7516_v2 = vmul.f32 %v2918_v61, %v7355_v54  ;;  %v7519_v47 = vmul.f32 %v3082_v57, %v7353_v60  ;;  %v7528_v24 = vmul.f32 %v3082_v57, %v7355_v54  ;;  %10672 = sst [smem:[#allocation65_spill]] %s7533_s5  ;;  %s7569_s5 = sld [smem:[#allocation11 + $0x20]] }
 0x24b   : > { %2163 = vrot.lane.b32.xlu1 %v7355_v54, %s10631_s2  ;;  %2161 = vrot.lane.b32.xlu0 %v7353_v60, %s10631_s2  ;;  %s7441_s2 = sld [smem:[#allocation11 + $0xa]]  ;;  %10662 = vst [vmem:[#allocation201_spill] sm:$0xff] %v7502_v45  ;;  %10663 = vst [vmem:[#allocation178_spill] sm:$0xff] %v7505_v30  ;;  %v7531_v62 = vmul.f32 %v3190_v43, %v7353_v60  ;;  %10673 = sst [smem:[#allocation67_spill]] %s7535_s3  ;;  %v7540_v23 = vmul.f32 %v3190_v43, %v7355_v54 }
 0x24c   : > { %10666 = vst [vmem:[#allocation179_spill] sm:$0xff] %v7516_v2  ;;  %10667 = vst [vmem:[#allocation81_spill] sm:$0xff] %v7519_v47  ;;  %v7543_v27 = vmul.f32 %v3298_v46, %v7353_v60  ;;  %v7546_v28 = vmul.f32 %v2244_v21, %v7353_v60  ;;  %10676 = sst [smem:[#allocation63_spill]] %s7548_s6  ;;  %v7555_v29 = vmul.f32 %v3298_v46, %v7355_v54  ;;  %s7560_s3 = sld [smem:[#allocation11 + $0x17]] }
 0x24d   : > { %10648 = sst [smem:[#allocation44_spill]] %s7437_s29  ;;  %10670 = vst [vmem:[#allocation61_spill] sm:$0xff] %v7528_v24  ;;  %10671 = vst [vmem:[#allocation69_spill] sm:$0xff] %v7531_v62  ;;  %v7558_v13 = vmul.f32 %v2244_v21, %v7355_v54  ;;  %s7565_s6 = sld [smem:[#allocation11 + $0x82]]  ;;  %v7572_v55 = vmul.f32 %v2624_v37, %v7353_v60  ;;  %v7575_v58 = vmul.f32 %v2624_v37, %v7355_v54  ;;  %v2274_v37 = vstv %s7435_s11 }
 0x24e   : > { %10674 = vst [vmem:[#allocation206_spill] sm:$0xff] %v7540_v23  ;;  %10675 = vst [vmem:[#allocation207_spill] sm:$0xff] %v7543_v27  ;;  %10682 = sst [smem:[#allocation79_spill]] %s7579_s18  ;;  %v7584_v18 = vmul.f32 %v3004_v10, %v7353_v60  ;;  %v7587_v1 = vmul.f32 %v3004_v10, %v7355_v54  ;;  %v7598_v50 = vmul.f32 %v3384_v6, %v7353_v60  ;;  %s7653_s11 = sld [smem:[#allocation11 + $0x3f]] }
 0x24f   : > { %2171 = vrot.lane.b32.xlu1 %v7355_v54, %s10632_s4  ;;  %2169 = vrot.lane.b32.xlu0 %v7353_v60, %s10632_s4  ;;  %s7446_s4 = sld [smem:[#allocation11 + $0x13]]  ;;  %10677 = sst [smem:[#allocation68_spill]] %s7550_s16  ;;  %10678 = vst [vmem:[#allocation184_spill] sm:$0xff] %v7555_v29  ;;  %v7601_v26 = vmul.f32 %v3384_v6, %v7355_v54  ;;  %v7634_v43 = vmul.f32 %v3462_v20, %v7353_v60 }
 0x250   : > { %s7567_s16 = sld [smem:[#allocation11 + $0x11]]  ;;  %10681 = sst [smem:[#allocation76_spill]] %s7569_s5  ;;  %10684 = vst [vmem:[#allocation185_spill] sm:$0xff] %v7584_v18  ;;  %10685 = vst [vmem:[#allocation95_spill] sm:$0xff] %v7587_v1  ;;  %v7637_v46 = vmul.f32 %v3462_v20, %v7355_v54 }
 0x251   : > { %10649 = sst [smem:[#allocation47_spill]] %s7441_s2  ;;  %10688 = vst [vmem:[#allocation108_spill] sm:$0xff] %v7598_v50  ;;  %10689 = vst [vmem:[#allocation196_spill] sm:$0xff] %v7601_v26  ;;  %s7665_s20 = sld [smem:[#allocation11 + $0x37]] }
 0x252   : > { %10679 = sst [smem:[#allocation71_spill]] %s7560_s3  ;;  %s7594_s18 = sld [smem:[#allocation11 + $0x21]]  ;;  %10695 = vst [vmem:[#allocation197_spill] sm:$0xff] %v7634_v43  ;;  %10696 = vst [vmem:[#allocation174_spill] sm:$0xff] %v7637_v46 }
 0x253   : > { %2179 = vrot.lane.b32.xlu1 %v7355_v54, %s10633_s24  ;;  %2177 = vrot.lane.b32.xlu0 %v7353_v60, %s10633_s24  ;;  %s7455_s24 = sld [smem:[#allocation11 + $0x1b]]  ;;  %s7581_s3 = sld [smem:[#allocation11 + $0x2e]]  ;;  %v3570_v31 = vstv %s7565_s6 }
 0x254   : > { %10690 = sst [smem:[#allocation85_spill]] %s7606_s21  ;;  %s7661_s6 = sld [smem:[#allocation11 + $0x33]]  ;;  %v7670_v7 = vmul.f32 %v3570_v31, %v7353_v60  ;;  %v7673_v9 = vmul.f32 %v3570_v31, %v7355_v54 }
 0x255   : > { %10650 = sst [smem:[#allocation45_spill]] %s7446_s4  ;;  %s7644_s4 = sld [smem:[#allocation11 + $0x2b]] }
 0x256   : > { %10680 = sst [smem:[#allocation75_spill]] %s7567_s16  ;;  %s7592_s16 = sld [smem:[#allocation11 + $0x18]]  ;;  %10712 = vst [vmem:[#allocation175_spill] sm:$0xff] %v7670_v7  ;;  %10714 = vst [vmem:[#allocation282_spill] sm:$0xff] %v7673_v9 }
 0x257   : > { %2187 = vrot.lane.b32.xlu1 %v7355_v54, %s10634_s22  ;;  %2185 = vrot.lane.b32.xlu0 %v7353_v60, %s10634_s22  ;;  %s7457_s22 = sld [smem:[#allocation11 + $0x1c]]  ;;  %10692 = sst [smem:[#allocation89_spill]] %s7623_s30 }
 0x258   : > { %10687 = sst [smem:[#allocation84_spill]] %s7594_s18  ;;  %s7615_s18 = sld [smem:[#allocation11 + $0x19]] }
 0x259   : > { %10651 = sst [smem:[#allocation49_spill]] %s7455_s24  ;;  %s10698_s24 = sld [smem:[#allocation65_spill]] }
 0x25a   : > { %10683 = sst [smem:[#allocation70_spill]] %s7581_s3  ;;  %s7608_s3 = sld [smem:[#allocation11 + $0x2f]] }
 0x25b   : > { %2195 = vrot.lane.b32.xlu1 %v7355_v54, %s10635_s0  ;;  %2193 = vrot.lane.b32.xlu0 %v7353_v60, %s10635_s0  ;;  %s7461_s0 = sld [smem:[#allocation11 + $0xb]]  ;;  %10706 = sst [smem:[#allocation97_spill]] %s7659_s7 }
 0x25c   : > { %10686 = sst [smem:[#allocation80_spill]] %s7592_s16  ;;  %s7617_s16 = sld [smem:[#allocation11 + $0x8b]] }
 0x25d   : > { %10652 = sst [smem:[#allocation50_spill]] %s7457_s22  ;;  %s10704_s22 = sld [smem:[#allocation63_spill]] }
 0x25e   : > { %10702 = sst [smem:[#allocation96_spill]] %s7653_s11  ;;  %s10710_s23 = sld [smem:[#allocation75_spill]] }
 0x25f   : > { %2203 = vrot.lane.b32.xlu1 %v7355_v54, %s10636_s28  ;;  %2201 = vrot.lane.b32.xlu0 %v7353_v60, %s10636_s28  ;;  %s7469_s28 = sld [smem:[#allocation12 + $0x1]]  ;;  %10707 = sst [smem:[#allocation98_spill]] %s7661_s6 }
 0x260   : > { %10691 = sst [smem:[#allocation88_spill]] %s7608_s3  ;;  %s10711_s1 = sld [smem:[#allocation80_spill]] }
 0x261   : > { %10653 = sst [smem:[#allocation53_spill]] %s7461_s0  ;;  %s7678_s15 = sld [smem:[#allocation11 + $0x35]] }
 0x262   : > { %10709 = sst [smem:[#allocation101_spill]] %s7665_s20  ;;  %s7681_s13 = sld [smem:[#allocation11 + $0x38]]  ;;  %v3678_v31 = vstv %s7617_s16 }
 0x263   : > { %2211 = vrot.lane.b32.xlu1 %v7355_v54, %s10637_s19  ;;  %2209 = vrot.lane.b32.xlu0 %v7353_v60, %s10637_s19  ;;  %s7476_s19 = sld [smem:[#allocation11 + $0x24]]  ;;  %s7686_s10 = sld [smem:[#allocation11 + $0x39]]  ;;  %v7714_v16 = vmul.f32 %v3678_v31, %v7353_v60  ;;  %v7717_v56 = vmul.f32 %v3678_v31, %v7355_v54  ;;  %v10736_v54 = vld [vmem:[#allocation87_spill] sm:$0xff] }
 0x264   : > { %s7688_s20 = sld [smem:[#allocation11 + $0x3b]]  ;;  %s7695_s2 = sld [smem:[#allocation12 + $0x2]] }
 0x265   : > { %10655 = sst [smem:[#allocation54_spill]] %s7469_s28  ;;  %s10705_s28 = sld [smem:[#allocation71_spill]]  ;;  %10727 = vst [vmem:[#allocation218_spill] sm:$0xff] %v7714_v16  ;;  %10728 = vst [vmem:[#allocation219_spill] sm:$0xff] %v7717_v56 }
 0x266   : > { %s7697_s0 = sld [smem:[#allocation11 + $0x48]]  ;;  %s7701_s5 = sld [smem:[#allocation11 + $0x3c]] }
 0x267   : > { %10717 = sst [smem:[#allocation102_spill]] %s7678_s15  ;;  %s7709_s16 = sld [smem:[#allocation11 + $0x3d]] }
 0x268   : > { %10718 = sst [smem:[#allocation103_spill]] %s7681_s13  ;;  %s7703_s29 = sld [smem:[#allocation11 + $0x40]] }
 0x269   : > { %10657 = sst [smem:[#allocation55_spill]] %s7476_s19  ;;  %s7663_s19 = sld [smem:[#allocation11 + $0x34]] }
 0x26a   : > { %10719 = sst [smem:[#allocation104_spill]] %s7686_s10  ;;  %s7711_s17 = sld [smem:[#allocation11 + $0x41]] }
 0x26b   : > { %10720 = sst [smem:[#allocation46_spill]] %s7688_s20  ;;  %s7723_s14 = sld [smem:[#allocation11 + $0x3e]] }
 0x26c   : > { %10721 = sst [smem:[#allocation48_spill]] %s7695_s2  ;;  %s7733_s8 = sld [smem:[#allocation11 + $0x44]] }
 0x26d   : > { %10722 = sst [smem:[#allocation106_spill]] %s7697_s0  ;;  %s7725_s3 = sld [smem:[#allocation11 + $0x42]] }
 0x26e   : > { %10723 = sst [smem:[#allocation107_spill]] %s7701_s5  ;;  %s7741_s30 = sld [smem:[#allocation11 + $0x49]] }
 0x26f   : > { %10708 = sst [smem:[#allocation99_spill]] %s7663_s19  ;;  %s7769_s21 = sld [smem:[#allocation11 + $0x52]] }
 0x270   : > { %10724 = sst [smem:[#allocation51_spill]] %s7703_s29  ;;  %s7767_s11 = sld [smem:[#allocation11 + $0x46]] }
 0x271   : > { %10725 = sst [smem:[#allocation109_spill]] %s7709_s16  ;;  %s7775_s6 = sld [smem:[#allocation11 + $0x4b]] }
 0x272   : > { %10726 = sst [smem:[#allocation111_spill]] %s7711_s17  ;;  %s7777_s7 = sld [smem:[#allocation11 + $0x53]] }
 0x273   : > { %10731 = sst [smem:[#allocation112_spill]] %s7733_s8  ;;  %s7789_s0 = sld [smem:[#allocation11 + $0x4d]] }
 0x274   : > { %10733 = sst [smem:[#allocation115_spill]] %s7743_s26  ;;  %s7787_s2 = sld [smem:[#allocation11 + $0x47]] }
 0x275   : > { %10734 = sst [smem:[#allocation116_spill]] %s7747_s9  ;;  %s7801_s17 = sld [smem:[#allocation11 + $0x4e]] }
 0x276   : > { %s7803_s16 = sld [smem:[#allocation11 + $0x54]]  ;;  %s7813_s5 = sld [smem:[#allocation11 + $0x56]] }
 0x277   : > { %s7815_s20 = sld [smem:[#allocation11 + $0x63]]  ;;  %s7819_s10 = sld [smem:[#allocation11 + $0x4f]] }
 0x278   : > { %s7821_s13 = sld [smem:[#allocation11 + $0x50]]  ;;  %s7841_s26 = sld [smem:[#allocation11 + $0x5b]] }
 0x279   : > { %s7855_s9 = sld [smem:[#allocation11 + $0x57]]  ;;  %s7857_s19 = sld [smem:[#allocation11 + $0x5c]] }
 0x27a   : > { %10740 = sst [smem:[#allocation117_spill]] %s7787_s2  ;;  %s7863_s27 = sld [smem:[#allocation11 + $0x58]] }
 0x27b   : > { %s7865_s8 = sld [smem:[#allocation11 + $0x5d]]  ;;  %s10754_s29 = sld [smem:[#allocation44_spill]] }
 0x27c   : > { %10744 = sst [smem:[#allocation120_spill]] %s7813_s5  ;;  %s10756_s2 = sld [smem:[#allocation40_spill]] }
 0x27d   : > { %10746 = sst [smem:[#allocation121_spill]] %s7815_s20  ;;  %s10760_s20 = sld [smem:[#allocation37_spill]] }
 0x27e   : > { %10748 = sst [smem:[#allocation123_spill]] %s7841_s26  ;;  %s10761_s26 = sld [smem:[#allocation47_spill]] }
 0x27f   : > { %s10762_s5 = sld [smem:[#allocation45_spill]]  ;;  %s10765_s15 = sld [smem:[#allocation42_spill]] }
 0x2b9   : > { %v2156_v5 = vpop.permute.xlu1 %2155  ;;  %v2154_v14 = vpop.permute.xlu0 %2153 }
 0x2ba   : > { %v2157_v57 = vsel %vm345_vm1, %v2154_v14, %v2156_v5  ;;  %v2158_v60 = vsel %vm345_vm1, %v2156_v5, %v2154_v14 }
 0x2bb   : > { %v7754_v31 = vmul.f32 %v2158_v60, %v10735_v32  ;;  %v7757_v49 = vmul.f32 %v2157_v57, %v10736_v54  ;;  %v10743_v54 = vld [vmem:[#allocation142_spill] sm:$0xff] }
 0x2bd   : > { %v2164_v51 = vpop.permute.xlu1 %2163  ;;  %v2162_v5 = vpop.permute.xlu0 %2161 }
 0x2be   : > { %v2165_v48 = vsel %vm366_vm0, %v2162_v5, %v2164_v51  ;;  %v2166_v14 = vsel %vm366_vm0, %v2164_v51, %v2162_v5  ;;  %v10738_v51 = vld [vmem:[#allocation72_spill] sm:$0xff] }
 0x2bf   : > { %v7780_v5 = vmul.f32 %v2166_v14, %v10738_v51  ;;  %v7783_v22 = vmul.f32 %v2165_v48, %v10739_v11  ;;  %v2221_v11 = vmul.f32 %v2220_v33, %v7754_v31  ;;  %v2222_v48 = vmul.f32 %v2220_v33, %v7757_v49  ;;  %v10742_v51 = vld [vmem:[#allocation141_spill] sm:$0xff] }
 0x2c1   : > { %v2172_v25 = vpop.permute.xlu1 %2171  ;;  %v2170_v20 = vpop.permute.xlu0 %2169  ;;  %v2224_v0 = vadd.f32 %v2222_v48, %v2218_v12 }
 0x2c2   : > { %v2173_v60 = vsel %vm388_vm2, %v2170_v20, %v2172_v25  ;;  %v2174_v14 = vsel %vm388_vm2, %v2172_v25, %v2170_v20  ;;  %v2227_v20 = vmul.f32 %v2226_v4, %v7780_v5  ;;  %v2228_v25 = vmul.f32 %v2226_v4, %v7783_v22  ;;  %v10750_v4 = vld [vmem:[#allocation153_spill] sm:$0xff] }
 0x2c3   : > { %v7806_v57 = vmul.f32 %v2174_v14, %v10742_v51  ;;  %v7809_v32 = vmul.f32 %v2173_v60, %v10743_v54  ;;  %v2223_v14 = vadd.f32 %v2221_v11, %v2218_v12 }
 0x2c5   : > { %v2180_v54 = vpop.permute.xlu1 %2179  ;;  %v2178_v51 = vpop.permute.xlu0 %2177  ;;  %v2233_v42 = vmul.f32 %v2232_v41, %v7806_v57 }
 0x2c6   : > { %v2181_v3 = vsel %vm410_vm3, %v2178_v51, %v2180_v54  ;;  %v2182_v60 = vsel %vm410_vm3, %v2180_v54, %v2178_v51  ;;  %v2234_v54 = vmul.f32 %v2232_v41, %v7809_v32  ;;  %v2230_v51 = vadd.f32 %v2228_v25, %v2224_v0 }
 0x2c7   : > { %v7844_v6 = vmul.f32 %v2182_v60, %v10749_v39  ;;  %v7847_v33 = vmul.f32 %v2181_v3, %v10750_v4  ;;  %v2229_v60 = vadd.f32 %v2227_v20, %v2223_v14  ;;  %v10770_v25 = vstv %s10760_s20  ;;  %s10778_s20 = sld [smem:[#allocation41_spill]] }
 0x2c8   : > { %v2236_v8 = vadd.f32 %v2234_v54, %v2230_v51 }
 0x2c9   : > { %v2188_v3 = vpop.permute.xlu1 %2187  ;;  %v2186_v41 = vpop.permute.xlu0 %2185  ;;  %v2239_v4 = vmul.f32 %v2238_v38, %v7844_v6  ;;  %v2240_v12 = vmul.f32 %v2238_v38, %v7847_v33  ;;  %v2235_v10 = vadd.f32 %v2233_v42, %v2229_v60 }
 0x2ca   : > { %v2189_v48 = vsel %vm432_vm4, %v2186_v41, %v2188_v3  ;;  %v2190_v11 = vsel %vm432_vm4, %v2188_v3, %v2186_v41  ;;  %v10755_v3 = vld [vmem:[#allocation161_spill] sm:$0xff] }
 0x2cb   : > { %v7886_v61 = vmul.f32 %v2189_v48, %v10753_v52  ;;  %v7889_v41 = vmul.f32 %v2190_v11, %v10755_v3  ;;  %v2241_v60 = vadd.f32 %v2239_v4, %v2235_v10  ;;  %v2242_v51 = vadd.f32 %v2240_v12, %v2236_v8  ;;  %v10757_v11 = vld [vmem:[#allocation166_spill] sm:$0xff] }
 0x2cc   : > { %v7898_v52 = vmul.f32 %v2274_v37, %v7754_v31  ;;  %v2276_v12 = vmul.f32 %v2274_v37, %v7757_v49  ;;  %v10759_v4 = vstv %s10754_s29  ;;  %v10763_v10 = vstv %s10756_s2  ;;  %s10769_s2 = sld [smem:[#allocation53_spill]] }
 0x2cd   : > { %v2196_v42 = vpop.permute.xlu1 %2195  ;;  %v2194_v54 = vpop.permute.xlu0 %2193  ;;  %v2251_v37 = vmul.f32 %v10763_v10, %v7886_v61  ;;  %v10764_v8 = vmov %v10763_v10  ;;  %v10768_v10 = vld [vmem:[#allocation169_spill] sm:$0xff] }
 0x2ce   : > { %v2197_v39 = vsel %vm454_vm5, %v2194_v54, %v2196_v42  ;;  %v2198_v38 = vsel %vm454_vm5, %v2196_v42, %v2194_v54  ;;  %v7915_v42 = vmul.f32 %v10759_v4, %v7754_v31  ;;  %v2252_v14 = vmul.f32 %v10764_v8, %v7889_v41 }
 0x2cf   : > { %v7902_v3 = vmul.f32 %v2197_v39, %v10757_v11  ;;  %v7905_v0 = vmul.f32 %v2198_v38, %v10758_v34  ;;  %v2247_v34 = vadd.f32 %v7546_v28, %v2241_v60  ;;  %v2248_v38 = vadd.f32 %v7558_v13, %v2242_v51  ;;  %v10767_v13 = vld [vmem:[#allocation168_spill] sm:$0xff] }
 0x2d0   : > { %v2279_v54 = vrot.slane %v7898_v52, 1  ;;  %v10766_v28 = vstv %s10754_s29  ;;  %v2280_v21 = vrot.slane %v2276_v12, 1  ;;  %v10772_v52 = vstv %s10761_s26  ;;  %s10775_s29 = sld [smem:[#allocation58_spill]]  ;;  %s10785_s26 = sld [smem:[#allocation56_spill]] }
 0x2d1   : > { %v2204_v39 = vpop.permute.xlu1 %2203  ;;  %v2202_v11 = vpop.permute.xlu0 %2201  ;;  %v7935_v60 = vmul.f32 %v10766_v28, %v7757_v49  ;;  %v2257_v20 = vmul.f32 %v10770_v25, %v7902_v3  ;;  %v2287_v56 = vmul.f32 %v10772_v52, %v7780_v5  ;;  %v10773_v28 = vmov %v10772_v52 }
 0x2d2   : > { %v2205_v4 = vsel %vm476_vm6, %v2202_v11, %v2204_v39  ;;  %v2206_v48 = vsel %vm476_vm6, %v2204_v39, %v2202_v11  ;;  %v10771_v39 = vmov %v10770_v25  ;;  %v2288_v16 = vmul.f32 %v10773_v28, %v7783_v22 }
 0x2d3   : > { %v7938_v51 = vmul.f32 %v2205_v4, %v10767_v13  ;;  %v7941_v8 = vmul.f32 %v2206_v48, %v10768_v10  ;;  %v2258_v11 = vmul.f32 %v10771_v39, %v7905_v0  ;;  %v10774_v4 = vstv %s10762_s5 }
 0x2d4   : > { %v7958_v13 = vmul.f32 %v10774_v4, %v7780_v5  ;;  %v2253_v25 = vadd.f32 %v2251_v37, %v2247_v34  ;;  %v2254_v29 = vadd.f32 %v2252_v14, %v2248_v38  ;;  %v10776_v39 = vstv %s10765_s15  ;;  %v10781_v38 = vld [vmem:[#allocation171_spill] sm:$0xff]  ;;  %s10790_s15 = sld [smem:[#allocation60_spill]] }
 0x2d5   : > { %v2212_v48 = vpop.permute.xlu1 %2211  ;;  %v2210_v10 = vpop.permute.xlu0 %2209  ;;  %v2263_v12 = vmul.f32 %v10776_v39, %v7938_v51  ;;  %v10777_v9 = vmov %v10776_v39  ;;  %v10779_v7 = vstv %s10769_s2  ;;  %v10780_v34 = vstv %s10762_s5  ;;  %v10782_v39 = vld [vmem:[#allocation172_spill] sm:$0xff]  ;;  %s10789_s5 = sld [smem:[#allocation64_spill]]  ;;  %s10808_s2 = sld [smem:[#allocation62_spill]] }
 0x2d6   : > { %v2264_v52 = vmul.f32 %v10777_v9, %v7941_v8  ;;  %v2213_v28 = vsel %vm498_vm7, %v2210_v10, %v2212_v48  ;;  %v2214_v4 = vsel %vm498_vm7, %v2212_v48, %v2210_v10  ;;  %v2299_v27 = vmul.f32 %v10779_v7, %v7806_v57 }
 0x2d7   : > { %v7976_v14 = vmul.f32 %v10780_v34, %v7783_v22  ;;  %v7979_v37 = vmul.f32 %v2213_v28, %v10781_v38  ;;  %v7982_v46 = vmul.f32 %v2214_v4, %v10782_v39  ;;  %v2259_v9 = vadd.f32 %v2257_v20, %v2253_v25 }
 0x2d8   : > { %v2260_v43 = vadd.f32 %v2258_v11, %v2254_v29  ;;  %v10783_v23 = vmov %v10779_v7  ;;  %v10784_v48 = vstv %s10775_s29  ;;  %v10787_v20 = vstv %s10778_s20  ;;  %s10812_s29 = sld [smem:[#allocation67_spill]]  ;;  %s10835_s20 = sld [smem:[#allocation52_spill]] }
 0x2d9   : > { %v2300_v26 = vmul.f32 %v10783_v23, %v7809_v32  ;;  %v7991_v7 = vmul.f32 %v10784_v48, %v7806_v57  ;;  %v10786_v10 = vmov %v10784_v48  ;;  %v2265_v34 = vadd.f32 %v2263_v12, %v2259_v9 }
 0x2da   : > { %v7996_v28 = vmul.f32 %v10786_v10, %v7809_v32  ;;  %v2266_v4 = vadd.f32 %v2264_v52, %v2260_v43  ;;  %v2269_v29 = vmul.f32 %v10787_v20, %v7979_v37  ;;  %v10788_v11 = vmov %v10787_v20 }
 0x2db   : > { %v2270_v23 = vmul.f32 %v10788_v11, %v7982_v46  ;;  %v2291_v25 = vrot.slane %v2287_v56, 1  ;;  %v2292_v38 = vrot.slane %v2288_v16, 1  ;;  %v2303_v43 = vrot.slane %v2299_v27, 1 }
 0x2dc   : > { %v2271_v10 = vadd.f32 %v2269_v29, %v2265_v34  ;;  %v2304_v9 = vrot.slane %v2300_v26, 1  ;;  %v10791_v20 = vstv %s10785_s26  ;;  %v10793_v27 = vstv %s10789_s5  ;;  %s10838_s26 = sld [smem:[#allocation97_spill]]  ;;  %s10842_s5 = sld [smem:[#allocation70_spill]] }
 0x2dd   : > { %v2272_v12 = vadd.f32 %v2270_v23, %v2266_v4  ;;  %v2311_v56 = vmul.f32 %v10791_v20, %v7844_v6  ;;  %v10792_v16 = vmov %v10791_v20  ;;  %v8018_v4 = vmul.f32 %v10793_v27, %v7844_v6 }
 0x2de   : > { %v2312_v11 = vmul.f32 %v10792_v16, %v7847_v33  ;;  %v2283_v48 = vadd.f32 %v2279_v54, %v2271_v10  ;;  %v10794_v26 = vstv %s10790_s15  ;;  %v10796_v16 = vmov %v10793_v27  ;;  %s10843_s15 = sld [smem:[#allocation50_spill]] }
 0x2df   : > { %v2284_v36 = vadd.f32 %v2280_v21, %v2272_v12  ;;  %v2335_v29 = vmul.f32 %v10794_v26, %v7886_v61  ;;  %v10795_v23 = vmov %v10794_v26  ;;  %v8029_v52 = vmul.f32 %v10796_v16, %v7847_v33 }
 0x2e0   : > { %v2336_v20 = vmul.f32 %v10795_v23, %v7889_v41  ;;  %v10797_v54 = vstv %s10705_s28  ;;  %v2295_v10 = vadd.f32 %v2291_v25, %v2283_v48  ;;  %v10798_v34 = vstv %s10698_s24  ;;  %s10803_s24 = sld [smem:[#allocation55_spill]]  ;;  %s10805_s28 = sld [smem:[#allocation54_spill]] }
 0x2e1   : > { %v8034_v21 = vmul.f32 %v10797_v54, %v7886_v61  ;;  %v2296_v12 = vadd.f32 %v2292_v38, %v2284_v36  ;;  %v2347_v27 = vmul.f32 %v10798_v34, %v7902_v3  ;;  %v10799_v39 = vmov %v10797_v54 }
 0x2e2   : > { %v8042_v50 = vmul.f32 %v10799_v39, %v7889_v41  ;;  %v2315_v26 = vrot.slane %v2311_v56, 1  ;;  %v2316_v62 = vrot.slane %v2312_v11, 1  ;;  %v10800_v23 = vmov %v10798_v34 }
 0x2e3   : > { %v2348_v24 = vmul.f32 %v10800_v23, %v7905_v0  ;;  %v10801_v16 = vstv %s10704_s22  ;;  %v2307_v54 = vadd.f32 %v2303_v43, %v2295_v10  ;;  %v2308_v25 = vadd.f32 %v2304_v9, %v2296_v12  ;;  %s10804_s22 = sld [smem:[#allocation91_spill]] }
 0x2e4   : > { %v2359_v47 = vmul.f32 %v10801_v16, %v7938_v51  ;;  %v10802_v36 = vmov %v10801_v16  ;;  %v2339_v39 = vrot.slane %v2335_v29, 1  ;;  %v2340_v56 = vrot.slane %v2336_v20, 1 }
 0x2e5   : > { %v2360_v38 = vmul.f32 %v10802_v36, %v7941_v8  ;;  %v2319_v23 = vadd.f32 %v2315_v26, %v2307_v54  ;;  %v2320_v16 = vadd.f32 %v2316_v62, %v2308_v25  ;;  %v2351_v43 = vrot.slane %v2347_v27, 1 }
 0x2e6   : > { %v2352_v10 = vrot.slane %v2348_v24, 1  ;;  %v2363_v12 = vrot.slane %v2359_v47, 1  ;;  %v10806_v29 = vstv %s10711_s1  ;;  %v10809_v62 = vrot.slane %v7444_v44, 1  ;;  %s10817_s1 = sld [smem:[#allocation79_spill]] }
 0x2e7   : > { %v8060_v20 = vmul.f32 %v10806_v29, %v7902_v3  ;;  %v10807_v36 = vmov %v10806_v29  ;;  %v10810_v26 = vrot.slane %v7450_v53, 1  ;;  %v2364_v24 = vrot.slane %v2360_v38, 1 }
 0x2e8   : > { %v8065_v34 = vmul.f32 %v10807_v36, %v7905_v0  ;;  %v2331_v27 = vadd.f32 %v10809_v62, %v2319_v23  ;;  %v10811_v47 = vstv %s7615_s18  ;;  %v10813_v29 = vstv %s10710_s23  ;;  %s10828_s23 = sld [smem:[#allocation85_spill]]  ;;  %s10830_s18 = sld [smem:[#allocation49_spill]] }
 0x2e9   : > { %v2332_v54 = vadd.f32 %v10810_v26, %v2320_v16  ;;  %v8074_v25 = vmul.f32 %v10811_v47, %v7938_v51  ;;  %v2371_v9 = vmul.f32 %v10813_v29, %v7979_v37  ;;  %v10814_v36 = vmov %v10811_v47 }
 0x2ea   : > { %v8082_v11 = vmul.f32 %v10814_v36, %v7941_v8  ;;  %v10815_v44 = vstv %s10803_s24  ;;  %v2343_v16 = vadd.f32 %v2339_v39, %v2331_v27  ;;  %v10818_v26 = vmov %v10813_v29  ;;  %s10860_s24 = sld [smem:[#allocation59_spill]] }
 0x2eb   : > { %v2601_v23 = vmul.f32 %v10815_v44, %v7754_v31  ;;  %v10816_v53 = vmov %v10815_v44  ;;  %v2344_v62 = vadd.f32 %v2340_v56, %v2332_v54  ;;  %v2372_v47 = vmul.f32 %v10818_v26, %v7982_v46 }
 0x2ec   : > { %v2602_v38 = vmul.f32 %v10816_v53, %v7757_v49  ;;  %v10819_v48 = vstv %s10804_s22  ;;  %v10820_v2 = vstv %s10805_s28  ;;  %v10822_v44 = vstv %s10808_s2  ;;  %s10870_s28 = sld [smem:[#allocation57_spill]]  ;;  %s10871_s2 = sld [smem:[#allocation98_spill]] }
 0x2ed   : > { %v8096_v29 = vmul.f32 %v10819_v48, %v7979_v37  ;;  %v2603_v36 = vadd.f32 %v2601_v23, %v10820_v2  ;;  %v10821_v30 = vmov %v10820_v2  ;;  %v2607_v18 = vmul.f32 %v10822_v44, %v7780_v5 }
 0x2ee   : > { %v2604_v1 = vadd.f32 %v2602_v38, %v10821_v30  ;;  %v10823_v59 = vmov %v10822_v44  ;;  %v2355_v19 = vadd.f32 %v2351_v43, %v2343_v16  ;;  %v2356_v39 = vadd.f32 %v2352_v10, %v2344_v62 }
 0x2ef   : > { %v2608_v53 = vmul.f32 %v10823_v59, %v7783_v22  ;;  %v10824_v56 = vstv %s10812_s29  ;;  %v2609_v48 = vadd.f32 %v2607_v18, %v2603_v36  ;;  %v10826_v2 = vstv %s10817_s1  ;;  %s10876_s29 = sld [smem:[#allocation99_spill]]  ;;  %s10877_s1 = sld [smem:[#allocation76_spill]] }
 0x2f0   : > { %v2613_v27 = vmul.f32 %v10824_v56, %v7806_v57  ;;  %v10825_v54 = vmov %v10824_v56  ;;  %v2619_v30 = vmul.f32 %v10826_v2, %v7844_v6  ;;  %v10827_v23 = vmov %v10826_v2 }
 0x2f1   : > { %v2614_v26 = vmul.f32 %v10825_v54, %v7809_v32  ;;  %v2610_v45 = vadd.f32 %v2608_v53, %v2604_v1  ;;  %v2620_v38 = vmul.f32 %v10827_v23, %v7847_v33  ;;  %v2367_v59 = vadd.f32 %v2363_v12, %v2355_v19 }
 0x2f2   : > { %v2368_v43 = vadd.f32 %v2364_v24, %v2356_v39  ;;  %v2375_v10 = vrot.slane %v2371_v9, 1  ;;  %v2376_v16 = vrot.slane %v2372_v47, 1  ;;  %v2459_v62 = vrot.slane %v8060_v20, 2 }
 0x2f3   : > { %v2460_v44 = vrot.slane %v8065_v34, 2  ;;  %v2615_v56 = vadd.f32 %v2613_v27, %v2609_v48  ;;  %v2616_v18 = vadd.f32 %v2614_v26, %v2610_v45  ;;  %v2471_v53 = vrot.slane %v8074_v25, 2 }
 0x2f4   : > { %v2379_v1 = vadd.f32 %v2375_v10, %v2367_v59  ;;  %v2380_v36 = vadd.f32 %v2376_v16, %v2368_v43  ;;  %v10829_v54 = vstv %s10804_s22  ;;  %v10831_v12 = vstv %s10828_s23  ;;  %s10865_s22 = sld [smem:[#allocation94_spill]]  ;;  %s10880_s23 = sld [smem:[#allocation102_spill]] }
 0x2f5   : > { %v8126_v2 = vmul.f32 %v10829_v54, %v7982_v46  ;;  %v2621_v19 = vadd.f32 %v2619_v30, %v2615_v56  ;;  %v2622_v9 = vadd.f32 %v2620_v38, %v2616_v18  ;;  %v2631_v24 = vmul.f32 %v10831_v12, %v7886_v61 }
 0x2f6   : > { %v10832_v47 = vmov %v10831_v12  ;;  %v10833_v45 = vrot.slane %v7915_v42, 2  ;;  %v10834_v26 = vrot.slane %v7935_v60, 2  ;;  %v2472_v23 = vrot.slane %v8082_v11, 2 }
 0x2f7   : > { %v2632_v39 = vmul.f32 %v10832_v47, %v7889_v41  ;;  %v2483_v30 = vrot.slane %v8096_v29, 2  ;;  %v2627_v38 = vadd.f32 %v7572_v55, %v2621_v19  ;;  %v2628_v59 = vadd.f32 %v7575_v58, %v2622_v9 }
 0x2f8   : > { %v2391_v27 = vadd.f32 %v10833_v45, %v2379_v1  ;;  %v2392_v48 = vadd.f32 %v10834_v26, %v2380_v36  ;;  %v10836_v43 = vstv %s7625_s12  ;;  %v10839_v60 = vrot.slane %v7958_v13, 2  ;;  %s10859_s12 = sld [smem:[#allocation92_spill]] }
 0x2f9   : > { %v2637_v10 = vmul.f32 %v10836_v43, %v7902_v3  ;;  %v10837_v42 = vmov %v10836_v43  ;;  %v10840_v18 = vrot.slane %v7976_v14, 2  ;;  %v2484_v36 = vrot.slane %v8126_v2, 2 }
 0x2fa   : > { %v2638_v16 = vmul.f32 %v10837_v42, %v7905_v0  ;;  %v2403_v56 = vadd.f32 %v10839_v60, %v2391_v27  ;;  %v10841_v55 = vstv %s10830_s18  ;;  %v2633_v54 = vadd.f32 %v2631_v24, %v2627_v38  ;;  %s10884_s18 = sld [smem:[#allocation68_spill]] }
 0x2fb   : > { %v2404_v1 = vadd.f32 %v10840_v18, %v2392_v48  ;;  %v8156_v58 = vmul.f32 %v10841_v55, %v7754_v31  ;;  %v2634_v19 = vadd.f32 %v2632_v39, %v2628_v59  ;;  %v10844_v9 = vstv %s7644_s4  ;;  %s10852_s4 = sld [smem:[#allocation88_spill]] }
 0x2fc   : > { %v2643_v13 = vmul.f32 %v10844_v9, %v7938_v51  ;;  %v10845_v12 = vmov %v10844_v9  ;;  %v10846_v14 = vrot.slane %v7991_v7, 2  ;;  %v10847_v27 = vmov %v10841_v55 }
 0x2fd   : > { %v2644_v47 = vmul.f32 %v10845_v12, %v7941_v8  ;;  %v8169_v26 = vmul.f32 %v10847_v27, %v7757_v49  ;;  %v10848_v48 = vstv %s10835_s20  ;;  %v2639_v38 = vadd.f32 %v2637_v10, %v2633_v54  ;;  %s10893_s20 = sld [smem:[#allocation101_spill]] }
 0x2fe   : > { %v2415_v45 = vadd.f32 %v10846_v14, %v2403_v56  ;;  %v2655_v43 = vmul.f32 %v10848_v48, %v7754_v31  ;;  %v10849_v24 = vmov %v10848_v48  ;;  %v2640_v59 = vadd.f32 %v2638_v16, %v2634_v19 }
 0x2ff   : > { %v2656_v39 = vmul.f32 %v10849_v24, %v7757_v49  ;;  %v10850_v42 = vstv %s10838_s26  ;;  %v10853_v56 = vrot.slane %v7996_v28, 2  ;;  %v10854_v9 = vrot.slane %v8018_v4, 2  ;;  %s10896_s26 = sld [smem:[#allocation103_spill]] }
 0x300   : > { %v2649_v60 = vmul.f32 %v10850_v42, %v7979_v37  ;;  %v10851_v18 = vmov %v10850_v42  ;;  %v10855_v14 = vstv %s10842_s5  ;;  %v10857_v54 = vstv %s10843_s15  ;;  %s10897_s5 = sld [smem:[#allocation84_spill]]  ;;  %s10898_s15 = sld [smem:[#allocation104_spill]] }
 0x301   : > { %v2650_v7 = vmul.f32 %v10851_v18, %v7982_v46  ;;  %v2416_v55 = vadd.f32 %v10853_v56, %v2404_v1  ;;  %v2427_v12 = vadd.f32 %v10854_v9, %v2415_v45  ;;  %v2667_v27 = vmul.f32 %v10855_v14, %v7780_v5 }
 0x302   : > { %v10856_v10 = vmov %v10855_v14  ;;  %v8196_v19 = vmul.f32 %v10857_v54, %v7780_v5  ;;  %v10858_v48 = vmov %v10857_v54  ;;  %v2645_v28 = vadd.f32 %v2643_v13, %v2639_v38 }
 0x303   : > { %v2668_v16 = vmul.f32 %v10856_v10, %v7783_v22  ;;  %v8201_v24 = vmul.f32 %v10858_v48, %v7783_v22  ;;  %v2646_v1 = vadd.f32 %v2644_v47, %v2640_v59  ;;  %v2659_v42 = vrot.slane %v2655_v43, 1 }
 0x304   : > { %v2660_v18 = vrot.slane %v2656_v39, 1  ;;  %v2651_v56 = vadd.f32 %v2649_v60, %v2645_v28  ;;  %v10861_v14 = vstv %s10852_s4  ;;  %v10863_v13 = vrot.slane %v8029_v52, 2  ;;  %s10907_s4 = sld [smem:[#allocation46_spill]] }
 0x305   : > { %v2652_v9 = vadd.f32 %v2650_v7, %v2646_v1  ;;  %v2679_v10 = vmul.f32 %v10861_v14, %v7806_v57  ;;  %v10862_v54 = vmov %v10861_v14  ;;  %v10864_v38 = vrot.slane %v7453_v15, 2 }
 0x306   : > { %v2680_v48 = vmul.f32 %v10862_v54, %v7809_v32  ;;  %v2428_v47 = vadd.f32 %v10863_v13, %v2416_v55  ;;  %v2671_v4 = vrot.slane %v2667_v27, 1  ;;  %v2672_v43 = vrot.slane %v2668_v16, 1 }
 0x307   : > { %v2439_v59 = vadd.f32 %v10864_v38, %v2427_v12  ;;  %v2663_v39 = vadd.f32 %v2659_v42, %v2651_v56  ;;  %v2664_v45 = vadd.f32 %v2660_v18, %v2652_v9  ;;  %v10866_v60 = vstv %s10859_s12  ;;  %s10909_s12 = sld [smem:[#allocation89_spill]] }
 0x308   : > { %v2691_v7 = vmul.f32 %v10866_v60, %v7844_v6  ;;  %v10867_v28 = vmov %v10866_v60  ;;  %v10868_v55 = vstv %s10860_s24  ;;  %v2683_v18 = vrot.slane %v2679_v10, 1  ;;  %s10910_s24 = sld [smem:[#allocation107_spill]] }
 0x309   : > { %v2692_v1 = vmul.f32 %v10867_v28, %v7847_v33  ;;  %v8226_v15 = vmul.f32 %v10868_v55, %v7806_v57  ;;  %v10869_v12 = vmov %v10868_v55  ;;  %v2675_v16 = vadd.f32 %v2671_v4, %v2663_v39 }
 0x30a   : > { %v8231_v27 = vmul.f32 %v10869_v12, %v7809_v32  ;;  %v2676_v42 = vadd.f32 %v2672_v43, %v2664_v45  ;;  %v2684_v56 = vrot.slane %v2680_v48, 1  ;;  %v10872_v9 = vrot.slane %v7464_v40, 2 }
 0x30b   : > { %v10873_v13 = vrot.slane %v8034_v21, 2  ;;  %v10874_v60 = vstv %s10865_s22  ;;  %v2687_v52 = vadd.f32 %v2683_v18, %v2675_v16  ;;  %v2695_v4 = vrot.slane %v2691_v7, 1  ;;  %s10911_s22 = sld [smem:[#allocation93_spill]] }
 0x30c   : > { %v2440_v54 = vadd.f32 %v10872_v9, %v2428_v47  ;;  %v2715_v28 = vmul.f32 %v10874_v60, %v7886_v61  ;;  %v10875_v55 = vmov %v10874_v60  ;;  %v2688_v14 = vadd.f32 %v2684_v56, %v2676_v42 }
 0x30d   : > { %v2451_v38 = vadd.f32 %v10873_v13, %v2439_v59  ;;  %v2716_v12 = vmul.f32 %v10875_v55, %v7889_v41  ;;  %v2696_v45 = vrot.slane %v2692_v1, 1  ;;  %v2519_v10 = vrot.slane %v8226_v15, 3 }
 0x30e   : > { %v2520_v40 = vrot.slane %v8231_v27, 3  ;;  %v10878_v21 = vstv %s10870_s28  ;;  %v2699_v43 = vadd.f32 %v2695_v4, %v2687_v52  ;;  %v10881_v7 = vstv %s10871_s2  ;;  %s10912_s28 = sld [smem:[#allocation109_spill]]  ;;  %s10929_s2 = sld [smem:[#allocation96_spill]] }
 0x30f   : > { %v8248_v48 = vmul.f32 %v10878_v21, %v7844_v6  ;;  %v10879_v47 = vmov %v10878_v21  ;;  %v2700_v39 = vadd.f32 %v2696_v45, %v2688_v14  ;;  %v2727_v1 = vmul.f32 %v10881_v7, %v7902_v3 }
 0x310   : > { %v8253_v59 = vmul.f32 %v10879_v47, %v7847_v33  ;;  %v10882_v16 = vmov %v10881_v7  ;;  %v10883_v18 = vrot.slane %v8042_v50, 2  ;;  %v2463_v9 = vadd.f32 %v2459_v62, %v2451_v38 }
 0x311   : > { %v2728_v42 = vmul.f32 %v10882_v16, %v7905_v0  ;;  %v2719_v13 = vrot.slane %v2715_v28, 1  ;;  %v2720_v60 = vrot.slane %v2716_v12, 1  ;;  %v10885_v55 = vrot.slane %v7481_v35, 1 }
 0x312   : > { %v2452_v56 = vadd.f32 %v10883_v18, %v2440_v54  ;;  %v10886_v14 = vrot.slane %v7491_v63, 1  ;;  %v10887_v45 = vstv %s10876_s29  ;;  %v10889_v54 = vstv %s10877_s1  ;;  %s10933_s29 = sld [smem:[#allocation51_spill]]  ;;  %s10934_s1 = sld [smem:[#allocation106_spill]] }
 0x313   : > { %v2711_v52 = vadd.f32 %v10885_v55, %v2699_v43  ;;  %v2739_v21 = vmul.f32 %v10887_v45, %v7938_v51  ;;  %v10888_v47 = vmov %v10887_v45  ;;  %v8278_v20 = vmul.f32 %v10889_v54, %v7886_v61 }
 0x314   : > { %v2712_v4 = vadd.f32 %v10886_v14, %v2700_v39  ;;  %v2740_v50 = vmul.f32 %v10888_v47, %v7941_v8  ;;  %v10890_v62 = vmov %v10889_v54  ;;  %v10891_v35 = vstv %s10880_s23  ;;  %s10944_s23 = sld [smem:[#allocation111_spill]] }
 0x315   : > { %v8283_v38 = vmul.f32 %v10890_v62, %v7889_v41  ;;  %v2751_v28 = vmul.f32 %v10891_v35, %v7979_v37  ;;  %v10892_v63 = vmov %v10891_v35  ;;  %v2723_v43 = vadd.f32 %v2719_v13, %v2711_v52 }
 0x316   : > { %v2752_v12 = vmul.f32 %v10892_v63, %v7982_v46  ;;  %v2724_v39 = vadd.f32 %v2720_v60, %v2712_v4  ;;  %v2731_v7 = vrot.slane %v2727_v1, 1  ;;  %v2732_v16 = vrot.slane %v2728_v42, 1 }
 0x317   : > { %v2464_v18 = vadd.f32 %v2460_v44, %v2452_v56  ;;  %v2475_v55 = vadd.f32 %v2471_v53, %v2463_v9  ;;  %v10894_v14 = vstv %s10884_s18  ;;  %v2743_v13 = vrot.slane %v2739_v21, 1  ;;  %s8648_s18 = sld [smem:[#allocation11 + $0x6c]] }
 0x318   : > { %v2763_v45 = vmul.f32 %v10894_v14, %v7754_v31  ;;  %v10895_v47 = vmov %v10894_v14  ;;  %v2735_v62 = vadd.f32 %v2731_v7, %v2723_v43  ;;  %v2736_v35 = vadd.f32 %v2732_v16, %v2724_v39 }
 0x319   : > { %v2764_v54 = vmul.f32 %v10895_v47, %v7757_v49  ;;  %v2744_v1 = vrot.slane %v2740_v50, 1  ;;  %v2531_v42 = vrot.slane %v8248_v48, 3  ;;  %v2532_v34 = vrot.slane %v8253_v59, 3 }
 0x31a   : > { %v2755_v25 = vrot.slane %v2751_v28, 1  ;;  %v2756_v44 = vrot.slane %v2752_v12, 1  ;;  %v2747_v53 = vadd.f32 %v2743_v13, %v2735_v62  ;;  %v10899_v9 = vstv %s10893_s20  ;;  %s8659_s20 = sld [smem:[#allocation11 + $0x65]] }
 0x31b   : > { %v2748_v56 = vadd.f32 %v2744_v1, %v2736_v35  ;;  %v2775_v60 = vmul.f32 %v10899_v9, %v7780_v5  ;;  %v10900_v52 = vmov %v10899_v9  ;;  %v2476_v21 = vadd.f32 %v2472_v23, %v2464_v18 }
 0x31c   : > { %v2776_v4 = vmul.f32 %v10900_v52, %v7783_v22  ;;  %v2487_v50 = vadd.f32 %v2483_v30, %v2475_v55  ;;  %v2767_v63 = vrot.slane %v2763_v45, 2  ;;  %v2768_v43 = vrot.slane %v2764_v54, 2 }
 0x31d   : > { %v2759_v28 = vadd.f32 %v2755_v25, %v2747_v53  ;;  %v2760_v39 = vadd.f32 %v2756_v44, %v2748_v56  ;;  %v10901_v12 = vstv %s10896_s26  ;;  %v10903_v47 = vstv %s10897_s5  ;;  %s8673_s26 = sld [smem:[#allocation11 + $0x6d]]  ;;  %s8675_s5 = sld [smem:[#allocation11 + $0x6e]] }
 0x31e   : > { %v2787_v7 = vmul.f32 %v10901_v12, %v7806_v57  ;;  %v10902_v16 = vmov %v10901_v12  ;;  %v8322_v62 = vmul.f32 %v10903_v47, %v7902_v3  ;;  %v10904_v11 = vmov %v10903_v47 }
 0x31f   : > { %v2788_v14 = vmul.f32 %v10902_v16, %v7809_v32  ;;  %v8327_v23 = vmul.f32 %v10904_v11, %v7905_v0  ;;  %v10905_v29 = vstv %s10898_s15  ;;  %v2771_v45 = vadd.f32 %v2767_v63, %v2759_v28  ;;  %s8688_s15 = sld [smem:[#allocation11 + $0x6f]] }
 0x320   : > { %v2799_v30 = vmul.f32 %v10905_v29, %v7844_v6  ;;  %v10906_v18 = vmov %v10905_v29  ;;  %v2772_v54 = vadd.f32 %v2768_v43, %v2760_v39  ;;  %v2779_v35 = vrot.slane %v2775_v60, 2 }
 0x321   : > { %v2800_v55 = vmul.f32 %v10906_v18, %v7847_v33  ;;  %v2780_v13 = vrot.slane %v2776_v4, 2  ;;  %v2488_v1 = vadd.f32 %v2484_v36, %v2476_v21  ;;  %v10908_v25 = vrot.slane %v8156_v58, 3 }
 0x322   : > { %v2555_v53 = vrot.slane %v8278_v20, 3  ;;  %v2556_v56 = vrot.slane %v8283_v38, 3  ;;  %v2783_v9 = vadd.f32 %v2779_v35, %v2771_v45  ;;  %v2791_v63 = vrot.slane %v2787_v7, 2 }
 0x323   : > { %v2499_v44 = vadd.f32 %v10908_v25, %v2487_v50  ;;  %v2784_v52 = vadd.f32 %v2780_v13, %v2772_v54  ;;  %v2792_v60 = vrot.slane %v2788_v14, 2  ;;  %v2567_v4 = vrot.slane %v8322_v62, 3 }
 0x324   : > { %v2568_v2 = vrot.slane %v8327_v23, 3  ;;  %v2803_v36 = vrot.slane %v2799_v30, 2  ;;  %v2804_v58 = vrot.slane %v2800_v55, 2  ;;  %v2795_v21 = vadd.f32 %v2791_v63, %v2783_v9 }
 0x325   : > { %v2796_v50 = vadd.f32 %v2792_v60, %v2784_v52  ;;  %v10913_v43 = vstv %s10907_s4  ;;  %v10915_v7 = vrot.slane %v8169_v26, 3  ;;  %v10916_v14 = vrot.slane %v8196_v19, 3  ;;  %s8703_s4 = sld [smem:[#allocation11 + $0x68]] }
 0x326   : > { %v2823_v28 = vmul.f32 %v10913_v43, %v7886_v61  ;;  %v10914_v39 = vmov %v10913_v43  ;;  %v10917_v11 = vstv %s10909_s12  ;;  %v2807_v55 = vadd.f32 %v2803_v36, %v2795_v21  ;;  %v10927_v21 = vld [vmem:[#allocation201_spill] sm:$0xff]  ;;  %s8705_s12 = sld [smem:[#allocation11 + $0x71]] }
 0x327   : > { %v2824_v12 = vmul.f32 %v10914_v39, %v7889_v41  ;;  %v2500_v16 = vadd.f32 %v10915_v7, %v2488_v1  ;;  %v2511_v47 = vadd.f32 %v10916_v14, %v2499_v44  ;;  %v8356_v29 = vmul.f32 %v10917_v11, %v7938_v51 }
 0x328   : > { %v10918_v30 = vmov %v10917_v11  ;;  %v2808_v45 = vadd.f32 %v2804_v58, %v2796_v50  ;;  %v10919_v54 = vstv %s10910_s24  ;;  %v10921_v19 = vstv %s10911_s22  ;;  %s8720_s24 = sld [smem:[#allocation11 + $0x72]]  ;;  %s8729_s22 = sld [smem:[#allocation11 + $0x73]] }
 0x329   : > { %v8361_v18 = vmul.f32 %v10918_v30, %v7941_v8  ;;  %v2835_v35 = vmul.f32 %v10919_v54, %v7902_v3  ;;  %v10920_v26 = vmov %v10919_v54  ;;  %v8372_v1 = vmul.f32 %v10921_v19, %v7979_v37 }
 0x32a   : > { %v2836_v13 = vmul.f32 %v10920_v26, %v7905_v0  ;;  %v10922_v25 = vmov %v10921_v19  ;;  %v10924_v9 = vstv %s10912_s28  ;;  %v10926_v36 = vrot.slane %v7494_v17, 2  ;;  %s8736_s28 = sld [smem:[#allocation11 + $0x74]] }
 0x32b   : > { %v8377_v44 = vmul.f32 %v10922_v25, %v7982_v46  ;;  %v2847_v52 = vmul.f32 %v10924_v9, %v7938_v51  ;;  %v10925_v63 = vmov %v10924_v9  ;;  %v10928_v50 = vrot.slane %v10927_v21, 2 }
 0x32c   : > { %v2848_v60 = vmul.f32 %v10925_v63, %v7941_v8  ;;  %v2819_v58 = vadd.f32 %v10926_v36, %v2807_v55  ;;  %v2827_v39 = vrot.slane %v2823_v28, 2  ;;  %v2828_v7 = vrot.slane %v2824_v12, 2 }
 0x32d   : > { %10923 = vst [vmem:[#allocation202_spill] sm:$0xff] %v8377_v44  ;;  %v2820_v43 = vadd.f32 %v10928_v50, %v2808_v45  ;;  %v10930_v14 = vrot.slane %v8201_v24, 3  ;;  %v2523_v30 = vadd.f32 %v2519_v10, %v2511_v47  ;;  %v10931_v54 = vstv %s7723_s14  ;;  %s10937_s14 = sld [smem:[#allocation48_spill]] }
 0x32e   : > { %v2859_v26 = vmul.f32 %v10931_v54, %v7979_v37  ;;  %v10932_v19 = vmov %v10931_v54  ;;  %v2831_v55 = vadd.f32 %v2827_v39, %v2819_v58  ;;  %v2839_v9 = vrot.slane %v2835_v35, 2 }
 0x32f   : > { %v2512_v11 = vadd.f32 %v10930_v14, %v2500_v16  ;;  %v2860_v17 = vmul.f32 %v10932_v19, %v7982_v46  ;;  %v2832_v25 = vadd.f32 %v2828_v7, %v2820_v43  ;;  %v2840_v28 = vrot.slane %v2836_v13, 2 }
 0x330   : > { %v2579_v12 = vrot.slane %v8356_v29, 3  ;;  %v2580_v24 = vrot.slane %v8361_v18, 3  ;;  %v2851_v15 = vrot.slane %v2847_v52, 2  ;;  %v2852_v10 = vrot.slane %v2848_v60, 2 }
 0x331   : > { %v2843_v16 = vadd.f32 %v2839_v9, %v2831_v55  ;;  %v2844_v47 = vadd.f32 %v2840_v28, %v2832_v25  ;;  %v10935_v45 = vstv %s10929_s2  ;;  %v2524_v13 = vadd.f32 %v2520_v40, %v2512_v11  ;;  %s8738_s2 = sld [smem:[#allocation11 + $0x75]] }
 0x332   : > { %v2871_v63 = vmul.f32 %v10935_v45, %v7754_v31  ;;  %v10936_v35 = vmov %v10935_v45  ;;  %v2535_v58 = vadd.f32 %v2531_v42, %v2523_v30  ;;  %v2863_v52 = vrot.slane %v2859_v26, 2 }
 0x333   : > { %v2872_v36 = vmul.f32 %v10936_v35, %v7757_v49  ;;  %v2864_v60 = vrot.slane %v2860_v17, 2  ;;  %v2855_v21 = vadd.f32 %v2851_v15, %v2843_v16  ;;  %v2856_v50 = vadd.f32 %v2852_v10, %v2844_v47 }
 0x334   : > { %v10938_v43 = vstv %s10933_s29  ;;  %v10940_v27 = vstv %s10934_s1  ;;  %v10942_v42 = vstv %s7741_s30  ;;  %v2875_v55 = vrot.slane %v2871_v63, 3  ;;  %s10957_s30 = sld [smem:[#allocation112_spill]]  ;;  %s8747_s29 = sld [smem:[#allocation11 + $0x76]] }
 0x335   : > { %v2883_v39 = vmul.f32 %v10938_v43, %v7780_v5  ;;  %v10939_v7 = vmov %v10938_v43  ;;  %v2981_v40 = vmul.f32 %v10940_v27, %v7754_v31  ;;  %v10941_v48 = vmov %v10940_v27  ;;  %s8760_s1 = sld [smem:[#allocation11 + $0x77]] }
 0x336   : > { %v2884_v14 = vmul.f32 %v10939_v7, %v7783_v22  ;;  %v2982_v11 = vmul.f32 %v10941_v48, %v7757_v49  ;;  %v2987_v30 = vmul.f32 %v10942_v42, %v7780_v5  ;;  %v10943_v54 = vmov %v10942_v42  ;;  %v10949_v7 = vld [vmem:[#allocation173_spill] sm:$0xff] }
 0x337   : > { %v2988_v26 = vmul.f32 %v10943_v54, %v7783_v22  ;;  %v2867_v19 = vadd.f32 %v2863_v52, %v2855_v21  ;;  %v2868_v17 = vadd.f32 %v2864_v60, %v2856_v50  ;;  %v2876_v25 = vrot.slane %v2872_v36, 3 }
 0x338   : > { %v10945_v9 = vstv %s10937_s14  ;;  %v10947_v16 = vstv %s7749_s25  ;;  %v2536_v43 = vadd.f32 %v2532_v34, %v2524_v13  ;;  %v10950_v52 = vrot.slane %v10949_v7, 3  ;;  %s10962_s25 = sld [smem:[#allocation114_spill]]  ;;  %s8767_s14 = sld [smem:[#allocation11 + $0x69]] }
 0x339   : > { %v2983_v28 = vadd.f32 %v2981_v40, %v10945_v9  ;;  %v10946_v15 = vmov %v10945_v9  ;;  %v2993_v47 = vmul.f32 %v10947_v16, %v7806_v57  ;;  %v10948_v45 = vmov %v10947_v16 }
 0x33a   : > { %v2984_v10 = vadd.f32 %v2982_v11, %v10946_v15  ;;  %v2994_v35 = vmul.f32 %v10948_v45, %v7809_v32  ;;  %v2547_v60 = vadd.f32 %v10950_v52, %v2535_v58  ;;  %v2879_v63 = vadd.f32 %v2875_v55, %v2867_v19  ;;  %v10955_v55 = vld [vmem:[#allocation200_spill] sm:$0xff] }
 0x33b   : > { %v2880_v21 = vadd.f32 %v2876_v25, %v2868_v17  ;;  %v2989_v36 = vadd.f32 %v2987_v30, %v2983_v28  ;;  %v10951_v27 = vstv %s7775_s6  ;;  %v2887_v42 = vrot.slane %v2883_v39, 3  ;;  %s8589_s6 = sld [smem:[#allocation11 + $0x62]] }
 0x33c   : > { %v2990_v50 = vadd.f32 %v2988_v26, %v2984_v10  ;;  %v2999_v40 = vmul.f32 %v10951_v27, %v7844_v6  ;;  %v10952_v48 = vmov %v10951_v27  ;;  %v2888_v54 = vrot.slane %v2884_v14, 3 }
 0x33d   : > { %v3000_v11 = vmul.f32 %v10952_v48, %v7847_v33  ;;  %v10953_v59 = vstv %s10944_s23  ;;  %v2995_v19 = vadd.f32 %v2993_v47, %v2989_v36  ;;  %v10956_v25 = vrot.slane %v10955_v55, 3  ;;  %s8778_s23 = sld [smem:[#allocation11 + $0x78]] }
 0x33e   : > { %v2895_v34 = vmul.f32 %v10953_v59, %v7806_v57  ;;  %v10954_v13 = vmov %v10953_v59  ;;  %v2996_v17 = vadd.f32 %v2994_v35, %v2990_v50  ;;  %v2559_v14 = vadd.f32 %v2555_v53, %v2547_v60  ;;  %v10963_v60 = vld [vmem:[#allocation185_spill] sm:$0xff] }
 0x33f   : > { %v2896_v58 = vmul.f32 %v10954_v13, %v7809_v32  ;;  %v2548_v39 = vadd.f32 %v10956_v25, %v2536_v43  ;;  %v2891_v9 = vadd.f32 %v2887_v42, %v2879_v63  ;;  %v2892_v28 = vadd.f32 %v2888_v54, %v2880_v21  ;;  %v10964_v21 = vld [vmem:[#allocation95_spill] sm:$0xff] }
 0x340   : > { %v3001_v15 = vadd.f32 %v2999_v40, %v2995_v19  ;;  %v3002_v10 = vadd.f32 %v3000_v11, %v2996_v17  ;;  %v10958_v16 = vstv %s7789_s0  ;;  %v2899_v35 = vrot.slane %v2895_v34, 3  ;;  %s8579_s0 = sld [smem:[#allocation11 + $0x60]] }
 0x341   : > { %v3011_v45 = vmul.f32 %v10958_v16, %v7886_v61  ;;  %v10959_v7 = vmov %v10958_v16  ;;  %v2900_v52 = vrot.slane %v2896_v58, 3  ;;  %v10960_v43 = vstv %s7725_s3  ;;  %s8584_s3 = sld [smem:[#allocation11 + $0x61]] }
 0x342   : > { %v3012_v47 = vmul.f32 %v10959_v7, %v7889_v41  ;;  %v2907_v36 = vmul.f32 %v10960_v43, %v7844_v6  ;;  %v10961_v20 = vmov %v10960_v43  ;;  %v3007_v63 = vadd.f32 %v10963_v60, %v3001_v15 }
 0x343   : > { %v2908_v53 = vmul.f32 %v10961_v20, %v7847_v33  ;;  %v3008_v50 = vadd.f32 %v10964_v21, %v3002_v10  ;;  %v10965_v27 = vstv %s7801_s17  ;;  %v2560_v42 = vadd.f32 %v2556_v56, %v2548_v39  ;;  %s11004_s17 = sld [smem:[#allocation123_spill]] }
 0x344   : > { %v3017_v40 = vmul.f32 %v10965_v27, %v7902_v3  ;;  %v10966_v48 = vmov %v10965_v27  ;;  %v2903_v54 = vadd.f32 %v2899_v35, %v2891_v9  ;;  %v2904_v59 = vadd.f32 %v2900_v52, %v2892_v28 }
 0x345   : > { %v3018_v11 = vmul.f32 %v10966_v48, %v7905_v0  ;;  %v10967_v34 = vstv %s10957_s30  ;;  %v3013_v58 = vadd.f32 %v3011_v45, %v3007_v63  ;;  %v3014_v19 = vadd.f32 %v3012_v47, %v3008_v50  ;;  %s8791_s30 = sld [smem:[#allocation11 + $0x7a]] }
 0x346   : > { %v2931_v13 = vmul.f32 %v10967_v34, %v7886_v61  ;;  %v10968_v17 = vstv %s7819_s10  ;;  %v2911_v10 = vrot.slane %v2907_v36, 3  ;;  %v2912_v38 = vrot.slane %v2908_v53, 3  ;;  %s10977_s10 = sld [smem:[#allocation116_spill]] }
 0x347   : > { %v3023_v55 = vmul.f32 %v10968_v17, %v7938_v51  ;;  %v10969_v25 = vmov %v10968_v17  ;;  %v10970_v56 = vstv %s10962_s25  ;;  %v3019_v16 = vadd.f32 %v3017_v40, %v3013_v58  ;;  %v10980_v58 = vld [vmem:[#allocation178_spill] sm:$0xff]  ;;  %s8800_s25 = sld [smem:[#allocation11 + $0x7b]] }
 0x348   : > { %v3024_v15 = vmul.f32 %v10969_v25, %v7941_v8  ;;  %v3035_v39 = vmul.f32 %v10970_v56, %v7754_v31  ;;  %v10971_v9 = vmov %v10970_v56  ;;  %v3020_v45 = vadd.f32 %v3018_v11, %v3014_v19 }
 0x349   : > { %v3036_v28 = vmul.f32 %v10971_v9, %v7757_v49  ;;  %v10972_v7 = vstv %s7821_s13  ;;  %v8506_v43 = vadd.f32 %v2567_v4, %v2559_v14  ;;  %v8510_v36 = vadd.f32 %v2568_v2, %v2560_v42  ;;  %s8546_s13 = sld [smem:[#allocation11 + $0x59]] }
 0x34a   : > { %v3029_v47 = vmul.f32 %v10972_v7, %v7979_v37  ;;  %v10973_v35 = vmov %v10972_v7  ;;  %v2915_v20 = vadd.f32 %v2911_v10, %v2903_v54  ;;  %v2916_v53 = vadd.f32 %v2912_v38, %v2904_v59 }
 0x34b   : > { %v3030_v52 = vmul.f32 %v10973_v35, %v7982_v46  ;;  %v3025_v60 = vadd.f32 %v3023_v55, %v3019_v16  ;;  %v3026_v63 = vadd.f32 %v3024_v15, %v3020_v45  ;;  %v10974_v21 = vstv %s7769_s21  ;;  %v10982_v55 = vld [vmem:[#allocation179_spill] sm:$0xff]  ;;  %s10986_s21 = sld [smem:[#allocation120_spill]] }
 0x34c   : > { %v3047_v50 = vmul.f32 %v10974_v21, %v7780_v5  ;;  %v10975_v27 = vmov %v10974_v21  ;;  %v10976_v62 = vmov %v10967_v34  ;;  %v2935_v14 = vrot.slane %v2931_v13, 3 }
 0x34d   : > { %v3048_v40 = vmul.f32 %v10975_v27, %v7783_v22  ;;  %v2932_v4 = vmul.f32 %v10976_v62, %v7889_v41  ;;  %v3039_v23 = vrot.slane %v3035_v39, 1  ;;  %v3040_v2 = vrot.slane %v3036_v28, 1 }
 0x34e   : > { %v3031_v48 = vadd.f32 %v3029_v47, %v3025_v60  ;;  %v3032_v11 = vadd.f32 %v3030_v52, %v3026_v63  ;;  %v10978_v42 = vstv %s7777_s7  ;;  %v10981_v19 = vrot.slane %v10980_v58, 3  ;;  %s10990_s7 = sld [smem:[#allocation117_spill]] }
 0x34f   : > { %v3059_v54 = vmul.f32 %v10978_v42, %v7806_v57  ;;  %v10979_v59 = vmov %v10978_v42  ;;  %v10983_v25 = vrot.slane %v10982_v55, 3  ;;  %v10984_v13 = vstv %s7803_s16  ;;  %s8646_s16 = sld [smem:[#allocation12 + $0x3]] }
 0x350   : > { %v3060_v34 = vmul.f32 %v10979_v59, %v7809_v32  ;;  %v2927_v17 = vadd.f32 %v10981_v19, %v2915_v20  ;;  %v3071_v10 = vmul.f32 %v10984_v13, %v7844_v6  ;;  %v10985_v38 = vmov %v10984_v13 }
 0x351   : > { %v2928_v15 = vadd.f32 %v10983_v25, %v2916_v53  ;;  %v3072_v56 = vmul.f32 %v10985_v38, %v7847_v33  ;;  %v3043_v39 = vadd.f32 %v3039_v23, %v3031_v48  ;;  %v3044_v9 = vadd.f32 %v3040_v2, %v3032_v11 }
 0x352   : > { %v3051_v28 = vrot.slane %v3047_v50, 1  ;;  %v3052_v16 = vrot.slane %v3048_v40, 1  ;;  %v2936_v45 = vrot.slane %v2932_v4, 3  ;;  %v10987_v7 = vstv %s10977_s10  ;;  %s8809_s10 = sld [smem:[#allocation11 + $0x7c]] }
 0x353   : > { %v2943_v47 = vmul.f32 %v10987_v7, %v7902_v3  ;;  %v10988_v35 = vmov %v10987_v7  ;;  %v10989_v20 = vstv %s7767_s11  ;;  %v3063_v21 = vrot.slane %v3059_v54, 1  ;;  %v10999_v7 = vld [vmem:[#allocation81_spill] sm:$0xff]  ;;  %s11003_s11 = sld [smem:[#allocation115_spill]] }
 0x354   : > { %v2944_v52 = vmul.f32 %v10988_v35, %v7905_v0  ;;  %v2955_v53 = vmul.f32 %v10989_v20, %v7938_v51  ;;  %v3055_v60 = vadd.f32 %v3051_v28, %v3043_v39  ;;  %v3056_v63 = vadd.f32 %v3052_v16, %v3044_v9 }
 0x355   : > { %v3064_v50 = vrot.slane %v3060_v34, 1  ;;  %v2939_v27 = vadd.f32 %v2935_v14, %v2927_v17  ;;  %v2940_v40 = vadd.f32 %v2936_v45, %v2928_v15  ;;  %v3075_v62 = vrot.slane %v3071_v10, 1 }
 0x356   : > { %v3076_v4 = vrot.slane %v3072_v56, 1  ;;  %v3067_v23 = vadd.f32 %v3063_v21, %v3055_v60  ;;  %v10991_v48 = vstv %s10986_s21  ;;  %v2947_v58 = vrot.slane %v2943_v47, 3  ;;  %s8813_s21 = sld [smem:[#allocation11 + $0x6a]] }
 0x357   : > { %v3068_v2 = vadd.f32 %v3064_v50, %v3056_v63  ;;  %v3095_v11 = vmul.f32 %v10991_v48, %v7886_v61  ;;  %v10992_v42 = vmov %v10991_v48  ;;  %v2948_v19 = vrot.slane %v2944_v52, 3  ;;  %v11001_v52 = vld [vmem:[#allocation61_spill] sm:$0xff] }
 0x358   : > { %v3096_v59 = vmul.f32 %v10992_v42, %v7889_v41  ;;  %v10993_v54 = vmov %v10989_v20  ;;  %v10994_v14 = vstv %s7855_s9  ;;  %v10995_v55 = vstv %s10990_s7  ;;  %s8576_s9 = sld [smem:[#allocation11 + $0x5f]]  ;;  %s8825_s7 = sld [smem:[#allocation11 + $0x7e]] }
 0x359   : > { %v2956_v34 = vmul.f32 %v10993_v54, %v7941_v8  ;;  %v3107_v17 = vmul.f32 %v10994_v14, %v7902_v3  ;;  %v2967_v25 = vmul.f32 %v10995_v55, %v7979_v37  ;;  %v3079_v15 = vadd.f32 %v3075_v62, %v3067_v23 }
 0x35a   : > { %v3080_v13 = vadd.f32 %v3076_v4, %v3068_v2  ;;  %v10996_v10 = vmov %v10994_v14  ;;  %v2951_v56 = vadd.f32 %v2947_v58, %v2939_v27  ;;  %v2952_v39 = vadd.f32 %v2948_v19, %v2940_v40 }
 0x35b   : > { %v3108_v38 = vmul.f32 %v10996_v10, %v7905_v0  ;;  %v10997_v9 = vmov %v10995_v55  ;;  %v10998_v16 = vstv %s7863_s27  ;;  %v11000_v47 = vrot.slane %v10999_v7, 1  ;;  %s8599_s27 = sld [smem:[#allocation11 + $0x64]] }
 0x35c   : > { %v2968_v28 = vmul.f32 %v10997_v9, %v7982_v46  ;;  %v3119_v45 = vmul.f32 %v10998_v16, %v7938_v51  ;;  %v11002_v20 = vrot.slane %v11001_v52, 1  ;;  %v3099_v63 = vrot.slane %v3095_v11, 1 }
 0x35d   : > { %v3091_v35 = vadd.f32 %v11000_v47, %v3079_v15  ;;  %v3100_v21 = vrot.slane %v3096_v59, 1  ;;  %v2959_v50 = vrot.slane %v2955_v53, 3  ;;  %v2960_v27 = vrot.slane %v2956_v34, 3 }
 0x35e   : > { %v3092_v60 = vadd.f32 %v11002_v20, %v3080_v13  ;;  %v3111_v40 = vrot.slane %v3107_v17, 1  ;;  %v3130_v62 = vstv %s8546_s13  ;;  %v3112_v2 = vrot.slane %v3108_v38, 1  ;;  %s8818_s13 = sld [smem:[#allocation11 + $0x7d]] }
 0x35f   : > { %v3103_v4 = vadd.f32 %v3099_v63, %v3091_v35  ;;  %v11005_v48 = vmov %v10998_v16  ;;  %v2963_v11 = vadd.f32 %v2959_v50, %v2951_v56  ;;  %v2964_v59 = vadd.f32 %v2960_v27, %v2952_v39 }
 0x360   : > { %v3104_v23 = vadd.f32 %v3100_v21, %v3092_v60  ;;  %v3120_v42 = vmul.f32 %v11005_v48, %v7941_v8  ;;  %v3123_v58 = vrot.slane %v3119_v45, 1  ;;  %v11006_v53 = vstv %s11003_s11  ;;  %s8834_s11 = sld [smem:[#allocation11 + $0x7f]] }
 0x361   : > { %v3143_v19 = vmul.f32 %v11006_v53, %v7754_v31  ;;  %v3115_v54 = vadd.f32 %v3111_v40, %v3103_v4  ;;  %v3131_v14 = vmul.f32 %v3130_v62, %v7979_v37  ;;  %v3132_v17 = vmul.f32 %v3130_v62, %v7982_v46 }
 0x362   : > { %v3116_v34 = vadd.f32 %v3112_v2, %v3104_v23  ;;  %v2971_v55 = vrot.slane %v2967_v25, 3  ;;  %v2972_v15 = vrot.slane %v2968_v28, 3  ;;  %v11007_v13 = vmov %v11006_v53 }
 0x363   : > { %v3144_v10 = vmul.f32 %v11007_v13, %v7757_v49  ;;  %v11008_v38 = vstv %s11004_s17  ;;  %v8604_v39 = vadd.f32 %v2579_v12, %v8506_v43  ;;  %v3124_v9 = vrot.slane %v3120_v42, 1  ;;  %s8856_s17 = sld [smem:[#allocation11 + $0x6b]] }
 0x364   : > { %v3155_v56 = vmul.f32 %v11008_v38, %v7780_v5  ;;  %v3127_v16 = vadd.f32 %v3123_v58, %v3115_v54  ;;  %v11009_v25 = vmov %v11008_v38  ;;  %v8614_v45 = vadd.f32 %v2580_v24, %v8510_v36 }
 0x365   : > { %v8609_v28 = vmul.f32 %v11009_v25, %v7783_v22  ;;  %v8616_v7 = vadd.f32 %v2971_v55, %v2963_v11  ;;  %v8618_v29 = vadd.f32 %v2972_v15, %v2964_v59  ;;  %v11010_v12 = vstv %s7857_s19  ;;  %s11014_s19 = sld [smem:[#allocation121_spill]] }
 0x366   : > { %v8623_v43 = vmul.f32 %v11010_v12, %v7806_v57  ;;  %v3128_v47 = vadd.f32 %v3124_v9, %v3116_v34  ;;  %v3135_v35 = vrot.slane %v3131_v14, 1  ;;  %v3136_v52 = vrot.slane %v3132_v17, 1 }
 0x367   : > { %v3147_v20 = vrot.slane %v3143_v19, 2  ;;  %v3148_v60 = vrot.slane %v3144_v10, 2  ;;  %v3159_v18 = vrot.slane %v3155_v56, 2  ;;  %v3202_v63 = vstv %s8576_s9  ;;  %s8841_s9 = sld [smem:[#allocation11 + $0x80]] }
 0x368   : > { %v3214_v24 = vstv %s8579_s0  ;;  %v3139_v36 = vadd.f32 %v3135_v35, %v3127_v16  ;;  %v3160_v21 = vrot.slane %v8609_v28, 2  ;;  %v11011_v50 = vmov %v11010_v12  ;;  %s8852_s0 = sld [smem:[#allocation11 + $0x81]] }
 0x369   : > { %v8631_v27 = vmul.f32 %v11011_v50, %v7809_v32  ;;  %v3226_v40 = vstv %s8584_s3  ;;  %v3171_v62 = vrot.slane %v8623_v43, 2  ;;  %v11012_v4 = vstv %s7865_s8  ;;  %s8661_s8 = sld [smem:[#allocation11 + $0x66]]  ;;  %s8869_s3 = sld [smem:[#allocation11 + $0x83]] }
 0x36a   : > { %v8638_v23 = vmul.f32 %v11012_v4, %v7844_v6  ;;  %v11013_v2 = vmov %v11012_v4  ;;  %v3238_v42 = vstv %s8589_s6  ;;  %v3140_v11 = vadd.f32 %v3136_v52, %v3128_v47  ;;  %s8877_s6 = sld [smem:[#allocation11 + $0x84]] }
 0x36b   : > { %v8643_v48 = vmul.f32 %v11013_v2, %v7847_v33  ;;  %v8651_v59 = vmul.f32 %v3202_v63, %v7886_v61  ;;  %v8654_v58 = vmul.f32 %v3202_v63, %v7889_v41  ;;  %v8657_v53 = vmul.f32 %v3214_v24, %v7902_v3 }
 0x36c   : > { %v8664_v19 = vmul.f32 %v3214_v24, %v7905_v0  ;;  %v8667_v54 = vmul.f32 %v3226_v40, %v7938_v51  ;;  %v8670_v34 = vmul.f32 %v3226_v40, %v7941_v8  ;;  %v3262_v14 = vstv %s8599_s27  ;;  %s8884_s27 = sld [smem:[#allocation11 + $0x85]] }
 0x36d   : > { %v3151_v17 = vadd.f32 %v3147_v20, %v3139_v36  ;;  %v8678_v55 = vmul.f32 %v3238_v42, %v7979_v37  ;;  %v8681_v15 = vmul.f32 %v3238_v42, %v7982_v46  ;;  %v11015_v13 = vstv %s11014_s19  ;;  %v11019_v20 = vld [vmem:[#allocation108_spill] sm:$0xff]  ;;  %s8913_s19 = sld [smem:[#allocation11 + $0x88]] }
 0x36e   : > { %v8686_v10 = vmul.f32 %v11015_v13, %v7754_v31  ;;  %v3172_v38 = vrot.slane %v8631_v27, 2  ;;  %v3183_v56 = vrot.slane %v8638_v23, 2  ;;  %v3184_v9 = vrot.slane %v8643_v48, 2 }
 0x36f   : > { %v11016_v16 = vmov %v11015_v13  ;;  %v3152_v28 = vadd.f32 %v3148_v60, %v3140_v11  ;;  %v8701_v47 = vmul.f32 %v3262_v14, %v7780_v5  ;;  %v3163_v63 = vadd.f32 %v3159_v18, %v3151_v17 }
 0x370   : > { %v8696_v25 = vmul.f32 %v11016_v16, %v7757_v49  ;;  %v8716_v40 = vmul.f32 %v3262_v14, %v7783_v22  ;;  %v3358_v4 = vstv %s8646_s16  ;;  %v3360_v23 = vstv %s8648_s18  ;;  %s8891_s16 = sld [smem:[#allocation11 + $0x86]]  ;;  %s8898_s18 = sld [smem:[#allocation11 + $0x87]] }
 0x371   : > { %v3164_v2 = vadd.f32 %v3160_v21, %v3152_v28  ;;  %v3361_v48 = vmul.f32 %v3360_v23, %v7754_v31  ;;  %v3362_v42 = vmul.f32 %v3360_v23, %v7757_v49  ;;  %v3274_v11 = vstv %s8659_s20  ;;  %s8920_s20 = sld [smem:[#allocation11 + $0x89]] }
 0x372   : > { %v3286_v17 = vstv %s8661_s8  ;;  %v3366_v13 = vstv %s8673_s26  ;;  %v3372_v16 = vstv %s8675_s5  ;;  %v3175_v14 = vadd.f32 %v3171_v62, %v3163_v63  ;;  %s8933_s8 = sld [smem:[#allocation11 + $0x8a]]  ;;  %s8943_s26 = sld [smem:[#allocation11 + $0x8c]] }
 0x373   : > { %v3363_v26 = vadd.f32 %v3361_v48, %v3358_v4  ;;  %v3364_v30 = vadd.f32 %v3362_v42, %v3358_v4  ;;  %v3378_v27 = vstv %s8688_s15  ;;  %v3367_v21 = vmul.f32 %v3366_v13, %v7780_v5  ;;  %s8952_s5 = sld [smem:[#allocation11 + $0x8d]]  ;;  %s8963_s15 = sld [smem:[#allocation11 + $0x8e]] }
 0x374   : > { %v3368_v28 = vmul.f32 %v3366_v13, %v7783_v22  ;;  %v3373_v18 = vmul.f32 %v3372_v16, %v7806_v57  ;;  %v3374_v23 = vmul.f32 %v3372_v16, %v7809_v32  ;;  %v3176_v50 = vadd.f32 %v3172_v38, %v3164_v2 }
 0x375   : > { %v8741_v36 = vmul.f32 %v3274_v11, %v7806_v57  ;;  %v3310_v62 = vstv %s8703_s4  ;;  %v3390_v63 = vstv %s8705_s12  ;;  %v3369_v4 = vadd.f32 %v3367_v21, %v3363_v26  ;;  %s8966_s4 = sld [smem:[#allocation11 + $0x8f]]  ;;  %s11058_s12 = sld [smem:[#allocation31_spill]] }
 0x376   : > { %v3370_v48 = vadd.f32 %v3368_v28, %v3364_v30  ;;  %v3379_v42 = vmul.f32 %v3378_v27, %v7844_v6  ;;  %v3380_v13 = vmul.f32 %v3378_v27, %v7847_v33  ;;  %v3187_v16 = vadd.f32 %v3183_v56, %v3175_v14 }
 0x377   : > { %v8751_v38 = vmul.f32 %v3274_v11, %v7809_v32  ;;  %v8754_v2 = vmul.f32 %v3286_v17, %v7844_v6  ;;  %v8757_v60 = vmul.f32 %v3286_v17, %v7847_v33  ;;  %v3375_v30 = vadd.f32 %v3373_v18, %v3369_v4  ;;  %v11017_v4 = vld [vmem:[#allocation69_spill] sm:$0xff] }
 0x378   : > { %v3376_v26 = vadd.f32 %v3374_v23, %v3370_v48  ;;  %v3396_v21 = vstv %s8720_s24  ;;  %v3188_v27 = vadd.f32 %v3184_v9, %v3176_v50  ;;  %v8764_v14 = vmul.f32 %v3310_v62, %v7886_v61  ;;  %s11059_s24 = sld [smem:[#allocation25_spill]] }
 0x379   : > { %v3391_v11 = vmul.f32 %v3390_v63, %v7886_v61  ;;  %v3381_v28 = vadd.f32 %v3379_v42, %v3375_v30  ;;  %v3392_v18 = vmul.f32 %v3390_v63, %v7889_v41  ;;  %v3402_v23 = vstv %s8729_s22  ;;  %v11020_v42 = vld [vmem:[#allocation196_spill] sm:$0xff]  ;;  %s11060_s22 = sld [smem:[#allocation30_spill]] }
 0x37a   : > { %v3382_v17 = vadd.f32 %v3380_v13, %v3376_v26  ;;  %v11018_v48 = vrot.slane %v11017_v4, 2  ;;  %v8774_v9 = vmul.f32 %v3310_v62, %v7889_v41  ;;  %v3397_v50 = vmul.f32 %v3396_v21, %v7902_v3  ;;  %v11021_v26 = vld [vmem:[#allocation206_spill] sm:$0xff] }
 0x37b   : > { %v3398_v56 = vmul.f32 %v3396_v21, %v7905_v0  ;;  %v3387_v52 = vadd.f32 %v11019_v20, %v3381_v28  ;;  %v3408_v30 = vstv %s8736_s28  ;;  %v3414_v63 = vstv %s8738_s2  ;;  %s11061_s28 = sld [smem:[#allocation28_spill]] }
 0x37c   : > { %v3199_v24 = vadd.f32 %v11018_v48, %v3187_v16  ;;  %v3388_v13 = vadd.f32 %v11020_v42, %v3382_v17  ;;  %v11022_v35 = vrot.slane %v11021_v26, 2  ;;  %v3280_v16 = vrot.slane %v8751_v38, 3 }
 0x37d   : > { %v3403_v48 = vmul.f32 %v3402_v23, %v7938_v51  ;;  %v3393_v43 = vadd.f32 %v3391_v11, %v3387_v52  ;;  %v3404_v12 = vmul.f32 %v3402_v23, %v7941_v8  ;;  %v3426_v44 = vstv %s8747_s29 }
 0x37e   : > { %v3200_v4 = vadd.f32 %v11022_v35, %v3188_v27  ;;  %v3394_v21 = vadd.f32 %v3392_v18, %v3388_v13  ;;  %v11023_v20 = vrot.slane %v8651_v59, 2  ;;  %v3409_v35 = vmul.f32 %v3408_v30, %v7979_v37  ;;  %s4223_s2 = sshll.u32 %s11059_s24, 7 }
 0x37f   : > { %v3410_v27 = vmul.f32 %v3408_v30, %v7982_v46  ;;  %v3415_v17 = vmul.f32 %v3414_v63, %v7754_v31  ;;  %v3399_v42 = vadd.f32 %v3397_v50, %v3393_v43  ;;  %v3416_v52 = vmul.f32 %v3414_v63, %v7757_v49  ;;  %s11063_s29 = sshll.u32 %s11060_s22, 3 }
 0x380   : > { %v3211_v28 = vadd.f32 %v11023_v20, %v3199_v24  ;;  %v3400_v26 = vadd.f32 %v3398_v56, %v3394_v21  ;;  %v3438_v11 = vstv %s8760_s1  ;;  %v11024_v18 = vrot.slane %v8654_v58, 2  ;;  %s334_s1 = scalar_lea.vmem [#allocation14], %s11063_s29 }
 0x381   : > { %v3427_v24 = vmul.f32 %v3426_v44, %v7780_v5  ;;  %v3428_v13 = vmul.f32 %v3426_v44, %v7783_v22  ;;  %v3322_v20 = vstv %s8767_s14  ;;  %v3405_v43 = vadd.f32 %v3403_v48, %v3399_v42  ;;  %s3785_s14 = sshll.u32 %s334_s1, 4  ;;  %p11065_p4 = scmp.ne.s32.totalorder %s11061_s28, 0  ;;  %s9015_s14 = int_to_ptr.vmem [resolvable:$true] %s3785_s14 }
 0x382   : > { %v3212_v23 = vadd.f32 %v11024_v18, %v3200_v4  ;;  %v3406_v56 = vadd.f32 %v3404_v12, %v3400_v26  ;;  %v11025_v50 = vrot.slane %v8657_v53, 2  ;;  %v3419_v58 = vrot.slane %v3415_v17, 1 }
 0x383   : > { %v3439_v4 = vmul.f32 %v3438_v11, %v7806_v57  ;;  %v3450_v21 = vstv %s8778_s23  ;;  %v3411_v18 = vadd.f32 %v3409_v35, %v3405_v43  ;;  %v3420_v44 = vrot.slane %v3416_v52, 1 }
 0x384   : > { %v3223_v63 = vadd.f32 %v11025_v50, %v3211_v28  ;;  %v3412_v59 = vadd.f32 %v3410_v27, %v3406_v56  ;;  %v3440_v30 = vmul.f32 %v3438_v11, %v7809_v32  ;;  %v11026_v12 = vrot.slane %v8664_v19, 2 }
 0x385   : > { %v3431_v53 = vrot.slane %v3427_v24, 1  ;;  %v3432_v28 = vrot.slane %v3428_v13, 1  ;;  %v3451_v42 = vmul.f32 %v3450_v21, %v7844_v6  ;;  %v3423_v26 = vadd.f32 %v3419_v58, %v3411_v18 }
 0x386   : > { %v3224_v48 = vadd.f32 %v11026_v12, %v3212_v23  ;;  %v3424_v17 = vadd.f32 %v3420_v44, %v3412_v59  ;;  %v3452_v50 = vmul.f32 %v3450_v21, %v7847_v33  ;;  %v3474_v62 = vstv %s8791_s30 }
 0x387   : > { %v11027_v35 = vrot.slane %v8667_v54, 2  ;;  %v3316_v52 = vrot.slane %v8774_v9, 3  ;;  %v8831_v19 = vmul.f32 %v3322_v20, %v7902_v3  ;;  %v3443_v11 = vrot.slane %v3439_v4, 1 }
 0x388   : > { %v3435_v23 = vadd.f32 %v3431_v53, %v3423_v26  ;;  %v3436_v24 = vadd.f32 %v3432_v28, %v3424_v17  ;;  %v3444_v13 = vrot.slane %v3440_v30, 1  ;;  %v3486_v59 = vstv %s8800_s25  ;;  %s11064_s25 = sld [smem:[#allocation301_spill]] }
 0x389   : > { %v3235_v27 = vadd.f32 %v11027_v35, %v3223_v63  ;;  %v11028_v43 = vrot.slane %v8670_v34, 2  ;;  %v3455_v54 = vrot.slane %v3451_v42, 1  ;;  %v3475_v63 = vmul.f32 %v3474_v62, %v7886_v61 }
 0x38a   : > { %v3476_v58 = vmul.f32 %v3474_v62, %v7889_v41  ;;  %v3447_v21 = vadd.f32 %v3443_v11, %v3435_v23  ;;  %v3448_v18 = vadd.f32 %v3444_v13, %v3436_v24  ;;  %v3456_v44 = vrot.slane %v3452_v50, 1  ;;  %v11033_v24 = vld [vmem:[#allocation174_spill] sm:$0xff] }
 0x38b   : > { %v3236_v56 = vadd.f32 %v11028_v43, %v3224_v48  ;;  %v3498_v4 = vstv %s8809_s10  ;;  %v11029_v30 = vrot.slane %v8678_v55, 2  ;;  %v8846_v53 = vmul.f32 %v3322_v20, %v7905_v0 }
 0x38c   : > { %v3334_v34 = vstv %s8813_s21  ;;  %v3487_v48 = vmul.f32 %v3486_v59, %v7902_v3  ;;  %v3459_v28 = vadd.f32 %v3455_v54, %v3447_v21  ;;  %v3460_v42 = vadd.f32 %v3456_v44, %v3448_v18  ;;  %s3771_s21 = scalar_lea.sflag [#allocation4], %s11060_s22 }
 0x38d   : > { %v3247_v12 = vadd.f32 %v11029_v30, %v3235_v27  ;;  %v3488_v62 = vmul.f32 %v3486_v59, %v7905_v0  ;;  %v3510_v26 = vstv %s8818_s13  ;;  %v11030_v17 = vrot.slane %v8681_v15, 2  ;;  %v11031_v27 = vld [vmem:[#allocation197_spill] sm:$0xff]  ;;  %s4451_s13 = scalar_lea.vmem %s9015_s14, 128 }
 0x38e   : > { %v3479_v55 = vrot.slane %v3475_v63, 1  ;;  %v3499_v20 = vmul.f32 %v3498_v4, %v7938_v51  ;;  %v3500_v35 = vmul.f32 %v3498_v4, %v7941_v8  ;;  %v11032_v11 = vrot.slane %v11031_v27, 1  ;;  %s9013_s10 = scalar_lea.hbm %s11064_s25, %s4223_s2  ;;  %p4452_p8 = scmp.ne.s32.totalorder %s9015_s14, %s4451_s13 }
 0x38f   : > { %v3248_v50 = vadd.f32 %v11030_v17, %v3236_v56  ;;  %v11034_v13 = vrot.slane %v11033_v24, 1  ;;  %v3480_v43 = vrot.slane %v3476_v58, 1  ;;  %v3522_v54 = vstv %s8825_s7  ;;  %s4551_s7 = smov [#allocation14]  }
 0x390   : > { %v3471_v23 = vadd.f32 %v11032_v11, %v3459_v28  ;;  %v11035_v21 = vrot.slane %v8686_v10, 3  ;;  %v3491_v56 = vrot.slane %v3487_v48, 1  ;;  %v3511_v18 = vmul.f32 %v3510_v26, %v7979_v37  ;;  %p4453_p11 = pnand %p4452_p8, %p11065_p4 }
 0x391   : > { %v3472_v59 = vadd.f32 %v11034_v13, %v3460_v42  ;;  %v3512_v63 = vmul.f32 %v3510_v26, %v7982_v46  ;;  %v3492_v30 = vrot.slane %v3488_v62, 1  ;;  %v3534_v28 = vstv %s8834_s11  ;;  %s4455_s11 = sshll.u32 %s4551_s7, 4  ;;  %s4456_s11 = int_to_ptr.vmem [resolvable:$false] %s4455_s11 }
 0x392   : > { %v3259_v15 = vadd.f32 %v11035_v21, %v3247_v12  ;;  %v3483_v44 = vadd.f32 %v3479_v55, %v3471_v23  ;;  %v11036_v17 = vrot.slane %v8696_v25, 3  ;;  %v3503_v58 = vrot.slane %v3499_v20, 1  ;;  %p4454_p12 = pneg %p4453_p11  ;;  %p4458_p0 = scmp.lt.s32.totalorder %s9015_s14, %s4456_s11 }
 0x393   : > { %v3484_v4 = vadd.f32 %v3480_v43, %v3472_v59  ;;  %v3504_v27 = vrot.slane %v3500_v35, 1  ;;  %v3523_v10 = vmul.f32 %v3522_v54, %v7754_v31  ;;  %v3524_v11 = vmul.f32 %v3522_v54, %v7757_v49 }
 0x394   : > { %v3260_v42 = vadd.f32 %v11036_v17, %v3248_v50  ;;  %v3495_v12 = vadd.f32 %v3491_v56, %v3483_v44  ;;  %v3546_v26 = vstv %s8841_s9  ;;  %v11037_v55 = vrot.slane %v8701_v47, 3  ;;  %s4457_s9 = scalar_lea.vmem %s4456_s11, 256 }
 0x395   : > { %v3496_v48 = vadd.f32 %v3492_v30, %v3484_v4  ;;  %v3515_v23 = vrot.slane %v3511_v18, 1  ;;  %v3516_v24 = vrot.slane %v3512_v63, 1  ;;  %v3535_v25 = vmul.f32 %v3534_v28, %v7780_v5  ;;  %p4459_p1 = scmp.lt.s32.totalorder %s4457_s9, %s4451_s13 }
 0x396   : > { %v3271_v62 = vadd.f32 %v11037_v55, %v3259_v15  ;;  %v3507_v50 = vadd.f32 %v3503_v58, %v3495_v12  ;;  %v3536_v35 = vmul.f32 %v3534_v28, %v7783_v22  ;;  %v3558_v13 = vstv %s8852_s0 }
 0x397   : > { %v3508_v20 = vadd.f32 %v3504_v27, %v3496_v48  ;;  %v11038_v59 = vrot.slane %v8716_v40, 3  ;;  %v3346_v54 = vstv %s8856_s17  ;;  %v3527_v21 = vrot.slane %v3523_v10, 2  ;;  %p4460_p13 = por %p4459_p1, %p4458_p0 }
 0x398   : > { %v3547_v47 = vmul.f32 %v3546_v26, %v7806_v57  ;;  %v3519_v15 = vadd.f32 %v3515_v23, %v3507_v50  ;;  %v3528_v18 = vrot.slane %v3524_v11, 2  ;;  %v3548_v63 = vmul.f32 %v3546_v26, %v7809_v32 }
 0x399   : > { %v3272_v43 = vadd.f32 %v11038_v59, %v3260_v42  ;;  %v3520_v56 = vadd.f32 %v3516_v24, %v3508_v20  ;;  %v11039_v44 = vrot.slane %v8741_v36, 3  ;;  %v3539_v30 = vrot.slane %v3535_v25, 2  ;;  %p4461_p3 = pnand %p4460_p13, %p4454_p12 }
 0x39a   : > { %v3559_v40 = vmul.f32 %v3558_v13, %v7844_v6  ;;  %v3582_v28 = vstv %s8869_s3  ;;  %v3531_v17 = vadd.f32 %v3527_v21, %v3519_v15  ;;  %v3540_v58 = vrot.slane %v3536_v35, 2 }
 0x39b   : > { %v3283_v4 = vadd.f32 %v11039_v44, %v3271_v62  ;;  %v3532_v42 = vadd.f32 %v3528_v18, %v3520_v56  ;;  %v3560_v27 = vmul.f32 %v3558_v13, %v7847_v33  ;;  %v3284_v10 = vadd.f32 %v3280_v16, %v3272_v43 }
 0x39c   : > { %v8905_v36 = vmul.f32 %v3334_v34, %v7938_v51  ;;  %v8910_v12 = vmul.f32 %v3334_v34, %v7941_v8  ;;  %v3551_v48 = vrot.slane %v3547_v47, 2  ;;  %v3543_v11 = vadd.f32 %v3539_v30, %v3531_v17 }
 0x39d   : > { %v3544_v26 = vadd.f32 %v3540_v58, %v3532_v42  ;;  %v3552_v55 = vrot.slane %v3548_v63, 2  ;;  %v3594_v62 = vstv %s8877_s6  ;;  %v11040_v23 = vrot.slane %v8754_v2, 3  ;;  %v11042_v63 = vld [vmem:[#allocation207_spill] sm:$0xff]  ;;  %v11046_v42 = vld [vmem:[#allocation282_spill] sm:$0xff] }
 0x39e   : > { %v3563_v16 = vrot.slane %v3559_v40, 2  ;;  %v3583_v24 = vmul.f32 %v3582_v28, %v7886_v61  ;;  %v3584_v25 = vmul.f32 %v3582_v28, %v7889_v41  ;;  %v3555_v50 = vadd.f32 %v3551_v48, %v3543_v11  ;;  %v11048_v48 = vld [vmem:[#allocation184_spill] sm:$0xff] }
 0x39f   : > { %v3295_v38 = vadd.f32 %v11040_v23, %v3283_v4  ;;  %v3556_v20 = vadd.f32 %v3552_v55, %v3544_v26  ;;  %v3564_v34 = vrot.slane %v3560_v27, 2  ;;  %v3606_v35 = vstv %s8884_s27 }
 0x3a0   : > { %v11041_v13 = vrot.slane %v8757_v60, 3  ;;  %v3327_v43 = vrot.slane %v8831_v19, 3  ;;  %v3595_v2 = vmul.f32 %v3594_v62, %v7902_v3  ;;  %v3596_v21 = vmul.f32 %v3594_v62, %v7905_v0  ;;  %v11044_v19 = vld [vmem:[#allocation175_spill] sm:$0xff] }
 0x3a1   : > { %v3328_v47 = vrot.slane %v8846_v53, 3  ;;  %v3567_v15 = vadd.f32 %v3563_v16, %v3555_v50  ;;  %v3568_v56 = vadd.f32 %v3564_v34, %v3556_v20  ;;  %v3618_v18 = vstv %s8891_s16 }
 0x3a2   : > { %v3296_v59 = vadd.f32 %v11041_v13, %v3284_v10  ;;  %v11043_v44 = vrot.slane %v11042_v63, 3  ;;  %v3587_v30 = vrot.slane %v3583_v24, 2  ;;  %v3607_v60 = vmul.f32 %v3606_v35, %v7938_v51 }
 0x3a3   : > { %v3608_v40 = vmul.f32 %v3606_v35, %v7941_v8  ;;  %v11045_v28 = vrot.slane %v11044_v19, 2  ;;  %v11047_v58 = vrot.slane %v11046_v42, 2  ;;  %v3588_v27 = vrot.slane %v3584_v25, 2 }
 0x3a4   : > { %v3307_v4 = vadd.f32 %v11043_v44, %v3295_v38  ;;  %v3630_v10 = vstv %s8898_s18  ;;  %v11049_v11 = vrot.slane %v11048_v48, 3  ;;  %v3599_v55 = vrot.slane %v3595_v2, 2 }
 0x3a5   : > { %v3579_v17 = vadd.f32 %v11045_v28, %v3567_v15  ;;  %v3580_v53 = vadd.f32 %v11047_v58, %v3568_v56  ;;  %v3600_v62 = vrot.slane %v3596_v21, 2  ;;  %v3619_v23 = vmul.f32 %v3618_v18, %v7979_v37 }
 0x3a6   : > { %v3308_v26 = vadd.f32 %v11049_v11, %v3296_v59  ;;  %v3620_v24 = vmul.f32 %v3618_v18, %v7982_v46  ;;  %v3642_v50 = vstv %s8913_s19  ;;  %v11050_v20 = vrot.slane %v8764_v14, 3 }
 0x3a7   : > { %v3591_v38 = vadd.f32 %v3587_v30, %v3579_v17  ;;  %v3592_v16 = vadd.f32 %v3588_v27, %v3580_v53  ;;  %v3611_v34 = vrot.slane %v3607_v60, 2  ;;  %v3612_v35 = vrot.slane %v3608_v40, 2 }
 0x3a8   : > { %v3319_v25 = vadd.f32 %v11050_v20, %v3307_v4  ;;  %v3631_v13 = vmul.f32 %v3630_v10, %v7754_v31  ;;  %v3632_v21 = vmul.f32 %v3630_v10, %v7757_v49  ;;  %v3654_v15 = vstv %s8920_s20 }
 0x3a9   : > { %v3603_v59 = vadd.f32 %v3599_v55, %v3591_v38  ;;  %v3604_v2 = vadd.f32 %v3600_v62, %v3592_v16  ;;  %v3320_v56 = vadd.f32 %v3316_v52, %v3308_v26  ;;  %v3347_v18 = vmul.f32 %v3346_v54, %v7979_v37 }
 0x3aa   : > { %v3643_v14 = vmul.f32 %v3642_v50, %v7780_v5  ;;  %v3644_v63 = vmul.f32 %v3642_v50, %v7783_v22  ;;  %v3623_v4 = vrot.slane %v3619_v23, 2  ;;  %v3624_v30 = vrot.slane %v3620_v24, 2 }
 0x3ab   : > { %v3615_v44 = vadd.f32 %v3611_v34, %v3603_v59  ;;  %v3616_v31 = vadd.f32 %v3612_v35, %v3604_v2  ;;  %v3331_v60 = vadd.f32 %v3327_v43, %v3319_v25  ;;  %v3635_v49 = vrot.slane %v3631_v13, 3 }
 0x3ac   : > { %v3655_v40 = vmul.f32 %v3654_v15, %v7806_v57  ;;  %v3666_v19 = vstv %s8933_s8  ;;  %v3636_v28 = vrot.slane %v3632_v21, 3  ;;  %v3656_v5 = vmul.f32 %v3654_v15, %v7809_v32 }
 0x3ad   : > { %v3627_v9 = vadd.f32 %v3623_v4, %v3615_v44  ;;  %v3628_v52 = vadd.f32 %v3624_v30, %v3616_v31  ;;  %v3332_v22 = vadd.f32 %v3328_v47, %v3320_v56  ;;  %v3647_v17 = vrot.slane %v3643_v14, 3  ;;  %v11051_v56 = vld [vmem:[#allocation218_spill] sm:$0xff] }
 0x3ae   : > { %v3648_v42 = vrot.slane %v3644_v63, 3  ;;  %v3690_v58 = vstv %s8943_s26  ;;  %v3667_v57 = vmul.f32 %v3666_v19, %v7844_v6  ;;  %v3668_v27 = vmul.f32 %v3666_v19, %v7847_v33  ;;  %v11053_v63 = vld [vmem:[#allocation219_spill] sm:$0xff] }
 0x3af   : > { %v3639_v43 = vadd.f32 %v3635_v49, %v3627_v9  ;;  %v3640_v53 = vadd.f32 %v3636_v28, %v3628_v52  ;;  %v3339_v10 = vrot.slane %v8905_v36, 3  ;;  %v3340_v48 = vrot.slane %v8910_v12, 3 }
 0x3b0   : > { %v3348_v32 = vmul.f32 %v3346_v54, %v7982_v46  ;;  %v3659_v11 = vrot.slane %v3655_v40, 3  ;;  %v3660_v55 = vrot.slane %v3656_v5, 3  ;;  %v3702_v62 = vstv %s8952_s5 }
 0x3b1   : > { %v3651_v26 = vadd.f32 %v3647_v17, %v3639_v43  ;;  %v3652_v47 = vadd.f32 %v3648_v42, %v3640_v53  ;;  %v3343_v23 = vadd.f32 %v3339_v10, %v3331_v60  ;;  %v3344_v38 = vadd.f32 %v3340_v48, %v3332_v22 }
 0x3b2   : > { %v3691_v6 = vmul.f32 %v3690_v58, %v7886_v61  ;;  %v3692_v33 = vmul.f32 %v3690_v58, %v7889_v41  ;;  %v3671_v24 = vrot.slane %v3667_v57, 3  ;;  %v3672_v12 = vrot.slane %v3668_v27, 3 }
 0x3b3   : > { %v3663_v16 = vadd.f32 %v3659_v11, %v3651_v26  ;;  %v3664_v36 = vadd.f32 %v3660_v55, %v3652_v47  ;;  %v3351_v50 = vrot.slane %v3347_v18, 3  ;;  %v3352_v20 = vrot.slane %v3348_v32, 3  ;;  %v4332_v47 = vld [vmem:[%s11058_s12] sm:$0xff] }
 0x3b4   : > { %v3703_v54 = vmul.f32 %v3702_v62, %v7902_v3  ;;  %v3714_v25 = vstv %s8963_s15  ;;  %v3704_v13 = vmul.f32 %v3702_v62, %v7905_v0  ;;  %v3726_v59 = vstv %s8966_s4  ;;  %v11062_v62 = vld [vmem:[#allocation32_spill] sm:$0xff] }
 0x3b5   : > { %v3675_v34 = vadd.f32 %v3671_v24, %v3663_v16  ;;  %v3676_v35 = vadd.f32 %v3672_v12, %v3664_v36  ;;  %v3355_v2 = vadd.f32 %v3351_v50, %v3343_v23  ;;  %v3356_v21 = vadd.f32 %v3352_v20, %v3344_v38 }
 0x3b6   : > { %v3695_v15 = vrot.slane %v3691_v6, 3  ;;  %v3696_v61 = vrot.slane %v3692_v33, 3  ;;  %v11052_v41 = vrot.slane %v11051_v56, 3  ;;  %v11054_v44 = vrot.slane %v11053_v63, 3 }
 0x3b7   : > { %v3715_v18 = vmul.f32 %v3714_v25, %v7938_v51  ;;  %v3716_v3 = vmul.f32 %v3714_v25, %v7941_v8  ;;  %v3707_v4 = vrot.slane %v3703_v54, 3  ;;  %v3727_v30 = vmul.f32 %v3726_v59, %v7979_v37  ;;  %v11056_v51 = vld [vmem:[#allocation202_spill] sm:$0xff] }
 0x3b8   : > { %v3687_v14 = vadd.f32 %v11052_v41, %v3675_v34  ;;  %v3688_v31 = vadd.f32 %v11054_v44, %v3676_v35  ;;  %v3728_v0 = vmul.f32 %v3726_v59, %v7982_v46  ;;  %v3739_v60 = vrot.slane %v8616_v7, 7 }
 0x3b9   : > { %v3708_v19 = vrot.slane %v3704_v13, 3  ;;  %v3740_v9 = vrot.slane %v8618_v29, 7  ;;  %v11055_v52 = vrot.slane %v8372_v1, 3  ;;  %v11057_v5 = vrot.slane %v11056_v51, 3 }
 0x3ba   : > { %v3699_v49 = vadd.f32 %v3695_v15, %v3687_v14  ;;  %v3700_v40 = vadd.f32 %v3696_v61, %v3688_v31  ;;  %v3719_v37 = vrot.slane %v3715_v18, 3  ;;  %v3720_v42 = vrot.slane %v3716_v3, 3 }
 0x3bb   : > { %v2595_v28 = vadd.f32 %v11055_v52, %v8604_v39  ;;  %v2596_v8 = vadd.f32 %v11057_v5, %v8614_v45  ;;  %v3731_v46 = vrot.slane %v3727_v30, 3  ;;  %v3732_v7 = vrot.slane %v3728_v0, 3 }
 0x3bc   : > { %v3711_v22 = vadd.f32 %v3707_v4, %v3699_v49  ;;  %v3712_v17 = vadd.f32 %v3708_v19, %v3700_v40  ;;  %v3745_v58 = vrot.slane %v3355_v2, 6  ;;  %v3746_v43 = vrot.slane %v3356_v21, 6 }
 0x3bd   : > { %v3755_v1 = vsel %vm2142_vm8, %v2595_v28, %v3739_v60  ;;  %v3756_v39 = vsel %vm2142_vm8, %v2596_v8, %v3740_v9 }
 0x3be   : > { %v3723_v53 = vadd.f32 %v3719_v37, %v3711_v22  ;;  %v3724_v29 = vadd.f32 %v3720_v42, %v3712_v17  ;;  %v3757_v45 = vsel %vm2145_vm9, %v3755_v1, %v3745_v58  ;;  %v3758_v10 = vsel %vm2145_vm9, %v3756_v39, %v3746_v43 }
 0x3c0   : > { %v3735_v57 = vadd.f32 %v3731_v46, %v3723_v53  ;;  %v3736_v27 = vadd.f32 %v3732_v7, %v3724_v29 }
 0x3c2   : > { %v3751_v48 = vrot.slane %v3735_v57, 5  ;;  %v3752_v32 = vrot.slane %v3736_v27, 5 }
 0x3c4   : > { %v3759_v11 = vsel %vm2148_vm10, %v3757_v45, %v3751_v48  ;;  %v3760_v26 = vsel %vm2148_vm10, %v3758_v10, %v3752_v32 }
 0x3c5   : > { %v3761_v55 = vadd.f32 %v4332_v47, %v3759_v11  ;;  %v3762_v23 = vadd.f32 %v3760_v26, %v11062_v62 }
 0x3c7   : > { %v3763_v38 = vmax.f32 %v3761_v55, 0.0  ;;  %v3764_v6 = vmax.f32 %v3762_v23, 0.0 }
 0x3c9   : > { %v3767_v33 = vcombine.low %v3763_v38, %v3764_v6 }
 0x3cb   : > { %3769 = vst [vmem:[%s334_s1] sm:$0xff] %v3767_v33 }
 0x3cc   : > { %4464 = shalt.err (!%p4461_p3)
}
 0x3cd   : > { %s4465_s0 = scalar_lea.hbm %s9013_s10, 128  ;;  %s4469_s6 = scalar_lea.hbm %s11064_s25, 256 }
 0x3ce   : > { %p4466_p6 = scmp.ne.s32.totalorder %s9013_s10, %s4465_s0  ;;  %p4470_p9 = scmp.lt.u32.totalorder %s9013_s10, %s11064_s25 }
 0x3cf   : > { %p4471_p10 = scmp.lt.u32.totalorder %s4469_s6, %s4465_s0  ;;  %p4473_p8 = scmp.lt.u32.totalorder %s4465_s0, %s9013_s10 }
 0x3d0   : > { %p4467_p7 = pnand %p4466_p6, %p11065_p4 }
 0x3d1   : > { %p4472_p2 = por %p4471_p10, %p4470_p9 }
 0x3d2   : > { %p4468_p5 = pneg %p4467_p7 }
 0x3d3   : > { %p4474_p11 = por %p4473_p8, %p4472_p2 }
 0x3d5   : > { %p4475_p12 = pnand %p4474_p11, %p4468_p5 }
 0x3d7   : > { %4478 = shalt.err (!%p4475_p12)
}
 0x3d8   : > { %4246 = dma.vmem_to_hbm [thread:$0]  (%p11065_p4), %s9015_s14, 128, %s9013_s10, %s3771_s21  }
 0x3d9 PF: > { %s11066_s18 = sld [smem:[#allocation21_spill]]  ;;  %s11067_s19 = sld [smem:[#allocation29_spill]] }
 0x3da   : > { %s11068_s20 = sld [smem:[#allocation24_spill]] }
 0x3df   : > { %s3797_s8 = sand.u32 1, %s11066_s18   ;;  %p11069_p0 = scmp.ne.s32.totalorder %s11067_s19, 0 }
 0x3e0   : > { %p11070_p1 = scmp.ge.s32.totalorder %s11068_s20, 2  ;;  %s3798_s26 = scalar_lea.sflag [#allocation4], %s3797_s8 }
 0x3e2   : > { %p4269_p13 = pnand %p11070_p1, %p11069_p0 }
 0x3e4   : > { %4516 = dma.done.wait (!%p4269_p13), %s3798_s26, 128  }
 0x3e5   : > { %4518 = vsyncadd (!%p4269_p13), %s3798_s26, 4294967168  ;;  %s11071_s24 = sld [smem:[#allocation26_spill]]  ;;  %s11072_s21 = sld [smem:[#allocation22_spill]] }
 0x3e6   : > { %s11073_s22 = sld [smem:[#allocation23_spill]]  ;;  %s11074_s23 = sld [smem:[#allocation27_spill]] }
 0x3eb   : > { %p23_p3 = scmp.ge.s32.totalorder %s11071_s24, 4  }
 0x3ed   :  { %25 = sbr.rel (!%p23_p3) target bundleno = 17 (0x11), region = 117 }
 0x3f4   :  { %3803 = vsyncpa [#allocation3], 1 }
 0x3f5   :  { %3805 = vsyncpa [#allocation3 + $0x1], 1 }
 0x3f6   :  { %3806 = vsyncpa [#allocation7], 1 }
 0x3f7   :  { %3807 = vsyncpa [#allocation4], 1 }
 0x3f8   :  { %3809 = vsyncpa [#allocation4 + $0x1], 1 }
 0x3f9   :  { %3810 = vsyncpa [#allocation5], 1 }
 0x3fa   :  { %3812 = vsyncpa [#allocation5 + $0x1], 1 }
 0x3fb   :  { %3813 = vsyncpa [#allocation10], 1 }
 0x3fc   :  { %3814 = vsyncpa [#allocation13], 1 }

</bundles_post_ra>
